<compile_context>
chip_gen: v7x
topology: tpu7x:2x2x1
jax: 0.10.0
libtpu: 0.0.40
codegen_flags: <defaults>
</compile_context>

<pallas_src>
import functools

import numpy as np
import jax
import jax.numpy as jnp
from jax import lax
from jax.experimental import pallas as pl
from jax.experimental.pallas import tpu as pltpu

NUM_CLASSES = 8
# Linear(180, 24) forces 15 * 12 flattened features; the smallest BUFFER_SIZE
# consistent with that through the conv/pool arithmetic is 123.
BUFFER_SIZE = 123

C1, K1, PK1, PS1 = 10, 8, 8, 2      # conv1 out-channels / kernel, pool1 kernel / stride
C2, K2, PK2, PS2 = 15, 6, 6, 4      # conv2 out-channels / kernel, pool2 kernel / stride


def _round_up(n, m):
    return ((n + m - 1) // m) * m


def _speechnet_kernel(x_ref, w1p_ref, w2p_ref, w3a_ref, w4_ref, b4_ref,
                      out_ref, h1_ref, p1_ref, h2_ref, feat_ref,
                      *, L1, L2, L3, L4):
    # Layout: batch tile on lanes (minor axis), stacked features/time on
    # sublanes.  x_ref is (L+1, TB) with a trailing ones row for bias folding.
    TB = x_ref.shape[1]
    ones_row = jnp.ones((1, TB), jnp.float32)

    # ---- Conv1d(1 -> 10, k=8, s=1) + bias: one MXU matmul -------------------
    # W1P rows are channel-major and phase-split (even conv times, then odd),
    # so the MaxPool1d(8, 2) decimation below is a contiguous slice.
    h1_ref[...] = jnp.dot(w1p_ref[...], x_ref[...],
                          preferred_element_type=jnp.float32)      # (C1*L1, TB)

    # ---- MaxPool1d(8, 2) with stride-2 pre-reduction, then ReLU -------------
    # (max is monotone, so ReLU-then-pool == pool-then-ReLU; fewer VPU maxes.)
    NE = (L1 + 1) // PS1                      # even-phase length (58)
    for c in range(C1):
        base = c * L1
        even = h1_ref[base:base + NE, :]      # conv1[c, 0::2]
        odd = h1_ref[base + NE:base + L1, :]  # conv1[c, 1::2]
        m2 = jnp.maximum(even, odd)           # stride-2 pairwise max
        w = jnp.maximum(jnp.maximum(m2[0:L2], m2[1:L2 + 1]),
                        jnp.maximum(m2[2:L2 + 2], m2[3:L2 + 3]))
        p1_ref[c * L2:(c + 1) * L2, :] = jnp.maximum(w, 0.0)
    p1_ref[C1 * L2:C1 * L2 + 1, :] = ones_row     # bias row for conv2 matmul

    # ---- Conv1d(10 -> 15, k=6, s=1) + bias: one MXU matmul ------------------
    # W2P rows are channel-major, phase-split mod 4 (pool stride 4).
    h2_ref[...] = jnp.dot(w2p_ref[...], p1_ref[...],
                          preferred_element_type=jnp.float32)      # (C2*L3, TB)

    # ---- MaxPool1d(6, 4) via the mod-4 phase layout, then ReLU --------------
    n0 = -(-L3 // PS2)                        # 13 (phase 0)
    n1 = -(-(L3 - 1) // PS2)                  # 13 (phase 1)
    n2 = -(-(L3 - 2) // PS2)                  # 12 (phase 2)
    for d in range(C2):
        base = d * L3
        ph0 = h2_ref[base:base + n0, :]
        ph1 = h2_ref[base + n0:base + n0 + n1, :]
        ph2 = h2_ref[base + n0 + n1:base + n0 + n1 + n2, :]
        ph3 = h2_ref[base + n0 + n1 + n2:base + L3, :]
        a = jnp.maximum(jnp.maximum(ph0[0:L4], ph0[1:L4 + 1]),
                        jnp.maximum(ph1[0:L4], ph1[1:L4 + 1]))
        b = jnp.maximum(ph2, ph3)
        # PyTorch Flatten order (feature = channel * L4 + t) falls out of the
        # channel-major stacking along sublanes.
        feat_ref[d * L4:(d + 1) * L4, :] = jnp.maximum(jnp.maximum(a, b), 0.0)
    feat_ref[C2 * L4:C2 * L4 + 1, :] = ones_row   # bias row for linear_one

    # ---- Linear(180 -> 24) + ReLU (b3 folded into the K=181 matmul) ---------
    h3 = jnp.maximum(jnp.dot(w3a_ref[...], feat_ref[...],
                             preferred_element_type=jnp.float32), 0.0)   # (24, TB)

    # ---- Linear(24 -> 8) + LogSoftmax over classes (sublane axis) -----------
    logits = jnp.dot(w4_ref[...], h3,
                     preferred_element_type=jnp.float32) + b4_ref[...]   # (8, TB)
    m = jnp.max(logits, axis=0, keepdims=True)
    s = logits - m
    out_ref[...] = s - jnp.log(jnp.sum(jnp.exp(s), axis=0, keepdims=True))


def prepare_params(params, buffer_size=BUFFER_SIZE):
    """One-time conversion of PyTorch-layout params into kernel layout
    (Toeplitz/unrolled conv matrices, phase-split rows, folded biases)."""
    w1, b1, w2, b2, w3, b3, w4, b4 = [np.asarray(p, np.float32) for p in params]
    L = buffer_size
    L1 = L - K1 + 1
    L2 = (L1 - PK1) // PS1 + 1
    L3 = L2 - K2 + 1
    L4 = (L3 - PK2) // PS2 + 1
    assert C2 * L4 == w3.shape[1], "BUFFER_SIZE incompatible with Linear(180, 24)"

    def phase_order(n, stride):
        return [t for p in range(stride) for t in range(p, n, stride)]

    # Conv1 Toeplitz: (C1*L1, L+1); last column carries b1 (x gets a ones row).
    order1 = phase_order(L1, PS1)
    w1p = np.zeros((C1 * L1, L + 1), np.float32)
    for c in range(C1):
        for r, t in enumerate(order1):
            row = c * L1 + r
            w1p[row, t:t + K1] = w1[c, 0, :]
            w1p[row, L] = b1[c]

    # Conv2 Toeplitz over the channel-major pooled-conv1 stack:
    # (C2*L3, C1*L2+1); last column carries b2 (pooled stack gets a ones row).
    order2 = phase_order(L3, PS2)
    w2p = np.zeros((C2 * L3, C1 * L2 + 1), np.float32)
    for d in range(C2):
        for r, t in enumerate(order2):
            row = d * L3 + r
            for c in range(C1):
                w2p[row, c * L2 + t:c * L2 + t + K2] = w2[d, c, :]
            w2p[row, C1 * L2] = b2[d]

    w3a = np.concatenate([w3, b3[:, None]], axis=1)     # (24, 181), b3 folded
    return (jnp.asarray(w1p), jnp.asarray(w2p), jnp.asarray(w3a),
            jnp.asarray(w4), jnp.asarray(b4[:, None]))


def speechnet_forward(x, prepared_params, *, tile_b=512):
    """x: (B, 1, L) float32 (PyTorch NCW). Returns (B, NUM_CLASSES) log-probs."""
    w1p, w2p, w3a, w4, b4c = prepared_params
    B, c_in, L = x.shape
    assert c_in == 1
    L1 = L - K1 + 1                   # Conv1d(1, 10, 8, 1)
    L2 = (L1 - PK1) // PS1 + 1        # MaxPool1d(8, 2)
    L3 = L2 - K2 + 1                  # Conv1d(10, 15, 6, 1)
    L4 = (L3 - PK2) // PS2 + 1        # MaxPool1d(6, 4)
    assert w1p.shape == (C1 * L1, L + 1)
    assert w2p.shape == (C2 * L3, C1 * L2 + 1)
    assert w3a.shape == (24, C2 * L4 + 1)
    assert L1 % 2 == 0 and (L1 + 1) // PS1 >= L2 + PK1 // PS1 - 1
    assert -(-L3 // PS2) >= L4 + 1 and -(-(L3 - 1) // PS2) >= L4 + 1

    # Batch tiling: the lane (minor) block dim must be a multiple of 128 or the
    # full (padded) batch dim.
    B8 = _round_up(B, 8)
    if B8 <= 128:
        tile = B8                                  # single step; tiny batch
    else:
        tile = min(_round_up(tile_b, 128), _round_up(B8, 128))
        if _round_up(B8, tile) // tile < 2 and tile > 128:
            # Keep >= 2 grid steps so both v7x TensorCores get work.
            tile = _round_up((B8 + 1) // 2, 128)
    B_pad = _round_up(B8, tile)

    x_t = jnp.transpose(x[:, 0, :], (1, 0)).astype(jnp.float32)   # (L, B)
    x_t = jnp.pad(x_t, ((0, 0), (0, B_pad - B)))
    # Trailing ones row folds the conv1 bias into the Toeplitz matmul.
    x_aug = jnp.concatenate([x_t, jnp.ones((1, B_pad), jnp.float32)], axis=0)

    grid = (B_pad // tile,)
    kernel = functools.partial(_speechnet_kernel, L1=L1, L2=L2, L3=L3, L4=L4)

    vmem = pl.BlockSpec(memory_space=pltpu.MemorySpace.VMEM)
    in_specs = [
        pl.BlockSpec((L + 1, tile), lambda i: (0, i)),   # x tile (time, lanes)
        vmem, vmem, vmem, vmem, vmem,                    # weights: whole-array VMEM
    ]
    out_spec = pl.BlockSpec((NUM_CLASSES, tile), lambda i: (0, i))

    macs = int(w1p.size) + int(w2p.size) + int(w3a.size) + int(w4.size)
    cost = pl.CostEstimate(
        flops=2 * macs * B_pad,
        transcendentals=(NUM_CLASSES + 1) * B_pad,
        bytes_accessed=4 * (int(x_aug.size) + NUM_CLASSES * B_pad
                            + int(w1p.size) + int(w2p.size) + int(w3a.size)
                            + int(w4.size) + int(b4c.size)))

    out = pl.pallas_call(
        kernel,
        grid=grid,
        in_specs=in_specs,
        out_specs=out_spec,
        out_shape=jax.ShapeDtypeStruct((NUM_CLASSES, B_pad), jnp.float32),
        scratch_shapes=[
            pltpu.VMEM((C1 * L1, tile), jnp.float32),       # conv1 stack (phase-split)
            pltpu.VMEM((C1 * L2 + 1, tile), jnp.float32),   # pooled1 stack + ones row
            pltpu.VMEM((C2 * L3, tile), jnp.float32),       # conv2 stack (phase-split)
            pltpu.VMEM((C2 * L4 + 1, tile), jnp.float32),   # flat features + ones row
        ],
        compiler_params=pltpu.CompilerParams(
            dimension_semantics=("parallel",),
            vmem_limit_bytes=32 * 1024 * 1024),
        cost_estimate=cost,
    )(x_aug, w1p, w2p, w3a, w4, b4c)

    return jnp.transpose(out[:, :B], (1, 0))                      # (B, NUM_CLASSES)


def init_params(key):
    """Deterministic synthetic parameters (PyTorch-default-style uniform init)."""
    ks = jax.random.split(key, 8)

    def u(k, shape, fan_in):
        bound = 1.0 / jnp.sqrt(jnp.float32(fan_in))
        return jax.random.uniform(k, shape, jnp.float32, -bound, bound)

    w1 = u(ks[0], (C1, 1, K1), 1 * K1)
    b1 = u(ks[1], (C1,), 1 * K1)
    w2 = u(ks[2], (C2, C1, K2), C1 * K2)
    b2 = u(ks[3], (C2,), C1 * K2)
    w3 = u(ks[4], (24, 180), 180)
    b3 = u(ks[5], (24,), 180)
    w4 = u(ks[6], (NUM_CLASSES, 24), 24)
    b4 = u(ks[7], (NUM_CLASSES,), 24)
    return (w1, b1, w2, b2, w3, b3, w4, b4)


def reference_forward(x, params):
    """Pure-JAX/XLA reference (matches PyTorch semantics), used as a check."""
    w1, b1, w2, b2, w3, b3, w4, b4 = params
    dn = ('NCH', 'OIH', 'NCH')
    hp = lax.Precision.HIGHEST
    y = lax.conv_general_dilated(x, w1, (1,), 'VALID', dimension_numbers=dn,
                                 precision=hp)
    y = jnp.maximum(y + b1[None, :, None], 0.0)
    y = lax.reduce_window(y, -jnp.inf, lax.max, (1, 1, 8), (1, 1, 2), 'VALID')
    y = lax.conv_general_dilated(y, w2, (1,), 'VALID', dimension_numbers=dn,
                                 precision=hp)
    y = jnp.maximum(y + b2[None, :, None], 0.0)
    y = lax.reduce_window(y, -jnp.inf, lax.max, (1, 1, 6), (1, 1, 4), 'VALID')
    y = y.reshape(y.shape[0], -1)                 # PyTorch flatten: (B, C*T)
    y = jnp.maximum(jnp.dot(y, w3.T, precision=hp) + b3, 0.0)
    y = jnp.dot(y, w4.T, precision=hp) + b4
    return jax.nn.log_softmax(y, axis=1)


if __name__ == "__main__":
    key = jax.random.PRNGKey(0)
    kp, kx = jax.random.split(key)
    params = init_params(kp)
    prepared = prepare_params(params)
    x = jax.random.normal(kx, (2, 1, BUFFER_SIZE), jnp.float32)

    fwd = jax.jit(speechnet_forward, static_argnames=("tile_b",))
    out = jax.block_until_ready(fwd(x, prepared))
    ref = jax.block_until_ready(reference_forward(x, params))

    assert out.shape == (2, NUM_CLASSES)
    # Tolerance covers possible MXU bf16-pass rounding on the K<=551 matmuls.
    assert bool(jnp.allclose(out, ref, atol=2e-3, rtol=2e-3)), (out, ref)
    print("KERNEL_OK")
</pallas_src>

<mosaic_0001>
module attributes {stable_mosaic.version = 11 : i64} {
  func.func @_speechnet_kernel(%arg0: i32, %arg1: memref<124x8xf32, #tpu.memory_space<vmem>>, %arg2: memref<1160x124xf32, #tpu.memory_space<vmem>>, %arg3: memref<750x551xf32, #tpu.memory_space<vmem>>, %arg4: memref<24x181xf32, #tpu.memory_space<vmem>>, %arg5: memref<8x24xf32, #tpu.memory_space<vmem>>, %arg6: memref<8x1xf32, #tpu.memory_space<vmem>>, %arg7: memref<8x8xf32, #tpu.memory_space<vmem>>, %arg8: memref<1160x8xf32, #tpu.memory_space<vmem>>, %arg9: memref<551x8xf32, #tpu.memory_space<vmem>>, %arg10: memref<750x8xf32, #tpu.memory_space<vmem>>, %arg11: memref<181x8xf32, #tpu.memory_space<vmem>>) attributes {dimension_semantics = [#tpu.dimension_semantics<parallel>], iteration_bounds = array<i64: 1>, scalar_prefetch = 0 : i64, scratch_operands = 4 : i64, tpu.core_type = #tpu.core_type<tc>, window_params = [{transform_indices = @transform_0, window_bounds = array<i64: 124, 8>}, {pipeline_mode = #tpu.pipeline_mode<synchronous>, transform_indices = @transform_1, window_bounds = array<i64: 1160, 124>}, {pipeline_mode = #tpu.pipeline_mode<synchronous>, transform_indices = @transform_2, window_bounds = array<i64: 750, 551>}, {pipeline_mode = #tpu.pipeline_mode<synchronous>, transform_indices = @transform_3, window_bounds = array<i64: 24, 181>}, {pipeline_mode = #tpu.pipeline_mode<synchronous>, transform_indices = @transform_4, window_bounds = array<i64: 8, 24>}, {pipeline_mode = #tpu.pipeline_mode<synchronous>, transform_indices = @transform_5, window_bounds = array<i64: 8, 1>}, {transform_indices = @transform_6, window_bounds = array<i64: 8, 8>}]} {
    %cst = arith.constant 1.000000e+00 : f32
    %0 = vector.broadcast %cst : f32 to vector<1x8xf32>
    %c0 = arith.constant 0 : index
    %c0_0 = arith.constant 0 : index
    %1 = vector.load %arg2[%c0, %c0_0] : memref<1160x124xf32, #tpu.memory_space<vmem>>, vector<1160x124xf32>
    %c0_1 = arith.constant 0 : index
    %c0_2 = arith.constant 0 : index
    %2 = vector.load %arg1[%c0_1, %c0_2] : memref<124x8xf32, #tpu.memory_space<vmem>>, vector<124x8xf32>
    %cst_3 = arith.constant dense<0.000000e+00> : vector<1160x8xf32>
    %3 = tpu.matmul %1, %2, %cst_3 {dimension_numbers = #tpu.dot_dimension_numbers<[1], [0], [0], [1], [0, 0, 1, 1], [], []>} : vector<1160x124xf32>, vector<124x8xf32>, vector<1160x8xf32> -> vector<1160x8xf32>
    %c0_4 = arith.constant 0 : index
    %c0_5 = arith.constant 0 : index
    %4 = vector.load %arg8[%c0_4, %c0_5] : memref<1160x8xf32, #tpu.memory_space<vmem>>, vector<1160x8xf32>
    tpu.vector_store %arg8[%c0_4, %c0_5], %3 {strides = array<i32>} : memref<1160x8xf32, #tpu.memory_space<vmem>>, vector<1160x8xf32>,
    %c0_6 = arith.constant 0 : index
    %c0_7 = arith.constant 0 : index
    %5 = vector.load %arg8[%c0_6, %c0_7] : memref<1160x8xf32, #tpu.memory_space<vmem>>, vector<58x8xf32>
    %c58 = arith.constant 58 : index
    %c0_8 = arith.constant 0 : index
    %6 = vector.load %arg8[%c58, %c0_8] : memref<1160x8xf32, #tpu.memory_space<vmem>>, vector<58x8xf32>
    %7 = arith.maximumf %5, %6 : vector<58x8xf32>
    %8 = vector.extract_strided_slice %7 {offsets = [0, 0], sizes = [55, 8], strides = [1, 1]} : vector<58x8xf32> to vector<55x8xf32>
    %9 = vector.extract_strided_slice %7 {offsets = [1, 0], sizes = [55, 8], strides = [1, 1]} : vector<58x8xf32> to vector<55x8xf32>
    %10 = arith.maximumf %8, %9 : vector<55x8xf32>
    %11 = vector.extract_strided_slice %7 {offsets = [2, 0], sizes = [55, 8], strides = [1, 1]} : vector<58x8xf32> to vector<55x8xf32>
    %12 = vector.extract_strided_slice %7 {offsets = [3, 0], sizes = [55, 8], strides = [1, 1]} : vector<58x8xf32> to vector<55x8xf32>
    %13 = arith.maximumf %11, %12 : vector<55x8xf32>
    %14 = arith.maximumf %10, %13 : vector<55x8xf32>
    %cst_9 = arith.constant 0.000000e+00 : f32
    %15 = vector.broadcast %cst_9 : f32 to vector<55x8xf32>
    %16 = arith.maximumf %14, %15 : vector<55x8xf32>
    %c0_10 = arith.constant 0 : index
    %c0_11 = arith.constant 0 : index
    %17 = vector.load %arg9[%c0_10, %c0_11] : memref<551x8xf32, #tpu.memory_space<vmem>>, vector<55x8xf32>
    tpu.vector_store %arg9[%c0_10, %c0_11], %16 {strides = array<i32>} : memref<551x8xf32, #tpu.memory_space<vmem>>, vector<55x8xf32>,
    %c116 = arith.constant 116 : index
    %c0_12 = arith.constant 0 : index
    %18 = vector.load %arg8[%c116, %c0_12] : memref<1160x8xf32, #tpu.memory_space<vmem>>, vector<58x8xf32>
    %c174 = arith.constant 174 : index
    %c0_13 = arith.constant 0 : index
    %19 = vector.load %arg8[%c174, %c0_13] : memref<1160x8xf32, #tpu.memory_space<vmem>>, vector<58x8xf32>
    %20 = arith.maximumf %18, %19 : vector<58x8xf32>
    %21 = vector.extract_strided_slice %20 {offsets = [0, 0], sizes = [55, 8], strides = [1, 1]} : vector<58x8xf32> to vector<55x8xf32>
    %22 = vector.extract_strided_slice %20 {offsets = [1, 0], sizes = [55, 8], strides = [1, 1]} : vector<58x8xf32> to vector<55x8xf32>
    %23 = arith.maximumf %21, %22 : vector<55x8xf32>
    %24 = vector.extract_strided_slice %20 {offsets = [2, 0], sizes = [55, 8], strides = [1, 1]} : vector<58x8xf32> to vector<55x8xf32>
    %25 = vector.extract_strided_slice %20 {offsets = [3, 0], sizes = [55, 8], strides = [1, 1]} : vector<58x8xf32> to vector<55x8xf32>
    %26 = arith.maximumf %24, %25 : vector<55x8xf32>
    %27 = arith.maximumf %23, %26 : vector<55x8xf32>
    %cst_14 = arith.constant 0.000000e+00 : f32
    %28 = vector.broadcast %cst_14 : f32 to vector<55x8xf32>
    %29 = arith.maximumf %27, %28 : vector<55x8xf32>
    %c55 = arith.constant 55 : index
    %c0_15 = arith.constant 0 : index
    %30 = vector.load %arg9[%c55, %c0_15] : memref<551x8xf32, #tpu.memory_space<vmem>>, vector<55x8xf32>
    tpu.vector_store %arg9[%c55, %c0_15], %29 {strides = array<i32>} : memref<551x8xf32, #tpu.memory_space<vmem>>, vector<55x8xf32>,
    %c232 = arith.constant 232 : index
    %c0_16 = arith.constant 0 : index
    %31 = vector.load %arg8[%c232, %c0_16] : memref<1160x8xf32, #tpu.memory_space<vmem>>, vector<58x8xf32>
    %c290 = arith.constant 290 : index
    %c0_17 = arith.constant 0 : index
    %32 = vector.load %arg8[%c290, %c0_17] : memref<1160x8xf32, #tpu.memory_space<vmem>>, vector<58x8xf32>
    %33 = arith.maximumf %31, %32 : vector<58x8xf32>
    %34 = vector.extract_strided_slice %33 {offsets = [0, 0], sizes = [55, 8], strides = [1, 1]} : vector<58x8xf32> to vector<55x8xf32>
    %35 = vector.extract_strided_slice %33 {offsets = [1, 0], sizes = [55, 8], strides = [1, 1]} : vector<58x8xf32> to vector<55x8xf32>
    %36 = arith.maximumf %34, %35 : vector<55x8xf32>
    %37 = vector.extract_strided_slice %33 {offsets = [2, 0], sizes = [55, 8], strides = [1, 1]} : vector<58x8xf32> to vector<55x8xf32>
    %38 = vector.extract_strided_slice %33 {offsets = [3, 0], sizes = [55, 8], strides = [1, 1]} : vector<58x8xf32> to vector<55x8xf32>
    %39 = arith.maximumf %37, %38 : vector<55x8xf32>
    %40 = arith.maximumf %36, %39 : vector<55x8xf32>
    %cst_18 = arith.constant 0.000000e+00 : f32
    %41 = vector.broadcast %cst_18 : f32 to vector<55x8xf32>
    %42 = arith.maximumf %40, %41 : vector<55x8xf32>
    %c110 = arith.constant 110 : index
    %c0_19 = arith.constant 0 : index
    %43 = vector.load %arg9[%c110, %c0_19] : memref<551x8xf32, #tpu.memory_space<vmem>>, vector<55x8xf32>
    tpu.vector_store %arg9[%c110, %c0_19], %42 {strides = array<i32>} : memref<551x8xf32, #tpu.memory_space<vmem>>, vector<55x8xf32>,
    %c348 = arith.constant 348 : index
    %c0_20 = arith.constant 0 : index
    %44 = vector.load %arg8[%c348, %c0_20] : memref<1160x8xf32, #tpu.memory_space<vmem>>, vector<58x8xf32>
    %c406 = arith.constant 406 : index
    %c0_21 = arith.constant 0 : index
    %45 = vector.load %arg8[%c406, %c0_21] : memref<1160x8xf32, #tpu.memory_space<vmem>>, vector<58x8xf32>
    %46 = arith.maximumf %44, %45 : vector<58x8xf32>
    %47 = vector.extract_strided_slice %46 {offsets = [0, 0], sizes = [55, 8], strides = [1, 1]} : vector<58x8xf32> to vector<55x8xf32>
    %48 = vector.extract_strided_slice %46 {offsets = [1, 0], sizes = [55, 8], strides = [1, 1]} : vector<58x8xf32> to vector<55x8xf32>
    %49 = arith.maximumf %47, %48 : vector<55x8xf32>
    %50 = vector.extract_strided_slice %46 {offsets = [2, 0], sizes = [55, 8], strides = [1, 1]} : vector<58x8xf32> to vector<55x8xf32>
    %51 = vector.extract_strided_slice %46 {offsets = [3, 0], sizes = [55, 8], strides = [1, 1]} : vector<58x8xf32> to vector<55x8xf32>
    %52 = arith.maximumf %50, %51 : vector<55x8xf32>
    %53 = arith.maximumf %49, %52 : vector<55x8xf32>
    %cst_22 = arith.constant 0.000000e+00 : f32
    %54 = vector.broadcast %cst_22 : f32 to vector<55x8xf32>
    %55 = arith.maximumf %53, %54 : vector<55x8xf32>
    %c165 = arith.constant 165 : index
    %c0_23 = arith.constant 0 : index
    %56 = vector.load %arg9[%c165, %c0_23] : memref<551x8xf32, #tpu.memory_space<vmem>>, vector<55x8xf32>
    tpu.vector_store %arg9[%c165, %c0_23], %55 {strides = array<i32>} : memref<551x8xf32, #tpu.memory_space<vmem>>, vector<55x8xf32>,
    %c464 = arith.constant 464 : index
    %c0_24 = arith.constant 0 : index
    %57 = vector.load %arg8[%c464, %c0_24] : memref<1160x8xf32, #tpu.memory_space<vmem>>, vector<58x8xf32>
    %c522 = arith.constant 522 : index
    %c0_25 = arith.constant 0 : index
    %58 = vector.load %arg8[%c522, %c0_25] : memref<1160x8xf32, #tpu.memory_space<vmem>>, vector<58x8xf32>
    %59 = arith.maximumf %57, %58 : vector<58x8xf32>
    %60 = vector.extract_strided_slice %59 {offsets = [0, 0], sizes = [55, 8], strides = [1, 1]} : vector<58x8xf32> to vector<55x8xf32>
    %61 = vector.extract_strided_slice %59 {offsets = [1, 0], sizes = [55, 8], strides = [1, 1]} : vector<58x8xf32> to vector<55x8xf32>
    %62 = arith.maximumf %60, %61 : vector<55x8xf32>
    %63 = vector.extract_strided_slice %59 {offsets = [2, 0], sizes = [55, 8], strides = [1, 1]} : vector<58x8xf32> to vector<55x8xf32>
    %64 = vector.extract_strided_slice %59 {offsets = [3, 0], sizes = [55, 8], strides = [1, 1]} : vector<58x8xf32> to vector<55x8xf32>
    %65 = arith.maximumf %63, %64 : vector<55x8xf32>
    %66 = arith.maximumf %62, %65 : vector<55x8xf32>
    %cst_26 = arith.constant 0.000000e+00 : f32
    %67 = vector.broadcast %cst_26 : f32 to vector<55x8xf32>
    %68 = arith.maximumf %66, %67 : vector<55x8xf32>
    %c220 = arith.constant 220 : index
    %c0_27 = arith.constant 0 : index
    %69 = vector.load %arg9[%c220, %c0_27] : memref<551x8xf32, #tpu.memory_space<vmem>>, vector<55x8xf32>
    tpu.vector_store %arg9[%c220, %c0_27], %68 {strides = array<i32>} : memref<551x8xf32, #tpu.memory_space<vmem>>, vector<55x8xf32>,
    %c580 = arith.constant 580 : index
    %c0_28 = arith.constant 0 : index
    %70 = vector.load %arg8[%c580, %c0_28] : memref<1160x8xf32, #tpu.memory_space<vmem>>, vector<58x8xf32>
    %c638 = arith.constant 638 : index
    %c0_29 = arith.constant 0 : index
    %71 = vector.load %arg8[%c638, %c0_29] : memref<1160x8xf32, #tpu.memory_space<vmem>>, vector<58x8xf32>
    %72 = arith.maximumf %70, %71 : vector<58x8xf32>
    %73 = vector.extract_strided_slice %72 {offsets = [0, 0], sizes = [55, 8], strides = [1, 1]} : vector<58x8xf32> to vector<55x8xf32>
    %74 = vector.extract_strided_slice %72 {offsets = [1, 0], sizes = [55, 8], strides = [1, 1]} : vector<58x8xf32> to vector<55x8xf32>
    %75 = arith.maximumf %73, %74 : vector<55x8xf32>
    %76 = vector.extract_strided_slice %72 {offsets = [2, 0], sizes = [55, 8], strides = [1, 1]} : vector<58x8xf32> to vector<55x8xf32>
    %77 = vector.extract_strided_slice %72 {offsets = [3, 0], sizes = [55, 8], strides = [1, 1]} : vector<58x8xf32> to vector<55x8xf32>
    %78 = arith.maximumf %76, %77 : vector<55x8xf32>
    %79 = arith.maximumf %75, %78 : vector<55x8xf32>
    %cst_30 = arith.constant 0.000000e+00 : f32
    %80 = vector.broadcast %cst_30 : f32 to vector<55x8xf32>
    %81 = arith.maximumf %79, %80 : vector<55x8xf32>
    %c275 = arith.constant 275 : index
    %c0_31 = arith.constant 0 : index
    %82 = vector.load %arg9[%c275, %c0_31] : memref<551x8xf32, #tpu.memory_space<vmem>>, vector<55x8xf32>
    tpu.vector_store %arg9[%c275, %c0_31], %81 {strides = array<i32>} : memref<551x8xf32, #tpu.memory_space<vmem>>, vector<55x8xf32>,
    %c696 = arith.constant 696 : index
    %c0_32 = arith.constant 0 : index
    %83 = vector.load %arg8[%c696, %c0_32] : memref<1160x8xf32, #tpu.memory_space<vmem>>, vector<58x8xf32>
    %c754 = arith.constant 754 : index
    %c0_33 = arith.constant 0 : index
    %84 = vector.load %arg8[%c754, %c0_33] : memref<1160x8xf32, #tpu.memory_space<vmem>>, vector<58x8xf32>
    %85 = arith.maximumf %83, %84 : vector<58x8xf32>
    %86 = vector.extract_strided_slice %85 {offsets = [0, 0], sizes = [55, 8], strides = [1, 1]} : vector<58x8xf32> to vector<55x8xf32>
    %87 = vector.extract_strided_slice %85 {offsets = [1, 0], sizes = [55, 8], strides = [1, 1]} : vector<58x8xf32> to vector<55x8xf32>
    %88 = arith.maximumf %86, %87 : vector<55x8xf32>
    %89 = vector.extract_strided_slice %85 {offsets = [2, 0], sizes = [55, 8], strides = [1, 1]} : vector<58x8xf32> to vector<55x8xf32>
    %90 = vector.extract_strided_slice %85 {offsets = [3, 0], sizes = [55, 8], strides = [1, 1]} : vector<58x8xf32> to vector<55x8xf32>
    %91 = arith.maximumf %89, %90 : vector<55x8xf32>
    %92 = arith.maximumf %88, %91 : vector<55x8xf32>
    %cst_34 = arith.constant 0.000000e+00 : f32
    %93 = vector.broadcast %cst_34 : f32 to vector<55x8xf32>
    %94 = arith.maximumf %92, %93 : vector<55x8xf32>
    %c330 = arith.constant 330 : index
    %c0_35 = arith.constant 0 : index
    %95 = vector.load %arg9[%c330, %c0_35] : memref<551x8xf32, #tpu.memory_space<vmem>>, vector<55x8xf32>
    tpu.vector_store %arg9[%c330, %c0_35], %94 {strides = array<i32>} : memref<551x8xf32, #tpu.memory_space<vmem>>, vector<55x8xf32>,
    %c812 = arith.constant 812 : index
    %c0_36 = arith.constant 0 : index
    %96 = vector.load %arg8[%c812, %c0_36] : memref<1160x8xf32, #tpu.memory_space<vmem>>, vector<58x8xf32>
    %c870 = arith.constant 870 : index
    %c0_37 = arith.constant 0 : index
    %97 = vector.load %arg8[%c870, %c0_37] : memref<1160x8xf32, #tpu.memory_space<vmem>>, vector<58x8xf32>
    %98 = arith.maximumf %96, %97 : vector<58x8xf32>
    %99 = vector.extract_strided_slice %98 {offsets = [0, 0], sizes = [55, 8], strides = [1, 1]} : vector<58x8xf32> to vector<55x8xf32>
    %100 = vector.extract_strided_slice %98 {offsets = [1, 0], sizes = [55, 8], strides = [1, 1]} : vector<58x8xf32> to vector<55x8xf32>
    %101 = arith.maximumf %99, %100 : vector<55x8xf32>
    %102 = vector.extract_strided_slice %98 {offsets = [2, 0], sizes = [55, 8], strides = [1, 1]} : vector<58x8xf32> to vector<55x8xf32>
    %103 = vector.extract_strided_slice %98 {offsets = [3, 0], sizes = [55, 8], strides = [1, 1]} : vector<58x8xf32> to vector<55x8xf32>
    %104 = arith.maximumf %102, %103 : vector<55x8xf32>
    %105 = arith.maximumf %101, %104 : vector<55x8xf32>
    %cst_38 = arith.constant 0.000000e+00 : f32
    %106 = vector.broadcast %cst_38 : f32 to vector<55x8xf32>
    %107 = arith.maximumf %105, %106 : vector<55x8xf32>
    %c385 = arith.constant 385 : index
    %c0_39 = arith.constant 0 : index
    %108 = vector.load %arg9[%c385, %c0_39] : memref<551x8xf32, #tpu.memory_space<vmem>>, vector<55x8xf32>
    tpu.vector_store %arg9[%c385, %c0_39], %107 {strides = array<i32>} : memref<551x8xf32, #tpu.memory_space<vmem>>, vector<55x8xf32>,
    %c928 = arith.constant 928 : index
    %c0_40 = arith.constant 0 : index
    %109 = vector.load %arg8[%c928, %c0_40] : memref<1160x8xf32, #tpu.memory_space<vmem>>, vector<58x8xf32>
    %c986 = arith.constant 986 : index
    %c0_41 = arith.constant 0 : index
    %110 = vector.load %arg8[%c986, %c0_41] : memref<1160x8xf32, #tpu.memory_space<vmem>>, vector<58x8xf32>
    %111 = arith.maximumf %109, %110 : vector<58x8xf32>
    %112 = vector.extract_strided_slice %111 {offsets = [0, 0], sizes = [55, 8], strides = [1, 1]} : vector<58x8xf32> to vector<55x8xf32>
    %113 = vector.extract_strided_slice %111 {offsets = [1, 0], sizes = [55, 8], strides = [1, 1]} : vector<58x8xf32> to vector<55x8xf32>
    %114 = arith.maximumf %112, %113 : vector<55x8xf32>
    %115 = vector.extract_strided_slice %111 {offsets = [2, 0], sizes = [55, 8], strides = [1, 1]} : vector<58x8xf32> to vector<55x8xf32>
    %116 = vector.extract_strided_slice %111 {offsets = [3, 0], sizes = [55, 8], strides = [1, 1]} : vector<58x8xf32> to vector<55x8xf32>
    %117 = arith.maximumf %115, %116 : vector<55x8xf32>
    %118 = arith.maximumf %114, %117 : vector<55x8xf32>
    %cst_42 = arith.constant 0.000000e+00 : f32
    %119 = vector.broadcast %cst_42 : f32 to vector<55x8xf32>
    %120 = arith.maximumf %118, %119 : vector<55x8xf32>
    %c440 = arith.constant 440 : index
    %c0_43 = arith.constant 0 : index
    %121 = vector.load %arg9[%c440, %c0_43] : memref<551x8xf32, #tpu.memory_space<vmem>>, vector<55x8xf32>
    tpu.vector_store %arg9[%c440, %c0_43], %120 {strides = array<i32>} : memref<551x8xf32, #tpu.memory_space<vmem>>, vector<55x8xf32>,
    %c1044 = arith.constant 1044 : index
    %c0_44 = arith.constant 0 : index
    %122 = vector.load %arg8[%c1044, %c0_44] : memref<1160x8xf32, #tpu.memory_space<vmem>>, vector<58x8xf32>
    %c1102 = arith.constant 1102 : index
    %c0_45 = arith.constant 0 : index
    %123 = vector.load %arg8[%c1102, %c0_45] : memref<1160x8xf32, #tpu.memory_space<vmem>>, vector<58x8xf32>
    %124 = arith.maximumf %122, %123 : vector<58x8xf32>
    %125 = vector.extract_strided_slice %124 {offsets = [0, 0], sizes = [55, 8], strides = [1, 1]} : vector<58x8xf32> to vector<55x8xf32>
    %126 = vector.extract_strided_slice %124 {offsets = [1, 0], sizes = [55, 8], strides = [1, 1]} : vector<58x8xf32> to vector<55x8xf32>
    %127 = arith.maximumf %125, %126 : vector<55x8xf32>
    %128 = vector.extract_strided_slice %124 {offsets = [2, 0], sizes = [55, 8], strides = [1, 1]} : vector<58x8xf32> to vector<55x8xf32>
    %129 = vector.extract_strided_slice %124 {offsets = [3, 0], sizes = [55, 8], strides = [1, 1]} : vector<58x8xf32> to vector<55x8xf32>
    %130 = arith.maximumf %128, %129 : vector<55x8xf32>
    %131 = arith.maximumf %127, %130 : vector<55x8xf32>
    %cst_46 = arith.constant 0.000000e+00 : f32
    %132 = vector.broadcast %cst_46 : f32 to vector<55x8xf32>
    %133 = arith.maximumf %131, %132 : vector<55x8xf32>
    %c495 = arith.constant 495 : index
    %c0_47 = arith.constant 0 : index
    %134 = vector.load %arg9[%c495, %c0_47] : memref<551x8xf32, #tpu.memory_space<vmem>>, vector<55x8xf32>
    tpu.vector_store %arg9[%c495, %c0_47], %133 {strides = array<i32>} : memref<551x8xf32, #tpu.memory_space<vmem>>, vector<55x8xf32>,
    %c550 = arith.constant 550 : index
    %c0_48 = arith.constant 0 : index
    %135 = vector.load %arg9[%c550, %c0_48] : memref<551x8xf32, #tpu.memory_space<vmem>>, vector<1x8xf32>
    tpu.vector_store %arg9[%c550, %c0_48], %0 {strides = array<i32>} : memref<551x8xf32, #tpu.memory_space<vmem>>, vector<1x8xf32>,
    %c0_49 = arith.constant 0 : index
    %c0_50 = arith.constant 0 : index
    %136 = vector.load %arg3[%c0_49, %c0_50] : memref<750x551xf32, #tpu.memory_space<vmem>>, vector<750x551xf32>
    %c0_51 = arith.constant 0 : index
    %c0_52 = arith.constant 0 : index
    %137 = vector.load %arg9[%c0_51, %c0_52] : memref<551x8xf32, #tpu.memory_space<vmem>>, vector<551x8xf32>
    %cst_53 = arith.constant dense<0.000000e+00> : vector<750x8xf32>
    %138 = tpu.matmul %136, %137, %cst_53 {dimension_numbers = #tpu.dot_dimension_numbers<[1], [0], [0], [1], [0, 0, 1, 1], [], []>} : vector<750x551xf32>, vector<551x8xf32>, vector<750x8xf32> -> vector<750x8xf32>
    %c0_54 = arith.constant 0 : index
    %c0_55 = arith.constant 0 : index
    %139 = vector.load %arg10[%c0_54, %c0_55] : memref<750x8xf32, #tpu.memory_space<vmem>>, vector<750x8xf32>
    tpu.vector_store %arg10[%c0_54, %c0_55], %138 {strides = array<i32>} : memref<750x8xf32, #tpu.memory_space<vmem>>, vector<750x8xf32>,
    %c0_56 = arith.constant 0 : index
    %c0_57 = arith.constant 0 : index
    %140 = vector.load %arg10[%c0_56, %c0_57] : memref<750x8xf32, #tpu.memory_space<vmem>>, vector<13x8xf32>
    %c13 = arith.constant 13 : index
    %c0_58 = arith.constant 0 : index
    %141 = vector.load %arg10[%c13, %c0_58] : memref<750x8xf32, #tpu.memory_space<vmem>>, vector<13x8xf32>
    %c26 = arith.constant 26 : index
    %c0_59 = arith.constant 0 : index
    %142 = vector.load %arg10[%c26, %c0_59] : memref<750x8xf32, #tpu.memory_space<vmem>>, vector<12x8xf32>
    %c38 = arith.constant 38 : index
    %c0_60 = arith.constant 0 : index
    %143 = vector.load %arg10[%c38, %c0_60] : memref<750x8xf32, #tpu.memory_space<vmem>>, vector<12x8xf32>
    %144 = vector.extract_strided_slice %140 {offsets = [0, 0], sizes = [12, 8], strides = [1, 1]} : vector<13x8xf32> to vector<12x8xf32>
    %145 = vector.extract_strided_slice %140 {offsets = [1, 0], sizes = [12, 8], strides = [1, 1]} : vector<13x8xf32> to vector<12x8xf32>
    %146 = arith.maximumf %144, %145 : vector<12x8xf32>
    %147 = vector.extract_strided_slice %141 {offsets = [0, 0], sizes = [12, 8], strides = [1, 1]} : vector<13x8xf32> to vector<12x8xf32>
    %148 = vector.extract_strided_slice %141 {offsets = [1, 0], sizes = [12, 8], strides = [1, 1]} : vector<13x8xf32> to vector<12x8xf32>
    %149 = arith.maximumf %147, %148 : vector<12x8xf32>
    %150 = arith.maximumf %146, %149 : vector<12x8xf32>
    %151 = arith.maximumf %142, %143 : vector<12x8xf32>
    %152 = arith.maximumf %150, %151 : vector<12x8xf32>
    %cst_61 = arith.constant 0.000000e+00 : f32
    %153 = vector.broadcast %cst_61 : f32 to vector<12x8xf32>
    %154 = arith.maximumf %152, %153 : vector<12x8xf32>
    %c0_62 = arith.constant 0 : index
    %c0_63 = arith.constant 0 : index
    %155 = vector.load %arg11[%c0_62, %c0_63] : memref<181x8xf32, #tpu.memory_space<vmem>>, vector<12x8xf32>
    tpu.vector_store %arg11[%c0_62, %c0_63], %154 {strides = array<i32>} : memref<181x8xf32, #tpu.memory_space<vmem>>, vector<12x8xf32>,
    %c50 = arith.constant 50 : index
    %c0_64 = arith.constant 0 : index
    %156 = vector.load %arg10[%c50, %c0_64] : memref<750x8xf32, #tpu.memory_space<vmem>>, vector<13x8xf32>
    %c63 = arith.constant 63 : index
    %c0_65 = arith.constant 0 : index
    %157 = vector.load %arg10[%c63, %c0_65] : memref<750x8xf32, #tpu.memory_space<vmem>>, vector<13x8xf32>
    %c76 = arith.constant 76 : index
    %c0_66 = arith.constant 0 : index
    %158 = vector.load %arg10[%c76, %c0_66] : memref<750x8xf32, #tpu.memory_space<vmem>>, vector<12x8xf32>
    %c88 = arith.constant 88 : index
    %c0_67 = arith.constant 0 : index
    %159 = vector.load %arg10[%c88, %c0_67] : memref<750x8xf32, #tpu.memory_space<vmem>>, vector<12x8xf32>
    %160 = vector.extract_strided_slice %156 {offsets = [0, 0], sizes = [12, 8], strides = [1, 1]} : vector<13x8xf32> to vector<12x8xf32>
    %161 = vector.extract_strided_slice %156 {offsets = [1, 0], sizes = [12, 8], strides = [1, 1]} : vector<13x8xf32> to vector<12x8xf32>
    %162 = arith.maximumf %160, %161 : vector<12x8xf32>
    %163 = vector.extract_strided_slice %157 {offsets = [0, 0], sizes = [12, 8], strides = [1, 1]} : vector<13x8xf32> to vector<12x8xf32>
    %164 = vector.extract_strided_slice %157 {offsets = [1, 0], sizes = [12, 8], strides = [1, 1]} : vector<13x8xf32> to vector<12x8xf32>
    %165 = arith.maximumf %163, %164 : vector<12x8xf32>
    %166 = arith.maximumf %162, %165 : vector<12x8xf32>
    %167 = arith.maximumf %158, %159 : vector<12x8xf32>
    %168 = arith.maximumf %166, %167 : vector<12x8xf32>
    %cst_68 = arith.constant 0.000000e+00 : f32
    %169 = vector.broadcast %cst_68 : f32 to vector<12x8xf32>
    %170 = arith.maximumf %168, %169 : vector<12x8xf32>
    %c12 = arith.constant 12 : index
    %c0_69 = arith.constant 0 : index
    %171 = vector.load %arg11[%c12, %c0_69] : memref<181x8xf32, #tpu.memory_space<vmem>>, vector<12x8xf32>
    tpu.vector_store %arg11[%c12, %c0_69], %170 {strides = array<i32>} : memref<181x8xf32, #tpu.memory_space<vmem>>, vector<12x8xf32>,
    %c100 = arith.constant 100 : index
    %c0_70 = arith.constant 0 : index
    %172 = vector.load %arg10[%c100, %c0_70] : memref<750x8xf32, #tpu.memory_space<vmem>>, vector<13x8xf32>
    %c113 = arith.constant 113 : index
    %c0_71 = arith.constant 0 : index
    %173 = vector.load %arg10[%c113, %c0_71] : memref<750x8xf32, #tpu.memory_space<vmem>>, vector<13x8xf32>
    %c126 = arith.constant 126 : index
    %c0_72 = arith.constant 0 : index
    %174 = vector.load %arg10[%c126, %c0_72] : memref<750x8xf32, #tpu.memory_space<vmem>>, vector<12x8xf32>
    %c138 = arith.constant 138 : index
    %c0_73 = arith.constant 0 : index
    %175 = vector.load %arg10[%c138, %c0_73] : memref<750x8xf32, #tpu.memory_space<vmem>>, vector<12x8xf32>
    %176 = vector.extract_strided_slice %172 {offsets = [0, 0], sizes = [12, 8], strides = [1, 1]} : vector<13x8xf32> to vector<12x8xf32>
    %177 = vector.extract_strided_slice %172 {offsets = [1, 0], sizes = [12, 8], strides = [1, 1]} : vector<13x8xf32> to vector<12x8xf32>
    %178 = arith.maximumf %176, %177 : vector<12x8xf32>
    %179 = vector.extract_strided_slice %173 {offsets = [0, 0], sizes = [12, 8], strides = [1, 1]} : vector<13x8xf32> to vector<12x8xf32>
    %180 = vector.extract_strided_slice %173 {offsets = [1, 0], sizes = [12, 8], strides = [1, 1]} : vector<13x8xf32> to vector<12x8xf32>
    %181 = arith.maximumf %179, %180 : vector<12x8xf32>
    %182 = arith.maximumf %178, %181 : vector<12x8xf32>
    %183 = arith.maximumf %174, %175 : vector<12x8xf32>
    %184 = arith.maximumf %182, %183 : vector<12x8xf32>
    %cst_74 = arith.constant 0.000000e+00 : f32
    %185 = vector.broadcast %cst_74 : f32 to vector<12x8xf32>
    %186 = arith.maximumf %184, %185 : vector<12x8xf32>
    %c24 = arith.constant 24 : index
    %c0_75 = arith.constant 0 : index
    %187 = vector.load %arg11[%c24, %c0_75] : memref<181x8xf32, #tpu.memory_space<vmem>>, vector<12x8xf32>
    tpu.vector_store %arg11[%c24, %c0_75], %186 {strides = array<i32>} : memref<181x8xf32, #tpu.memory_space<vmem>>, vector<12x8xf32>,
    %c150 = arith.constant 150 : index
    %c0_76 = arith.constant 0 : index
    %188 = vector.load %arg10[%c150, %c0_76] : memref<750x8xf32, #tpu.memory_space<vmem>>, vector<13x8xf32>
    %c163 = arith.constant 163 : index
    %c0_77 = arith.constant 0 : index
    %189 = vector.load %arg10[%c163, %c0_77] : memref<750x8xf32, #tpu.memory_space<vmem>>, vector<13x8xf32>
    %c176 = arith.constant 176 : index
    %c0_78 = arith.constant 0 : index
    %190 = vector.load %arg10[%c176, %c0_78] : memref<750x8xf32, #tpu.memory_space<vmem>>, vector<12x8xf32>
    %c188 = arith.constant 188 : index
    %c0_79 = arith.constant 0 : index
    %191 = vector.load %arg10[%c188, %c0_79] : memref<750x8xf32, #tpu.memory_space<vmem>>, vector<12x8xf32>
    %192 = vector.extract_strided_slice %188 {offsets = [0, 0], sizes = [12, 8], strides = [1, 1]} : vector<13x8xf32> to vector<12x8xf32>
    %193 = vector.extract_strided_slice %188 {offsets = [1, 0], sizes = [12, 8], strides = [1, 1]} : vector<13x8xf32> to vector<12x8xf32>
    %194 = arith.maximumf %192, %193 : vector<12x8xf32>
    %195 = vector.extract_strided_slice %189 {offsets = [0, 0], sizes = [12, 8], strides = [1, 1]} : vector<13x8xf32> to vector<12x8xf32>
    %196 = vector.extract_strided_slice %189 {offsets = [1, 0], sizes = [12, 8], strides = [1, 1]} : vector<13x8xf32> to vector<12x8xf32>
    %197 = arith.maximumf %195, %196 : vector<12x8xf32>
    %198 = arith.maximumf %194, %197 : vector<12x8xf32>
    %199 = arith.maximumf %190, %191 : vector<12x8xf32>
    %200 = arith.maximumf %198, %199 : vector<12x8xf32>
    %cst_80 = arith.constant 0.000000e+00 : f32
    %201 = vector.broadcast %cst_80 : f32 to vector<12x8xf32>
    %202 = arith.maximumf %200, %201 : vector<12x8xf32>
    %c36 = arith.constant 36 : index
    %c0_81 = arith.constant 0 : index
    %203 = vector.load %arg11[%c36, %c0_81] : memref<181x8xf32, #tpu.memory_space<vmem>>, vector<12x8xf32>
    tpu.vector_store %arg11[%c36, %c0_81], %202 {strides = array<i32>} : memref<181x8xf32, #tpu.memory_space<vmem>>, vector<12x8xf32>,
    %c200 = arith.constant 200 : index
    %c0_82 = arith.constant 0 : index
    %204 = vector.load %arg10[%c200, %c0_82] : memref<750x8xf32, #tpu.memory_space<vmem>>, vector<13x8xf32>
    %c213 = arith.constant 213 : index
    %c0_83 = arith.constant 0 : index
    %205 = vector.load %arg10[%c213, %c0_83] : memref<750x8xf32, #tpu.memory_space<vmem>>, vector<13x8xf32>
    %c226 = arith.constant 226 : index
    %c0_84 = arith.constant 0 : index
    %206 = vector.load %arg10[%c226, %c0_84] : memref<750x8xf32, #tpu.memory_space<vmem>>, vector<12x8xf32>
    %c238 = arith.constant 238 : index
    %c0_85 = arith.constant 0 : index
    %207 = vector.load %arg10[%c238, %c0_85] : memref<750x8xf32, #tpu.memory_space<vmem>>, vector<12x8xf32>
    %208 = vector.extract_strided_slice %204 {offsets = [0, 0], sizes = [12, 8], strides = [1, 1]} : vector<13x8xf32> to vector<12x8xf32>
    %209 = vector.extract_strided_slice %204 {offsets = [1, 0], sizes = [12, 8], strides = [1, 1]} : vector<13x8xf32> to vector<12x8xf32>
    %210 = arith.maximumf %208, %209 : vector<12x8xf32>
    %211 = vector.extract_strided_slice %205 {offsets = [0, 0], sizes = [12, 8], strides = [1, 1]} : vector<13x8xf32> to vector<12x8xf32>
    %212 = vector.extract_strided_slice %205 {offsets = [1, 0], sizes = [12, 8], strides = [1, 1]} : vector<13x8xf32> to vector<12x8xf32>
    %213 = arith.maximumf %211, %212 : vector<12x8xf32>
    %214 = arith.maximumf %210, %213 : vector<12x8xf32>
    %215 = arith.maximumf %206, %207 : vector<12x8xf32>
    %216 = arith.maximumf %214, %215 : vector<12x8xf32>
    %cst_86 = arith.constant 0.000000e+00 : f32
    %217 = vector.broadcast %cst_86 : f32 to vector<12x8xf32>
    %218 = arith.maximumf %216, %217 : vector<12x8xf32>
    %c48 = arith.constant 48 : index
    %c0_87 = arith.constant 0 : index
    %219 = vector.load %arg11[%c48, %c0_87] : memref<181x8xf32, #tpu.memory_space<vmem>>, vector<12x8xf32>
    tpu.vector_store %arg11[%c48, %c0_87], %218 {strides = array<i32>} : memref<181x8xf32, #tpu.memory_space<vmem>>, vector<12x8xf32>,
    %c250 = arith.constant 250 : index
    %c0_88 = arith.constant 0 : index
    %220 = vector.load %arg10[%c250, %c0_88] : memref<750x8xf32, #tpu.memory_space<vmem>>, vector<13x8xf32>
    %c263 = arith.constant 263 : index
    %c0_89 = arith.constant 0 : index
    %221 = vector.load %arg10[%c263, %c0_89] : memref<750x8xf32, #tpu.memory_space<vmem>>, vector<13x8xf32>
    %c276 = arith.constant 276 : index
    %c0_90 = arith.constant 0 : index
    %222 = vector.load %arg10[%c276, %c0_90] : memref<750x8xf32, #tpu.memory_space<vmem>>, vector<12x8xf32>
    %c288 = arith.constant 288 : index
    %c0_91 = arith.constant 0 : index
    %223 = vector.load %arg10[%c288, %c0_91] : memref<750x8xf32, #tpu.memory_space<vmem>>, vector<12x8xf32>
    %224 = vector.extract_strided_slice %220 {offsets = [0, 0], sizes = [12, 8], strides = [1, 1]} : vector<13x8xf32> to vector<12x8xf32>
    %225 = vector.extract_strided_slice %220 {offsets = [1, 0], sizes = [12, 8], strides = [1, 1]} : vector<13x8xf32> to vector<12x8xf32>
    %226 = arith.maximumf %224, %225 : vector<12x8xf32>
    %227 = vector.extract_strided_slice %221 {offsets = [0, 0], sizes = [12, 8], strides = [1, 1]} : vector<13x8xf32> to vector<12x8xf32>
    %228 = vector.extract_strided_slice %221 {offsets = [1, 0], sizes = [12, 8], strides = [1, 1]} : vector<13x8xf32> to vector<12x8xf32>
    %229 = arith.maximumf %227, %228 : vector<12x8xf32>
    %230 = arith.maximumf %226, %229 : vector<12x8xf32>
    %231 = arith.maximumf %222, %223 : vector<12x8xf32>
    %232 = arith.maximumf %230, %231 : vector<12x8xf32>
    %cst_92 = arith.constant 0.000000e+00 : f32
    %233 = vector.broadcast %cst_92 : f32 to vector<12x8xf32>
    %234 = arith.maximumf %232, %233 : vector<12x8xf32>
    %c60 = arith.constant 60 : index
    %c0_93 = arith.constant 0 : index
    %235 = vector.load %arg11[%c60, %c0_93] : memref<181x8xf32, #tpu.memory_space<vmem>>, vector<12x8xf32>
    tpu.vector_store %arg11[%c60, %c0_93], %234 {strides = array<i32>} : memref<181x8xf32, #tpu.memory_space<vmem>>, vector<12x8xf32>,
    %c300 = arith.constant 300 : index
    %c0_94 = arith.constant 0 : index
    %236 = vector.load %arg10[%c300, %c0_94] : memref<750x8xf32, #tpu.memory_space<vmem>>, vector<13x8xf32>
    %c313 = arith.constant 313 : index
    %c0_95 = arith.constant 0 : index
    %237 = vector.load %arg10[%c313, %c0_95] : memref<750x8xf32, #tpu.memory_space<vmem>>, vector<13x8xf32>
    %c326 = arith.constant 326 : index
    %c0_96 = arith.constant 0 : index
    %238 = vector.load %arg10[%c326, %c0_96] : memref<750x8xf32, #tpu.memory_space<vmem>>, vector<12x8xf32>
    %c338 = arith.constant 338 : index
    %c0_97 = arith.constant 0 : index
    %239 = vector.load %arg10[%c338, %c0_97] : memref<750x8xf32, #tpu.memory_space<vmem>>, vector<12x8xf32>
    %240 = vector.extract_strided_slice %236 {offsets = [0, 0], sizes = [12, 8], strides = [1, 1]} : vector<13x8xf32> to vector<12x8xf32>
    %241 = vector.extract_strided_slice %236 {offsets = [1, 0], sizes = [12, 8], strides = [1, 1]} : vector<13x8xf32> to vector<12x8xf32>
    %242 = arith.maximumf %240, %241 : vector<12x8xf32>
    %243 = vector.extract_strided_slice %237 {offsets = [0, 0], sizes = [12, 8], strides = [1, 1]} : vector<13x8xf32> to vector<12x8xf32>
    %244 = vector.extract_strided_slice %237 {offsets = [1, 0], sizes = [12, 8], strides = [1, 1]} : vector<13x8xf32> to vector<12x8xf32>
    %245 = arith.maximumf %243, %244 : vector<12x8xf32>
    %246 = arith.maximumf %242, %245 : vector<12x8xf32>
    %247 = arith.maximumf %238, %239 : vector<12x8xf32>
    %248 = arith.maximumf %246, %247 : vector<12x8xf32>
    %cst_98 = arith.constant 0.000000e+00 : f32
    %249 = vector.broadcast %cst_98 : f32 to vector<12x8xf32>
    %250 = arith.maximumf %248, %249 : vector<12x8xf32>
    %c72 = arith.constant 72 : index
    %c0_99 = arith.constant 0 : index
    %251 = vector.load %arg11[%c72, %c0_99] : memref<181x8xf32, #tpu.memory_space<vmem>>, vector<12x8xf32>
    tpu.vector_store %arg11[%c72, %c0_99], %250 {strides = array<i32>} : memref<181x8xf32, #tpu.memory_space<vmem>>, vector<12x8xf32>,
    %c350 = arith.constant 350 : index
    %c0_100 = arith.constant 0 : index
    %252 = vector.load %arg10[%c350, %c0_100] : memref<750x8xf32, #tpu.memory_space<vmem>>, vector<13x8xf32>
    %c363 = arith.constant 363 : index
    %c0_101 = arith.constant 0 : index
    %253 = vector.load %arg10[%c363, %c0_101] : memref<750x8xf32, #tpu.memory_space<vmem>>, vector<13x8xf32>
    %c376 = arith.constant 376 : index
    %c0_102 = arith.constant 0 : index
    %254 = vector.load %arg10[%c376, %c0_102] : memref<750x8xf32, #tpu.memory_space<vmem>>, vector<12x8xf32>
    %c388 = arith.constant 388 : index
    %c0_103 = arith.constant 0 : index
    %255 = vector.load %arg10[%c388, %c0_103] : memref<750x8xf32, #tpu.memory_space<vmem>>, vector<12x8xf32>
    %256 = vector.extract_strided_slice %252 {offsets = [0, 0], sizes = [12, 8], strides = [1, 1]} : vector<13x8xf32> to vector<12x8xf32>
    %257 = vector.extract_strided_slice %252 {offsets = [1, 0], sizes = [12, 8], strides = [1, 1]} : vector<13x8xf32> to vector<12x8xf32>
    %258 = arith.maximumf %256, %257 : vector<12x8xf32>
    %259 = vector.extract_strided_slice %253 {offsets = [0, 0], sizes = [12, 8], strides = [1, 1]} : vector<13x8xf32> to vector<12x8xf32>
    %260 = vector.extract_strided_slice %253 {offsets = [1, 0], sizes = [12, 8], strides = [1, 1]} : vector<13x8xf32> to vector<12x8xf32>
    %261 = arith.maximumf %259, %260 : vector<12x8xf32>
    %262 = arith.maximumf %258, %261 : vector<12x8xf32>
    %263 = arith.maximumf %254, %255 : vector<12x8xf32>
    %264 = arith.maximumf %262, %263 : vector<12x8xf32>
    %cst_104 = arith.constant 0.000000e+00 : f32
    %265 = vector.broadcast %cst_104 : f32 to vector<12x8xf32>
    %266 = arith.maximumf %264, %265 : vector<12x8xf32>
    %c84 = arith.constant 84 : index
    %c0_105 = arith.constant 0 : index
    %267 = vector.load %arg11[%c84, %c0_105] : memref<181x8xf32, #tpu.memory_space<vmem>>, vector<12x8xf32>
    tpu.vector_store %arg11[%c84, %c0_105], %266 {strides = array<i32>} : memref<181x8xf32, #tpu.memory_space<vmem>>, vector<12x8xf32>,
    %c400 = arith.constant 400 : index
    %c0_106 = arith.constant 0 : index
    %268 = vector.load %arg10[%c400, %c0_106] : memref<750x8xf32, #tpu.memory_space<vmem>>, vector<13x8xf32>
    %c413 = arith.constant 413 : index
    %c0_107 = arith.constant 0 : index
    %269 = vector.load %arg10[%c413, %c0_107] : memref<750x8xf32, #tpu.memory_space<vmem>>, vector<13x8xf32>
    %c426 = arith.constant 426 : index
    %c0_108 = arith.constant 0 : index
    %270 = vector.load %arg10[%c426, %c0_108] : memref<750x8xf32, #tpu.memory_space<vmem>>, vector<12x8xf32>
    %c438 = arith.constant 438 : index
    %c0_109 = arith.constant 0 : index
    %271 = vector.load %arg10[%c438, %c0_109] : memref<750x8xf32, #tpu.memory_space<vmem>>, vector<12x8xf32>
    %272 = vector.extract_strided_slice %268 {offsets = [0, 0], sizes = [12, 8], strides = [1, 1]} : vector<13x8xf32> to vector<12x8xf32>
    %273 = vector.extract_strided_slice %268 {offsets = [1, 0], sizes = [12, 8], strides = [1, 1]} : vector<13x8xf32> to vector<12x8xf32>
    %274 = arith.maximumf %272, %273 : vector<12x8xf32>
    %275 = vector.extract_strided_slice %269 {offsets = [0, 0], sizes = [12, 8], strides = [1, 1]} : vector<13x8xf32> to vector<12x8xf32>
    %276 = vector.extract_strided_slice %269 {offsets = [1, 0], sizes = [12, 8], strides = [1, 1]} : vector<13x8xf32> to vector<12x8xf32>
    %277 = arith.maximumf %275, %276 : vector<12x8xf32>
    %278 = arith.maximumf %274, %277 : vector<12x8xf32>
    %279 = arith.maximumf %270, %271 : vector<12x8xf32>
    %280 = arith.maximumf %278, %279 : vector<12x8xf32>
    %cst_110 = arith.constant 0.000000e+00 : f32
    %281 = vector.broadcast %cst_110 : f32 to vector<12x8xf32>
    %282 = arith.maximumf %280, %281 : vector<12x8xf32>
    %c96 = arith.constant 96 : index
    %c0_111 = arith.constant 0 : index
    %283 = vector.load %arg11[%c96, %c0_111] : memref<181x8xf32, #tpu.memory_space<vmem>>, vector<12x8xf32>
    tpu.vector_store %arg11[%c96, %c0_111], %282 {strides = array<i32>} : memref<181x8xf32, #tpu.memory_space<vmem>>, vector<12x8xf32>,
    %c450 = arith.constant 450 : index
    %c0_112 = arith.constant 0 : index
    %284 = vector.load %arg10[%c450, %c0_112] : memref<750x8xf32, #tpu.memory_space<vmem>>, vector<13x8xf32>
    %c463 = arith.constant 463 : index
    %c0_113 = arith.constant 0 : index
    %285 = vector.load %arg10[%c463, %c0_113] : memref<750x8xf32, #tpu.memory_space<vmem>>, vector<13x8xf32>
    %c476 = arith.constant 476 : index
    %c0_114 = arith.constant 0 : index
    %286 = vector.load %arg10[%c476, %c0_114] : memref<750x8xf32, #tpu.memory_space<vmem>>, vector<12x8xf32>
    %c488 = arith.constant 488 : index
    %c0_115 = arith.constant 0 : index
    %287 = vector.load %arg10[%c488, %c0_115] : memref<750x8xf32, #tpu.memory_space<vmem>>, vector<12x8xf32>
    %288 = vector.extract_strided_slice %284 {offsets = [0, 0], sizes = [12, 8], strides = [1, 1]} : vector<13x8xf32> to vector<12x8xf32>
    %289 = vector.extract_strided_slice %284 {offsets = [1, 0], sizes = [12, 8], strides = [1, 1]} : vector<13x8xf32> to vector<12x8xf32>
    %290 = arith.maximumf %288, %289 : vector<12x8xf32>
    %291 = vector.extract_strided_slice %285 {offsets = [0, 0], sizes = [12, 8], strides = [1, 1]} : vector<13x8xf32> to vector<12x8xf32>
    %292 = vector.extract_strided_slice %285 {offsets = [1, 0], sizes = [12, 8], strides = [1, 1]} : vector<13x8xf32> to vector<12x8xf32>
    %293 = arith.maximumf %291, %292 : vector<12x8xf32>
    %294 = arith.maximumf %290, %293 : vector<12x8xf32>
    %295 = arith.maximumf %286, %287 : vector<12x8xf32>
    %296 = arith.maximumf %294, %295 : vector<12x8xf32>
    %cst_116 = arith.constant 0.000000e+00 : f32
    %297 = vector.broadcast %cst_116 : f32 to vector<12x8xf32>
    %298 = arith.maximumf %296, %297 : vector<12x8xf32>
    %c108 = arith.constant 108 : index
    %c0_117 = arith.constant 0 : index
    %299 = vector.load %arg11[%c108, %c0_117] : memref<181x8xf32, #tpu.memory_space<vmem>>, vector<12x8xf32>
    tpu.vector_store %arg11[%c108, %c0_117], %298 {strides = array<i32>} : memref<181x8xf32, #tpu.memory_space<vmem>>, vector<12x8xf32>,
    %c500 = arith.constant 500 : index
    %c0_118 = arith.constant 0 : index
    %300 = vector.load %arg10[%c500, %c0_118] : memref<750x8xf32, #tpu.memory_space<vmem>>, vector<13x8xf32>
    %c513 = arith.constant 513 : index
    %c0_119 = arith.constant 0 : index
    %301 = vector.load %arg10[%c513, %c0_119] : memref<750x8xf32, #tpu.memory_space<vmem>>, vector<13x8xf32>
    %c526 = arith.constant 526 : index
    %c0_120 = arith.constant 0 : index
    %302 = vector.load %arg10[%c526, %c0_120] : memref<750x8xf32, #tpu.memory_space<vmem>>, vector<12x8xf32>
    %c538 = arith.constant 538 : index
    %c0_121 = arith.constant 0 : index
    %303 = vector.load %arg10[%c538, %c0_121] : memref<750x8xf32, #tpu.memory_space<vmem>>, vector<12x8xf32>
    %304 = vector.extract_strided_slice %300 {offsets = [0, 0], sizes = [12, 8], strides = [1, 1]} : vector<13x8xf32> to vector<12x8xf32>
    %305 = vector.extract_strided_slice %300 {offsets = [1, 0], sizes = [12, 8], strides = [1, 1]} : vector<13x8xf32> to vector<12x8xf32>
    %306 = arith.maximumf %304, %305 : vector<12x8xf32>
    %307 = vector.extract_strided_slice %301 {offsets = [0, 0], sizes = [12, 8], strides = [1, 1]} : vector<13x8xf32> to vector<12x8xf32>
    %308 = vector.extract_strided_slice %301 {offsets = [1, 0], sizes = [12, 8], strides = [1, 1]} : vector<13x8xf32> to vector<12x8xf32>
    %309 = arith.maximumf %307, %308 : vector<12x8xf32>
    %310 = arith.maximumf %306, %309 : vector<12x8xf32>
    %311 = arith.maximumf %302, %303 : vector<12x8xf32>
    %312 = arith.maximumf %310, %311 : vector<12x8xf32>
    %cst_122 = arith.constant 0.000000e+00 : f32
    %313 = vector.broadcast %cst_122 : f32 to vector<12x8xf32>
    %314 = arith.maximumf %312, %313 : vector<12x8xf32>
    %c120 = arith.constant 120 : index
    %c0_123 = arith.constant 0 : index
    %315 = vector.load %arg11[%c120, %c0_123] : memref<181x8xf32, #tpu.memory_space<vmem>>, vector<12x8xf32>
    tpu.vector_store %arg11[%c120, %c0_123], %314 {strides = array<i32>} : memref<181x8xf32, #tpu.memory_space<vmem>>, vector<12x8xf32>,
    %c550_124 = arith.constant 550 : index
    %c0_125 = arith.constant 0 : index
    %316 = vector.load %arg10[%c550_124, %c0_125] : memref<750x8xf32, #tpu.memory_space<vmem>>, vector<13x8xf32>
    %c563 = arith.constant 563 : index
    %c0_126 = arith.constant 0 : index
    %317 = vector.load %arg10[%c563, %c0_126] : memref<750x8xf32, #tpu.memory_space<vmem>>, vector<13x8xf32>
    %c576 = arith.constant 576 : index
    %c0_127 = arith.constant 0 : index
    %318 = vector.load %arg10[%c576, %c0_127] : memref<750x8xf32, #tpu.memory_space<vmem>>, vector<12x8xf32>
    %c588 = arith.constant 588 : index
    %c0_128 = arith.constant 0 : index
    %319 = vector.load %arg10[%c588, %c0_128] : memref<750x8xf32, #tpu.memory_space<vmem>>, vector<12x8xf32>
    %320 = vector.extract_strided_slice %316 {offsets = [0, 0], sizes = [12, 8], strides = [1, 1]} : vector<13x8xf32> to vector<12x8xf32>
    %321 = vector.extract_strided_slice %316 {offsets = [1, 0], sizes = [12, 8], strides = [1, 1]} : vector<13x8xf32> to vector<12x8xf32>
    %322 = arith.maximumf %320, %321 : vector<12x8xf32>
    %323 = vector.extract_strided_slice %317 {offsets = [0, 0], sizes = [12, 8], strides = [1, 1]} : vector<13x8xf32> to vector<12x8xf32>
    %324 = vector.extract_strided_slice %317 {offsets = [1, 0], sizes = [12, 8], strides = [1, 1]} : vector<13x8xf32> to vector<12x8xf32>
    %325 = arith.maximumf %323, %324 : vector<12x8xf32>
    %326 = arith.maximumf %322, %325 : vector<12x8xf32>
    %327 = arith.maximumf %318, %319 : vector<12x8xf32>
    %328 = arith.maximumf %326, %327 : vector<12x8xf32>
    %cst_129 = arith.constant 0.000000e+00 : f32
    %329 = vector.broadcast %cst_129 : f32 to vector<12x8xf32>
    %330 = arith.maximumf %328, %329 : vector<12x8xf32>
    %c132 = arith.constant 132 : index
    %c0_130 = arith.constant 0 : index
    %331 = vector.load %arg11[%c132, %c0_130] : memref<181x8xf32, #tpu.memory_space<vmem>>, vector<12x8xf32>
    tpu.vector_store %arg11[%c132, %c0_130], %330 {strides = array<i32>} : memref<181x8xf32, #tpu.memory_space<vmem>>, vector<12x8xf32>,
    %c600 = arith.constant 600 : index
    %c0_131 = arith.constant 0 : index
    %332 = vector.load %arg10[%c600, %c0_131] : memref<750x8xf32, #tpu.memory_space<vmem>>, vector<13x8xf32>
    %c613 = arith.constant 613 : index
    %c0_132 = arith.constant 0 : index
    %333 = vector.load %arg10[%c613, %c0_132] : memref<750x8xf32, #tpu.memory_space<vmem>>, vector<13x8xf32>
    %c626 = arith.constant 626 : index
    %c0_133 = arith.constant 0 : index
    %334 = vector.load %arg10[%c626, %c0_133] : memref<750x8xf32, #tpu.memory_space<vmem>>, vector<12x8xf32>
    %c638_134 = arith.constant 638 : index
    %c0_135 = arith.constant 0 : index
    %335 = vector.load %arg10[%c638_134, %c0_135] : memref<750x8xf32, #tpu.memory_space<vmem>>, vector<12x8xf32>
    %336 = vector.extract_strided_slice %332 {offsets = [0, 0], sizes = [12, 8], strides = [1, 1]} : vector<13x8xf32> to vector<12x8xf32>
    %337 = vector.extract_strided_slice %332 {offsets = [1, 0], sizes = [12, 8], strides = [1, 1]} : vector<13x8xf32> to vector<12x8xf32>
    %338 = arith.maximumf %336, %337 : vector<12x8xf32>
    %339 = vector.extract_strided_slice %333 {offsets = [0, 0], sizes = [12, 8], strides = [1, 1]} : vector<13x8xf32> to vector<12x8xf32>
    %340 = vector.extract_strided_slice %333 {offsets = [1, 0], sizes = [12, 8], strides = [1, 1]} : vector<13x8xf32> to vector<12x8xf32>
    %341 = arith.maximumf %339, %340 : vector<12x8xf32>
    %342 = arith.maximumf %338, %341 : vector<12x8xf32>
    %343 = arith.maximumf %334, %335 : vector<12x8xf32>
    %344 = arith.maximumf %342, %343 : vector<12x8xf32>
    %cst_136 = arith.constant 0.000000e+00 : f32
    %345 = vector.broadcast %cst_136 : f32 to vector<12x8xf32>
    %346 = arith.maximumf %344, %345 : vector<12x8xf32>
    %c144 = arith.constant 144 : index
    %c0_137 = arith.constant 0 : index
    %347 = vector.load %arg11[%c144, %c0_137] : memref<181x8xf32, #tpu.memory_space<vmem>>, vector<12x8xf32>
    tpu.vector_store %arg11[%c144, %c0_137], %346 {strides = array<i32>} : memref<181x8xf32, #tpu.memory_space<vmem>>, vector<12x8xf32>,
    %c650 = arith.constant 650 : index
    %c0_138 = arith.constant 0 : index
    %348 = vector.load %arg10[%c650, %c0_138] : memref<750x8xf32, #tpu.memory_space<vmem>>, vector<13x8xf32>
    %c663 = arith.constant 663 : index
    %c0_139 = arith.constant 0 : index
    %349 = vector.load %arg10[%c663, %c0_139] : memref<750x8xf32, #tpu.memory_space<vmem>>, vector<13x8xf32>
    %c676 = arith.constant 676 : index
    %c0_140 = arith.constant 0 : index
    %350 = vector.load %arg10[%c676, %c0_140] : memref<750x8xf32, #tpu.memory_space<vmem>>, vector<12x8xf32>
    %c688 = arith.constant 688 : index
    %c0_141 = arith.constant 0 : index
    %351 = vector.load %arg10[%c688, %c0_141] : memref<750x8xf32, #tpu.memory_space<vmem>>, vector<12x8xf32>
    %352 = vector.extract_strided_slice %348 {offsets = [0, 0], sizes = [12, 8], strides = [1, 1]} : vector<13x8xf32> to vector<12x8xf32>
    %353 = vector.extract_strided_slice %348 {offsets = [1, 0], sizes = [12, 8], strides = [1, 1]} : vector<13x8xf32> to vector<12x8xf32>
    %354 = arith.maximumf %352, %353 : vector<12x8xf32>
    %355 = vector.extract_strided_slice %349 {offsets = [0, 0], sizes = [12, 8], strides = [1, 1]} : vector<13x8xf32> to vector<12x8xf32>
    %356 = vector.extract_strided_slice %349 {offsets = [1, 0], sizes = [12, 8], strides = [1, 1]} : vector<13x8xf32> to vector<12x8xf32>
    %357 = arith.maximumf %355, %356 : vector<12x8xf32>
    %358 = arith.maximumf %354, %357 : vector<12x8xf32>
    %359 = arith.maximumf %350, %351 : vector<12x8xf32>
    %360 = arith.maximumf %358, %359 : vector<12x8xf32>
    %cst_142 = arith.constant 0.000000e+00 : f32
    %361 = vector.broadcast %cst_142 : f32 to vector<12x8xf32>
    %362 = arith.maximumf %360, %361 : vector<12x8xf32>
    %c156 = arith.constant 156 : index
    %c0_143 = arith.constant 0 : index
    %363 = vector.load %arg11[%c156, %c0_143] : memref<181x8xf32, #tpu.memory_space<vmem>>, vector<12x8xf32>
    tpu.vector_store %arg11[%c156, %c0_143], %362 {strides = array<i32>} : memref<181x8xf32, #tpu.memory_space<vmem>>, vector<12x8xf32>,
    %c700 = arith.constant 700 : index
    %c0_144 = arith.constant 0 : index
    %364 = vector.load %arg10[%c700, %c0_144] : memref<750x8xf32, #tpu.memory_space<vmem>>, vector<13x8xf32>
    %c713 = arith.constant 713 : index
    %c0_145 = arith.constant 0 : index
    %365 = vector.load %arg10[%c713, %c0_145] : memref<750x8xf32, #tpu.memory_space<vmem>>, vector<13x8xf32>
    %c726 = arith.constant 726 : index
    %c0_146 = arith.constant 0 : index
    %366 = vector.load %arg10[%c726, %c0_146] : memref<750x8xf32, #tpu.memory_space<vmem>>, vector<12x8xf32>
    %c738 = arith.constant 738 : index
    %c0_147 = arith.constant 0 : index
    %367 = vector.load %arg10[%c738, %c0_147] : memref<750x8xf32, #tpu.memory_space<vmem>>, vector<12x8xf32>
    %368 = vector.extract_strided_slice %364 {offsets = [0, 0], sizes = [12, 8], strides = [1, 1]} : vector<13x8xf32> to vector<12x8xf32>
    %369 = vector.extract_strided_slice %364 {offsets = [1, 0], sizes = [12, 8], strides = [1, 1]} : vector<13x8xf32> to vector<12x8xf32>
    %370 = arith.maximumf %368, %369 : vector<12x8xf32>
    %371 = vector.extract_strided_slice %365 {offsets = [0, 0], sizes = [12, 8], strides = [1, 1]} : vector<13x8xf32> to vector<12x8xf32>
    %372 = vector.extract_strided_slice %365 {offsets = [1, 0], sizes = [12, 8], strides = [1, 1]} : vector<13x8xf32> to vector<12x8xf32>
    %373 = arith.maximumf %371, %372 : vector<12x8xf32>
    %374 = arith.maximumf %370, %373 : vector<12x8xf32>
    %375 = arith.maximumf %366, %367 : vector<12x8xf32>
    %376 = arith.maximumf %374, %375 : vector<12x8xf32>
    %cst_148 = arith.constant 0.000000e+00 : f32
    %377 = vector.broadcast %cst_148 : f32 to vector<12x8xf32>
    %378 = arith.maximumf %376, %377 : vector<12x8xf32>
    %c168 = arith.constant 168 : index
    %c0_149 = arith.constant 0 : index
    %379 = vector.load %arg11[%c168, %c0_149] : memref<181x8xf32, #tpu.memory_space<vmem>>, vector<12x8xf32>
    tpu.vector_store %arg11[%c168, %c0_149], %378 {strides = array<i32>} : memref<181x8xf32, #tpu.memory_space<vmem>>, vector<12x8xf32>,
    %c180 = arith.constant 180 : index
    %c0_150 = arith.constant 0 : index
    %380 = vector.load %arg11[%c180, %c0_150] : memref<181x8xf32, #tpu.memory_space<vmem>>, vector<1x8xf32>
    tpu.vector_store %arg11[%c180, %c0_150], %0 {strides = array<i32>} : memref<181x8xf32, #tpu.memory_space<vmem>>, vector<1x8xf32>,
    %c0_151 = arith.constant 0 : index
    %c0_152 = arith.constant 0 : index
    %381 = vector.load %arg4[%c0_151, %c0_152] : memref<24x181xf32, #tpu.memory_space<vmem>>, vector<24x181xf32>
    %c0_153 = arith.constant 0 : index
    %c0_154 = arith.constant 0 : index
    %382 = vector.load %arg11[%c0_153, %c0_154] : memref<181x8xf32, #tpu.memory_space<vmem>>, vector<181x8xf32>
    %cst_155 = arith.constant dense<0.000000e+00> : vector<24x8xf32>
    %383 = tpu.matmul %381, %382, %cst_155 {dimension_numbers = #tpu.dot_dimension_numbers<[1], [0], [0], [1], [0, 0, 1, 1], [], []>} : vector<24x181xf32>, vector<181x8xf32>, vector<24x8xf32> -> vector<24x8xf32>
    %cst_156 = arith.constant 0.000000e+00 : f32
    %384 = vector.broadcast %cst_156 : f32 to vector<24x8xf32>
    %385 = arith.maximumf %383, %384 : vector<24x8xf32>
    %c0_157 = arith.constant 0 : index
    %c0_158 = arith.constant 0 : index
    %386 = vector.load %arg5[%c0_157, %c0_158] : memref<8x24xf32, #tpu.memory_space<vmem>>, vector<8x24xf32>
    %cst_159 = arith.constant dense<0.000000e+00> : vector<8x8xf32>
    %387 = tpu.matmul %386, %385, %cst_159 {dimension_numbers = #tpu.dot_dimension_numbers<[1], [0], [0], [1], [0, 0, 1, 1], [], []>} : vector<8x24xf32>, vector<24x8xf32>, vector<8x8xf32> -> vector<8x8xf32>
    %c0_160 = arith.constant 0 : index
    %c0_161 = arith.constant 0 : index
    %388 = vector.load %arg6[%c0_160, %c0_161] : memref<8x1xf32, #tpu.memory_space<vmem>>, vector<8x1xf32>
    %389 = vector.broadcast %388 : vector<8x1xf32> to vector<8x8xf32>
    %390 = arith.addf %387, %389 : vector<8x8xf32>
    %cst_162 = arith.constant dense<0xFF800000> : vector<8xf32>
    %391 = vector.multi_reduction <maximumf>, %390, %cst_162 [0] : vector<8x8xf32> to vector<8xf32>
    %392 = vector.shape_cast %391 : vector<8xf32> to vector<1x8xf32>
    %393 = vector.broadcast %392 : vector<1x8xf32> to vector<8x8xf32>
    %394 = arith.subf %390, %393 : vector<8x8xf32>
    %395 = math.exp %394 : vector<8x8xf32>
    %cst_163 = arith.constant dense<0.000000e+00> : vector<8xf32>
    %396 = vector.multi_reduction <add>, %395, %cst_163 [0] : vector<8x8xf32> to vector<8xf32>
    %397 = vector.shape_cast %396 : vector<8xf32> to vector<1x8xf32>
    %398 = math.log %397 : vector<1x8xf32>
    %399 = vector.broadcast %398 : vector<1x8xf32> to vector<8x8xf32>
    %400 = arith.subf %394, %399 : vector<8x8xf32>
    %c0_164 = arith.constant 0 : index
    %c0_165 = arith.constant 0 : index
    %401 = vector.load %arg7[%c0_164, %c0_165] : memref<8x8xf32, #tpu.memory_space<vmem>>, vector<8x8xf32>
    tpu.vector_store %arg7[%c0_164, %c0_165], %400 {strides = array<i32>} : memref<8x8xf32, #tpu.memory_space<vmem>>, vector<8x8xf32>,
    return
  }
  func.func @transform_0(%arg0: i32) -> (i32, i32) {
    %c0_i32 = arith.constant 0 : i32
    %c0_i32_0 = arith.constant 0 : i32
    return %c0_i32, %arg0 : i32, i32
  }
  func.func @transform_1(%arg0: i32) -> (i32, i32) {
    %c0_i32 = arith.constant 0 : i32
    %c0_i32_0 = arith.constant 0 : i32
    %c0_i32_1 = arith.constant 0 : i32
    return %c0_i32, %c0_i32_0 : i32, i32
  }
  func.func @transform_2(%arg0: i32) -> (i32, i32) {
    %c0_i32 = arith.constant 0 : i32
    %c0_i32_0 = arith.constant 0 : i32
    %c0_i32_1 = arith.constant 0 : i32
    return %c0_i32, %c0_i32_0 : i32, i32
  }
  func.func @transform_3(%arg0: i32) -> (i32, i32) {
    %c0_i32 = arith.constant 0 : i32
    %c0_i32_0 = arith.constant 0 : i32
    %c0_i32_1 = arith.constant 0 : i32
    return %c0_i32, %c0_i32_0 : i32, i32
  }
  func.func @transform_4(%arg0: i32) -> (i32, i32) {
    %c0_i32 = arith.constant 0 : i32
    %c0_i32_0 = arith.constant 0 : i32
    %c0_i32_1 = arith.constant 0 : i32
    return %c0_i32, %c0_i32_0 : i32, i32
  }
  func.func @transform_5(%arg0: i32) -> (i32, i32) {
    %c0_i32 = arith.constant 0 : i32
    %c0_i32_0 = arith.constant 0 : i32
    %c0_i32_1 = arith.constant 0 : i32
    return %c0_i32, %c0_i32_0 : i32, i32
  }
  func.func @transform_6(%arg0: i32) -> (i32, i32) {
    %c0_i32 = arith.constant 0 : i32
    %c0_i32_0 = arith.constant 0 : i32
    return %c0_i32, %arg0 : i32, i32
  }
}

</mosaic_0001>

<bundles_post_ra>
// kernel: speechnet_forward.1
= control target key start
LH: loop header
LB: loop body
LE: loop exit
PB: predicated region body
PF: predicated region fallthrough
CT: control target
= control target key end

     0   :  { %v7525_v0 = vmov 0.0|0.0   ;;  %vm7526_vm0 = vmmov 0   ;;  %v7527_v6 = vmov 0.0   ;;  %vm620_vm1 = vcmask 1043456   ;;  %s10873_s0 = inlined_call_operand.vmem [shape: f32[124,8], index: 0, kind: input, shape index: {}]   ;;  %s10874_s1 = inlined_call_operand.vmem [shape: f32[1160,124], index: 1, kind: input, shape index: {}]   ;;  %s10875_s2 = inlined_call_operand.vmem [shape: f32[750,551], index: 2, kind: input, shape index: {}]   ;;  %s10876_s3 = inlined_call_operand.vmem [shape: f32[24,181], index: 3, kind: input, shape index: {}]   ;;  %s10877_s5 = inlined_call_operand.vmem [shape: f32[8,1], index: 5, kind: input, shape index: {}]   ;;  %s10878_s4 = inlined_call_operand.vmem [shape: f32[8,24], index: 4, kind: input, shape index: {}]   ;;  %s10879_s6 = inlined_call_operand.vmem [shape: f32[8,8], index: 6, kind: output, shape index: {}]  }
   0x1   :  { %7161 = vmatprep.subr.bf16.mxu0 %v7525_v0  ;;  %v168_v1 = vld [vmem:[%s10873_s0] sm:$0xff]  ;;  %v169_v2 = vld [vmem:[%s10873_s0 + $0x8] sm:$0xff]  ;;  %v170_v3 = vld [vmem:[%s10873_s0 + $0x10] sm:$0xff]  ;;  %7186 = vmatprep.subr.bf16.mxu1 %v7525_v0  ;;  %vm7528_vm2 = vmmov 1   ;;  %vm184_vm4 = vcmask 1014784   ;;  %vm1414_vm5 = vcmask 64512  }
   0x2   :  { %v7162_v4 = vpack.c.bf16 %v169_v2, %v168_v1  ;;  %v171_v5 = vld [vmem:[%s10873_s0 + $0x18] sm:$0xff]  ;;  %6566 = vmatprep.mubr.msk.f32.mxu0 %vm7526_vm0, %v7527_v6  ;;  %v172_v8 = vld [vmem:[%s10873_s0 + $0x20] sm:$0xff]  ;;  %v173_v9 = vld [vmem:[%s10873_s0 + $0x28] sm:$0xff]  ;;  %vm1591_vm6 = vcmask 1046528   ;;  %vm1634_vm7 = vcmask 1045504   ;;  %vm1677_vm8 = vcmask 63488  }
   0x3   :  { %v7165_v7 = vpack.c.bf16 %v171_v5, %v170_v3  ;;  %v7168_v10 = vpack.c.bf16 %v173_v9, %v172_v8  ;;  %v174_v11 = vld [vmem:[%s10873_s0 + $0x30] sm:$0xff]  ;;  %v175_v12 = vld [vmem:[%s10873_s0 + $0x38] sm:$0xff]  ;;  %v176_v14 = vld [vmem:[%s10873_s0 + $0x40] sm:$0xff]  ;;  %vm2723_vm9 = vcmask 57344   ;;  %vm3264_vm10 = vcmask 318464  }
   0x4   :  { %7163 = vmatpush3.bf16.msra.mxu0 %v7162_v4  ;;  %v7171_v13 = vpack.c.bf16 %v175_v12, %v174_v11  ;;  %v177_v15 = vld [vmem:[%s10873_s0 + $0x48] sm:$0xff]  ;;  %v178_v17 = vld [vmem:[%s10873_s0 + $0x50] sm:$0xff]  ;;  %v179_v18 = vld [vmem:[%s10873_s0 + $0x58] sm:$0xff]  ;;  %vm5285_vm11 = vcmask 60416   ;;  %vm5821_vm12 = vcmask 433152   ;;  %vm5248_vm13 = vcmask 62464  }
   0x5   :  { %7164 = vmatprep.subr.bf16.mxu0 %v7525_v0  ;;  %v7174_v16 = vpack.c.bf16 %v177_v15, %v176_v14  ;;  %v7177_v19 = vpack.c.bf16 %v179_v18, %v178_v17  ;;  %v180_v20 = vld [vmem:[%s10873_s0 + $0x60] sm:$0xff]  ;;  %v181_v21 = vld [vmem:[%s10873_s0 + $0x68] sm:$0xff]  ;;  %v182_v23 = vld [vmem:[%s10873_s0 + $0x70] sm:$0xff]  ;;  %vm5831_vm14 = vcmask 1044480   ;;  %vm5925_vm15 = vcmask 195584  }
   0x6   :  { %v7180_v22 = vpack.c.bf16 %v181_v21, %v180_v20  ;;  %v183_v24 = vld [vmem:[%s10873_s0 + $0x78] sm:$0xf]  ;;  %vm7184_vm3 = vmpackc.low %vm620_vm1, %vm7528_vm2  ;;  %v23_v26 = vld [vmem:[%s10874_s1] sm:$0xff] }
   0x7   :  { %v7183_v25 = vpack.c.bf16 %v183_v24, %v182_v23  ;;  %v24_v27 = vld [vmem:[%s10874_s1 + $0x8] sm:$0xff]  ;;  %v25_v28 = vld [vmem:[%s10874_s1 + $0x10] sm:$0xff]  ;;  %v26_v29 = vld [vmem:[%s10874_s1 + $0x18] sm:$0xff] }
   0x8   :  { %7166 = vmatpush3.bf16.msra.mxu0 %v7165_v7  ;;  %v27_v30 = vld [vmem:[%s10874_s1 + $0x20] sm:$0xff]  ;;  %v28_v31 = vld [vmem:[%s10874_s1 + $0x28] sm:$0xff]  ;;  %v29_v32 = vld [vmem:[%s10874_s1 + $0x30] sm:$0xff] }
   0x9   :  { %7167 = vmatprep.subr.bf16.mxu0 %v7525_v0  ;;  %v30_v33 = vld [vmem:[%s10874_s1 + $0x38] sm:$0xff]  ;;  %v31_v34 = vld [vmem:[%s10874_s1 + $0x40] sm:$0xff]  ;;  %v32_v35 = vld [vmem:[%s10874_s1 + $0x48] sm:$0xff] }
   0xa   :  { %v33_v36 = vld [vmem:[%s10874_s1 + $0x50] sm:$0xff]  ;;  %v34_v37 = vld [vmem:[%s10874_s1 + $0x58] sm:$0xff]  ;;  %v35_v38 = vld [vmem:[%s10874_s1 + $0x60] sm:$0xff] }
   0xb   :  { %v36_v39 = vld [vmem:[%s10874_s1 + $0x68] sm:$0xff]  ;;  %v37_v40 = vld [vmem:[%s10874_s1 + $0x70] sm:$0xff]  ;;  %v38_v41 = vld [vmem:[%s10874_s1 + $0x78] sm:$0xff] }
   0xc   :  { %7169 = vmatpush3.bf16.msra.mxu0 %v7168_v10  ;;  %v39_v42 = vld [vmem:[%s10874_s1 + $0x80] sm:$0xff]  ;;  %v40_v43 = vld [vmem:[%s10874_s1 + $0x88] sm:$0xff]  ;;  %v41_v44 = vld [vmem:[%s10874_s1 + $0x90] sm:$0xff] }
   0xd   :  { %7170 = vmatprep.subr.bf16.mxu0 %v7525_v0  ;;  %v42_v45 = vld [vmem:[%s10874_s1 + $0x98] sm:$0xff]  ;;  %v43_v46 = vld [vmem:[%s10874_s1 + $0xa0] sm:$0xff]  ;;  %v44_v47 = vld [vmem:[%s10874_s1 + $0xa8] sm:$0xff] }
   0xe   :  { %v45_v48 = vld [vmem:[%s10874_s1 + $0xb0] sm:$0xff]  ;;  %v46_v49 = vld [vmem:[%s10874_s1 + $0xb8] sm:$0xff]  ;;  %v47_v50 = vld [vmem:[%s10874_s1 + $0xc0] sm:$0xff] }
   0xf   :  { %v48_v51 = vld [vmem:[%s10874_s1 + $0xc8] sm:$0xff]  ;;  %v49_v52 = vld [vmem:[%s10874_s1 + $0xd0] sm:$0xff]  ;;  %v50_v53 = vld [vmem:[%s10874_s1 + $0xd8] sm:$0xff] }
  0x10   :  { %7172 = vmatpush3.bf16.msra.mxu0 %v7171_v13  ;;  %v51_v54 = vld [vmem:[%s10874_s1 + $0xe0] sm:$0xff]  ;;  %v52_v55 = vld [vmem:[%s10874_s1 + $0xe8] sm:$0xff]  ;;  %v53_v56 = vld [vmem:[%s10874_s1 + $0xf0] sm:$0xff] }
  0x11   :  { %7173 = vmatprep.subr.bf16.mxu0 %v7525_v0  ;;  %v54_v57 = vld [vmem:[%s10874_s1 + $0xf8] sm:$0xff]  ;;  %v55_v58 = vld [vmem:[%s10874_s1 + $0x100] sm:$0xff]  ;;  %v56_v59 = vld [vmem:[%s10874_s1 + $0x108] sm:$0xff] }
  0x12   :  { %v57_v60 = vld [vmem:[%s10874_s1 + $0x110] sm:$0xff]  ;;  %v58_v61 = vld [vmem:[%s10874_s1 + $0x118] sm:$0xff]  ;;  %v59_v62 = vld [vmem:[%s10874_s1 + $0x120] sm:$0xff] }
  0x13   :  { %v60_v63 = vld [vmem:[%s10874_s1 + $0x128] sm:$0xff]  ;;  %v61_v1 = vld [vmem:[%s10874_s1 + $0x130] sm:$0xff]  ;;  %v62_v2 = vld [vmem:[%s10874_s1 + $0x138] sm:$0xff] }
  0x14   :  { %7175 = vmatpush3.bf16.msra.mxu0 %v7174_v16  ;;  %v63_v3 = vld [vmem:[%s10874_s1 + $0x140] sm:$0xff]  ;;  %v64_v4 = vld [vmem:[%s10874_s1 + $0x148] sm:$0xff]  ;;  %v65_v5 = vld [vmem:[%s10874_s1 + $0x150] sm:$0xff] }
  0x15   :  { %7176 = vmatprep.subr.bf16.mxu0 %v7525_v0  ;;  %v66_v7 = vld [vmem:[%s10874_s1 + $0x158] sm:$0xff]  ;;  %v67_v8 = vld [vmem:[%s10874_s1 + $0x160] sm:$0xff]  ;;  %v68_v9 = vld [vmem:[%s10874_s1 + $0x168] sm:$0xff] }
  0x16   :  { %v69_v10 = vld [vmem:[%s10874_s1 + $0x170] sm:$0xff]  ;;  %v70_v11 = vld [vmem:[%s10874_s1 + $0x178] sm:$0xff]  ;;  %v71_v12 = vld [vmem:[%s10874_s1 + $0x180] sm:$0xff] }
  0x17   :  { %v72_v13 = vld [vmem:[%s10874_s1 + $0x188] sm:$0xff]  ;;  %v73_v14 = vld [vmem:[%s10874_s1 + $0x190] sm:$0xff]  ;;  %v74_v15 = vld [vmem:[%s10874_s1 + $0x198] sm:$0xff] }
  0x18   :  { %7178 = vmatpush3.bf16.msra.mxu0 %v7177_v19  ;;  %v75_v16 = vld [vmem:[%s10874_s1 + $0x1a0] sm:$0xff]  ;;  %v76_v17 = vld [vmem:[%s10874_s1 + $0x1a8] sm:$0xff]  ;;  %v77_v20 = vld [vmem:[%s10874_s1 + $0x1b0] sm:$0xff] }
  0x19   :  { %7179 = vmatprep.subr.bf16.mxu0 %v7525_v0  ;;  %v78_v23 = vld [vmem:[%s10874_s1 + $0x1b8] sm:$0xff] }
  0x1c   :  { %7181 = vmatpush3.bf16.msra.mxu0 %v7180_v22 }
  0x1d   :  { %7182 = vmatprep.subr.bf16.mxu0 %v7525_v0 }
  0x20   :  { %7185 = vmatpush3.bf16.msk.msra.mxu0 %vm7184_vm3, %v7183_v25 }
  0x23   :  { %6567 = vmatmul.mubr.msk.f32.vlgmr.msra.gmra.mrb[0].mxu0 %vm184_vm4, %v23_v26  ;;  %v79_v26 = vld [vmem:[%s10874_s1 + $0x1c0] sm:$0xff] }
  0x24   :  { %6569 = vmatprep.mubr.msk.f32.mxu0 %vm7526_vm0, %v7527_v6 }
  0x27   :  { %6570 = vmatmul.mubr.msk.f32.gmra.mrb[2].mxu0 %vm184_vm4, %v24_v27 }
  0x28   :  { %6572 = vmatprep.mubr.msk.f32.mxu0 %vm7526_vm0, %v7527_v6 }
  0x2b   :  { %6573 = vmatmul.mubr.msk.f32.gmra.mrb[4].mxu0 %vm184_vm4, %v25_v28 }
  0x2c   :  { %6575 = vmatprep.mubr.msk.f32.mxu0 %vm7526_vm0, %v7527_v6 }
  0x2f   :  { %6576 = vmatmul.mubr.msk.f32.gmra.mrb[6].mxu0 %vm184_vm4, %v26_v29  ;;  %v80_v29 = vld [vmem:[%s10874_s1 + $0x1c8] sm:$0xff] }
  0x30   :  { %6578 = vmatprep.mubr.msk.f32.mxu0 %vm7526_vm0, %v7527_v6 }
  0x33   :  { %6579 = vmatmul.mubr.msk.f32.gmra.mrb[8].mxu0 %vm184_vm4, %v27_v30 }
  0x34   :  { %6581 = vmatprep.mubr.msk.f32.mxu0 %vm7526_vm0, %v7527_v6 }
  0x37   :  { %6582 = vmatmul.mubr.msk.f32.gmra.mrb[10].mxu0 %vm184_vm4, %v28_v31 }
  0x38   :  { %6584 = vmatprep.mubr.msk.f32.mxu0 %vm7526_vm0, %v7527_v6 }
  0x3b   :  { %6585 = vmatmul.mubr.msk.f32.gmra.mrb[12].mxu0 %vm184_vm4, %v29_v32  ;;  %v81_v32 = vld [vmem:[%s10874_s1 + $0x1d0] sm:$0xff] }
  0x3c   :  { %6587 = vmatprep.mubr.msk.f32.mxu0 %vm7526_vm0, %v7527_v6 }
  0x3f   :  { %6588 = vmatmul.mubr.msk.f32.gmra.mrb[14].mxu0 %vm184_vm4, %v30_v33 }
  0x40   :  { %6590 = vmatprep.mubr.msk.f32.mxu0 %vm7526_vm0, %v7527_v6 }
  0x43   :  { %6591 = vmatmul.mubr.msk.f32.gmra.mrb[16].mxu0 %vm184_vm4, %v31_v34 }
  0x44   :  { %6593 = vmatprep.mubr.msk.f32.mxu0 %vm7526_vm0, %v7527_v6 }
  0x47   :  { %6594 = vmatmul.mubr.msk.f32.gmra.mrb[18].mxu0 %vm184_vm4, %v32_v35  ;;  %v82_v35 = vld [vmem:[%s10874_s1 + $0x1d8] sm:$0xff] }
  0x48   :  { %6596 = vmatprep.mubr.msk.f32.mxu0 %vm7526_vm0, %v7527_v6 }
  0x4b   :  { %6597 = vmatmul.mubr.msk.f32.gmra.mrb[20].mxu0 %vm184_vm4, %v33_v36 }
  0x4c   :  { %6599 = vmatprep.mubr.msk.f32.mxu0 %vm7526_vm0, %v7527_v6 }
  0x4f   :  { %6600 = vmatmul.mubr.msk.f32.gmra.mrb[22].mxu0 %vm184_vm4, %v34_v37 }
  0x50   :  { %6602 = vmatprep.mubr.msk.f32.mxu0 %vm7526_vm0, %v7527_v6 }
  0x53   :  { %6603 = vmatmul.mubr.msk.f32.gmra.mrb[24].mxu0 %vm184_vm4, %v35_v38  ;;  %v83_v38 = vld [vmem:[%s10874_s1 + $0x1e0] sm:$0xff] }
  0x54   :  { %6605 = vmatprep.mubr.msk.f32.mxu0 %vm7526_vm0, %v7527_v6 }
  0x57   :  { %6606 = vmatmul.mubr.msk.f32.gmra.mrb[26].mxu0 %vm184_vm4, %v36_v39 }
  0x58   :  { %6608 = vmatprep.mubr.msk.f32.mxu0 %vm7526_vm0, %v7527_v6 }
  0x5b   :  { %6609 = vmatmul.mubr.msk.f32.gmra.mrb[28].mxu0 %vm184_vm4, %v37_v40 }
  0x5c   :  { %6611 = vmatprep.mubr.msk.f32.mxu0 %vm7526_vm0, %v7527_v6 }
  0x5f   :  { %6612 = vmatmul.mubr.msk.f32.gmra.mrb[30].mxu0 %vm184_vm4, %v38_v41  ;;  %v84_v41 = vld [vmem:[%s10874_s1 + $0x1e8] sm:$0xff] }
  0x60   :  { %6614 = vmatprep.mubr.msk.f32.mxu0 %vm7526_vm0, %v7527_v6 }
  0x63   :  { %6615 = vmatmul.mubr.msk.f32.gmra.mrb[32].mxu0 %vm184_vm4, %v39_v42 }
  0x64   :  { %6617 = vmatprep.mubr.msk.f32.mxu0 %vm7526_vm0, %v7527_v6 }
  0x67   :  { %6618 = vmatmul.mubr.msk.f32.gmra.mrb[34].mxu0 %vm184_vm4, %v40_v43 }
  0x68   :  { %6620 = vmatprep.mubr.msk.f32.mxu0 %vm7526_vm0, %v7527_v6 }
  0x6b   :  { %6621 = vmatmul.mubr.msk.f32.gmra.mrb[36].mxu0 %vm184_vm4, %v41_v44  ;;  %v85_v44 = vld [vmem:[%s10874_s1 + $0x1f0] sm:$0xff] }
  0x6c   :  { %6623 = vmatprep.mubr.msk.f32.mxu0 %vm7526_vm0, %v7527_v6 }
  0x6f   :  { %6624 = vmatmul.mubr.msk.f32.gmra.mrb[38].mxu0 %vm184_vm4, %v42_v45 }
  0x70   :  { %6626 = vmatprep.mubr.msk.f32.mxu0 %vm7526_vm0, %v7527_v6 }
  0x73   :  { %6627 = vmatmul.mubr.msk.f32.gmra.mrb[40].mxu0 %vm184_vm4, %v43_v46 }
  0x74   :  { %6629 = vmatprep.mubr.msk.f32.mxu0 %vm7526_vm0, %v7527_v6 }
  0x77   :  { %6630 = vmatmul.mubr.msk.f32.gmra.mrb[42].mxu0 %vm184_vm4, %v44_v47  ;;  %v86_v47 = vld [vmem:[%s10874_s1 + $0x1f8] sm:$0xff] }
  0x78   :  { %6632 = vmatprep.mubr.msk.f32.mxu0 %vm7526_vm0, %v7527_v6 }
  0x7b   :  { %6633 = vmatmul.mubr.msk.f32.gmra.mrb[44].mxu0 %vm184_vm4, %v45_v48 }
  0x7c   :  { %6635 = vmatprep.mubr.msk.f32.mxu0 %vm7526_vm0, %v7527_v6 }
  0x7f   :  { %6636 = vmatmul.mubr.msk.f32.gmra.mrb[46].mxu0 %vm184_vm4, %v46_v49 }
  0x80   :  { %6638 = vmatprep.mubr.msk.f32.mxu0 %vm7526_vm0, %v7527_v6 }
  0x83   :  { %6639 = vmatmul.mubr.msk.f32.gmra.mrb[48].mxu0 %vm184_vm4, %v47_v50 }
  0x84   :  { %6641 = vmatprep.mubr.msk.f32.mxu0 %vm7526_vm0, %v7527_v6 }
  0x87   :  { %6642 = vmatmul.mubr.msk.f32.gmra.mrb[50].mxu0 %vm184_vm4, %v48_v51 }
  0x88   :  { %6644 = vmatprep.mubr.msk.f32.mxu0 %vm7526_vm0, %v7527_v6 }
  0x8b   :  { %6645 = vmatmul.mubr.msk.f32.gmra.mrb[52].mxu0 %vm184_vm4, %v49_v52  ;;  %v87_v52 = vld [vmem:[%s10874_s1 + $0x200] sm:$0xff] }
  0x8c   :  { %6647 = vmatprep.mubr.msk.f32.mxu0 %vm7526_vm0, %v7527_v6 }
  0x8f   :  { %6648 = vmatmul.mubr.msk.f32.gmra.mrb[54].mxu0 %vm184_vm4, %v50_v53 }
  0x90   :  { %6650 = vmatprep.mubr.msk.f32.mxu0 %vm7526_vm0, %v7527_v6 }
  0x93   :  { %6651 = vmatmul.mubr.msk.f32.gmra.mrb[56].mxu0 %vm184_vm4, %v51_v54 }
  0x94   :  { %6653 = vmatprep.mubr.msk.f32.mxu0 %vm7526_vm0, %v7527_v6 }
  0x97   :  { %6654 = vmatmul.mubr.msk.f32.gmra.mrb[58].mxu0 %vm184_vm4, %v52_v55 }
  0x98   :  { %6656 = vmatprep.mubr.msk.f32.mxu0 %vm7526_vm0, %v7527_v6 }
  0x9b   :  { %6657 = vmatmul.mubr.msk.f32.gmra.mrb[60].mxu0 %vm184_vm4, %v53_v56 }
  0x9c   :  { %6659 = vmatprep.mubr.msk.f32.mxu0 %vm7526_vm0, %v7527_v6 }
  0x9f   :  { %6660 = vmatmul.mubr.msk.f32.gmra.mrb[62].mxu0 %vm184_vm4, %v54_v57 }
  0xa0   :  { %6662 = vmatprep.mubr.msk.f32.mxu0 %vm7526_vm0, %v7527_v6 }
  0xa3   :  { %6663 = vmatmul.mubr.msk.f32.gmra.mrb[64].mxu0 %vm184_vm4, %v55_v58 }
  0xa4   :  { %6665 = vmatprep.mubr.msk.f32.mxu0 %vm7526_vm0, %v7527_v6 }
  0xa7   :  { %6666 = vmatmul.mubr.msk.f32.gmra.mrb[66].mxu0 %vm184_vm4, %v56_v59  ;;  %v88_v59 = vld [vmem:[%s10874_s1 + $0x208] sm:$0xff] }
  0xa8   :  { %6668 = vmatprep.mubr.msk.f32.mxu0 %vm7526_vm0, %v7527_v6 }
  0xab   :  { %6669 = vmatmul.mubr.msk.f32.gmra.mrb[68].mxu0 %vm184_vm4, %v57_v60 }
  0xac   :  { %6671 = vmatprep.mubr.msk.f32.mxu0 %vm7526_vm0, %v7527_v6 }
  0xaf   :  { %6672 = vmatmul.mubr.msk.f32.gmra.mrb[70].mxu0 %vm184_vm4, %v58_v61 }
  0xb0   :  { %6674 = vmatprep.mubr.msk.f32.mxu0 %vm7526_vm0, %v7527_v6 }
  0xb3   :  { %6675 = vmatmul.mubr.msk.f32.gmra.mrb[72].mxu0 %vm184_vm4, %v59_v62 }
  0xb4   :  { %6677 = vmatprep.mubr.msk.f32.mxu0 %vm7526_vm0, %v7527_v6 }
  0xb7   :  { %6678 = vmatmul.mubr.msk.f32.gmra.mrb[74].mxu0 %vm184_vm4, %v60_v63 }
  0xb8   :  { %6680 = vmatprep.mubr.msk.f32.mxu0 %vm7526_vm0, %v7527_v6 }
  0xbb   :  { %6681 = vmatmul.mubr.msk.f32.gmra.mrb[76].mxu0 %vm184_vm4, %v61_v1 }
  0xbc   :  { %6683 = vmatprep.mubr.msk.f32.mxu0 %vm7526_vm0, %v7527_v6 }
  0xbf   :  { %6684 = vmatmul.mubr.msk.f32.gmra.mrb[78].mxu0 %vm184_vm4, %v62_v2 }
  0xc0   :  { %6686 = vmatprep.mubr.msk.f32.mxu0 %vm7526_vm0, %v7527_v6 }
  0xc3   :  { %6687 = vmatmul.mubr.msk.f32.gmra.mrb[80].mxu0 %vm184_vm4, %v63_v3 }
  0xc4   :  { %6689 = vmatprep.mubr.msk.f32.mxu0 %vm7526_vm0, %v7527_v6 }
  0xc7   :  { %6690 = vmatmul.mubr.msk.f32.gmra.mrb[82].mxu0 %vm184_vm4, %v64_v4 }
  0xc8   :  { %6692 = vmatprep.mubr.msk.f32.mxu0 %vm7526_vm0, %v7527_v6 }
  0xcb   :  { %6693 = vmatmul.mubr.msk.f32.gmra.mrb[84].mxu0 %vm184_vm4, %v65_v5  ;;  %v89_v5 = vld [vmem:[%s10874_s1 + $0x210] sm:$0xff] }
  0xcc   :  { %6695 = vmatprep.mubr.msk.f32.mxu0 %vm7526_vm0, %v7527_v6 }
  0xcf   :  { %6696 = vmatmul.mubr.msk.f32.gmra.mrb[86].mxu0 %vm184_vm4, %v66_v7 }
  0xd0   :  { %6698 = vmatprep.mubr.msk.f32.mxu0 %vm7526_vm0, %v7527_v6 }
  0xd3   :  { %6699 = vmatmul.mubr.msk.f32.gmra.mrb[88].mxu0 %vm184_vm4, %v67_v8 }
  0xd4   :  { %6701 = vmatprep.mubr.msk.f32.mxu0 %vm7526_vm0, %v7527_v6 }
  0xd7   :  { %6702 = vmatmul.mubr.msk.f32.gmra.mrb[90].mxu0 %vm184_vm4, %v68_v9 }
  0xd8   :  { %6704 = vmatprep.mubr.msk.f32.mxu0 %vm7526_vm0, %v7527_v6 }
  0xdb   :  { %6705 = vmatmul.mubr.msk.f32.gmra.mrb[92].mxu0 %vm184_vm4, %v69_v10 }
  0xdc   :  { %6707 = vmatprep.mubr.msk.f32.mxu0 %vm7526_vm0, %v7527_v6 }
  0xdf   :  { %6708 = vmatmul.mubr.msk.f32.gmra.mrb[94].mxu0 %vm184_vm4, %v70_v11 }
  0xe0   :  { %6710 = vmatprep.mubr.msk.f32.mxu0 %vm7526_vm0, %v7527_v6 }
  0xe3   :  { %6711 = vmatmul.mubr.msk.f32.gmra.mrb[96].mxu0 %vm184_vm4, %v71_v12 }
  0xe4   :  { %6713 = vmatprep.mubr.msk.f32.mxu0 %vm7526_vm0, %v7527_v6 }
  0xe7   :  { %6714 = vmatmul.mubr.msk.f32.gmra.mrb[98].mxu0 %vm184_vm4, %v72_v13 }
  0xe8   :  { %6716 = vmatprep.mubr.msk.f32.mxu0 %vm7526_vm0, %v7527_v6 }
  0xeb   :  { %6717 = vmatmul.mubr.msk.f32.gmra.mrb[100].mxu0 %vm184_vm4, %v73_v14 }
  0xec   :  { %6719 = vmatprep.mubr.msk.f32.mxu0 %vm7526_vm0, %v7527_v6 }
  0xef   :  { %6720 = vmatmul.mubr.msk.f32.gmra.mrb[102].mxu0 %vm184_vm4, %v74_v15  ;;  %v90_v15 = vld [vmem:[%s10874_s1 + $0x218] sm:$0xff] }
  0xf0   :  { %6722 = vmatprep.mubr.msk.f32.mxu0 %vm7526_vm0, %v7527_v6 }
  0xf3   :  { %6723 = vmatmul.mubr.msk.f32.gmra.mrb[104].mxu0 %vm184_vm4, %v75_v16 }
  0xf4   :  { %6725 = vmatprep.mubr.msk.f32.mxu0 %vm7526_vm0, %v7527_v6 }
  0xf6   :  { %v690_v18 = vpop.f32.mrb[0].mxu0 }
  0xf7   :  { %1415 = vst.msk [vmem:[#allocation2] sm:$0xff] %vm1414_vm5, %v690_v18  ;;  %v6568_v19 = vpop.f32.mrb[1].mxu0  ;;  %6726 = vmatmul.mubr.msk.f32.gmra.mrb[106].mxu0 %vm184_vm4, %v76_v17 }
  0xf8   :  { %6728 = vmatprep.mubr.msk.f32.mxu0 %vm7526_vm0, %v7527_v6 }
  0xfa   :  { %v695_v21 = vpop.f32.mrb[2].mxu0 }
  0xfb   :  { %1416 = vst.msk [vmem:[#allocation2 + $0x8] sm:$0xff] %vm1414_vm5, %v695_v21  ;;  %v6571_v22 = vpop.f32.mrb[3].mxu0  ;;  %6729 = vmatmul.mubr.msk.f32.gmra.mrb[108].mxu0 %vm184_vm4, %v77_v20 }
  0xfc   :  { %6731 = vmatprep.mubr.msk.f32.mxu0 %vm7526_vm0, %v7527_v6 }
  0xfe   :  { %v700_v24 = vpop.f32.mrb[4].mxu0  ;;  %v1560_v51 = vld [vmem:[#allocation2] sm:$0xff] }
  0xff   :  { %1417 = vst.msk [vmem:[#allocation2 + $0x10] sm:$0xff] %vm1414_vm5, %v700_v24  ;;  %v6574_v25 = vpop.f32.mrb[5].mxu0  ;;  %6732 = vmatmul.mubr.msk.f32.gmra.mrb[110].mxu0 %vm184_vm4, %v78_v23 }
 0x100   :  { %6734 = vmatprep.mubr.msk.f32.mxu0 %vm7526_vm0, %v7527_v6 }
 0x102   :  { %v705_v27 = vpop.f32.mrb[6].mxu0  ;;  %v1561_v54 = vld [vmem:[#allocation2 + $0x8] sm:$0xff] }
 0x103   :  { %1418 = vst.msk [vmem:[#allocation2 + $0x18] sm:$0xff] %vm1414_vm5, %v705_v27  ;;  %v6577_v28 = vpop.f32.mrb[7].mxu0  ;;  %6735 = vmatmul.mubr.msk.f32.gmra.mrb[112].mxu0 %vm184_vm4, %v79_v26  ;;  %v91_v27 = vld [vmem:[%s10874_s1 + $0x220] sm:$0xff] }
 0x104   :  { %6737 = vmatprep.mubr.msk.f32.mxu0 %vm7526_vm0, %v7527_v6 }
 0x106   :  { %v710_v30 = vpop.f32.mrb[8].mxu0  ;;  %v1562_v62 = vld [vmem:[#allocation2 + $0x10] sm:$0xff] }
 0x107   :  { %1419 = vst.msk [vmem:[#allocation2 + $0x20] sm:$0xff] %vm1414_vm5, %v710_v30  ;;  %v6580_v31 = vpop.f32.mrb[9].mxu0  ;;  %6738 = vmatmul.mubr.msk.f32.gmra.mrb[114].mxu0 %vm184_vm4, %v80_v29 }
 0x108   :  { %6740 = vmatprep.mubr.msk.f32.mxu0 %vm7526_vm0, %v7527_v6 }
 0x10a   :  { %v715_v33 = vpop.f32.mrb[10].mxu0  ;;  %v1563_v8 = vld [vmem:[#allocation2 + $0x18] sm:$0xff] }
 0x10b   :  { %1420 = vst.msk [vmem:[#allocation2 + $0x28] sm:$0xff] %vm1414_vm5, %v715_v33  ;;  %v6583_v34 = vpop.f32.mrb[11].mxu0  ;;  %6741 = vmatmul.mubr.msk.f32.gmra.mrb[116].mxu0 %vm184_vm4, %v81_v32 }
 0x10c   :  { %6743 = vmatprep.mubr.msk.f32.mxu0 %vm7526_vm0, %v7527_v6 }
 0x10e   :  { %v720_v36 = vpop.f32.mrb[12].mxu0  ;;  %v1564_v18 = vld [vmem:[#allocation2 + $0x20] sm:$0xff] }
 0x10f   :  { %1421 = vst.msk [vmem:[#allocation2 + $0x30] sm:$0xff] %vm1414_vm5, %v720_v36  ;;  %v6586_v37 = vpop.f32.mrb[13].mxu0  ;;  %6744 = vmatmul.mubr.msk.f32.gmra.mrb[118].mxu0 %vm184_vm4, %v82_v35 }
 0x110   :  { %6746 = vmatprep.mubr.msk.f32.mxu0 %vm7526_vm0, %v7527_v6 }
 0x112   :  { %v725_v39 = vpop.f32.mrb[14].mxu0  ;;  %v1565_v31 = vld [vmem:[#allocation2 + $0x28] sm:$0xff] }
 0x113   :  { %1422 = vst.msk [vmem:[#allocation2 + $0x38] sm:$0xff] %vm1414_vm5, %v725_v39  ;;  %v6589_v40 = vpop.f32.mrb[15].mxu0  ;;  %6747 = vmatmul.mubr.msk.f32.gmra.mrb[120].mxu0 %vm184_vm4, %v83_v38  ;;  %v92_v39 = vld [vmem:[%s10874_s1 + $0x228] sm:$0xff] }
 0x114   :  { %6749 = vmatprep.mubr.msk.f32.mxu0 %vm7526_vm0, %v7527_v6 }
 0x116   :  { %v730_v42 = vpop.f32.mrb[16].mxu0 }
 0x117   :  { %1423 = vst.msk [vmem:[#allocation2 + $0x40] sm:$0xff] %vm1414_vm5, %v730_v42  ;;  %v6592_v43 = vpop.f32.mrb[17].mxu0  ;;  %6750 = vmatmul.mubr.msk.f32.gmra.mrb[122].mxu0 %vm184_vm4, %v84_v41 }
 0x118   :  { %6752 = vmatprep.mubr.msk.f32.mxu0 %vm7526_vm0, %v7527_v6 }
 0x11a   :  { %v735_v45 = vpop.f32.mrb[18].mxu0  ;;  %v1567_v42 = vld [vmem:[#allocation2 + $0x38] sm:$0x3] }
 0x11b   :  { %1424 = vst.msk [vmem:[#allocation2 + $0x48] sm:$0xff] %vm1414_vm5, %v735_v45  ;;  %v6595_v46 = vpop.f32.mrb[19].mxu0  ;;  %6753 = vmatmul.mubr.msk.f32.gmra.mrb[124].mxu0 %vm184_vm4, %v85_v44  ;;  %v1566_v45 = vld [vmem:[#allocation2 + $0x30] sm:$0xff] }
 0x11c   :  { %6755 = vmatprep.mubr.msk.f32.mxu0 %vm7526_vm0, %v7527_v6 }
 0x11e   :  { %v1568_v48 = vld [vmem:[#allocation2 + $0x3a] sm:$0xff]  ;;  %v740_v49 = vpop.f32.mrb[20].mxu0 }
 0x11f   :  { %1425 = vst.msk [vmem:[#allocation2 + $0x50] sm:$0xff] %vm1414_vm5, %v740_v49  ;;  %v6598_v50 = vpop.f32.mrb[21].mxu0  ;;  %6756 = vmatmul.mubr.msk.f32.gmra.mrb[126].mxu0 %vm184_vm4, %v86_v47  ;;  %v1576_v53 = vmax.f32 %v1560_v51, %v1568_v48 }
 0x120   :  { %6758 = vmatprep.mubr.msk.f32.mxu0 %vm7526_vm0, %v7527_v6 }
 0x121   :  { %v1592_v60 = vrot.slane %v1576_v53, 1 }
 0x122   :  { %v1569_v55 = vld [vmem:[#allocation2 + $0x42] sm:$0xff]  ;;  %v745_v56 = vpop.f32.mrb[22].mxu0 }
 0x123   :  { %v1577_v57 = vmax.f32 %v1561_v54, %v1569_v55  ;;  %1426 = vst.msk [vmem:[#allocation2 + $0x58] sm:$0xff] %vm1414_vm5, %v745_v56  ;;  %v6601_v58 = vpop.f32.mrb[23].mxu0  ;;  %6759 = vmatmul.mubr.msk.f32.gmra.mrb[128].mxu0 %vm184_vm4, %v87_v52  ;;  %v93_v56 = vld [vmem:[%s10874_s1 + $0x230] sm:$0xff] }
 0x124   :  { %6761 = vmatprep.mubr.msk.f32.mxu0 %vm7526_vm0, %v7527_v6 }
 0x125   :  { %v1593_v61 = vrot.slane %v1577_v57, 1 }
 0x126   :  { %v1570_v63 = vld [vmem:[#allocation2 + $0x4a] sm:$0xff]  ;;  %v750_v1 = vpop.f32.mrb[24].mxu0 }
 0x127   :  { %v1578_v2 = vmax.f32 %v1562_v62, %v1570_v63  ;;  %1427 = vst.msk [vmem:[#allocation2 + $0x60] sm:$0xff] %vm1414_vm5, %v750_v1  ;;  %v6604_v3 = vpop.f32.mrb[25].mxu0  ;;  %6762 = vmatmul.mubr.msk.f32.gmra.mrb[130].mxu0 %vm184_vm4, %v88_v59  ;;  %v1594_v4 = vsel %vm1591_vm6, %v1592_v60, %v1593_v61 }
 0x128   :  { %6764 = vmatprep.mubr.msk.f32.mxu0 %vm7526_vm0, %v7527_v6  ;;  %v1612_v11 = vmax.f32 %v1576_v53, %v1594_v4 }
 0x129   :  { %v1595_v7 = vrot.slane %v1578_v2, 1 }
 0x12a   :  { %v1571_v9 = vld [vmem:[#allocation2 + $0x52] sm:$0xff]  ;;  %v755_v10 = vpop.f32.mrb[26].mxu0  ;;  %v1635_v21 = vrot.slane %v1612_v11, 2 }
 0x12b   :  { %v1579_v12 = vmax.f32 %v1563_v8, %v1571_v9  ;;  %1428 = vst.msk [vmem:[#allocation2 + $0x68] sm:$0xff] %vm1414_vm5, %v755_v10  ;;  %v6607_v13 = vpop.f32.mrb[27].mxu0  ;;  %6765 = vmatmul.mubr.msk.f32.gmra.mrb[132].mxu0 %vm184_vm4, %v89_v5  ;;  %v1596_v14 = vsel %vm1591_vm6, %v1593_v61, %v1595_v7  ;;  %v94_v5 = vld [vmem:[%s10874_s1 + $0x238] sm:$0xff] }
 0x12c   :  { %6767 = vmatprep.mubr.msk.f32.mxu0 %vm7526_vm0, %v7527_v6  ;;  %v1613_v16 = vmax.f32 %v1577_v57, %v1596_v14 }
 0x12d   :  { %v1597_v17 = vrot.slane %v1579_v12, 1 }
 0x12e   :  { %v1572_v19 = vld [vmem:[#allocation2 + $0x5a] sm:$0xff]  ;;  %v760_v20 = vpop.f32.mrb[28].mxu0  ;;  %v1636_v22 = vrot.slane %v1613_v16, 2 }
 0x12f   :  { %v1598_v23 = vsel %vm1591_vm6, %v1595_v7, %v1597_v17  ;;  %v1580_v24 = vmax.f32 %v1564_v18, %v1572_v19  ;;  %1429 = vst.msk [vmem:[#allocation2 + $0x70] sm:$0xff] %vm1414_vm5, %v760_v20  ;;  %v6610_v25 = vpop.f32.mrb[29].mxu0  ;;  %6768 = vmatmul.mubr.msk.f32.gmra.mrb[134].mxu0 %vm184_vm4, %v90_v15  ;;  %v95_v18 = vld [vmem:[%s10874_s1 + $0x240] sm:$0xff] }
 0x130   :  { %v1614_v26 = vmax.f32 %v1578_v2, %v1598_v23  ;;  %6770 = vmatprep.mubr.msk.f32.mxu0 %vm7526_vm0, %v7527_v6  ;;  %v1637_v28 = vsel %vm1634_vm7, %v1635_v21, %v1636_v22 }
 0x131   :  { %v1599_v29 = vrot.slane %v1580_v24, 1  ;;  %v1657_v30 = vmax.f32 %v1612_v11, %v1637_v28 }
 0x132   :  { %v1573_v32 = vld [vmem:[#allocation2 + $0x62] sm:$0xff]  ;;  %v765_v33 = vpop.f32.mrb[30].mxu0  ;;  %v1638_v34 = vrot.slane %v1614_v26, 2 }
 0x133   :  { %v1581_v35 = vmax.f32 %v1565_v31, %v1573_v32  ;;  %1430 = vst.msk [vmem:[#allocation2 + $0x78] sm:$0xff] %vm1414_vm5, %v765_v33  ;;  %v6613_v36 = vpop.f32.mrb[31].mxu0  ;;  %6771 = vmatmul.mubr.msk.f32.gmra.mrb[136].mxu0 %vm184_vm4, %v91_v27  ;;  %v1664_v37 = vmax.f32 %v1657_v30, 0.0  ;;  %v1600_v38 = vsel %vm1591_vm6, %v1597_v17, %v1599_v29  ;;  %v96_v31 = vld [vmem:[%s10874_s1 + $0x248] sm:$0xff] }
 0x134   :  { %6773 = vmatprep.mubr.msk.f32.mxu0 %vm7526_vm0, %v7527_v6  ;;  %v1639_v40 = vsel %vm1634_vm7, %v1636_v22, %v1638_v34  ;;  %v1615_v41 = vmax.f32 %v1579_v12, %v1600_v38  ;;  %v97_v36 = vld [vmem:[%s10874_s1 + $0x250] sm:$0xff] }
 0x135   :  { %v1601_v43 = vrot.slane %v1581_v35, 1  ;;  %v1658_v44 = vmax.f32 %v1613_v16, %v1639_v40  ;;  %1671 = vst.msk [vmem:[#allocation3] sm:$0xff] %vm1414_vm5, %v1664_v37 }
 0x136   :  { %v1574_v46 = vld [vmem:[#allocation2 + $0x6a] sm:$0xff]  ;;  %v1575_v47 = vld [vmem:[#allocation2 + $0x72] sm:$0x3]  ;;  %v770_v48 = vpop.f32.mrb[32].mxu0  ;;  %v1640_v49 = vrot.slane %v1615_v41, 2 }
 0x137   :  { %v1602_v50 = vsel %vm1591_vm6, %v1599_v29, %v1601_v43  ;;  %v1582_v51 = vmax.f32 %v1566_v45, %v1574_v46  ;;  %v1583_v52 = vmax.f32 %v1567_v42, %v1575_v47  ;;  %1431 = vst.msk [vmem:[#allocation2 + $0x80] sm:$0xff] %vm1414_vm5, %v770_v48  ;;  %v6616_v53 = vpop.f32.mrb[33].mxu0  ;;  %6774 = vmatmul.mubr.msk.f32.gmra.mrb[138].mxu0 %vm184_vm4, %v92_v39  ;;  %v1665_v54 = vmax.f32 %v1658_v44, 0.0  ;;  %v98_v42 = vld [vmem:[%s10874_s1 + $0x258] sm:$0xff]  ;;  %v99_v48 = vld [vmem:[%s10874_s1 + $0x260] sm:$0xff] }
 0x138   :  { %v1616_v55 = vmax.f32 %v1580_v24, %v1602_v50  ;;  %6776 = vmatprep.mubr.msk.f32.mxu0 %vm7526_vm0, %v7527_v6  ;;  %v1641_v57 = vsel %vm1634_vm7, %v1638_v34, %v1640_v49 }
 0x139   :  { %v1603_v58 = vrot.slane %v1582_v51, 1  ;;  %v1620_v59 = vrot.slane %v1583_v52, 1  ;;  %1672 = vst.msk [vmem:[#allocation3 + $0x8] sm:$0xff] %vm1414_vm5, %v1665_v54  ;;  %v1659_v60 = vmax.f32 %v1614_v26, %v1641_v57 }
 0x13a   :  { %v775_v61 = vpop.f32.mrb[34].mxu0  ;;  %v1642_v62 = vrot.slane %v1616_v55, 2 }
 0x13b   :  { %v1621_v63 = vsel %vm1591_vm6, %v1603_v58, %v1620_v59  ;;  %v1625_v1 = vmax.f32 %v1583_v52, %v1620_v59  ;;  %1432 = vst.msk [vmem:[#allocation2 + $0x88] sm:$0xff] %vm1414_vm5, %v775_v61  ;;  %v6619_v2 = vpop.f32.mrb[35].mxu0  ;;  %6777 = vmatmul.mubr.msk.f32.gmra.mrb[140].mxu0 %vm184_vm4, %v93_v56  ;;  %v1666_v3 = vmax.f32 %v1659_v60, 0.0  ;;  %v1604_v8 = vsel %vm1591_vm6, %v1601_v43, %v1603_v58  ;;  %v101_v56 = vld [vmem:[%s10874_s1 + $0x270] sm:$0xff] }
 0x13c   :  { %v1624_v4 = vmax.f32 %v1582_v51, %v1621_v63  ;;  %6779 = vmatprep.mubr.msk.f32.mxu0 %vm7526_vm0, %v7527_v6  ;;  %v1643_v7 = vsel %vm1634_vm7, %v1640_v49, %v1642_v62  ;;  %v1617_v11 = vmax.f32 %v1581_v35, %v1604_v8  ;;  %v1618_v14 = vmax.f32 %v1582_v51, %v1603_v58  ;;  %v3195_v19 = vld [vmem:[#allocation3] sm:$0xff]  ;;  %v102_v63 = vld [vmem:[%s10874_s1 + $0x278] sm:$0xff] }
 0x13d   :  { %v1648_v9 = vrot.slane %v1625_v1, 2  ;;  %v1660_v10 = vmax.f32 %v1615_v41, %v1643_v7  ;;  %1673 = vst.msk [vmem:[#allocation3 + $0x10] sm:$0xff] %vm1414_vm5, %v1666_v3  ;;  %v100_v51 = vld [vmem:[%s10874_s1 + $0x268] sm:$0xff] }
 0x13e   :  { %v1646_v12 = vrot.slane %v1624_v4, 2  ;;  %v780_v13 = vpop.f32.mrb[36].mxu0  ;;  %v1644_v17 = vrot.slane %v1617_v11, 2  ;;  %v1680_v58 = vld [vmem:[#allocation2 + $0x7c] sm:$0xff] }
 0x13f   :  { %1433 = vst.msk [vmem:[#allocation2 + $0x90] sm:$0xff] %vm1414_vm5, %v780_v13  ;;  %v6622_v15 = vpop.f32.mrb[37].mxu0  ;;  %6780 = vmatmul.mubr.msk.f32.gmra.mrb[142].mxu0 %vm184_vm4, %v94_v5  ;;  %v1667_v16 = vmax.f32 %v1660_v10, 0.0  ;;  %v103_v10 = vld [vmem:[%s10874_s1 + $0x280] sm:$0xff] }
 0x140   :  { %6782 = vmatprep.mubr.msk.f32.mxu0 %vm7526_vm0, %v7527_v6  ;;  %v3196_v20 = vld [vmem:[#allocation3 + $0x8] sm:$0xff]  ;;  %v1649_v21 = vsel %vm1634_vm7, %v1646_v12, %v1648_v9  ;;  %v1645_v23 = vsel %vm1634_vm7, %v1642_v62, %v1644_v17  ;;  %v1647_v24 = vsel %vm1634_vm7, %v1644_v17, %v1646_v12 }
 0x141   :  { %v7187_v22 = vpack.c.bf16 %v3196_v20, %v3195_v19  ;;  %1674 = vst.msk [vmem:[#allocation3 + $0x18] sm:$0xff] %vm1414_vm5, %v1667_v16  ;;  %v1663_v25 = vmax.f32 %v1618_v14, %v1649_v21  ;;  %v1661_v27 = vmax.f32 %v1616_v55, %v1645_v23  ;;  %v1662_v28 = vmax.f32 %v1617_v11, %v1647_v24  ;;  %v1679_v55 = vld [vmem:[#allocation2 + $0x74] sm:$0xff]  ;;  %v104_v19 = vld [vmem:[%s10874_s1 + $0x288] sm:$0xff] }
 0x142   :  { %v785_v26 = vpop.f32.mrb[38].mxu0  ;;  %v1681_v3 = vld [vmem:[#allocation2 + $0x84] sm:$0xff] }
 0x143   :  { %1434 = vst.msk [vmem:[#allocation2 + $0x98] sm:$0xff] %vm1414_vm5, %v785_v26  ;;  %v6625_v29 = vpop.f32.mrb[39].mxu0  ;;  %6783 = vmatmul.mubr.msk.f32.gmra.mrb[144].mxu0 %vm184_vm4, %v95_v18  ;;  %7188 = vmatpush1.bf16.msra.mxu1 %v7187_v22  ;;  %v1670_v30 = vmax.f32 %v1663_v25, 0.0  ;;  %v1668_v32 = vmax.f32 %v1661_v27, 0.0  ;;  %v1669_v33 = vmax.f32 %v1662_v28, 0.0 }
 0x144   :  { %6785 = vmatprep.mubr.msk.f32.mxu0 %vm7526_vm0, %v7527_v6  ;;  %7189 = vmatprep.subr.bf16.mxu1 %v7525_v0  ;;  %v3197_v37 = vld [vmem:[#allocation3 + $0x10] sm:$0xff] }
 0x145   :  { %1678 = vst.msk [vmem:[#allocation3 + $0x30] sm:$0x7f] %vm1677_vm8, %v1670_v30 }
 0x146   :  { %v790_v34 = vpop.f32.mrb[40].mxu0  ;;  %1675 = vst.msk [vmem:[#allocation3 + $0x20] sm:$0xff] %vm1414_vm5, %v1668_v32  ;;  %1676 = vst.msk [vmem:[#allocation3 + $0x28] sm:$0xff] %vm1414_vm5, %v1669_v33  ;;  %v1682_v12 = vld [vmem:[#allocation2 + $0x8c] sm:$0xff] }
 0x147   :  { %1435 = vst.msk [vmem:[#allocation2 + $0xa0] sm:$0xff] %vm1414_vm5, %v790_v34  ;;  %v6628_v35 = vpop.f32.mrb[41].mxu0  ;;  %6786 = vmatmul.mubr.msk.f32.gmra.mrb[146].mxu0 %vm184_vm4, %v96_v31  ;;  %v105_v31 = vld [vmem:[%s10874_s1 + $0x290] sm:$0xff] }
 0x148   :  { %6788 = vmatprep.mubr.msk.f32.mxu0 %vm7526_vm0, %v7527_v6  ;;  %v3198_v38 = vld [vmem:[#allocation3 + $0x18] sm:$0xff] }
 0x149   :  { %v7190_v39 = vpack.c.bf16 %v3198_v38, %v3197_v37 }
 0x14a   :  { %v795_v40 = vpop.f32.mrb[42].mxu0  ;;  %v1683_v22 = vld [vmem:[#allocation2 + $0x94] sm:$0xff] }
 0x14b   :  { %1436 = vst.msk [vmem:[#allocation2 + $0xa8] sm:$0xff] %vm1414_vm5, %v795_v40  ;;  %v6631_v41 = vpop.f32.mrb[43].mxu0  ;;  %6789 = vmatmul.mubr.msk.f32.gmra.mrb[148].mxu0 %vm184_vm4, %v97_v36  ;;  %7191 = vmatpush1.bf16.msra.mxu1 %v7190_v39 }
 0x14c   :  { %6791 = vmatprep.mubr.msk.f32.mxu0 %vm7526_vm0, %v7527_v6  ;;  %7192 = vmatprep.subr.bf16.mxu1 %v7525_v0 }
 0x14d   :  { %v3199_v43 = vld [vmem:[#allocation3 + $0x20] sm:$0xff]  ;;  %v3200_v44 = vld [vmem:[#allocation3 + $0x28] sm:$0xff] }
 0x14e   :  { %v800_v45 = vpop.f32.mrb[44].mxu0  ;;  %v7193_v46 = vpack.c.bf16 %v3200_v44, %v3199_v43  ;;  %v1684_v35 = vld [vmem:[#allocation2 + $0x9c] sm:$0xff] }
 0x14f   :  { %1437 = vst.msk [vmem:[#allocation2 + $0xb0] sm:$0xff] %vm1414_vm5, %v800_v45  ;;  %v6634_v47 = vpop.f32.mrb[45].mxu0  ;;  %6792 = vmatmul.mubr.msk.f32.gmra.mrb[150].mxu0 %vm184_vm4, %v98_v42  ;;  %v106_v43 = vld [vmem:[%s10874_s1 + $0x298] sm:$0xff] }
 0x150   :  { %7194 = vmatpush1.bf16.msra.mxu1 %v7193_v46  ;;  %6794 = vmatprep.mubr.msk.f32.mxu0 %vm7526_vm0, %v7527_v6 }
 0x151   :  { %7195 = vmatprep.subr.bf16.mxu1 %v7525_v0 }
 0x152   :  { %v805_v49 = vpop.f32.mrb[46].mxu0  ;;  %v1686_v46 = vld [vmem:[#allocation2 + $0xac] sm:$0x3] }
 0x153   :  { %1438 = vst.msk [vmem:[#allocation2 + $0xb8] sm:$0xff] %vm1414_vm5, %v805_v49  ;;  %v6637_v50 = vpop.f32.mrb[47].mxu0  ;;  %6795 = vmatmul.mubr.msk.f32.gmra.mrb[152].mxu0 %vm184_vm4, %v99_v48  ;;  %v1685_v49 = vld [vmem:[#allocation2 + $0xa4] sm:$0xff] }
 0x154   :  { %6797 = vmatprep.mubr.msk.f32.mxu0 %vm7526_vm0, %v7527_v6 }
 0x156   :  { %v1687_v52 = vld [vmem:[#allocation2 + $0xae] sm:$0xff]  ;;  %v810_v53 = vpop.f32.mrb[48].mxu0 }
 0x157   :  { %1439 = vst.msk [vmem:[#allocation2 + $0xc0] sm:$0xff] %vm1414_vm5, %v810_v53  ;;  %v6640_v54 = vpop.f32.mrb[49].mxu0  ;;  %6798 = vmatmul.mubr.msk.f32.gmra.mrb[154].mxu0 %vm184_vm4, %v100_v51  ;;  %v1695_v57 = vmax.f32 %v1679_v55, %v1687_v52 }
 0x158   :  { %6800 = vmatprep.mubr.msk.f32.mxu0 %vm7526_vm0, %v7527_v6 }
 0x159   :  { %v1710_v1 = vrot.slane %v1695_v57, 1 }
 0x15a   :  { %v1688_v59 = vld [vmem:[#allocation2 + $0xb6] sm:$0xff]  ;;  %v815_v60 = vpop.f32.mrb[50].mxu0 }
 0x15b   :  { %v1696_v61 = vmax.f32 %v1680_v58, %v1688_v59  ;;  %1440 = vst.msk [vmem:[#allocation2 + $0xc8] sm:$0xff] %vm1414_vm5, %v815_v60  ;;  %v6643_v62 = vpop.f32.mrb[51].mxu0  ;;  %6801 = vmatmul.mubr.msk.f32.gmra.mrb[156].mxu0 %vm184_vm4, %v101_v56  ;;  %v107_v60 = vld [vmem:[%s10874_s1 + $0x2a0] sm:$0xff] }
 0x15c   :  { %6803 = vmatprep.mubr.msk.f32.mxu0 %vm7526_vm0, %v7527_v6 }
 0x15d   :  { %v1711_v2 = vrot.slane %v1696_v61, 1 }
 0x15e   :  { %v1689_v4 = vld [vmem:[#allocation2 + $0xbe] sm:$0xff]  ;;  %v820_v5 = vpop.f32.mrb[52].mxu0 }
 0x15f   :  { %v1697_v7 = vmax.f32 %v1681_v3, %v1689_v4  ;;  %1441 = vst.msk [vmem:[#allocation2 + $0xd0] sm:$0xff] %vm1414_vm5, %v820_v5  ;;  %v6646_v8 = vpop.f32.mrb[53].mxu0  ;;  %6804 = vmatmul.mubr.msk.f32.gmra.mrb[158].mxu0 %vm184_vm4, %v102_v63  ;;  %v1712_v9 = vsel %vm1591_vm6, %v1710_v1, %v1711_v2 }
 0x160   :  { %6806 = vmatprep.mubr.msk.f32.mxu0 %vm7526_vm0, %v7527_v6  ;;  %v1730_v15 = vmax.f32 %v1695_v57, %v1712_v9 }
 0x161   :  { %v1713_v11 = vrot.slane %v1697_v7, 1 }
 0x162   :  { %v1690_v13 = vld [vmem:[#allocation2 + $0xc6] sm:$0xff]  ;;  %v825_v14 = vpop.f32.mrb[54].mxu0  ;;  %v1752_v25 = vrot.slane %v1730_v15, 2 }
 0x163   :  { %v1698_v16 = vmax.f32 %v1682_v12, %v1690_v13  ;;  %1442 = vst.msk [vmem:[#allocation2 + $0xd8] sm:$0xff] %vm1414_vm5, %v825_v14  ;;  %v6649_v17 = vpop.f32.mrb[55].mxu0  ;;  %6807 = vmatmul.mubr.msk.f32.gmra.mrb[160].mxu0 %vm184_vm4, %v103_v10  ;;  %v1714_v18 = vsel %vm1591_vm6, %v1711_v2, %v1713_v11  ;;  %v108_v10 = vld [vmem:[%s10874_s1 + $0x2a8] sm:$0xff] }
 0x164   :  { %6809 = vmatprep.mubr.msk.f32.mxu0 %vm7526_vm0, %v7527_v6  ;;  %v1731_v20 = vmax.f32 %v1696_v61, %v1714_v18 }
 0x165   :  { %v1715_v21 = vrot.slane %v1698_v16, 1 }
 0x166   :  { %v1691_v23 = vld [vmem:[#allocation2 + $0xce] sm:$0xff]  ;;  %v830_v24 = vpop.f32.mrb[56].mxu0  ;;  %v1753_v26 = vrot.slane %v1731_v20, 2 }
 0x167   :  { %v1716_v27 = vsel %vm1591_vm6, %v1713_v11, %v1715_v21  ;;  %v1699_v28 = vmax.f32 %v1683_v22, %v1691_v23  ;;  %1443 = vst.msk [vmem:[#allocation2 + $0xe0] sm:$0xff] %vm1414_vm5, %v830_v24  ;;  %v6652_v29 = vpop.f32.mrb[57].mxu0  ;;  %6810 = vmatmul.mubr.msk.f32.gmra.mrb[162].mxu0 %vm184_vm4, %v104_v19  ;;  %v109_v22 = vld [vmem:[%s10874_s1 + $0x2b0] sm:$0xff] }
 0x168   :  { %v1732_v30 = vmax.f32 %v1697_v7, %v1716_v27  ;;  %6812 = vmatprep.mubr.msk.f32.mxu0 %vm7526_vm0, %v7527_v6  ;;  %v1754_v32 = vsel %vm1634_vm7, %v1752_v25, %v1753_v26 }
 0x169   :  { %v1717_v33 = vrot.slane %v1699_v28, 1  ;;  %v1774_v34 = vmax.f32 %v1730_v15, %v1754_v32 }
 0x16a   :  { %v1692_v36 = vld [vmem:[#allocation2 + $0xd6] sm:$0xff]  ;;  %v835_v37 = vpop.f32.mrb[58].mxu0  ;;  %v1755_v38 = vrot.slane %v1732_v30, 2 }
 0x16b   :  { %v1700_v39 = vmax.f32 %v1684_v35, %v1692_v36  ;;  %1444 = vst.msk [vmem:[#allocation2 + $0xe8] sm:$0xff] %vm1414_vm5, %v835_v37  ;;  %v6655_v40 = vpop.f32.mrb[59].mxu0  ;;  %6813 = vmatmul.mubr.msk.f32.gmra.mrb[164].mxu0 %vm184_vm4, %v105_v31  ;;  %v1781_v41 = vmax.f32 %v1774_v34, 0.0  ;;  %v1718_v42 = vsel %vm1591_vm6, %v1715_v21, %v1717_v33  ;;  %v110_v35 = vld [vmem:[%s10874_s1 + $0x2b8] sm:$0xff] }
 0x16c   :  { %6815 = vmatprep.mubr.msk.f32.mxu0 %vm7526_vm0, %v7527_v6  ;;  %v1756_v44 = vsel %vm1634_vm7, %v1753_v26, %v1755_v38  ;;  %v1733_v45 = vmax.f32 %v1698_v16, %v1718_v42  ;;  %v111_v40 = vld [vmem:[%s10874_s1 + $0x2c0] sm:$0xff] }
 0x16d   :  { %v1719_v47 = vrot.slane %v1700_v39, 1  ;;  %v1775_v48 = vmax.f32 %v1731_v20, %v1756_v44  ;;  %1788 = vst.msk [vmem:[#allocation3 + $0x37] sm:$0xff] %vm1414_vm5, %v1781_v41 }
 0x16e   :  { %v1693_v50 = vld [vmem:[#allocation2 + $0xde] sm:$0xff]  ;;  %v1694_v51 = vld [vmem:[#allocation2 + $0xe6] sm:$0x3]  ;;  %v840_v52 = vpop.f32.mrb[60].mxu0  ;;  %v1757_v53 = vrot.slane %v1733_v45, 2 }
 0x16f   :  { %v1720_v54 = vsel %vm1591_vm6, %v1717_v33, %v1719_v47  ;;  %v1701_v55 = vmax.f32 %v1685_v49, %v1693_v50  ;;  %v1702_v56 = vmax.f32 %v1686_v46, %v1694_v51  ;;  %1445 = vst.msk [vmem:[#allocation2 + $0xf0] sm:$0xff] %vm1414_vm5, %v840_v52  ;;  %v6658_v57 = vpop.f32.mrb[61].mxu0  ;;  %6816 = vmatmul.mubr.msk.f32.gmra.mrb[166].mxu0 %vm184_vm4, %v106_v43  ;;  %v1782_v58 = vmax.f32 %v1775_v48, 0.0  ;;  %v112_v46 = vld [vmem:[%s10874_s1 + $0x2c8] sm:$0xff]  ;;  %v113_v52 = vld [vmem:[%s10874_s1 + $0x2d0] sm:$0xff] }
 0x170   :  { %v1734_v59 = vmax.f32 %v1699_v28, %v1720_v54  ;;  %6818 = vmatprep.mubr.msk.f32.mxu0 %vm7526_vm0, %v7527_v6  ;;  %v1758_v61 = vsel %vm1634_vm7, %v1755_v38, %v1757_v53 }
 0x171   :  { %v1721_v62 = vrot.slane %v1701_v55, 1  ;;  %v1738_v63 = vrot.slane %v1702_v56, 1  ;;  %1789 = vst.msk [vmem:[#allocation3 + $0x3f] sm:$0xff] %vm1414_vm5, %v1782_v58  ;;  %v1776_v1 = vmax.f32 %v1732_v30, %v1758_v61  ;;  %v115_v58 = vld [vmem:[%s10874_s1 + $0x2e0] sm:$0xff] }
 0x172   :  { %v845_v2 = vpop.f32.mrb[62].mxu0  ;;  %v1759_v3 = vrot.slane %v1734_v59, 2 }
 0x173   :  { %v1739_v4 = vsel %vm1591_vm6, %v1721_v62, %v1738_v63  ;;  %v1743_v5 = vmax.f32 %v1702_v56, %v1738_v63  ;;  %1446 = vst.msk [vmem:[#allocation2 + $0xf8] sm:$0xff] %vm1414_vm5, %v845_v2  ;;  %v6661_v7 = vpop.f32.mrb[63].mxu0  ;;  %6819 = vmatmul.mubr.msk.f32.gmra.mrb[168].mxu0 %vm184_vm4, %v107_v60  ;;  %v1783_v8 = vmax.f32 %v1776_v1, 0.0  ;;  %v1722_v12 = vsel %vm1591_vm6, %v1719_v47, %v1721_v62  ;;  %v116_v63 = vld [vmem:[%s10874_s1 + $0x2e8] sm:$0xff] }
 0x174   :  { %v1742_v9 = vmax.f32 %v1701_v55, %v1739_v4  ;;  %6821 = vmatprep.mubr.msk.f32.mxu0 %vm7526_vm0, %v7527_v6  ;;  %v1760_v11 = vsel %vm1634_vm7, %v1757_v53, %v1759_v3  ;;  %v1735_v15 = vmax.f32 %v1700_v39, %v1722_v12  ;;  %v1736_v18 = vmax.f32 %v1701_v55, %v1721_v62  ;;  %v3201_v23 = vld [vmem:[#allocation3 + $0x30] sm:$0xff]  ;;  %v1795_v62 = vld [vmem:[#allocation2 + $0xe8] sm:$0xff] }
 0x175   :  { %v1765_v13 = vrot.slane %v1743_v5, 2  ;;  %v1777_v14 = vmax.f32 %v1733_v45, %v1760_v11  ;;  %1790 = vst.msk [vmem:[#allocation3 + $0x47] sm:$0xff] %vm1414_vm5, %v1783_v8  ;;  %v114_v55 = vld [vmem:[%s10874_s1 + $0x2d8] sm:$0xff]  ;;  %v117_v8 = vld [vmem:[%s10874_s1 + $0x2f0] sm:$0xff] }
 0x176   :  { %v1763_v16 = vrot.slane %v1742_v9, 2  ;;  %v850_v17 = vpop.f32.mrb[64].mxu0  ;;  %v1761_v21 = vrot.slane %v1735_v15, 2  ;;  %v1796_v2 = vld [vmem:[#allocation2 + $0xf0] sm:$0xff] }
 0x177   :  { %1447 = vst.msk [vmem:[#allocation2 + $0x100] sm:$0xff] %vm1414_vm5, %v850_v17  ;;  %v6664_v19 = vpop.f32.mrb[65].mxu0  ;;  %6822 = vmatmul.mubr.msk.f32.gmra.mrb[170].mxu0 %vm184_vm4, %v108_v10  ;;  %v1784_v20 = vmax.f32 %v1777_v14, 0.0  ;;  %v118_v17 = vld [vmem:[%s10874_s1 + $0x2f8] sm:$0xff] }
 0x178   :  { %6824 = vmatprep.mubr.msk.f32.mxu0 %vm7526_vm0, %v7527_v6  ;;  %v3202_v24 = vld [vmem:[#allocation3 + $0x38] sm:$0xff]  ;;  %v1766_v25 = vsel %vm1634_vm7, %v1763_v16, %v1765_v13  ;;  %v1762_v27 = vsel %vm1634_vm7, %v1759_v3, %v1761_v21  ;;  %v1764_v28 = vsel %vm1634_vm7, %v1761_v21, %v1763_v16 }
 0x179   :  { %v7196_v26 = vpack.c.bf16 %v3202_v24, %v3201_v23  ;;  %1791 = vst.msk [vmem:[#allocation3 + $0x4f] sm:$0xff] %vm1414_vm5, %v1784_v20  ;;  %v1780_v29 = vmax.f32 %v1736_v18, %v1766_v25  ;;  %v1778_v31 = vmax.f32 %v1734_v59, %v1762_v27  ;;  %v1779_v32 = vmax.f32 %v1735_v15, %v1764_v28  ;;  %v119_v27 = vld [vmem:[%s10874_s1 + $0x300] sm:$0xff] }
 0x17a   :  { %v855_v30 = vpop.f32.mrb[66].mxu0  ;;  %v1797_v11 = vld [vmem:[#allocation2 + $0xf8] sm:$0xff] }
 0x17b   :  { %1448 = vst.msk [vmem:[#allocation2 + $0x108] sm:$0xff] %vm1414_vm5, %v855_v30  ;;  %v6667_v33 = vpop.f32.mrb[67].mxu0  ;;  %6825 = vmatmul.mubr.msk.f32.gmra.mrb[172].mxu0 %vm184_vm4, %v109_v22  ;;  %7197 = vmatpush1.bf16.msra.mxu1 %v7196_v26  ;;  %v1787_v34 = vmax.f32 %v1780_v29, 0.0  ;;  %v1785_v36 = vmax.f32 %v1778_v31, 0.0  ;;  %v1786_v37 = vmax.f32 %v1779_v32, 0.0 }
 0x17c   :  { %6827 = vmatprep.mubr.msk.f32.mxu0 %vm7526_vm0, %v7527_v6  ;;  %7198 = vmatprep.subr.bf16.mxu1 %v7525_v0  ;;  %v3203_v41 = vld [vmem:[#allocation3 + $0x40] sm:$0xff] }
 0x17d   :  { %1794 = vst.msk [vmem:[#allocation3 + $0x67] sm:$0x7f] %vm1677_vm8, %v1787_v34 }
 0x17e   :  { %v860_v38 = vpop.f32.mrb[68].mxu0  ;;  %1792 = vst.msk [vmem:[#allocation3 + $0x57] sm:$0xff] %vm1414_vm5, %v1785_v36  ;;  %1793 = vst.msk [vmem:[#allocation3 + $0x5f] sm:$0xff] %vm1414_vm5, %v1786_v37  ;;  %v1798_v19 = vld [vmem:[#allocation2 + $0x100] sm:$0xff]  ;;  %v120_v37 = vld [vmem:[%s10874_s1 + $0x308] sm:$0xff] }
 0x17f   :  { %1449 = vst.msk [vmem:[#allocation2 + $0x110] sm:$0xff] %vm1414_vm5, %v860_v38  ;;  %v6670_v39 = vpop.f32.mrb[69].mxu0  ;;  %6828 = vmatmul.mubr.msk.f32.gmra.mrb[174].mxu0 %vm184_vm4, %v110_v35 }
 0x180   :  { %6830 = vmatprep.mubr.msk.f32.mxu0 %vm7526_vm0, %v7527_v6  ;;  %v3204_v42 = vld [vmem:[#allocation3 + $0x48] sm:$0xff] }
 0x181   :  { %v7199_v43 = vpack.c.bf16 %v3204_v42, %v3203_v41 }
 0x182   :  { %v865_v44 = vpop.f32.mrb[70].mxu0  ;;  %v1799_v29 = vld [vmem:[#allocation2 + $0x108] sm:$0xff] }
 0x183   :  { %1450 = vst.msk [vmem:[#allocation2 + $0x118] sm:$0xff] %vm1414_vm5, %v865_v44  ;;  %v6673_v45 = vpop.f32.mrb[71].mxu0  ;;  %6831 = vmatmul.mubr.msk.f32.gmra.mrb[176].mxu0 %vm184_vm4, %v111_v40  ;;  %7200 = vmatpush1.bf16.msra.mxu1 %v7199_v43 }
 0x184   :  { %6833 = vmatprep.mubr.msk.f32.mxu0 %vm7526_vm0, %v7527_v6  ;;  %7201 = vmatprep.subr.bf16.mxu1 %v7525_v0 }
 0x185   :  { %v3205_v47 = vld [vmem:[#allocation3 + $0x50] sm:$0xff]  ;;  %v3206_v48 = vld [vmem:[#allocation3 + $0x58] sm:$0xff] }
 0x186   :  { %v870_v49 = vpop.f32.mrb[72].mxu0  ;;  %v7202_v50 = vpack.c.bf16 %v3206_v48, %v3205_v47  ;;  %v1800_v42 = vld [vmem:[#allocation2 + $0x110] sm:$0xff] }
 0x187   :  { %1451 = vst.msk [vmem:[#allocation2 + $0x120] sm:$0xff] %vm1414_vm5, %v870_v49  ;;  %v6676_v51 = vpop.f32.mrb[73].mxu0  ;;  %6834 = vmatmul.mubr.msk.f32.gmra.mrb[178].mxu0 %vm184_vm4, %v112_v46 }
 0x188   :  { %7203 = vmatpush1.bf16.msra.mxu1 %v7202_v50  ;;  %6836 = vmatprep.mubr.msk.f32.mxu0 %vm7526_vm0, %v7527_v6  ;;  %v121_v51 = vld [vmem:[%s10874_s1 + $0x310] sm:$0xff] }
 0x189   :  { %7204 = vmatprep.subr.bf16.mxu1 %v7525_v0 }
 0x18a   :  { %v875_v53 = vpop.f32.mrb[74].mxu0 }
 0x18b   :  { %1452 = vst.msk [vmem:[#allocation2 + $0x128] sm:$0xff] %vm1414_vm5, %v875_v53  ;;  %v6679_v54 = vpop.f32.mrb[75].mxu0  ;;  %6837 = vmatmul.mubr.msk.f32.gmra.mrb[180].mxu0 %vm184_vm4, %v113_v52 }
 0x18c   :  { %6839 = vmatprep.mubr.msk.f32.mxu0 %vm7526_vm0, %v7527_v6 }
 0x18e   :  { %v880_v56 = vpop.f32.mrb[76].mxu0  ;;  %v1802_v53 = vld [vmem:[#allocation2 + $0x120] sm:$0x3] }
 0x18f   :  { %1453 = vst.msk [vmem:[#allocation2 + $0x130] sm:$0xff] %vm1414_vm5, %v880_v56  ;;  %v6682_v57 = vpop.f32.mrb[77].mxu0  ;;  %6840 = vmatmul.mubr.msk.f32.gmra.mrb[182].mxu0 %vm184_vm4, %v114_v55  ;;  %v1801_v56 = vld [vmem:[#allocation2 + $0x118] sm:$0xff] }
 0x190   :  { %6842 = vmatprep.mubr.msk.f32.mxu0 %vm7526_vm0, %v7527_v6 }
 0x192   :  { %v1803_v59 = vld [vmem:[#allocation2 + $0x122] sm:$0xff]  ;;  %v885_v60 = vpop.f32.mrb[78].mxu0 }
 0x193   :  { %1454 = vst.msk [vmem:[#allocation2 + $0x138] sm:$0xff] %vm1414_vm5, %v885_v60  ;;  %v6685_v61 = vpop.f32.mrb[79].mxu0  ;;  %6843 = vmatmul.mubr.msk.f32.gmra.mrb[184].mxu0 %vm184_vm4, %v115_v58  ;;  %v1811_v1 = vmax.f32 %v1795_v62, %v1803_v59 }
 0x194   :  { %6845 = vmatprep.mubr.msk.f32.mxu0 %vm7526_vm0, %v7527_v6 }
 0x195   :  { %v1826_v9 = vrot.slane %v1811_v1, 1 }
 0x196   :  { %v1804_v3 = vld [vmem:[#allocation2 + $0x12a] sm:$0xff]  ;;  %v890_v4 = vpop.f32.mrb[80].mxu0 }
 0x197   :  { %v1812_v5 = vmax.f32 %v1796_v2, %v1804_v3  ;;  %1455 = vst.msk [vmem:[#allocation2 + $0x140] sm:$0xff] %vm1414_vm5, %v890_v4  ;;  %v6688_v7 = vpop.f32.mrb[81].mxu0  ;;  %6846 = vmatmul.mubr.msk.f32.gmra.mrb[186].mxu0 %vm184_vm4, %v116_v63  ;;  %v122_v3 = vld [vmem:[%s10874_s1 + $0x318] sm:$0xff] }
 0x198   :  { %6848 = vmatprep.mubr.msk.f32.mxu0 %vm7526_vm0, %v7527_v6 }
 0x199   :  { %v1827_v10 = vrot.slane %v1812_v5, 1 }
 0x19a   :  { %v1805_v12 = vld [vmem:[#allocation2 + $0x132] sm:$0xff]  ;;  %v895_v13 = vpop.f32.mrb[82].mxu0 }
 0x19b   :  { %v1813_v14 = vmax.f32 %v1797_v11, %v1805_v12  ;;  %1456 = vst.msk [vmem:[#allocation2 + $0x148] sm:$0xff] %vm1414_vm5, %v895_v13  ;;  %v6691_v15 = vpop.f32.mrb[83].mxu0  ;;  %6849 = vmatmul.mubr.msk.f32.gmra.mrb[188].mxu0 %vm184_vm4, %v117_v8  ;;  %v1828_v16 = vsel %vm1591_vm6, %v1826_v9, %v1827_v10 }
 0x19c   :  { %6851 = vmatprep.mubr.msk.f32.mxu0 %vm7526_vm0, %v7527_v6  ;;  %v1846_v22 = vmax.f32 %v1811_v1, %v1828_v16 }
 0x19d   :  { %v1829_v18 = vrot.slane %v1813_v14, 1 }
 0x19e   :  { %v1806_v20 = vld [vmem:[#allocation2 + $0x13a] sm:$0xff]  ;;  %v900_v21 = vpop.f32.mrb[84].mxu0  ;;  %v1868_v32 = vrot.slane %v1846_v22, 2 }
 0x19f   :  { %v1830_v23 = vsel %vm1591_vm6, %v1827_v10, %v1829_v18  ;;  %v1814_v24 = vmax.f32 %v1798_v19, %v1806_v20  ;;  %1457 = vst.msk [vmem:[#allocation2 + $0x150] sm:$0xff] %vm1414_vm5, %v900_v21  ;;  %v6694_v25 = vpop.f32.mrb[85].mxu0  ;;  %6852 = vmatmul.mubr.msk.f32.gmra.mrb[190].mxu0 %vm184_vm4, %v118_v17  ;;  %v3207_v19 = vld [vmem:[#allocation3 + $0x60] sm:$0xff] }
 0x1a0   :  { %v1847_v26 = vmax.f32 %v1812_v5, %v1830_v23  ;;  %6854 = vmatprep.mubr.msk.f32.mxu0 %vm7526_vm0, %v7527_v6 }
 0x1a1   :  { %v1831_v28 = vrot.slane %v1814_v24, 1 }
 0x1a2   :  { %v1807_v30 = vld [vmem:[#allocation2 + $0x142] sm:$0xff]  ;;  %v905_v31 = vpop.f32.mrb[86].mxu0  ;;  %v1869_v33 = vrot.slane %v1847_v26, 2 }
 0x1a3   :  { %v1815_v34 = vmax.f32 %v1799_v29, %v1807_v30  ;;  %1458 = vst.msk [vmem:[#allocation2 + $0x158] sm:$0xff] %vm1414_vm5, %v905_v31  ;;  %v6697_v35 = vpop.f32.mrb[87].mxu0  ;;  %6855 = vmatmul.mubr.msk.f32.gmra.mrb[192].mxu0 %vm184_vm4, %v119_v27  ;;  %v1832_v36 = vsel %vm1591_vm6, %v1829_v18, %v1831_v28  ;;  %v123_v18 = vld [vmem:[%s10874_s1 + $0x320] sm:$0xff] }
 0x1a4   :  { %6857 = vmatprep.mubr.msk.f32.mxu0 %vm7526_vm0, %v7527_v6  ;;  %v1870_v38 = vsel %vm1634_vm7, %v1868_v32, %v1869_v33  ;;  %v1848_v39 = vmax.f32 %v1813_v14, %v1832_v36  ;;  %v124_v32 = vld [vmem:[%s10874_s1 + $0x328] sm:$0xff] }
 0x1a5   :  { %v1833_v40 = vrot.slane %v1815_v34, 1  ;;  %v1890_v41 = vmax.f32 %v1846_v22, %v1870_v38 }
 0x1a6   :  { %v1808_v43 = vld [vmem:[#allocation2 + $0x14a] sm:$0xff]  ;;  %v910_v44 = vpop.f32.mrb[88].mxu0  ;;  %v1871_v45 = vrot.slane %v1848_v39, 2 }
 0x1a7   :  { %v1834_v46 = vsel %vm1591_vm6, %v1831_v28, %v1833_v40  ;;  %v1816_v47 = vmax.f32 %v1800_v42, %v1808_v43  ;;  %1459 = vst.msk [vmem:[#allocation2 + $0x160] sm:$0xff] %vm1414_vm5, %v910_v44  ;;  %v6700_v48 = vpop.f32.mrb[89].mxu0  ;;  %6858 = vmatmul.mubr.msk.f32.gmra.mrb[194].mxu0 %vm184_vm4, %v120_v37  ;;  %v1897_v49 = vmax.f32 %v1890_v41, 0.0  ;;  %v125_v44 = vld [vmem:[%s10874_s1 + $0x330] sm:$0xff] }
 0x1a8   :  { %v1849_v50 = vmax.f32 %v1814_v24, %v1834_v46  ;;  %6860 = vmatprep.mubr.msk.f32.mxu0 %vm7526_vm0, %v7527_v6  ;;  %v1872_v52 = vsel %vm1634_vm7, %v1869_v33, %v1871_v45 }
 0x1a9   :  { %v1835_v54 = vrot.slane %v1816_v47, 1  ;;  %1904 = vst.msk [vmem:[#allocation3 + $0x6e] sm:$0xff] %vm1414_vm5, %v1897_v49  ;;  %v1891_v55 = vmax.f32 %v1847_v26, %v1872_v52 }
 0x1aa   :  { %v1809_v57 = vld [vmem:[#allocation2 + $0x152] sm:$0xff]  ;;  %v1810_v58 = vld [vmem:[#allocation2 + $0x15a] sm:$0x3]  ;;  %v915_v59 = vpop.f32.mrb[90].mxu0  ;;  %v1873_v60 = vrot.slane %v1849_v50, 2 }
 0x1ab   :  { %v1817_v61 = vmax.f32 %v1801_v56, %v1809_v57  ;;  %v1818_v62 = vmax.f32 %v1802_v53, %v1810_v58  ;;  %1460 = vst.msk [vmem:[#allocation2 + $0x168] sm:$0xff] %vm1414_vm5, %v915_v59  ;;  %v6703_v63 = vpop.f32.mrb[91].mxu0  ;;  %6861 = vmatmul.mubr.msk.f32.gmra.mrb[196].mxu0 %vm184_vm4, %v121_v51  ;;  %v1898_v1 = vmax.f32 %v1891_v55, 0.0  ;;  %v1836_v2 = vsel %vm1591_vm6, %v1833_v40, %v1835_v54  ;;  %v126_v51 = vld [vmem:[%s10874_s1 + $0x338] sm:$0xff] }
 0x1ac   :  { %6863 = vmatprep.mubr.msk.f32.mxu0 %vm7526_vm0, %v7527_v6  ;;  %v1874_v4 = vsel %vm1634_vm7, %v1871_v45, %v1873_v60  ;;  %v1850_v5 = vmax.f32 %v1815_v34, %v1836_v2 }
 0x1ad   :  { %v1837_v7 = vrot.slane %v1817_v61, 1  ;;  %v1854_v8 = vrot.slane %v1818_v62, 1  ;;  %v1892_v9 = vmax.f32 %v1848_v39, %v1874_v4  ;;  %1905 = vst.msk [vmem:[#allocation3 + $0x76] sm:$0xff] %vm1414_vm5, %v1898_v1 }
 0x1ae   :  { %v920_v10 = vpop.f32.mrb[92].mxu0  ;;  %v1875_v11 = vrot.slane %v1850_v5, 2 }
 0x1af   :  { %v1838_v12 = vsel %vm1591_vm6, %v1835_v54, %v1837_v7  ;;  %v1855_v13 = vsel %vm1591_vm6, %v1837_v7, %v1854_v8  ;;  %v1859_v14 = vmax.f32 %v1818_v62, %v1854_v8  ;;  %1461 = vst.msk [vmem:[#allocation2 + $0x170] sm:$0xff] %vm1414_vm5, %v920_v10  ;;  %v6706_v15 = vpop.f32.mrb[93].mxu0  ;;  %6864 = vmatmul.mubr.msk.f32.gmra.mrb[198].mxu0 %vm184_vm4, %v122_v3  ;;  %v1899_v21 = vmax.f32 %v1892_v9, 0.0  ;;  %v127_v54 = vld [vmem:[%s10874_s1 + $0x340] sm:$0xff]  ;;  %v128_v62 = vld [vmem:[%s10874_s1 + $0x348] sm:$0xff]  ;;  %v129_v3 = vld [vmem:[%s10874_s1 + $0x350] sm:$0xff] }
 0x1b0   :  { %v1851_v16 = vmax.f32 %v1816_v47, %v1838_v12  ;;  %v1858_v17 = vmax.f32 %v1817_v61, %v1855_v13  ;;  %6866 = vmatprep.mubr.msk.f32.mxu0 %vm7526_vm0, %v7527_v6  ;;  %v3208_v20 = vld [vmem:[#allocation3 + $0x68] sm:$0xff]  ;;  %v1876_v22 = vsel %vm1634_vm7, %v1873_v60, %v1875_v11  ;;  %v1852_v29 = vmax.f32 %v1817_v61, %v1837_v7  ;;  %v2726_v47 = vld [vmem:[%s10875_s2 + $0x8] sm:$0xff]  ;;  %v1911_v8 = vld [vmem:[#allocation2 + $0x15c] sm:$0xff] }
 0x1b1   :  { %v1881_v23 = vrot.slane %v1859_v14, 2  ;;  %v7205_v24 = vpack.c.bf16 %v3208_v20, %v3207_v19  ;;  %v1893_v25 = vmax.f32 %v1849_v50, %v1876_v22  ;;  %1906 = vst.msk [vmem:[#allocation3 + $0x7e] sm:$0xff] %vm1414_vm5, %v1899_v21  ;;  %3614 = vmatprep.mubr.f32.mxu1 %v2726_v47  ;;  %v130_v9 = vld [vmem:[%s10874_s1 + $0x358] sm:$0xff] }
 0x1b2   :  { %v1879_v26 = vrot.slane %v1858_v17, 2  ;;  %v925_v27 = vpop.f32.mrb[94].mxu0  ;;  %v1877_v28 = vrot.slane %v1851_v16, 2 }
 0x1b3   :  { %1462 = vst.msk [vmem:[#allocation2 + $0x178] sm:$0xff] %vm1414_vm5, %v925_v27  ;;  %v6709_v30 = vpop.f32.mrb[95].mxu0  ;;  %6867 = vmatmul.mubr.msk.f32.gmra.mrb[200].mxu0 %vm184_vm4, %v123_v18  ;;  %7206 = vmatpush1.bf16.msra.mxu1 %v7205_v24  ;;  %v1900_v31 = vmax.f32 %v1893_v25, 0.0  ;;  %v132_v25 = vld [vmem:[%s10874_s1 + $0x368] sm:$0xff] }
 0x1b4   :  { %6869 = vmatprep.mubr.msk.f32.mxu0 %vm7526_vm0, %v7527_v6  ;;  %7207 = vmatprep.subr.bf16.mxu1 %v7525_v0  ;;  %v1878_v33 = vsel %vm1634_vm7, %v1875_v11, %v1877_v28  ;;  %v1880_v34 = vsel %vm1634_vm7, %v1877_v28, %v1879_v26  ;;  %v1882_v35 = vsel %vm1634_vm7, %v1879_v26, %v1881_v23  ;;  %v3209_v45 = vld [vmem:[#allocation3 + $0x70] sm:$0xff]  ;;  %v1912_v11 = vld [vmem:[#allocation2 + $0x164] sm:$0xff] }
 0x1b5   :  { %v1894_v36 = vmax.f32 %v1850_v5, %v1878_v33  ;;  %1907 = vst.msk [vmem:[#allocation3 + $0x86] sm:$0xff] %vm1414_vm5, %v1900_v31  ;;  %v1895_v37 = vmax.f32 %v1851_v16, %v1880_v34  ;;  %v1896_v38 = vmax.f32 %v1852_v29, %v1882_v35  ;;  %v131_v16 = vld [vmem:[%s10874_s1 + $0x360] sm:$0xff]  ;;  %v133_v34 = vld [vmem:[%s10874_s1 + $0x370] sm:$0xff] }
 0x1b6   :  { %v930_v39 = vpop.f32.mrb[96].mxu0  ;;  %v1913_v19 = vld [vmem:[#allocation2 + $0x16c] sm:$0xff] }
 0x1b7   :  { %1463 = vst.msk [vmem:[#allocation2 + $0x180] sm:$0xff] %vm1414_vm5, %v930_v39  ;;  %v6712_v40 = vpop.f32.mrb[97].mxu0  ;;  %6870 = vmatmul.mubr.msk.f32.gmra.mrb[202].mxu0 %vm184_vm4, %v124_v32  ;;  %v1901_v41 = vmax.f32 %v1894_v36, 0.0  ;;  %v1902_v42 = vmax.f32 %v1895_v37, 0.0  ;;  %v1903_v43 = vmax.f32 %v1896_v38, 0.0 }
 0x1b8   :  { %6872 = vmatprep.mubr.msk.f32.mxu0 %vm7526_vm0, %v7527_v6  ;;  %v3210_v46 = vld [vmem:[#allocation3 + $0x78] sm:$0xff] }
 0x1b9   :  { %1908 = vst.msk [vmem:[#allocation3 + $0x8e] sm:$0xff] %vm1414_vm5, %v1901_v41  ;;  %1909 = vst.msk [vmem:[#allocation3 + $0x96] sm:$0xff] %vm1414_vm5, %v1902_v42  ;;  %v7208_v49 = vpack.c.bf16 %v3210_v46, %v3209_v45  ;;  %v134_v46 = vld [vmem:[%s10874_s1 + $0x378] sm:$0xff] }
 0x1ba   :  { %1910 = vst.msk [vmem:[#allocation3 + $0x9e] sm:$0x7f] %vm1677_vm8, %v1903_v43  ;;  %v935_v48 = vpop.f32.mrb[98].mxu0  ;;  %v1914_v27 = vld [vmem:[#allocation2 + $0x174] sm:$0xff] }
 0x1bb   :  { %1464 = vst.msk [vmem:[#allocation2 + $0x188] sm:$0xff] %vm1414_vm5, %v935_v48  ;;  %v6715_v50 = vpop.f32.mrb[99].mxu0  ;;  %6873 = vmatmul.mubr.msk.f32.gmra.mrb[204].mxu0 %vm184_vm4, %v125_v44  ;;  %7209 = vmatpush1.bf16.msra.mxu1 %v7208_v49 }
 0x1bc   :  { %6875 = vmatprep.mubr.msk.f32.mxu0 %vm7526_vm0, %v7527_v6  ;;  %7210 = vmatprep.subr.bf16.mxu1 %v7525_v0  ;;  %v3211_v55 = vld [vmem:[#allocation3 + $0x80] sm:$0xff] }
 0x1be   :  { %v940_v52 = vpop.f32.mrb[100].mxu0  ;;  %v1915_v37 = vld [vmem:[#allocation2 + $0x17c] sm:$0xff] }
 0x1bf   :  { %1465 = vst.msk [vmem:[#allocation2 + $0x190] sm:$0xff] %vm1414_vm5, %v940_v52  ;;  %v6718_v53 = vpop.f32.mrb[101].mxu0  ;;  %6876 = vmatmul.mubr.msk.f32.gmra.mrb[206].mxu0 %vm184_vm4, %v126_v51 }
 0x1c0   :  { %6878 = vmatprep.mubr.msk.f32.mxu0 %vm7526_vm0, %v7527_v6  ;;  %v3212_v56 = vld [vmem:[#allocation3 + $0x88] sm:$0xff]  ;;  %v3213_v59 = vld [vmem:[#allocation3 + $0x90] sm:$0xff] }
 0x1c1   :  { %v7211_v57 = vpack.c.bf16 %v3212_v56, %v3211_v55  ;;  %v3214_v60 = vld [vmem:[#allocation3 + $0x98] sm:$0xff] }
 0x1c2   :  { %v945_v58 = vpop.f32.mrb[102].mxu0  ;;  %v7214_v63 = vpack.c.bf16 %v3214_v60, %v3213_v59  ;;  %v1916_v50 = vld [vmem:[#allocation2 + $0x184] sm:$0xff] }
 0x1c3   :  { %1466 = vst.msk [vmem:[#allocation2 + $0x198] sm:$0xff] %vm1414_vm5, %v945_v58  ;;  %v6721_v61 = vpop.f32.mrb[103].mxu0  ;;  %6879 = vmatmul.mubr.msk.f32.gmra.mrb[208].mxu0 %vm184_vm4, %v127_v54  ;;  %7212 = vmatpush1.bf16.msra.mxu1 %v7211_v57  ;;  %v135_v58 = vld [vmem:[%s10874_s1 + $0x380] sm:$0xff] }
 0x1c4   :  { %6881 = vmatprep.mubr.msk.f32.mxu0 %vm7526_vm0, %v7527_v6  ;;  %7213 = vmatprep.subr.bf16.mxu1 %v7525_v0 }
 0x1c6   :  { %v950_v1 = vpop.f32.mrb[104].mxu0  ;;  %v1918_v61 = vld [vmem:[#allocation2 + $0x194] sm:$0x3] }
 0x1c7   :  { %1467 = vst.msk [vmem:[#allocation2 + $0x1a0] sm:$0xff] %vm1414_vm5, %v950_v1  ;;  %v6724_v2 = vpop.f32.mrb[105].mxu0  ;;  %6882 = vmatmul.mubr.msk.f32.gmra.mrb[210].mxu0 %vm184_vm4, %v128_v62  ;;  %7215 = vmatpush1.bf16.msra.mxu1 %v7214_v63  ;;  %v1917_v1 = vld [vmem:[#allocation2 + $0x18c] sm:$0xff] }
 0x1c8   :  { %6884 = vmatprep.mubr.msk.f32.mxu0 %vm7526_vm0, %v7527_v6  ;;  %7216 = vmatprep.subr.bf16.mxu1 %v7525_v0 }
 0x1ca   :  { %v1919_v4 = vld [vmem:[#allocation2 + $0x196] sm:$0xff]  ;;  %v955_v5 = vpop.f32.mrb[106].mxu0 }
 0x1cb   :  { %1468 = vst.msk [vmem:[#allocation2 + $0x1a8] sm:$0xff] %vm1414_vm5, %v955_v5  ;;  %v6727_v7 = vpop.f32.mrb[107].mxu0  ;;  %6885 = vmatmul.mubr.msk.f32.gmra.mrb[212].mxu0 %vm184_vm4, %v129_v3  ;;  %v1927_v10 = vmax.f32 %v1911_v8, %v1919_v4 }
 0x1cc   :  { %6887 = vmatprep.mubr.msk.f32.mxu0 %vm7526_vm0, %v7527_v6 }
 0x1cd   :  { %v1942_v17 = vrot.slane %v1927_v10, 1 }
 0x1ce   :  { %v1920_v12 = vld [vmem:[#allocation2 + $0x19e] sm:$0xff]  ;;  %v960_v13 = vpop.f32.mrb[108].mxu0 }
 0x1cf   :  { %v1928_v14 = vmax.f32 %v1912_v11, %v1920_v12  ;;  %1469 = vst.msk [vmem:[#allocation2 + $0x1b0] sm:$0xff] %vm1414_vm5, %v960_v13  ;;  %v6730_v15 = vpop.f32.mrb[109].mxu0  ;;  %6888 = vmatmul.mubr.msk.f32.gmra.mrb[214].mxu0 %vm184_vm4, %v130_v9  ;;  %v136_v13 = vld [vmem:[%s10874_s1 + $0x388] sm:$0xff] }
 0x1d0   :  { %6890 = vmatprep.mubr.msk.f32.mxu0 %vm7526_vm0, %v7527_v6 }
 0x1d1   :  { %v1943_v18 = vrot.slane %v1928_v14, 1 }
 0x1d2   :  { %v1921_v20 = vld [vmem:[#allocation2 + $0x1a6] sm:$0xff]  ;;  %v965_v21 = vpop.f32.mrb[110].mxu0 }
 0x1d3   :  { %v1929_v22 = vmax.f32 %v1913_v19, %v1921_v20  ;;  %1470 = vst.msk [vmem:[#allocation2 + $0x1b8] sm:$0xff] %vm1414_vm5, %v965_v21  ;;  %v6733_v23 = vpop.f32.mrb[111].mxu0  ;;  %6891 = vmatmul.mubr.msk.f32.gmra.mrb[216].mxu0 %vm184_vm4, %v131_v16  ;;  %v1944_v24 = vsel %vm1591_vm6, %v1942_v17, %v1943_v18 }
 0x1d4   :  { %6893 = vmatprep.mubr.msk.f32.mxu0 %vm7526_vm0, %v7527_v6  ;;  %v1962_v30 = vmax.f32 %v1927_v10, %v1944_v24 }
 0x1d5   :  { %v1945_v26 = vrot.slane %v1929_v22, 1 }
 0x1d6   :  { %v1922_v28 = vld [vmem:[#allocation2 + $0x1ae] sm:$0xff]  ;;  %v970_v29 = vpop.f32.mrb[112].mxu0  ;;  %v1984_v40 = vrot.slane %v1962_v30, 2 }
 0x1d7   :  { %v1930_v31 = vmax.f32 %v1914_v27, %v1922_v28  ;;  %1471 = vst.msk [vmem:[#allocation2 + $0x1c0] sm:$0xff] %vm1414_vm5, %v970_v29  ;;  %v6736_v32 = vpop.f32.mrb[113].mxu0  ;;  %6894 = vmatmul.mubr.msk.f32.gmra.mrb[218].mxu0 %vm184_vm4, %v132_v25  ;;  %v1946_v33 = vsel %vm1591_vm6, %v1943_v18, %v1945_v26  ;;  %v137_v25 = vld [vmem:[%s10874_s1 + $0x390] sm:$0xff] }
 0x1d8   :  { %6896 = vmatprep.mubr.msk.f32.mxu0 %vm7526_vm0, %v7527_v6  ;;  %v1963_v35 = vmax.f32 %v1928_v14, %v1946_v33 }
 0x1d9   :  { %v1947_v36 = vrot.slane %v1930_v31, 1 }
 0x1da   :  { %v1923_v38 = vld [vmem:[#allocation2 + $0x1b6] sm:$0xff]  ;;  %v975_v39 = vpop.f32.mrb[114].mxu0  ;;  %v1985_v41 = vrot.slane %v1963_v35, 2 }
 0x1db   :  { %v1948_v42 = vsel %vm1591_vm6, %v1945_v26, %v1947_v36  ;;  %v1931_v43 = vmax.f32 %v1915_v37, %v1923_v38  ;;  %1472 = vst.msk [vmem:[#allocation2 + $0x1c8] sm:$0xff] %vm1414_vm5, %v975_v39  ;;  %v6739_v44 = vpop.f32.mrb[115].mxu0  ;;  %6897 = vmatmul.mubr.msk.f32.gmra.mrb[220].mxu0 %vm184_vm4, %v133_v34  ;;  %v138_v37 = vld [vmem:[%s10874_s1 + $0x398] sm:$0xff] }
 0x1dc   :  { %v1964_v45 = vmax.f32 %v1929_v22, %v1948_v42  ;;  %6899 = vmatprep.mubr.msk.f32.mxu0 %vm7526_vm0, %v7527_v6  ;;  %v1986_v47 = vsel %vm1634_vm7, %v1984_v40, %v1985_v41 }
 0x1dd   :  { %v1949_v48 = vrot.slane %v1931_v43, 1  ;;  %v2006_v49 = vmax.f32 %v1962_v30, %v1986_v47 }
 0x1de   :  { %v1924_v51 = vld [vmem:[#allocation2 + $0x1be] sm:$0xff]  ;;  %v980_v52 = vpop.f32.mrb[116].mxu0  ;;  %v1987_v53 = vrot.slane %v1964_v45, 2 }
 0x1df   :  { %v1932_v54 = vmax.f32 %v1916_v50, %v1924_v51  ;;  %1473 = vst.msk [vmem:[#allocation2 + $0x1d0] sm:$0xff] %vm1414_vm5, %v980_v52  ;;  %v6742_v55 = vpop.f32.mrb[117].mxu0  ;;  %6900 = vmatmul.mubr.msk.f32.gmra.mrb[222].mxu0 %vm184_vm4, %v134_v46  ;;  %v2013_v56 = vmax.f32 %v2006_v49, 0.0  ;;  %v1950_v57 = vsel %vm1591_vm6, %v1947_v36, %v1949_v48  ;;  %v139_v50 = vld [vmem:[%s10874_s1 + $0x3a0] sm:$0xff] }
 0x1e0   :  { %6902 = vmatprep.mubr.msk.f32.mxu0 %vm7526_vm0, %v7527_v6  ;;  %v1988_v59 = vsel %vm1634_vm7, %v1985_v41, %v1987_v53  ;;  %v1965_v60 = vmax.f32 %v1930_v31, %v1950_v57  ;;  %v140_v55 = vld [vmem:[%s10874_s1 + $0x3a8] sm:$0xff] }
 0x1e1   :  { %v1951_v62 = vrot.slane %v1932_v54, 1  ;;  %v2007_v63 = vmax.f32 %v1963_v35, %v1988_v59  ;;  %2020 = vst.msk [vmem:[#allocation3 + $0xa5] sm:$0xff] %vm1414_vm5, %v2013_v56 }
 0x1e2   :  { %v1925_v2 = vld [vmem:[#allocation2 + $0x1c6] sm:$0xff]  ;;  %v1926_v3 = vld [vmem:[#allocation2 + $0x1ce] sm:$0x3]  ;;  %v985_v4 = vpop.f32.mrb[118].mxu0  ;;  %v1989_v5 = vrot.slane %v1965_v60, 2 }
 0x1e3   :  { %v1952_v7 = vsel %vm1591_vm6, %v1949_v48, %v1951_v62  ;;  %v1933_v8 = vmax.f32 %v1917_v1, %v1925_v2  ;;  %v1934_v9 = vmax.f32 %v1918_v61, %v1926_v3  ;;  %1474 = vst.msk [vmem:[#allocation2 + $0x1d8] sm:$0xff] %vm1414_vm5, %v985_v4  ;;  %v6745_v10 = vpop.f32.mrb[119].mxu0  ;;  %6903 = vmatmul.mubr.msk.f32.gmra.mrb[224].mxu0 %vm184_vm4, %v135_v58  ;;  %v2014_v11 = vmax.f32 %v2007_v63, 0.0  ;;  %v141_v61 = vld [vmem:[%s10874_s1 + $0x3b0] sm:$0xff]  ;;  %v142_v4 = vld [vmem:[%s10874_s1 + $0x3b8] sm:$0xff] }
 0x1e4   :  { %v1966_v12 = vmax.f32 %v1931_v43, %v1952_v7  ;;  %6905 = vmatprep.mubr.msk.f32.mxu0 %vm7526_vm0, %v7527_v6  ;;  %v1990_v14 = vsel %vm1634_vm7, %v1987_v53, %v1989_v5 }
 0x1e5   :  { %v1953_v15 = vrot.slane %v1933_v8, 1  ;;  %v1970_v16 = vrot.slane %v1934_v9, 1  ;;  %2021 = vst.msk [vmem:[#allocation3 + $0xad] sm:$0xff] %vm1414_vm5, %v2014_v11  ;;  %v2008_v17 = vmax.f32 %v1964_v45, %v1990_v14  ;;  %v144_v11 = vld [vmem:[%s10874_s1 + $0x3c8] sm:$0xff] }
 0x1e6   :  { %v990_v18 = vpop.f32.mrb[120].mxu0  ;;  %v1991_v19 = vrot.slane %v1966_v12, 2 }
 0x1e7   :  { %v1971_v20 = vsel %vm1591_vm6, %v1953_v15, %v1970_v16  ;;  %v1975_v21 = vmax.f32 %v1934_v9, %v1970_v16  ;;  %1475 = vst.msk [vmem:[#allocation2 + $0x1e0] sm:$0xff] %vm1414_vm5, %v990_v18  ;;  %v6748_v22 = vpop.f32.mrb[121].mxu0  ;;  %6906 = vmatmul.mubr.msk.f32.gmra.mrb[226].mxu0 %vm184_vm4, %v136_v13  ;;  %v2015_v23 = vmax.f32 %v2008_v17, 0.0  ;;  %v1954_v27 = vsel %vm1591_vm6, %v1951_v62, %v1953_v15  ;;  %v145_v16 = vld [vmem:[%s10874_s1 + $0x3d0] sm:$0xff] }
 0x1e8   :  { %v1974_v24 = vmax.f32 %v1933_v8, %v1971_v20  ;;  %6908 = vmatprep.mubr.msk.f32.mxu0 %vm7526_vm0, %v7527_v6  ;;  %v1992_v26 = vsel %vm1634_vm7, %v1989_v5, %v1991_v19  ;;  %v1967_v30 = vmax.f32 %v1932_v54, %v1954_v27  ;;  %v1968_v33 = vmax.f32 %v1933_v8, %v1953_v15  ;;  %v3215_v38 = vld [vmem:[#allocation3 + $0xa0] sm:$0xff]  ;;  %v143_v8 = vld [vmem:[%s10874_s1 + $0x3c0] sm:$0xff]  ;;  %v2027_v15 = vld [vmem:[#allocation2 + $0x1d0] sm:$0xff] }
 0x1e9   :  { %v1997_v28 = vrot.slane %v1975_v21, 2  ;;  %v2009_v29 = vmax.f32 %v1965_v60, %v1992_v26  ;;  %2022 = vst.msk [vmem:[#allocation3 + $0xb5] sm:$0xff] %vm1414_vm5, %v2015_v23  ;;  %v146_v23 = vld [vmem:[%s10874_s1 + $0x3d8] sm:$0xff] }
 0x1ea   :  { %v1995_v31 = vrot.slane %v1974_v24, 2  ;;  %v995_v32 = vpop.f32.mrb[122].mxu0  ;;  %v1993_v36 = vrot.slane %v1967_v30, 2  ;;  %v2028_v18 = vld [vmem:[#allocation2 + $0x1d8] sm:$0xff] }
 0x1eb   :  { %1476 = vst.msk [vmem:[#allocation2 + $0x1e8] sm:$0xff] %vm1414_vm5, %v995_v32  ;;  %v6751_v34 = vpop.f32.mrb[123].mxu0  ;;  %6909 = vmatmul.mubr.msk.f32.gmra.mrb[228].mxu0 %vm184_vm4, %v137_v25  ;;  %v2016_v35 = vmax.f32 %v2009_v29, 0.0  ;;  %v147_v32 = vld [vmem:[%s10874_s1 + $0x3e0] sm:$0xff] }
 0x1ec   :  { %6911 = vmatprep.mubr.msk.f32.mxu0 %vm7526_vm0, %v7527_v6  ;;  %v3216_v39 = vld [vmem:[#allocation3 + $0xa8] sm:$0xff]  ;;  %v1998_v40 = vsel %vm1634_vm7, %v1995_v31, %v1997_v28  ;;  %v1994_v42 = vsel %vm1634_vm7, %v1991_v19, %v1993_v36  ;;  %v1996_v43 = vsel %vm1634_vm7, %v1993_v36, %v1995_v31 }
 0x1ed   :  { %v7217_v41 = vpack.c.bf16 %v3216_v39, %v3215_v38  ;;  %2023 = vst.msk [vmem:[#allocation3 + $0xbd] sm:$0xff] %vm1414_vm5, %v2016_v35  ;;  %v2012_v44 = vmax.f32 %v1968_v33, %v1998_v40  ;;  %v2010_v46 = vmax.f32 %v1966_v12, %v1994_v42  ;;  %v2011_v47 = vmax.f32 %v1967_v30, %v1996_v43  ;;  %v148_v42 = vld [vmem:[%s10874_s1 + $0x3e8] sm:$0xff] }
 0x1ee   :  { %v1000_v45 = vpop.f32.mrb[124].mxu0  ;;  %v2029_v26 = vld [vmem:[#allocation2 + $0x1e0] sm:$0xff] }
 0x1ef   :  { %1477 = vst.msk [vmem:[#allocation2 + $0x1f0] sm:$0xff] %vm1414_vm5, %v1000_v45  ;;  %v6754_v48 = vpop.f32.mrb[125].mxu0  ;;  %6912 = vmatmul.mubr.msk.f32.gmra.mrb[230].mxu0 %vm184_vm4, %v138_v37  ;;  %7218 = vmatpush1.bf16.msra.mxu1 %v7217_v41  ;;  %v2019_v49 = vmax.f32 %v2012_v44, 0.0  ;;  %v2017_v51 = vmax.f32 %v2010_v46, 0.0  ;;  %v2018_v52 = vmax.f32 %v2011_v47, 0.0 }
 0x1f0   :  { %6914 = vmatprep.mubr.msk.f32.mxu0 %vm7526_vm0, %v7527_v6  ;;  %7219 = vmatprep.subr.bf16.mxu1 %v7525_v0  ;;  %v3217_v56 = vld [vmem:[#allocation3 + $0xb0] sm:$0xff] }
 0x1f1   :  { %2026 = vst.msk [vmem:[#allocation3 + $0xd5] sm:$0x7f] %vm1677_vm8, %v2019_v49 }
 0x1f2   :  { %v1005_v53 = vpop.f32.mrb[126].mxu0  ;;  %2024 = vst.msk [vmem:[#allocation3 + $0xc5] sm:$0xff] %vm1414_vm5, %v2017_v51  ;;  %2025 = vst.msk [vmem:[#allocation3 + $0xcd] sm:$0xff] %vm1414_vm5, %v2018_v52  ;;  %v2030_v34 = vld [vmem:[#allocation2 + $0x1e8] sm:$0xff] }
 0x1f3   :  { %1478 = vst.msk [vmem:[#allocation2 + $0x1f8] sm:$0xff] %vm1414_vm5, %v1005_v53  ;;  %v6757_v54 = vpop.f32.mrb[127].mxu0  ;;  %6915 = vmatmul.mubr.msk.f32.gmra.mrb[232].mxu0 %vm184_vm4, %v139_v50  ;;  %v149_v53 = vld [vmem:[%s10874_s1 + $0x3f0] sm:$0xff] }
 0x1f4   :  { %6917 = vmatprep.mubr.msk.f32.mxu0 %vm7526_vm0, %v7527_v6  ;;  %v3218_v57 = vld [vmem:[#allocation3 + $0xb8] sm:$0xff] }
 0x1f5   :  { %v7220_v58 = vpack.c.bf16 %v3218_v57, %v3217_v56 }
 0x1f6   :  { %v1010_v59 = vpop.f32.mrb[128].mxu0  ;;  %v2031_v45 = vld [vmem:[#allocation2 + $0x1f0] sm:$0xff] }
 0x1f7   :  { %1479 = vst.msk [vmem:[#allocation2 + $0x200] sm:$0xff] %vm1414_vm5, %v1010_v59  ;;  %v6760_v60 = vpop.f32.mrb[129].mxu0  ;;  %6918 = vmatmul.mubr.msk.f32.gmra.mrb[234].mxu0 %vm184_vm4, %v140_v55  ;;  %7221 = vmatpush1.bf16.msra.mxu1 %v7220_v58 }
 0x1f8   :  { %6920 = vmatprep.mubr.msk.f32.mxu0 %vm7526_vm0, %v7527_v6  ;;  %7222 = vmatprep.subr.bf16.mxu1 %v7525_v0 }
 0x1f9   :  { %v3219_v62 = vld [vmem:[#allocation3 + $0xc0] sm:$0xff]  ;;  %v3220_v63 = vld [vmem:[#allocation3 + $0xc8] sm:$0xff] }
 0x1fa   :  { %v1015_v1 = vpop.f32.mrb[130].mxu0  ;;  %v7223_v2 = vpack.c.bf16 %v3220_v63, %v3219_v62  ;;  %v2032_v58 = vld [vmem:[#allocation2 + $0x1f8] sm:$0xff] }
 0x1fb   :  { %1480 = vst.msk [vmem:[#allocation2 + $0x208] sm:$0xff] %vm1414_vm5, %v1015_v1  ;;  %v6763_v3 = vpop.f32.mrb[131].mxu0  ;;  %6921 = vmatmul.mubr.msk.f32.gmra.mrb[236].mxu0 %vm184_vm4, %v141_v61 }
 0x1fc   :  { %7224 = vmatpush1.bf16.msra.mxu1 %v7223_v2  ;;  %6923 = vmatprep.mubr.msk.f32.mxu0 %vm7526_vm0, %v7527_v6  ;;  %v150_v3 = vld [vmem:[%s10874_s1 + $0x3f8] sm:$0xff] }
 0x1fd   :  { %7225 = vmatprep.subr.bf16.mxu1 %v7525_v0 }
 0x1fe   :  { %v1020_v5 = vpop.f32.mrb[132].mxu0 }
 0x1ff   :  { %1481 = vst.msk [vmem:[#allocation2 + $0x210] sm:$0xff] %vm1414_vm5, %v1020_v5  ;;  %v6766_v7 = vpop.f32.mrb[133].mxu0  ;;  %6924 = vmatmul.mubr.msk.f32.gmra.mrb[238].mxu0 %vm184_vm4, %v142_v4 }
 0x200   :  { %6926 = vmatprep.mubr.msk.f32.mxu0 %vm7526_vm0, %v7527_v6 }
 0x202   :  { %v1025_v9 = vpop.f32.mrb[134].mxu0  ;;  %v2034_v7 = vld [vmem:[#allocation2 + $0x208] sm:$0x3] }
 0x203   :  { %1482 = vst.msk [vmem:[#allocation2 + $0x218] sm:$0xff] %vm1414_vm5, %v1025_v9  ;;  %v6769_v10 = vpop.f32.mrb[135].mxu0  ;;  %6927 = vmatmul.mubr.msk.f32.gmra.mrb[240].mxu0 %vm184_vm4, %v143_v8 }
 0x204   :  { %6929 = vmatprep.mubr.msk.f32.mxu0 %vm7526_vm0, %v7527_v6  ;;  %v2033_v10 = vld [vmem:[#allocation2 + $0x200] sm:$0xff] }
 0x206   :  { %v2035_v12 = vld [vmem:[#allocation2 + $0x20a] sm:$0xff]  ;;  %v1030_v13 = vpop.f32.mrb[136].mxu0 }
 0x207   :  { %1483 = vst.msk [vmem:[#allocation2 + $0x220] sm:$0xff] %vm1414_vm5, %v1030_v13  ;;  %v6772_v14 = vpop.f32.mrb[137].mxu0  ;;  %6930 = vmatmul.mubr.msk.f32.gmra.mrb[242].mxu0 %vm184_vm4, %v144_v11  ;;  %v2043_v17 = vmax.f32 %v2027_v15, %v2035_v12 }
 0x208   :  { %6932 = vmatprep.mubr.msk.f32.mxu0 %vm7526_vm0, %v7527_v6 }
 0x209   :  { %v2058_v24 = vrot.slane %v2043_v17, 1 }
 0x20a   :  { %v2036_v19 = vld [vmem:[#allocation2 + $0x212] sm:$0xff]  ;;  %v1035_v20 = vpop.f32.mrb[138].mxu0 }
 0x20b   :  { %v2044_v21 = vmax.f32 %v2028_v18, %v2036_v19  ;;  %1484 = vst.msk [vmem:[#allocation2 + $0x228] sm:$0xff] %vm1414_vm5, %v1035_v20  ;;  %v6775_v22 = vpop.f32.mrb[139].mxu0  ;;  %6933 = vmatmul.mubr.msk.f32.gmra.mrb[244].mxu0 %vm184_vm4, %v145_v16  ;;  %v151_v20 = vld [vmem:[%s10874_s1 + $0x400] sm:$0xff] }
 0x20c   :  { %6935 = vmatprep.mubr.msk.f32.mxu0 %vm7526_vm0, %v7527_v6 }
 0x20d   :  { %v2059_v25 = vrot.slane %v2044_v21, 1 }
 0x20e   :  { %v2037_v27 = vld [vmem:[#allocation2 + $0x21a] sm:$0xff]  ;;  %v1040_v28 = vpop.f32.mrb[140].mxu0 }
 0x20f   :  { %v2045_v29 = vmax.f32 %v2029_v26, %v2037_v27  ;;  %1485 = vst.msk [vmem:[#allocation2 + $0x230] sm:$0xff] %vm1414_vm5, %v1040_v28  ;;  %v6778_v30 = vpop.f32.mrb[141].mxu0  ;;  %6936 = vmatmul.mubr.msk.f32.gmra.mrb[246].mxu0 %vm184_vm4, %v146_v23  ;;  %v2060_v31 = vsel %vm1591_vm6, %v2058_v24, %v2059_v25 }
 0x210   :  { %6938 = vmatprep.mubr.msk.f32.mxu0 %vm7526_vm0, %v7527_v6  ;;  %v2078_v37 = vmax.f32 %v2043_v17, %v2060_v31 }
 0x211   :  { %v2061_v33 = vrot.slane %v2045_v29, 1 }
 0x212   :  { %v2038_v35 = vld [vmem:[#allocation2 + $0x222] sm:$0xff]  ;;  %v1045_v36 = vpop.f32.mrb[142].mxu0  ;;  %v2100_v48 = vrot.slane %v2078_v37, 2 }
 0x213   :  { %v2062_v38 = vsel %vm1591_vm6, %v2059_v25, %v2061_v33  ;;  %v2046_v39 = vmax.f32 %v2030_v34, %v2038_v35  ;;  %1486 = vst.msk [vmem:[#allocation2 + $0x238] sm:$0xff] %vm1414_vm5, %v1045_v36  ;;  %v6781_v40 = vpop.f32.mrb[143].mxu0  ;;  %6939 = vmatmul.mubr.msk.f32.gmra.mrb[248].mxu0 %vm184_vm4, %v147_v32  ;;  %v3221_v34 = vld [vmem:[#allocation3 + $0xd0] sm:$0xff] }
 0x214   :  { %v2079_v41 = vmax.f32 %v2044_v21, %v2062_v38  ;;  %6941 = vmatprep.mubr.msk.f32.mxu0 %vm7526_vm0, %v7527_v6 }
 0x215   :  { %v2063_v43 = vrot.slane %v2046_v39, 1 }
 0x216   :  { %v2101_v44 = vrot.slane %v2079_v41, 2  ;;  %v2039_v46 = vld [vmem:[#allocation2 + $0x22a] sm:$0xff]  ;;  %v1050_v47 = vpop.f32.mrb[144].mxu0 }
 0x217   :  { %v2064_v49 = vsel %vm1591_vm6, %v2061_v33, %v2063_v43  ;;  %v2047_v50 = vmax.f32 %v2031_v45, %v2039_v46  ;;  %1487 = vst.msk [vmem:[#allocation2 + $0x240] sm:$0xff] %vm1414_vm5, %v1050_v47  ;;  %v6784_v51 = vpop.f32.mrb[145].mxu0  ;;  %6942 = vmatmul.mubr.msk.f32.gmra.mrb[250].mxu0 %vm184_vm4, %v148_v42  ;;  %v152_v33 = vld [vmem:[%s10874_s1 + $0x408] sm:$0xff] }
 0x218   :  { %v2080_v52 = vmax.f32 %v2045_v29, %v2064_v49  ;;  %6944 = vmatprep.mubr.msk.f32.mxu0 %vm7526_vm0, %v7527_v6  ;;  %v2102_v54 = vsel %vm1634_vm7, %v2100_v48, %v2101_v44  ;;  %v153_v49 = vld [vmem:[%s10874_s1 + $0x410] sm:$0xff] }
 0x219   :  { %v2065_v55 = vrot.slane %v2047_v50, 1  ;;  %v2122_v56 = vmax.f32 %v2078_v37, %v2102_v54 }
 0x21a   :  { %v2103_v57 = vrot.slane %v2080_v52, 2  ;;  %v2040_v59 = vld [vmem:[#allocation2 + $0x232] sm:$0xff]  ;;  %v1055_v60 = vpop.f32.mrb[146].mxu0 }
 0x21b   :  { %v2066_v61 = vsel %vm1591_vm6, %v2063_v43, %v2065_v55  ;;  %v2048_v62 = vmax.f32 %v2032_v58, %v2040_v59  ;;  %1488 = vst.msk [vmem:[#allocation2 + $0x248] sm:$0xff] %vm1414_vm5, %v1055_v60  ;;  %v6787_v63 = vpop.f32.mrb[147].mxu0  ;;  %6945 = vmatmul.mubr.msk.f32.gmra.mrb[252].mxu0 %vm184_vm4, %v149_v53  ;;  %v2129_v1 = vmax.f32 %v2122_v56, 0.0  ;;  %v154_v59 = vld [vmem:[%s10874_s1 + $0x418] sm:$0xff] }
 0x21c   :  { %v2081_v2 = vmax.f32 %v2046_v39, %v2066_v61  ;;  %6947 = vmatprep.mubr.msk.f32.mxu0 %vm7526_vm0, %v7527_v6  ;;  %v2104_v4 = vsel %vm1634_vm7, %v2101_v44, %v2103_v57 }
 0x21d   :  { %v2067_v5 = vrot.slane %v2048_v62, 1  ;;  %2136 = vst.msk [vmem:[#allocation3 + $0xdc] sm:$0xff] %vm1414_vm5, %v2129_v1  ;;  %v2123_v8 = vmax.f32 %v2079_v41, %v2104_v4 }
 0x21e   :  { %v2105_v9 = vrot.slane %v2081_v2, 2  ;;  %v2041_v11 = vld [vmem:[#allocation2 + $0x23a] sm:$0xff]  ;;  %v2042_v12 = vld [vmem:[#allocation2 + $0x242] sm:$0x3]  ;;  %v1060_v13 = vpop.f32.mrb[148].mxu0 }
 0x21f   :  { %v2068_v14 = vsel %vm1591_vm6, %v2065_v55, %v2067_v5  ;;  %v2049_v15 = vmax.f32 %v2033_v10, %v2041_v11  ;;  %v2050_v16 = vmax.f32 %v2034_v7, %v2042_v12  ;;  %1489 = vst.msk [vmem:[#allocation2 + $0x250] sm:$0xff] %vm1414_vm5, %v1060_v13  ;;  %v6790_v17 = vpop.f32.mrb[149].mxu0  ;;  %6948 = vmatmul.mubr.msk.f32.gmra.mrb[254].mxu0 %vm184_vm4, %v150_v3  ;;  %v2130_v18 = vmax.f32 %v2123_v8, 0.0 }
 0x220   :  { %v2082_v19 = vmax.f32 %v2047_v50, %v2068_v14  ;;  %6950 = vmatprep.mubr.msk.f32.mxu0 %vm7526_vm0, %v7527_v6  ;;  %v2106_v21 = vsel %vm1634_vm7, %v2103_v57, %v2105_v9  ;;  %v2725_v14 = vld [vmem:[%s10875_s2] sm:$0xff]  ;;  %v2731_v17 = vld [vmem:[%s10875_s2 + $0x30] sm:$0xff] }
 0x221   :  { %v2069_v22 = vrot.slane %v2049_v15, 1  ;;  %v2086_v23 = vrot.slane %v2050_v16, 1  ;;  %v2124_v24 = vmax.f32 %v2080_v52, %v2106_v21  ;;  %2137 = vst.msk [vmem:[#allocation3 + $0xe4] sm:$0xff] %vm1414_vm5, %v2130_v18  ;;  %v158_v21 = vld [vmem:[%s10874_s1 + $0x438] sm:$0xff] }
 0x222   :  { %v2107_v25 = vrot.slane %v2082_v19, 2  ;;  %v1065_v26 = vpop.f32.mrb[150].mxu0 }
 0x223   :  { %v2070_v27 = vsel %vm1591_vm6, %v2067_v5, %v2069_v22  ;;  %v2087_v28 = vsel %vm1591_vm6, %v2069_v22, %v2086_v23  ;;  %v2091_v29 = vmax.f32 %v2050_v16, %v2086_v23  ;;  %1490 = vst.msk [vmem:[#allocation2 + $0x258] sm:$0xff] %vm1414_vm5, %v1065_v26  ;;  %v6793_v30 = vpop.f32.mrb[151].mxu0  ;;  %6951 = vmatmul.mubr.msk.f32.gmra.mrb[0].mxu0 %vm184_vm4, %v151_v20  ;;  %v2131_v36 = vmax.f32 %v2124_v24, 0.0  ;;  %v156_v5 = vld [vmem:[%s10874_s1 + $0x428] sm:$0xff]  ;;  %v2735_v26 = vld [vmem:[%s10875_s2 + $0x50] sm:$0xff] }
 0x224   :  { %v2083_v31 = vmax.f32 %v2048_v62, %v2070_v27  ;;  %v2090_v32 = vmax.f32 %v2049_v15, %v2087_v28  ;;  %6953 = vmatprep.mubr.msk.f32.mxu0 %vm7526_vm0, %v7527_v6  ;;  %v3222_v35 = vld [vmem:[#allocation3 + $0xd8] sm:$0xff]  ;;  %v2108_v37 = vsel %vm1634_vm7, %v2105_v9, %v2107_v25  ;;  %v2084_v44 = vmax.f32 %v2049_v15, %v2069_v22  ;;  %v157_v15 = vld [vmem:[%s10874_s1 + $0x430] sm:$0xff]  ;;  %v2730_v20 = vld [vmem:[%s10875_s2 + $0x28] sm:$0xff] }
 0x225   :  { %v2113_v38 = vrot.slane %v2091_v29, 2  ;;  %v7226_v39 = vpack.c.bf16 %v3222_v35, %v3221_v34  ;;  %v2125_v40 = vmax.f32 %v2081_v2, %v2108_v37  ;;  %2138 = vst.msk [vmem:[#allocation3 + $0xec] sm:$0xff] %vm1414_vm5, %v2131_v36  ;;  %v155_v2 = vld [vmem:[%s10874_s1 + $0x420] sm:$0xff]  ;;  %v2736_v22 = vld [vmem:[%s10875_s2 + $0x58] sm:$0xff] }
 0x226   :  { %v2109_v41 = vrot.slane %v2083_v31, 2  ;;  %v2111_v42 = vrot.slane %v2090_v32, 2  ;;  %v1070_v43 = vpop.f32.mrb[152].mxu0  ;;  %v2741_v27 = vld [vmem:[%s10875_s2 + $0x80] sm:$0xff]  ;;  %v2144_v29 = vld [vmem:[#allocation2 + $0x24c] sm:$0xff]  ;;  %v2740_v36 = vld [vmem:[%s10875_s2 + $0x78] sm:$0xff] }
 0x227   :  { %1491 = vst.msk [vmem:[#allocation2 + $0x260] sm:$0xff] %vm1414_vm5, %v1070_v43  ;;  %v6796_v45 = vpop.f32.mrb[153].mxu0  ;;  %6954 = vmatmul.mubr.msk.f32.gmra.mrb[2].mxu0 %vm184_vm4, %v152_v33  ;;  %7227 = vmatpush1.bf16.msra.mxu1 %v7226_v39  ;;  %v2132_v46 = vmax.f32 %v2125_v40, 0.0  ;;  %v2143_v28 = vld [vmem:[#allocation2 + $0x244] sm:$0xff] }
 0x228   :  { %v2112_v47 = vsel %vm1634_vm7, %v2109_v41, %v2111_v42  ;;  %v2114_v48 = vsel %vm1634_vm7, %v2111_v42, %v2113_v38  ;;  %6956 = vmatprep.mubr.msk.f32.mxu0 %vm7526_vm0, %v7527_v6  ;;  %7228 = vmatprep.subr.bf16.mxu1 %v7525_v0  ;;  %v2110_v50 = vsel %vm1634_vm7, %v2107_v25, %v2109_v41  ;;  %v3223_v60 = vld [vmem:[#allocation3 + $0xe0] sm:$0xff]  ;;  %v159_v30 = vld [vmem:[%s10874_s1 + $0x440] sm:$0xff] }
 0x229   :  { %v2128_v51 = vmax.f32 %v2084_v44, %v2114_v48  ;;  %v2126_v52 = vmax.f32 %v2082_v19, %v2110_v50  ;;  %2139 = vst.msk [vmem:[#allocation3 + $0xf4] sm:$0xff] %vm1414_vm5, %v2132_v46  ;;  %v2127_v53 = vmax.f32 %v2083_v31, %v2112_v47  ;;  %v160_v38 = vld [vmem:[%s10874_s1 + $0x448] sm:$0xff]  ;;  %v2745_v47 = vld [vmem:[%s10875_s2 + $0xa0] sm:$0xff]  ;;  %v2751_v50 = vld [vmem:[%s10875_s2 + $0xd0] sm:$0xff] }
 0x22a   :  { %v1075_v54 = vpop.f32.mrb[154].mxu0  ;;  %v2145_v37 = vld [vmem:[#allocation2 + $0x254] sm:$0xff]  ;;  %v2746_v39 = vld [vmem:[%s10875_s2 + $0xa8] sm:$0xff] }
 0x22b   :  { %v2135_v55 = vmax.f32 %v2128_v51, 0.0  ;;  %1492 = vst.msk [vmem:[#allocation2 + $0x268] sm:$0xff] %vm1414_vm5, %v1075_v54  ;;  %v6799_v56 = vpop.f32.mrb[155].mxu0  ;;  %6957 = vmatmul.mubr.msk.f32.gmra.mrb[4].mxu0 %vm184_vm4, %v153_v49  ;;  %v2133_v57 = vmax.f32 %v2126_v52, 0.0  ;;  %v2134_v58 = vmax.f32 %v2127_v53, 0.0  ;;  %v161_v49 = vld [vmem:[%s10874_s1 + $0x450] sm:$0xff] }
 0x22c   :  { %6959 = vmatprep.mubr.msk.f32.mxu0 %vm7526_vm0, %v7527_v6  ;;  %v3224_v61 = vld [vmem:[#allocation3 + $0xe8] sm:$0xff] }
 0x22d   :  { %2142 = vst.msk [vmem:[#allocation3 + $0x10c] sm:$0x7f] %vm1677_vm8, %v2135_v55  ;;  %v7229_v63 = vpack.c.bf16 %v3224_v61, %v3223_v60  ;;  %v162_v61 = vld [vmem:[%s10874_s1 + $0x458] sm:$0xff] }
 0x22e   :  { %2140 = vst.msk [vmem:[#allocation3 + $0xfc] sm:$0xff] %vm1414_vm5, %v2133_v57  ;;  %2141 = vst.msk [vmem:[#allocation3 + $0x104] sm:$0xff] %vm1414_vm5, %v2134_v58  ;;  %v1080_v62 = vpop.f32.mrb[156].mxu0  ;;  %v2146_v48 = vld [vmem:[#allocation2 + $0x25c] sm:$0xff]  ;;  %v2750_v58 = vld [vmem:[%s10875_s2 + $0xc8] sm:$0xff] }
 0x22f   :  { %1493 = vst.msk [vmem:[#allocation2 + $0x270] sm:$0xff] %vm1414_vm5, %v1080_v62  ;;  %v6802_v1 = vpop.f32.mrb[157].mxu0  ;;  %6960 = vmatmul.mubr.msk.f32.gmra.mrb[6].mxu0 %vm184_vm4, %v154_v59  ;;  %7230 = vmatpush1.bf16.msra.mxu1 %v7229_v63  ;;  %v2756_v62 = vld [vmem:[%s10875_s2 + $0xf8] sm:$0xff] }
 0x230   :  { %6962 = vmatprep.mubr.msk.f32.mxu0 %vm7526_vm0, %v7527_v6  ;;  %7231 = vmatprep.subr.bf16.mxu1 %v7525_v0  ;;  %v3225_v7 = vld [vmem:[#allocation3 + $0xf0] sm:$0xff] }
 0x232   :  { %v1085_v3 = vpop.f32.mrb[158].mxu0  ;;  %v2147_v59 = vld [vmem:[#allocation2 + $0x264] sm:$0xff] }
 0x233   :  { %1494 = vst.msk [vmem:[#allocation2 + $0x278] sm:$0xff] %vm1414_vm5, %v1085_v3  ;;  %v6805_v4 = vpop.f32.mrb[159].mxu0  ;;  %6963 = vmatmul.mubr.msk.f32.gmra.mrb[8].mxu0 %vm184_vm4, %v155_v2 }
 0x234   :  { %6965 = vmatprep.mubr.msk.f32.mxu0 %vm7526_vm0, %v7527_v6 }
 0x235   :  { %v3226_v8 = vld [vmem:[#allocation3 + $0xf8] sm:$0xff]  ;;  %v3227_v11 = vld [vmem:[#allocation3 + $0x100] sm:$0xff]  ;;  %v3228_v12 = vld [vmem:[#allocation3 + $0x108] sm:$0xff] }
 0x236   :  { %v7232_v9 = vpack.c.bf16 %v3226_v8, %v3225_v7  ;;  %v1090_v10 = vpop.f32.mrb[160].mxu0  ;;  %v7235_v16 = vpack.c.bf16 %v3228_v12, %v3227_v11  ;;  %v163_v12 = vld [vmem:[%s10874_s1 + $0x460] sm:$0xff] }
 0x237   :  { %1495 = vst.msk [vmem:[#allocation2 + $0x280] sm:$0xff] %vm1414_vm5, %v1090_v10  ;;  %v6808_v13 = vpop.f32.mrb[161].mxu0  ;;  %6966 = vmatmul.mubr.msk.f32.gmra.mrb[10].mxu0 %vm184_vm4, %v156_v5  ;;  %v2148_v10 = vld [vmem:[#allocation2 + $0x26c] sm:$0xff] }
 0x238   :  { %7233 = vmatpush1.bf16.msra.mxu1 %v7232_v9  ;;  %6968 = vmatprep.mubr.msk.f32.mxu0 %vm7526_vm0, %v7527_v6  ;;  %v2755_v9 = vld [vmem:[%s10875_s2 + $0xf0] sm:$0xff]  ;;  %v2761_v13 = vld [vmem:[%s10875_s2 + $0x120] sm:$0xff] }
 0x239   :  { %7234 = vmatprep.subr.bf16.mxu1 %v7525_v0 }
 0x23a   :  { %v1095_v18 = vpop.f32.mrb[162].mxu0 }
 0x23b   :  { %3615 = vmatmul.mubr.f32.vlgmr.msra.gmra.mrb[0].mxu1 %v2725_v14  ;;  %1496 = vst.msk [vmem:[#allocation2 + $0x288] sm:$0xff] %vm1414_vm5, %v1095_v18  ;;  %v6811_v19 = vpop.f32.mrb[163].mxu0  ;;  %6969 = vmatmul.mubr.msk.f32.gmra.mrb[12].mxu0 %vm184_vm4, %v157_v15 }
 0x23c   :  { %7236 = vmatpush1.bf16.msra.mxu1 %v7235_v16  ;;  %3619 = vmatprep.mubr.f32.mxu1 %v2731_v17 }
 0x23d   :  { %6971 = vmatprep.mubr.msk.f32.mxu0 %vm7526_vm0, %v7527_v6  ;;  %7237 = vmatprep.subr.bf16.mxu1 %v7525_v0 }
 0x23e   :  { %v2151_v23 = vld [vmem:[#allocation2 + $0x27e] sm:$0xff]  ;;  %v1100_v24 = vpop.f32.mrb[164].mxu0 }
 0x23f   :  { %3620 = vmatmul.mubr.f32.gmra.mrb[2].mxu1 %v2730_v20  ;;  %1497 = vst.msk [vmem:[#allocation2 + $0x290] sm:$0xff] %vm1414_vm5, %v1100_v24  ;;  %v6814_v25 = vpop.f32.mrb[165].mxu0  ;;  %6972 = vmatmul.mubr.msk.f32.gmra.mrb[14].mxu0 %vm184_vm4, %v158_v21  ;;  %v2159_v31 = vmax.f32 %v2143_v28, %v2151_v23  ;;  %v2760_v23 = vld [vmem:[%s10875_s2 + $0x118] sm:$0xff]  ;;  %v2766_v24 = vld [vmem:[%s10875_s2 + $0x148] sm:$0xff] }
 0x240   :  { %3624 = vmatprep.mubr.f32.mxu1 %v2736_v22  ;;  %6974 = vmatprep.mubr.msk.f32.mxu0 %vm7526_vm0, %v7527_v6 }
 0x241   :  { %v2174_v40 = vrot.slane %v2159_v31, 1 }
 0x242   :  { %v2152_v32 = vld [vmem:[#allocation2 + $0x286] sm:$0xff]  ;;  %v1105_v33 = vpop.f32.mrb[166].mxu0 }
 0x243   :  { %3625 = vmatmul.mubr.f32.gmra.mrb[4].mxu1 %v2735_v26  ;;  %v2160_v34 = vmax.f32 %v2144_v29, %v2152_v32  ;;  %1498 = vst.msk [vmem:[#allocation2 + $0x298] sm:$0xff] %vm1414_vm5, %v1105_v33  ;;  %v6817_v35 = vpop.f32.mrb[167].mxu0  ;;  %6975 = vmatmul.mubr.msk.f32.gmra.mrb[16].mxu0 %vm184_vm4, %v159_v30  ;;  %v2149_v26 = vld [vmem:[#allocation2 + $0x274] sm:$0xff]  ;;  %v164_v29 = vld [vmem:[%s10874_s1 + $0x468] sm:$0xff] }
 0x244   :  { %3629 = vmatprep.mubr.f32.mxu1 %v2741_v27  ;;  %6977 = vmatprep.mubr.msk.f32.mxu0 %vm7526_vm0, %v7527_v6  ;;  %v2150_v27 = vld [vmem:[#allocation2 + $0x27c] sm:$0x3] }
 0x245   :  { %v2175_v41 = vrot.slane %v2160_v34, 1 }
 0x246   :  { %v2153_v42 = vld [vmem:[#allocation2 + $0x28e] sm:$0xff]  ;;  %v1110_v43 = vpop.f32.mrb[168].mxu0 }
 0x247   :  { %3630 = vmatmul.mubr.f32.gmra.mrb[6].mxu1 %v2740_v36  ;;  %v2176_v44 = vsel %vm1591_vm6, %v2174_v40, %v2175_v41  ;;  %v2161_v45 = vmax.f32 %v2145_v37, %v2153_v42  ;;  %1499 = vst.msk [vmem:[#allocation2 + $0x2a0] sm:$0xff] %vm1414_vm5, %v1110_v43  ;;  %v6820_v46 = vpop.f32.mrb[169].mxu0  ;;  %6978 = vmatmul.mubr.msk.f32.gmra.mrb[18].mxu0 %vm184_vm4, %v160_v38 }
 0x248   :  { %3634 = vmatprep.mubr.f32.mxu1 %v2746_v39  ;;  %6980 = vmatprep.mubr.msk.f32.mxu0 %vm7526_vm0, %v7527_v6  ;;  %v2194_v52 = vmax.f32 %v2159_v31, %v2176_v44  ;;  %v165_v44 = vld [vmem:[%s10874_s1 + $0x470] sm:$0xff] }
 0x249   :  { %v2177_v51 = vrot.slane %v2161_v45, 1 }
 0x24a   :  { %v2154_v53 = vld [vmem:[#allocation2 + $0x296] sm:$0xff]  ;;  %v1115_v54 = vpop.f32.mrb[170].mxu0  ;;  %v2216_v1 = vrot.slane %v2194_v52, 2 }
 0x24b   :  { %3635 = vmatmul.mubr.f32.gmra.mrb[8].mxu1 %v2745_v47  ;;  %v2178_v55 = vsel %vm1591_vm6, %v2175_v41, %v2177_v51  ;;  %v2162_v56 = vmax.f32 %v2146_v48, %v2154_v53  ;;  %1500 = vst.msk [vmem:[#allocation2 + $0x2a8] sm:$0xff] %vm1414_vm5, %v1115_v54  ;;  %v6823_v57 = vpop.f32.mrb[171].mxu0  ;;  %6981 = vmatmul.mubr.msk.f32.gmra.mrb[20].mxu0 %vm184_vm4, %v161_v49  ;;  %v2765_v41 = vld [vmem:[%s10875_s2 + $0x140] sm:$0xff]  ;;  %v2771_v48 = vld [vmem:[%s10875_s2 + $0x170] sm:$0xff] }
 0x24c   :  { %3639 = vmatprep.mubr.f32.mxu1 %v2751_v50  ;;  %v2195_v60 = vmax.f32 %v2160_v34, %v2178_v55  ;;  %6983 = vmatprep.mubr.msk.f32.mxu0 %vm7526_vm0, %v7527_v6 }
 0x24d   :  { %v2179_v63 = vrot.slane %v2162_v56, 1 }
 0x24e   :  { %v2217_v2 = vrot.slane %v2195_v60, 2  ;;  %v2155_v3 = vld [vmem:[#allocation2 + $0x29e] sm:$0xff]  ;;  %v1120_v4 = vpop.f32.mrb[172].mxu0 }
 0x24f   :  { %3640 = vmatmul.mubr.f32.gmra.mrb[10].mxu1 %v2750_v58  ;;  %v2180_v5 = vsel %vm1591_vm6, %v2177_v51, %v2179_v63  ;;  %v2163_v7 = vmax.f32 %v2147_v59, %v2155_v3  ;;  %1501 = vst.msk [vmem:[#allocation2 + $0x2b0] sm:$0xff] %vm1414_vm5, %v1120_v4  ;;  %v6826_v8 = vpop.f32.mrb[173].mxu0  ;;  %6984 = vmatmul.mubr.msk.f32.gmra.mrb[22].mxu0 %vm184_vm4, %v162_v61  ;;  %v166_v59 = vld [vmem:[%s10874_s1 + $0x478] sm:$0xff] }
 0x250   :  { %3644 = vmatprep.mubr.f32.mxu1 %v2756_v62  ;;  %v8717_v11 = vmax.f32 %v2161_v45, %v2180_v5  ;;  %6986 = vmatprep.mubr.msk.f32.mxu0 %vm7526_vm0, %v7527_v6  ;;  %v2218_v14 = vsel %vm1634_vm7, %v2216_v1, %v2217_v2  ;;  %v2775_v8 = vld [vmem:[%s10875_s2 + $0x190] sm:$0xff] }
 0x251   :  { %v2181_v15 = vrot.slane %v2163_v7, 1  ;;  %v2238_v16 = vmax.f32 %v2194_v52, %v2218_v14 }
 0x252   :  { %v2219_v17 = vrot.slane %v8717_v11, 2  ;;  %v2156_v18 = vld [vmem:[#allocation2 + $0x2a6] sm:$0xff]  ;;  %v1125_v19 = vpop.f32.mrb[174].mxu0 }
 0x253   :  { %3645 = vmatmul.mubr.f32.gmra.mrb[12].mxu1 %v2755_v9  ;;  %v2182_v20 = vsel %vm1591_vm6, %v2179_v63, %v2181_v15  ;;  %v2164_v21 = vmax.f32 %v2148_v10, %v2156_v18  ;;  %1502 = vst.msk [vmem:[#allocation2 + $0x2b8] sm:$0xff] %vm1414_vm5, %v1125_v19  ;;  %v6829_v22 = vpop.f32.mrb[175].mxu0  ;;  %6987 = vmatmul.mubr.msk.f32.gmra.mrb[24].mxu0 %vm184_vm4, %v163_v12  ;;  %v2245_v25 = vmax.f32 %v2238_v16, 0.0  ;;  %v167_v12 = vld [vmem:[%s10874_s1 + $0x480] sm:$0xff] }
 0x254   :  { %3649 = vmatprep.mubr.f32.mxu1 %v2761_v13  ;;  %v2197_v28 = vmax.f32 %v2162_v56, %v2182_v20  ;;  %6989 = vmatprep.mubr.msk.f32.mxu0 %vm7526_vm0, %v7527_v6  ;;  %v2220_v30 = vsel %vm1634_vm7, %v2217_v2, %v2219_v17  ;;  %v2770_v56 = vld [vmem:[%s10875_s2 + $0x168] sm:$0xff]  ;;  %v2781_v18 = vld [vmem:[%s10875_s2 + $0x1c0] sm:$0xff] }
 0x255   :  { %v2183_v31 = vrot.slane %v2164_v21, 1  ;;  %v2239_v32 = vmax.f32 %v2195_v60, %v2220_v30  ;;  %2252 = vst.msk [vmem:[#allocation3 + $0x113] sm:$0xff] %vm1414_vm5, %v2245_v25  ;;  %v2776_v60 = vld [vmem:[%s10875_s2 + $0x198] sm:$0xff] }
 0x256   :  { %v2221_v33 = vrot.slane %v2197_v28, 2  ;;  %v2157_v34 = vld [vmem:[#allocation2 + $0x2ae] sm:$0xff]  ;;  %v2158_v35 = vld [vmem:[#allocation2 + $0x2b6] sm:$0x3]  ;;  %v1130_v36 = vpop.f32.mrb[176].mxu0 }
 0x257   :  { %3650 = vmatmul.mubr.f32.gmra.mrb[14].mxu1 %v2760_v23  ;;  %v2184_v37 = vsel %vm1591_vm6, %v2181_v15, %v2183_v31  ;;  %v2165_v38 = vmax.f32 %v2149_v26, %v2157_v34  ;;  %v2166_v39 = vmax.f32 %v2150_v27, %v2158_v35  ;;  %1503 = vst.msk [vmem:[#allocation2 + $0x2c0] sm:$0xff] %vm1414_vm5, %v1130_v36  ;;  %v6832_v40 = vpop.f32.mrb[177].mxu0  ;;  %v2246_v42 = vmax.f32 %v2239_v32, 0.0  ;;  %v2786_v27 = vld [vmem:[%s10875_s2 + $0x1e8] sm:$0xff] }
 0x258   :  { %6990 = vmatmul.mubr.msk.f32.gmra.mrb[26].mxu0 %vm184_vm4, %v164_v29  ;;  %3654 = vmatprep.mubr.f32.mxu1 %v2766_v24  ;;  %v2198_v43 = vmax.f32 %v2163_v7, %v2184_v37  ;;  %v2222_v45 = vsel %vm1634_vm7, %v2219_v17, %v2221_v33  ;;  %v2780_v24 = vld [vmem:[%s10875_s2 + $0x1b8] sm:$0xff]  ;;  %v2790_v37 = vld [vmem:[%s10875_s2 + $0x208] sm:$0xff] }
 0x259   :  { %6992 = vmatprep.mubr.msk.f32.mxu0 %vm7526_vm0, %v7527_v6  ;;  %v2185_v46 = vrot.slane %v2165_v38, 1  ;;  %v2202_v47 = vrot.slane %v2166_v39, 1  ;;  %2253 = vst.msk [vmem:[#allocation3 + $0x11b] sm:$0xff] %vm1414_vm5, %v2246_v42  ;;  %v2240_v49 = vmax.f32 %v8717_v11, %v2222_v45  ;;  %v2796_v40 = vld [vmem:[%s10875_s2 + $0x238] sm:$0xff]  ;;  %v2801_v45 = vld [vmem:[%s10875_s2 + $0x260] sm:$0xff] }
 0x25a   :  { %v2223_v50 = vrot.slane %v2198_v43, 2  ;;  %v1135_v51 = vpop.f32.mrb[178].mxu0 }
 0x25b   :  { %3655 = vmatmul.mubr.f32.gmra.mrb[16].mxu1 %v2765_v41  ;;  %v2186_v52 = vsel %vm1591_vm6, %v2183_v31, %v2185_v46  ;;  %v2203_v53 = vsel %vm1591_vm6, %v2185_v46, %v2202_v47  ;;  %v2207_v54 = vmax.f32 %v2166_v39, %v2202_v47  ;;  %1504 = vst.msk [vmem:[#allocation2 + $0x2c8] sm:$0xff] %vm1414_vm5, %v1135_v51  ;;  %v6835_v55 = vpop.f32.mrb[179].mxu0  ;;  %v2247_v62 = vmax.f32 %v2240_v49, 0.0  ;;  %v2785_v31 = vld [vmem:[%s10875_s2 + $0x1e0] sm:$0xff]  ;;  %v2806_v49 = vld [vmem:[%s10875_s2 + $0x288] sm:$0xff] }
 0x25c   :  { %6993 = vmatmul.mubr.msk.f32.gmra.mrb[28].mxu0 %vm184_vm4, %v165_v44  ;;  %v2199_v57 = vmax.f32 %v2164_v21, %v2186_v52  ;;  %v2206_v58 = vmax.f32 %v2165_v38, %v2203_v53  ;;  %3659 = vmatprep.mubr.f32.mxu1 %v2771_v48  ;;  %v2224_v61 = vsel %vm1634_vm7, %v2221_v33, %v2223_v50  ;;  %v3229_v13 = vld [vmem:[#allocation3 + $0x110] sm:$0xff]  ;;  %v2791_v33 = vld [vmem:[%s10875_s2 + $0x210] sm:$0xff]  ;;  %v2805_v52 = vld [vmem:[%s10875_s2 + $0x280] sm:$0xff] }
 0x25d   :  { %6995 = vmatprep.mubr.msk.f32.mxu0 %vm7526_vm0, %v7527_v6  ;;  %v2200_v63 = vmax.f32 %v2165_v38, %v2185_v46  ;;  %v2229_v1 = vrot.slane %v2207_v54, 2  ;;  %v2241_v2 = vmax.f32 %v2197_v28, %v2224_v61  ;;  %2254 = vst.msk [vmem:[#allocation3 + $0x123] sm:$0xff] %vm1414_vm5, %v2247_v62  ;;  %v2795_v44 = vld [vmem:[%s10875_s2 + $0x230] sm:$0xff]  ;;  %v2800_v48 = vld [vmem:[%s10875_s2 + $0x258] sm:$0xff] }
 0x25e   :  { %v2225_v3 = vrot.slane %v2199_v57, 2  ;;  %v2227_v4 = vrot.slane %v2206_v58, 2  ;;  %v1140_v5 = vpop.f32.mrb[180].mxu0  ;;  %v2259_v53 = vld [vmem:[#allocation2 + $0x2b8] sm:$0xff]  ;;  %v2811_v54 = vld [vmem:[%s10875_s2 + $0x2b0] sm:$0xff] }
 0x25f   :  { %3660 = vmatmul.mubr.f32.gmra.mrb[18].mxu1 %v2770_v56  ;;  %1505 = vst.msk [vmem:[#allocation2 + $0x2d0] sm:$0xff] %vm1414_vm5, %v1140_v5  ;;  %v6838_v7 = vpop.f32.mrb[181].mxu0  ;;  %v2248_v9 = vmax.f32 %v2241_v2, 0.0  ;;  %v2816_v61 = vld [vmem:[%s10875_s2 + $0x2d8] sm:$0xff] }
 0x260   :  { %6996 = vmatmul.mubr.msk.f32.gmra.mrb[30].mxu0 %vm184_vm4, %v166_v59  ;;  %3664 = vmatprep.mubr.f32.mxu1 %v2776_v60  ;;  %v2228_v10 = vsel %vm1634_vm7, %v2225_v3, %v2227_v4  ;;  %v2230_v11 = vsel %vm1634_vm7, %v2227_v4, %v2229_v1  ;;  %v3230_v14 = vld [vmem:[#allocation3 + $0x118] sm:$0xff]  ;;  %v2226_v15 = vsel %vm1634_vm7, %v2223_v50, %v2225_v3  ;;  %v2810_v59 = vld [vmem:[%s10875_s2 + $0x2a8] sm:$0xff]  ;;  %v2815_v4 = vld [vmem:[%s10875_s2 + $0x2d0] sm:$0xff] }
 0x261   :  { %6998 = vmatprep.mubr.msk.f32.mxu0 %vm7526_vm0, %v7527_v6  ;;  %v2244_v16 = vmax.f32 %v2200_v63, %v2230_v11  ;;  %v7238_v17 = vpack.c.bf16 %v3230_v14, %v3229_v13  ;;  %2255 = vst.msk [vmem:[#allocation3 + $0x12b] sm:$0xff] %vm1414_vm5, %v2248_v9  ;;  %v2242_v19 = vmax.f32 %v2198_v43, %v2226_v15  ;;  %v2260_v60 = vld [vmem:[#allocation2 + $0x2c0] sm:$0xff]  ;;  %v2820_v14 = vld [vmem:[%s10875_s2 + $0x2f8] sm:$0xff] }
 0x262   :  { %v2243_v20 = vmax.f32 %v2199_v57, %v2228_v10  ;;  %v1145_v21 = vpop.f32.mrb[182].mxu0  ;;  %v2261_v5 = vld [vmem:[#allocation2 + $0x2c8] sm:$0xff]  ;;  %v2821_v7 = vld [vmem:[%s10875_s2 + $0x300] sm:$0xff] }
 0x263   :  { %3665 = vmatmul.mubr.f32.gmra.mrb[20].mxu1 %v2775_v8  ;;  %v2251_v22 = vmax.f32 %v2244_v16, 0.0  ;;  %1506 = vst.msk [vmem:[#allocation2 + $0x2d8] sm:$0xff] %vm1414_vm5, %v1145_v21  ;;  %v6841_v23 = vpop.f32.mrb[183].mxu0  ;;  %v2249_v25 = vmax.f32 %v2242_v19, 0.0 }
 0x264   :  { %6999 = vmatmul.mubr.msk.f32.gmra.mrb[32].mxu0 %vm184_vm4, %v167_v12  ;;  %7239 = vmatpush1.bf16.msra.mxu1 %v7238_v17  ;;  %v2250_v26 = vmax.f32 %v2243_v20, 0.0  ;;  %v3231_v29 = vld [vmem:[#allocation3 + $0x120] sm:$0xff] }
 0x265   :  { %3669 = vmatprep.mubr.f32.mxu1 %v2781_v18  ;;  %7240 = vmatprep.subr.bf16.mxu1 %v7525_v0  ;;  %2258 = vst.msk [vmem:[#allocation3 + $0x143] sm:$0x7f] %vm1677_vm8, %v2251_v22  ;;  %v2826_v17 = vld [vmem:[%s10875_s2 + $0x328] sm:$0xff] }
 0x266   :  { %2256 = vst.msk [vmem:[#allocation3 + $0x133] sm:$0xff] %vm1414_vm5, %v2249_v25  ;;  %2257 = vst.msk [vmem:[#allocation3 + $0x13b] sm:$0xff] %vm1414_vm5, %v2250_v26  ;;  %v1150_v28 = vpop.f32.mrb[184].mxu0  ;;  %v2262_v15 = vld [vmem:[#allocation2 + $0x2d0] sm:$0xff] }
 0x267   :  { %3670 = vmatmul.mubr.f32.gmra.mrb[22].mxu1 %v2780_v24  ;;  %1507 = vst.msk [vmem:[#allocation2 + $0x2e0] sm:$0xff] %vm1414_vm5, %v1150_v28  ;;  %v6844_v30 = vpop.f32.mrb[185].mxu0  ;;  %v2825_v24 = vld [vmem:[%s10875_s2 + $0x320] sm:$0xff]  ;;  %v2831_v28 = vld [vmem:[%s10875_s2 + $0x350] sm:$0xff] }
 0x268   :  { %3674 = vmatprep.mubr.f32.mxu1 %v2786_v27  ;;  %v3232_v32 = vld [vmem:[#allocation3 + $0x128] sm:$0xff] }
 0x269   :  { %v7241_v34 = vpack.c.bf16 %v3232_v32, %v3231_v29 }
 0x26a   :  { %v1155_v35 = vpop.f32.mrb[186].mxu0  ;;  %v2263_v25 = vld [vmem:[#allocation2 + $0x2d8] sm:$0xff] }
 0x26b   :  { %3675 = vmatmul.mubr.f32.gmra.mrb[24].mxu1 %v2785_v31  ;;  %1508 = vst.msk [vmem:[#allocation2 + $0x2e8] sm:$0xff] %vm1414_vm5, %v1155_v35  ;;  %v6847_v36 = vpop.f32.mrb[187].mxu0 }
 0x26c   :  { %7242 = vmatpush1.bf16.msra.mxu1 %v7241_v34  ;;  %3679 = vmatprep.mubr.f32.mxu1 %v2791_v33  ;;  %v2830_v36 = vld [vmem:[%s10875_s2 + $0x348] sm:$0xff] }
 0x26d   :  { %7243 = vmatprep.subr.bf16.mxu1 %v7525_v0  ;;  %v3233_v38 = vld [vmem:[#allocation3 + $0x130] sm:$0xff]  ;;  %v3234_v39 = vld [vmem:[#allocation3 + $0x138] sm:$0xff] }
 0x26e   :  { %v7244_v41 = vpack.c.bf16 %v3234_v39, %v3233_v38  ;;  %v1160_v42 = vpop.f32.mrb[188].mxu0  ;;  %v2836_v39 = vld [vmem:[%s10875_s2 + $0x378] sm:$0xff] }
 0x26f   :  { %3680 = vmatmul.mubr.f32.gmra.mrb[26].mxu1 %v2790_v37  ;;  %1509 = vst.msk [vmem:[#allocation2 + $0x2f0] sm:$0xff] %vm1414_vm5, %v1160_v42  ;;  %v6850_v43 = vpop.f32.mrb[189].mxu0  ;;  %v2264_v37 = vld [vmem:[#allocation2 + $0x2e0] sm:$0xff] }
 0x270   :  { %7245 = vmatpush1.bf16.msra.mxu1 %v7244_v41  ;;  %3684 = vmatprep.mubr.f32.mxu1 %v2796_v40 }
 0x271   :  { %7246 = vmatprep.subr.bf16.mxu1 %v7525_v0 }
 0x272   :  { %v1165_v46 = vpop.f32.mrb[190].mxu0 }
 0x273   :  { %3685 = vmatmul.mubr.f32.gmra.mrb[28].mxu1 %v2795_v44  ;;  %1510 = vst.msk [vmem:[#allocation2 + $0x2f8] sm:$0xff] %vm1414_vm5, %v1165_v46  ;;  %v6853_v47 = vpop.f32.mrb[191].mxu0 }
 0x274   :  { %3689 = vmatprep.mubr.f32.mxu1 %v2801_v45 }
 0x276   :  { %v1170_v50 = vpop.f32.mrb[192].mxu0 }
 0x277   :  { %3690 = vmatmul.mubr.f32.gmra.mrb[30].mxu1 %v2800_v48  ;;  %1511 = vst.msk [vmem:[#allocation2 + $0x300] sm:$0xff] %vm1414_vm5, %v1170_v50  ;;  %v6856_v51 = vpop.f32.mrb[193].mxu0 }
 0x278   :  { %3694 = vmatprep.mubr.f32.mxu1 %v2806_v49  ;;  %v2835_v49 = vld [vmem:[%s10875_s2 + $0x370] sm:$0xff]  ;;  %v2265_v51 = vld [vmem:[#allocation2 + $0x2e8] sm:$0xff] }
 0x27a   :  { %v2267_v55 = vld [vmem:[#allocation2 + $0x2f2] sm:$0xff]  ;;  %v1175_v56 = vpop.f32.mrb[194].mxu0 }
 0x27b   :  { %3695 = vmatmul.mubr.f32.gmra.mrb[32].mxu1 %v2805_v52  ;;  %v2275_v57 = vmax.f32 %v2259_v53, %v2267_v55  ;;  %1512 = vst.msk [vmem:[#allocation2 + $0x308] sm:$0xff] %vm1414_vm5, %v1175_v56  ;;  %v6859_v58 = vpop.f32.mrb[195].mxu0  ;;  %v2266_v52 = vld [vmem:[#allocation2 + $0x2f0] sm:$0x3] }
 0x27c   :  { %3699 = vmatprep.mubr.f32.mxu1 %v2811_v54  ;;  %v2841_v54 = vld [vmem:[%s10875_s2 + $0x3a0] sm:$0xff] }
 0x27d   :  { %v2290_v1 = vrot.slane %v2275_v57, 1 }
 0x27e   :  { %v2268_v62 = vld [vmem:[#allocation2 + $0x2fa] sm:$0xff]  ;;  %v1180_v63 = vpop.f32.mrb[196].mxu0 }
 0x27f   :  { %3700 = vmatmul.mubr.f32.gmra.mrb[34].mxu1 %v2810_v59  ;;  %v2276_v2 = vmax.f32 %v2260_v60, %v2268_v62  ;;  %1513 = vst.msk [vmem:[#allocation2 + $0x310] sm:$0xff] %vm1414_vm5, %v1180_v63  ;;  %v6862_v3 = vpop.f32.mrb[197].mxu0 }
 0x280   :  { %3704 = vmatprep.mubr.f32.mxu1 %v2816_v61  ;;  %v2840_v3 = vld [vmem:[%s10875_s2 + $0x398] sm:$0xff] }
 0x281   :  { %v2291_v8 = vrot.slane %v2276_v2, 1 }
 0x282   :  { %v2269_v9 = vld [vmem:[#allocation2 + $0x302] sm:$0xff]  ;;  %v1185_v10 = vpop.f32.mrb[198].mxu0 }
 0x283   :  { %3705 = vmatmul.mubr.f32.gmra.mrb[36].mxu1 %v2815_v4  ;;  %v2292_v11 = vsel %vm1591_vm6, %v2290_v1, %v2291_v8  ;;  %v2277_v12 = vmax.f32 %v2261_v5, %v2269_v9  ;;  %1514 = vst.msk [vmem:[#allocation2 + $0x318] sm:$0xff] %vm1414_vm5, %v1185_v10  ;;  %v6865_v13 = vpop.f32.mrb[199].mxu0 }
 0x284   :  { %3709 = vmatprep.mubr.f32.mxu1 %v2821_v7  ;;  %v2310_v16 = vmax.f32 %v2275_v57, %v2292_v11  ;;  %v2846_v7 = vld [vmem:[%s10875_s2 + $0x3c8] sm:$0xff] }
 0x285   :  { %v2293_v18 = vrot.slane %v2277_v12, 1 }
 0x286   :  { %v2270_v19 = vld [vmem:[#allocation2 + $0x30a] sm:$0xff]  ;;  %v1190_v20 = vpop.f32.mrb[200].mxu0  ;;  %v2332_v26 = vrot.slane %v2310_v16, 2 }
 0x287   :  { %3710 = vmatmul.mubr.f32.gmra.mrb[38].mxu1 %v2820_v14  ;;  %v2294_v21 = vsel %vm1591_vm6, %v2291_v8, %v2293_v18  ;;  %v2278_v22 = vmax.f32 %v2262_v15, %v2270_v19  ;;  %1515 = vst.msk [vmem:[#allocation2 + $0x320] sm:$0xff] %vm1414_vm5, %v1190_v20  ;;  %v6868_v23 = vpop.f32.mrb[201].mxu0  ;;  %v3235_v14 = vld [vmem:[#allocation3 + $0x140] sm:$0xff]  ;;  %v2845_v19 = vld [vmem:[%s10875_s2 + $0x3c0] sm:$0xff] }
 0x288   :  { %3714 = vmatprep.mubr.f32.mxu1 %v2826_v17  ;;  %v2311_v27 = vmax.f32 %v2276_v2, %v2294_v21  ;;  %v2851_v23 = vld [vmem:[%s10875_s2 + $0x3f0] sm:$0xff] }
 0x289   :  { %v2295_v29 = vrot.slane %v2278_v22, 1 }
 0x28a   :  { %v2333_v30 = vrot.slane %v2311_v27, 2  ;;  %v2271_v31 = vld [vmem:[#allocation2 + $0x312] sm:$0xff]  ;;  %v1195_v32 = vpop.f32.mrb[202].mxu0 }
 0x28b   :  { %3715 = vmatmul.mubr.f32.gmra.mrb[40].mxu1 %v2825_v24  ;;  %v2296_v33 = vsel %vm1591_vm6, %v2293_v18, %v2295_v29  ;;  %v2279_v34 = vmax.f32 %v2263_v25, %v2271_v31  ;;  %1516 = vst.msk [vmem:[#allocation2 + $0x328] sm:$0xff] %vm1414_vm5, %v1195_v32  ;;  %v6871_v35 = vpop.f32.mrb[203].mxu0 }
 0x28c   :  { %3719 = vmatprep.mubr.f32.mxu1 %v2831_v28  ;;  %v2312_v38 = vmax.f32 %v2277_v12, %v2296_v33  ;;  %v2334_v40 = vsel %vm1634_vm7, %v2332_v26, %v2333_v30 }
 0x28d   :  { %v2297_v41 = vrot.slane %v2279_v34, 1  ;;  %v2354_v42 = vmax.f32 %v2310_v16, %v2334_v40 }
 0x28e   :  { %v2335_v43 = vrot.slane %v2312_v38, 2  ;;  %v2272_v44 = vld [vmem:[#allocation2 + $0x31a] sm:$0xff]  ;;  %v1200_v45 = vpop.f32.mrb[204].mxu0 }
 0x28f   :  { %3720 = vmatmul.mubr.f32.gmra.mrb[42].mxu1 %v2830_v36  ;;  %v2298_v46 = vsel %vm1591_vm6, %v2295_v29, %v2297_v41  ;;  %v2280_v47 = vmax.f32 %v2264_v37, %v2272_v44  ;;  %1517 = vst.msk [vmem:[#allocation2 + $0x330] sm:$0xff] %vm1414_vm5, %v1200_v45  ;;  %v6874_v48 = vpop.f32.mrb[205].mxu0  ;;  %v2361_v50 = vmax.f32 %v2354_v42, 0.0 }
 0x290   :  { %3724 = vmatprep.mubr.f32.mxu1 %v2836_v39  ;;  %v2313_v53 = vmax.f32 %v2278_v22, %v2298_v46  ;;  %v2336_v55 = vsel %vm1634_vm7, %v2333_v30, %v2335_v43  ;;  %v2855_v46 = vld [vmem:[%s10875_s2 + $0x410] sm:$0xff] }
 0x291   :  { %v2299_v56 = vrot.slane %v2280_v47, 1  ;;  %2368 = vst.msk [vmem:[#allocation3 + $0x14a] sm:$0xff] %vm1414_vm5, %v2361_v50  ;;  %v2355_v57 = vmax.f32 %v2311_v27, %v2336_v55  ;;  %v2861_v50 = vld [vmem:[%s10875_s2 + $0x440] sm:$0xff]  ;;  %v2860_v55 = vld [vmem:[%s10875_s2 + $0x438] sm:$0xff] }
 0x292   :  { %v2337_v58 = vrot.slane %v2313_v53, 2  ;;  %v2273_v59 = vld [vmem:[#allocation2 + $0x322] sm:$0xff]  ;;  %v2274_v60 = vld [vmem:[#allocation2 + $0x32a] sm:$0x3]  ;;  %v1205_v61 = vpop.f32.mrb[206].mxu0 }
 0x293   :  { %3725 = vmatmul.mubr.f32.gmra.mrb[44].mxu1 %v2835_v49  ;;  %v2300_v62 = vsel %vm1591_vm6, %v2297_v41, %v2299_v56  ;;  %v2281_v63 = vmax.f32 %v2265_v51, %v2273_v59  ;;  %v2282_v1 = vmax.f32 %v2266_v52, %v2274_v60  ;;  %1518 = vst.msk [vmem:[#allocation2 + $0x338] sm:$0xff] %vm1414_vm5, %v1205_v61  ;;  %v6877_v2 = vpop.f32.mrb[207].mxu0  ;;  %v2362_v4 = vmax.f32 %v2355_v57, 0.0  ;;  %v2865_v60 = vld [vmem:[%s10875_s2 + $0x460] sm:$0xff]  ;;  %v2871_v61 = vld [vmem:[%s10875_s2 + $0x490] sm:$0xff] }
 0x294   :  { %3729 = vmatprep.mubr.f32.mxu1 %v2841_v54  ;;  %v2314_v5 = vmax.f32 %v2279_v34, %v2300_v62  ;;  %v2338_v8 = vsel %vm1634_vm7, %v2335_v43, %v2337_v58  ;;  %v2850_v34 = vld [vmem:[%s10875_s2 + $0x3e8] sm:$0xff] }
 0x295   :  { %v2301_v9 = vrot.slane %v2281_v63, 1  ;;  %v2318_v10 = vrot.slane %v2282_v1, 1  ;;  %v2356_v11 = vmax.f32 %v2312_v38, %v2338_v8  ;;  %2369 = vst.msk [vmem:[#allocation3 + $0x152] sm:$0xff] %vm1414_vm5, %v2362_v4  ;;  %v2856_v38 = vld [vmem:[%s10875_s2 + $0x418] sm:$0xff] }
 0x296   :  { %v2339_v12 = vrot.slane %v2314_v5, 2  ;;  %v1210_v13 = vpop.f32.mrb[208].mxu0  ;;  %v2876_v8 = vld [vmem:[%s10875_s2 + $0x4b8] sm:$0xff] }
 0x297   :  { %3730 = vmatmul.mubr.f32.gmra.mrb[46].mxu1 %v2840_v3  ;;  %v2302_v15 = vsel %vm1591_vm6, %v2299_v56, %v2301_v9  ;;  %v2319_v16 = vsel %vm1591_vm6, %v2301_v9, %v2318_v10  ;;  %v2323_v17 = vmax.f32 %v2282_v1, %v2318_v10  ;;  %1519 = vst.msk [vmem:[#allocation2 + $0x340] sm:$0xff] %vm1414_vm5, %v1210_v13  ;;  %v6880_v18 = vpop.f32.mrb[209].mxu0  ;;  %v2363_v24 = vmax.f32 %v2356_v11, 0.0  ;;  %v2866_v56 = vld [vmem:[%s10875_s2 + $0x468] sm:$0xff]  ;;  %v2875_v11 = vld [vmem:[%s10875_s2 + $0x4b0] sm:$0xff]  ;;  %v2881_v13 = vld [vmem:[%s10875_s2 + $0x4e0] sm:$0xff] }
 0x298   :  { %3734 = vmatprep.mubr.f32.mxu1 %v2846_v7  ;;  %v2315_v20 = vmax.f32 %v2280_v47, %v2302_v15  ;;  %v2322_v21 = vmax.f32 %v2281_v63, %v2319_v16  ;;  %v3236_v22 = vld [vmem:[#allocation3 + $0x148] sm:$0xff]  ;;  %v2340_v25 = vsel %vm1634_vm7, %v2337_v58, %v2339_v12  ;;  %v2316_v26 = vmax.f32 %v2281_v63, %v2301_v9  ;;  %v2880_v18 = vld [vmem:[%s10875_s2 + $0x4d8] sm:$0xff] }
 0x299   :  { %v2345_v27 = vrot.slane %v2323_v17, 2  ;;  %v7247_v28 = vpack.c.bf16 %v3236_v22, %v3235_v14  ;;  %v2357_v29 = vmax.f32 %v2313_v53, %v2340_v25  ;;  %2370 = vst.msk [vmem:[#allocation3 + $0x15a] sm:$0xff] %vm1414_vm5, %v2363_v24 }
 0x29a   :  { %v2341_v30 = vrot.slane %v2315_v20, 2  ;;  %v2343_v31 = vrot.slane %v2322_v21, 2  ;;  %v1215_v32 = vpop.f32.mrb[210].mxu0 }
 0x29b   :  { %3735 = vmatmul.mubr.f32.gmra.mrb[48].mxu1 %v2845_v19  ;;  %1520 = vst.msk [vmem:[#allocation2 + $0x348] sm:$0xff] %vm1414_vm5, %v1215_v32  ;;  %v6883_v33 = vpop.f32.mrb[211].mxu0  ;;  %v2364_v35 = vmax.f32 %v2357_v29, 0.0  ;;  %v2376_v19 = vld [vmem:[#allocation2 + $0x334] sm:$0xff] }
 0x29c   :  { %7248 = vmatpush1.bf16.msra.mxu1 %v7247_v28  ;;  %3739 = vmatprep.mubr.f32.mxu1 %v2851_v23  ;;  %v2344_v36 = vsel %vm1634_vm7, %v2341_v30, %v2343_v31  ;;  %v2346_v37 = vsel %vm1634_vm7, %v2343_v31, %v2345_v27  ;;  %v2342_v39 = vsel %vm1634_vm7, %v2339_v12, %v2341_v30  ;;  %v3237_v47 = vld [vmem:[#allocation3 + $0x150] sm:$0xff]  ;;  %v2375_v12 = vld [vmem:[#allocation2 + $0x32c] sm:$0xff] }
 0x29d   :  { %7249 = vmatprep.subr.bf16.mxu1 %v7525_v0  ;;  %v2360_v40 = vmax.f32 %v2316_v26, %v2346_v37  ;;  %v2358_v41 = vmax.f32 %v2314_v5, %v2342_v39  ;;  %2371 = vst.msk [vmem:[#allocation3 + $0x162] sm:$0xff] %vm1414_vm5, %v2364_v35  ;;  %v2359_v42 = vmax.f32 %v2315_v20, %v2344_v36  ;;  %v2870_v5 = vld [vmem:[%s10875_s2 + $0x488] sm:$0xff]  ;;  %v2885_v26 = vld [vmem:[%s10875_s2 + $0x500] sm:$0xff]  ;;  %v2891_v28 = vld [vmem:[%s10875_s2 + $0x530] sm:$0xff] }
 0x29e   :  { %v1220_v43 = vpop.f32.mrb[212].mxu0  ;;  %v2886_v20 = vld [vmem:[%s10875_s2 + $0x508] sm:$0xff]  ;;  %v2377_v27 = vld [vmem:[#allocation2 + $0x33c] sm:$0xff] }
 0x29f   :  { %3740 = vmatmul.mubr.f32.gmra.mrb[50].mxu1 %v2850_v34  ;;  %v2367_v44 = vmax.f32 %v2360_v40, 0.0  ;;  %1521 = vst.msk [vmem:[#allocation2 + $0x350] sm:$0xff] %vm1414_vm5, %v1220_v43  ;;  %v6886_v45 = vpop.f32.mrb[213].mxu0  ;;  %v2365_v48 = vmax.f32 %v2358_v41, 0.0  ;;  %v2366_v49 = vmax.f32 %v2359_v42, 0.0  ;;  %v2890_v35 = vld [vmem:[%s10875_s2 + $0x528] sm:$0xff] }
 0x2a0   :  { %3744 = vmatprep.mubr.f32.mxu1 %v2856_v38  ;;  %v3238_v51 = vld [vmem:[#allocation3 + $0x158] sm:$0xff]  ;;  %v2896_v38 = vld [vmem:[%s10875_s2 + $0x558] sm:$0xff]  ;;  %v2895_v45 = vld [vmem:[%s10875_s2 + $0x550] sm:$0xff] }
 0x2a1   :  { %2374 = vst.msk [vmem:[#allocation3 + $0x17a] sm:$0x7f] %vm1677_vm8, %v2367_v44  ;;  %v7250_v53 = vpack.c.bf16 %v3238_v51, %v3237_v47 }
 0x2a2   :  { %2372 = vst.msk [vmem:[#allocation3 + $0x16a] sm:$0xff] %vm1414_vm5, %v2365_v48  ;;  %2373 = vst.msk [vmem:[#allocation3 + $0x172] sm:$0xff] %vm1414_vm5, %v2366_v49  ;;  %v1225_v52 = vpop.f32.mrb[214].mxu0  ;;  %v2378_v36 = vld [vmem:[#allocation2 + $0x344] sm:$0xff] }
 0x2a3   :  { %3745 = vmatmul.mubr.f32.gmra.mrb[52].mxu1 %v2855_v46  ;;  %1522 = vst.msk [vmem:[#allocation2 + $0x358] sm:$0xff] %vm1414_vm5, %v1225_v52  ;;  %v6889_v54 = vpop.f32.mrb[215].mxu0  ;;  %v2901_v49 = vld [vmem:[%s10875_s2 + $0x580] sm:$0xff] }
 0x2a4   :  { %3749 = vmatprep.mubr.f32.mxu1 %v2861_v50  ;;  %7251 = vmatpush1.bf16.msra.mxu1 %v7250_v53  ;;  %v3239_v58 = vld [vmem:[#allocation3 + $0x160] sm:$0xff] }
 0x2a5   :  { %7252 = vmatprep.subr.bf16.mxu1 %v7525_v0 }
 0x2a6   :  { %v1230_v57 = vpop.f32.mrb[216].mxu0  ;;  %v2379_v46 = vld [vmem:[#allocation2 + $0x34c] sm:$0xff] }
 0x2a7   :  { %3750 = vmatmul.mubr.f32.gmra.mrb[54].mxu1 %v2860_v55  ;;  %1523 = vst.msk [vmem:[#allocation2 + $0x360] sm:$0xff] %vm1414_vm5, %v1230_v57  ;;  %v6892_v59 = vpop.f32.mrb[217].mxu0  ;;  %v2900_v57 = vld [vmem:[%s10875_s2 + $0x578] sm:$0xff] }
 0x2a8   :  { %3754 = vmatprep.mubr.f32.mxu1 %v2866_v56 }
 0x2a9   :  { %v3240_v62 = vld [vmem:[#allocation3 + $0x168] sm:$0xff]  ;;  %v3241_v63 = vld [vmem:[#allocation3 + $0x170] sm:$0xff]  ;;  %v3242_v1 = vld [vmem:[#allocation3 + $0x178] sm:$0xff] }
 0x2aa   :  { %v7253_v2 = vpack.c.bf16 %v3240_v62, %v3239_v58  ;;  %v1235_v3 = vpop.f32.mrb[218].mxu0  ;;  %v7256_v7 = vpack.c.bf16 %v3242_v1, %v3241_v63  ;;  %v2380_v58 = vld [vmem:[#allocation2 + $0x354] sm:$0xff] }
 0x2ab   :  { %3755 = vmatmul.mubr.f32.gmra.mrb[56].mxu1 %v2865_v60  ;;  %1524 = vst.msk [vmem:[#allocation2 + $0x368] sm:$0xff] %vm1414_vm5, %v1235_v3  ;;  %v6895_v4 = vpop.f32.mrb[219].mxu0  ;;  %v2906_v60 = vld [vmem:[%s10875_s2 + $0x5a8] sm:$0xff] }
 0x2ac   :  { %7254 = vmatpush1.bf16.msra.mxu1 %v7253_v2  ;;  %3759 = vmatprep.mubr.f32.mxu1 %v2871_v61 }
 0x2ad   :  { %7255 = vmatprep.subr.bf16.mxu1 %v7525_v0 }
 0x2ae   :  { %v1240_v9 = vpop.f32.mrb[220].mxu0 }
 0x2af   :  { %3760 = vmatmul.mubr.f32.gmra.mrb[58].mxu1 %v2870_v5  ;;  %1525 = vst.msk [vmem:[#allocation2 + $0x370] sm:$0xff] %vm1414_vm5, %v1240_v9  ;;  %v6898_v10 = vpop.f32.mrb[221].mxu0 }
 0x2b0   :  { %7257 = vmatpush1.bf16.msra.mxu1 %v7256_v7  ;;  %3764 = vmatprep.mubr.f32.mxu1 %v2876_v8  ;;  %v2905_v8 = vld [vmem:[%s10875_s2 + $0x5a0] sm:$0xff] }
 0x2b1   :  { %7258 = vmatprep.subr.bf16.mxu1 %v7525_v0  ;;  %v2381_v10 = vld [vmem:[#allocation2 + $0x35c] sm:$0xff] }
 0x2b2   :  { %v2383_v14 = vld [vmem:[#allocation2 + $0x366] sm:$0xff]  ;;  %v1245_v15 = vpop.f32.mrb[222].mxu0 }
 0x2b3   :  { %3765 = vmatmul.mubr.f32.gmra.mrb[60].mxu1 %v2875_v11  ;;  %v2391_v16 = vmax.f32 %v2375_v12, %v2383_v14  ;;  %1526 = vst.msk [vmem:[#allocation2 + $0x378] sm:$0xff] %vm1414_vm5, %v1245_v15  ;;  %v6901_v17 = vpop.f32.mrb[223].mxu0  ;;  %v2382_v11 = vld [vmem:[#allocation2 + $0x364] sm:$0x3] }
 0x2b4   :  { %3769 = vmatprep.mubr.f32.mxu1 %v2881_v13  ;;  %v2911_v13 = vld [vmem:[%s10875_s2 + $0x5d0] sm:$0xff] }
 0x2b5   :  { %v2406_v23 = vrot.slane %v2391_v16, 1 }
 0x2b6   :  { %v2384_v21 = vld [vmem:[#allocation2 + $0x36e] sm:$0xff]  ;;  %v1250_v22 = vpop.f32.mrb[224].mxu0 }
 0x2b7   :  { %3770 = vmatmul.mubr.f32.gmra.mrb[62].mxu1 %v2880_v18  ;;  %v2392_v24 = vmax.f32 %v2376_v19, %v2384_v21  ;;  %1527 = vst.msk [vmem:[#allocation2 + $0x380] sm:$0xff] %vm1414_vm5, %v1250_v22  ;;  %v6904_v25 = vpop.f32.mrb[225].mxu0 }
 0x2b8   :  { %3774 = vmatprep.mubr.f32.mxu1 %v2886_v20  ;;  %v2910_v25 = vld [vmem:[%s10875_s2 + $0x5c8] sm:$0xff] }
 0x2b9   :  { %v2407_v29 = vrot.slane %v2392_v24, 1 }
 0x2ba   :  { %v2385_v30 = vld [vmem:[#allocation2 + $0x376] sm:$0xff]  ;;  %v1255_v31 = vpop.f32.mrb[226].mxu0 }
 0x2bb   :  { %3775 = vmatmul.mubr.f32.gmra.mrb[64].mxu1 %v2885_v26  ;;  %v2408_v32 = vsel %vm1591_vm6, %v2406_v23, %v2407_v29  ;;  %v2393_v33 = vmax.f32 %v2377_v27, %v2385_v30  ;;  %1528 = vst.msk [vmem:[#allocation2 + $0x388] sm:$0xff] %vm1414_vm5, %v1255_v31  ;;  %v6907_v34 = vpop.f32.mrb[227].mxu0 }
 0x2bc   :  { %3779 = vmatprep.mubr.f32.mxu1 %v2891_v28  ;;  %v2426_v37 = vmax.f32 %v2391_v16, %v2408_v32  ;;  %v2916_v28 = vld [vmem:[%s10875_s2 + $0x5f8] sm:$0xff] }
 0x2bd   :  { %v2409_v39 = vrot.slane %v2393_v33, 1 }
 0x2be   :  { %v2386_v40 = vld [vmem:[#allocation2 + $0x37e] sm:$0xff]  ;;  %v1260_v41 = vpop.f32.mrb[228].mxu0  ;;  %v2448_v47 = vrot.slane %v2426_v37, 2 }
 0x2bf   :  { %3780 = vmatmul.mubr.f32.gmra.mrb[66].mxu1 %v2890_v35  ;;  %v2410_v42 = vsel %vm1591_vm6, %v2407_v29, %v2409_v39  ;;  %v2394_v43 = vmax.f32 %v2378_v36, %v2386_v40  ;;  %1529 = vst.msk [vmem:[#allocation2 + $0x390] sm:$0xff] %vm1414_vm5, %v1260_v41  ;;  %v6910_v44 = vpop.f32.mrb[229].mxu0 }
 0x2c0   :  { %3784 = vmatprep.mubr.f32.mxu1 %v2896_v38  ;;  %v2427_v48 = vmax.f32 %v2392_v24, %v2410_v42  ;;  %v2921_v42 = vld [vmem:[%s10875_s2 + $0x620] sm:$0xff] }
 0x2c1   :  { %v2411_v50 = vrot.slane %v2394_v43, 1 }
 0x2c2   :  { %v2449_v51 = vrot.slane %v2427_v48, 2  ;;  %v2387_v52 = vld [vmem:[#allocation2 + $0x386] sm:$0xff]  ;;  %v1265_v53 = vpop.f32.mrb[230].mxu0 }
 0x2c3   :  { %3785 = vmatmul.mubr.f32.gmra.mrb[68].mxu1 %v2895_v45  ;;  %v2412_v54 = vsel %vm1591_vm6, %v2409_v39, %v2411_v50  ;;  %v2395_v55 = vmax.f32 %v2379_v46, %v2387_v52  ;;  %1530 = vst.msk [vmem:[#allocation2 + $0x398] sm:$0xff] %vm1414_vm5, %v1265_v53  ;;  %v6913_v56 = vpop.f32.mrb[231].mxu0  ;;  %v2915_v39 = vld [vmem:[%s10875_s2 + $0x5f0] sm:$0xff]  ;;  %v2920_v53 = vld [vmem:[%s10875_s2 + $0x618] sm:$0xff] }
 0x2c4   :  { %3789 = vmatprep.mubr.f32.mxu1 %v2901_v49  ;;  %v2428_v59 = vmax.f32 %v2393_v33, %v2412_v54  ;;  %v2450_v61 = vsel %vm1634_vm7, %v2448_v47, %v2449_v51 }
 0x2c5   :  { %v2413_v62 = vrot.slane %v2395_v55, 1  ;;  %v2470_v63 = vmax.f32 %v2426_v37, %v2450_v61 }
 0x2c6   :  { %v2451_v1 = vrot.slane %v2428_v59, 2  ;;  %v2388_v2 = vld [vmem:[#allocation2 + $0x38e] sm:$0xff]  ;;  %v1270_v3 = vpop.f32.mrb[232].mxu0 }
 0x2c7   :  { %3790 = vmatmul.mubr.f32.gmra.mrb[70].mxu1 %v2900_v57  ;;  %v2414_v4 = vsel %vm1591_vm6, %v2411_v50, %v2413_v62  ;;  %v2396_v5 = vmax.f32 %v2380_v58, %v2388_v2  ;;  %1531 = vst.msk [vmem:[#allocation2 + $0x3a0] sm:$0xff] %vm1414_vm5, %v1270_v3  ;;  %v6916_v7 = vpop.f32.mrb[233].mxu0  ;;  %v2477_v9 = vmax.f32 %v2470_v63, 0.0  ;;  %v2926_v58 = vld [vmem:[%s10875_s2 + $0x648] sm:$0xff] }
 0x2c8   :  { %3794 = vmatprep.mubr.f32.mxu1 %v2906_v60  ;;  %v2429_v12 = vmax.f32 %v2394_v43, %v2414_v4  ;;  %v2452_v14 = vsel %vm1634_vm7, %v2449_v51, %v2451_v1  ;;  %v2925_v4 = vld [vmem:[%s10875_s2 + $0x640] sm:$0xff] }
 0x2c9   :  { %v2415_v15 = vrot.slane %v2396_v5, 1  ;;  %v2471_v16 = vmax.f32 %v2427_v48, %v2452_v14  ;;  %2484 = vst.msk [vmem:[#allocation3 + $0x181] sm:$0xff] %vm1414_vm5, %v2477_v9  ;;  %v2936_v14 = vld [vmem:[%s10875_s2 + $0x698] sm:$0xff] }
 0x2ca   :  { %v2453_v17 = vrot.slane %v2429_v12, 2  ;;  %v2389_v18 = vld [vmem:[#allocation2 + $0x396] sm:$0xff]  ;;  %v2390_v19 = vld [vmem:[#allocation2 + $0x39e] sm:$0x3]  ;;  %v1275_v20 = vpop.f32.mrb[234].mxu0 }
 0x2cb   :  { %3795 = vmatmul.mubr.f32.gmra.mrb[72].mxu1 %v2905_v8  ;;  %v2416_v21 = vsel %vm1591_vm6, %v2413_v62, %v2415_v15  ;;  %v2397_v22 = vmax.f32 %v2381_v10, %v2389_v18  ;;  %v2398_v23 = vmax.f32 %v2382_v11, %v2390_v19  ;;  %1532 = vst.msk [vmem:[#allocation2 + $0x3a8] sm:$0xff] %vm1414_vm5, %v1275_v20  ;;  %v6919_v24 = vpop.f32.mrb[235].mxu0  ;;  %v2478_v26 = vmax.f32 %v2471_v16, 0.0  ;;  %v2931_v8 = vld [vmem:[%s10875_s2 + $0x670] sm:$0xff] }
 0x2cc   :  { %3799 = vmatprep.mubr.f32.mxu1 %v2911_v13  ;;  %v2430_v27 = vmax.f32 %v2395_v55, %v2416_v21  ;;  %v2454_v29 = vsel %vm1634_vm7, %v2451_v1, %v2453_v17  ;;  %v7529_v16 = vmov 1.0   ;;  %v2935_v19 = vld [vmem:[%s10875_s2 + $0x690] sm:$0xff] }
 0x2cd   :  { %v2417_v30 = vrot.slane %v2397_v22, 1  ;;  %v2434_v31 = vrot.slane %v2398_v23, 1  ;;  %2485 = vst.msk [vmem:[#allocation3 + $0x189] sm:$0xff] %vm1414_vm5, %v2478_v26  ;;  %v2472_v32 = vmax.f32 %v2428_v59, %v2454_v29  ;;  %v2940_v26 = vld [vmem:[%s10875_s2 + $0x6b8] sm:$0xff] }
 0x2ce   :  { %v2455_v33 = vrot.slane %v2430_v27, 2  ;;  %v1280_v34 = vpop.f32.mrb[236].mxu0  ;;  %2724 = vst.msk [vmem:[#allocation3 + $0x226] sm:$0x1] %vm2723_vm9, %v7529_v16  ;;  %5791 = vst.msk [vmem:[#allocation5 + $0xb4] sm:$0x1] %vm2723_vm9, %v7529_v16 }
 0x2cf   :  { %3800 = vmatmul.mubr.f32.gmra.mrb[74].mxu1 %v2910_v25  ;;  %v2418_v35 = vsel %vm1591_vm6, %v2415_v15, %v2417_v30  ;;  %v2435_v36 = vsel %vm1591_vm6, %v2417_v30, %v2434_v31  ;;  %v2439_v37 = vmax.f32 %v2398_v23, %v2434_v31  ;;  %1533 = vst.msk [vmem:[#allocation2 + $0x3b0] sm:$0xff] %vm1414_vm5, %v1280_v34  ;;  %v6922_v38 = vpop.f32.mrb[237].mxu0  ;;  %v2479_v44 = vmax.f32 %v2472_v32, 0.0  ;;  %v2951_v31 = vld [vmem:[%s10875_s2 + $0x710] sm:$0xff]  ;;  %v2950_v34 = vld [vmem:[%s10875_s2 + $0x708] sm:$0xff] }
 0x2d0   :  { %3804 = vmatprep.mubr.f32.mxu1 %v2916_v28  ;;  %v2431_v40 = vmax.f32 %v2396_v5, %v2418_v35  ;;  %v2438_v41 = vmax.f32 %v2397_v22, %v2435_v36  ;;  %v2456_v43 = vsel %vm1634_vm7, %v2453_v17, %v2455_v33  ;;  %v2432_v45 = vmax.f32 %v2397_v22, %v2417_v30  ;;  %v3243_v51 = vld [vmem:[#allocation3 + $0x180] sm:$0xff]  ;;  %v2941_v22 = vld [vmem:[%s10875_s2 + $0x6c0] sm:$0xff]  ;;  %v2956_v36 = vld [vmem:[%s10875_s2 + $0x738] sm:$0xff] }
 0x2d1   :  { %v2461_v46 = vrot.slane %v2439_v37, 2  ;;  %v2473_v47 = vmax.f32 %v2429_v12, %v2456_v43  ;;  %2486 = vst.msk [vmem:[#allocation3 + $0x191] sm:$0xff] %vm1414_vm5, %v2479_v44  ;;  %v2930_v12 = vld [vmem:[%s10875_s2 + $0x668] sm:$0xff]  ;;  %v2945_v30 = vld [vmem:[%s10875_s2 + $0x6e0] sm:$0xff] }
 0x2d2   :  { %v2457_v48 = vrot.slane %v2431_v40, 2  ;;  %v2459_v49 = vrot.slane %v2438_v41, 2  ;;  %v1285_v50 = vpop.f32.mrb[238].mxu0  ;;  %v2491_v35 = vld [vmem:[#allocation2 + $0x3a0] sm:$0xff]  ;;  %v2955_v41 = vld [vmem:[%s10875_s2 + $0x730] sm:$0xff] }
 0x2d3   :  { %3805 = vmatmul.mubr.f32.gmra.mrb[76].mxu1 %v2915_v39  ;;  %1534 = vst.msk [vmem:[#allocation2 + $0x3b8] sm:$0xff] %vm1414_vm5, %v1285_v50  ;;  %v6925_v52 = vpop.f32.mrb[239].mxu0  ;;  %v2480_v54 = vmax.f32 %v2473_v47, 0.0  ;;  %v2961_v43 = vld [vmem:[%s10875_s2 + $0x760] sm:$0xff] }
 0x2d4   :  { %3809 = vmatprep.mubr.f32.mxu1 %v2921_v42  ;;  %v2460_v55 = vsel %vm1634_vm7, %v2457_v48, %v2459_v49  ;;  %v2462_v56 = vsel %vm1634_vm7, %v2459_v49, %v2461_v46  ;;  %v3244_v57 = vld [vmem:[#allocation3 + $0x188] sm:$0xff]  ;;  %v2458_v59 = vsel %vm1634_vm7, %v2455_v33, %v2457_v48  ;;  %v2492_v42 = vld [vmem:[#allocation2 + $0x3a8] sm:$0xff]  ;;  %v2960_v49 = vld [vmem:[%s10875_s2 + $0x758] sm:$0xff] }
 0x2d5   :  { %v2476_v60 = vmax.f32 %v2432_v45, %v2462_v56  ;;  %v7259_v61 = vpack.c.bf16 %v3244_v57, %v3243_v51  ;;  %2487 = vst.msk [vmem:[#allocation3 + $0x199] sm:$0xff] %vm1414_vm5, %v2480_v54  ;;  %v2474_v62 = vmax.f32 %v2430_v27, %v2458_v59  ;;  %v2475_v63 = vmax.f32 %v2431_v40, %v2460_v55  ;;  %v2946_v27 = vld [vmem:[%s10875_s2 + $0x6e8] sm:$0xff] }
 0x2d6   :  { %v1290_v1 = vpop.f32.mrb[240].mxu0  ;;  %v2493_v50 = vld [vmem:[#allocation2 + $0x3b0] sm:$0xff]  ;;  %v2966_v51 = vld [vmem:[%s10875_s2 + $0x788] sm:$0xff] }
 0x2d7   :  { %3810 = vmatmul.mubr.f32.gmra.mrb[78].mxu1 %v2920_v53  ;;  %v2483_v2 = vmax.f32 %v2476_v60, 0.0  ;;  %1535 = vst.msk [vmem:[#allocation2 + $0x3c0] sm:$0xff] %vm1414_vm5, %v1290_v1  ;;  %v6928_v3 = vpop.f32.mrb[241].mxu0  ;;  %v2481_v5 = vmax.f32 %v2474_v62, 0.0  ;;  %v2482_v7 = vmax.f32 %v2475_v63, 0.0 }
 0x2d8   :  { %7260 = vmatpush1.bf16.msra.mxu1 %v7259_v61  ;;  %3814 = vmatprep.mubr.f32.mxu1 %v2926_v58  ;;  %v3245_v10 = vld [vmem:[#allocation3 + $0x190] sm:$0xff]  ;;  %v2965_v58 = vld [vmem:[%s10875_s2 + $0x780] sm:$0xff]  ;;  %v2971_v61 = vld [vmem:[%s10875_s2 + $0x7b0] sm:$0xff] }
 0x2d9   :  { %7261 = vmatprep.subr.bf16.mxu1 %v7525_v0  ;;  %2490 = vst.msk [vmem:[#allocation3 + $0x1b1] sm:$0x7f] %vm1677_vm8, %v2483_v2 }
 0x2da   :  { %2488 = vst.msk [vmem:[#allocation3 + $0x1a1] sm:$0xff] %vm1414_vm5, %v2481_v5  ;;  %2489 = vst.msk [vmem:[#allocation3 + $0x1a9] sm:$0xff] %vm1414_vm5, %v2482_v7  ;;  %v1295_v9 = vpop.f32.mrb[242].mxu0  ;;  %v2494_v59 = vld [vmem:[#allocation2 + $0x3b8] sm:$0xff]  ;;  %v2970_v5 = vld [vmem:[%s10875_s2 + $0x7a8] sm:$0xff] }
 0x2db   :  { %3815 = vmatmul.mubr.f32.gmra.mrb[80].mxu1 %v2925_v4  ;;  %1536 = vst.msk [vmem:[#allocation2 + $0x3c8] sm:$0xff] %vm1414_vm5, %v1295_v9  ;;  %v6931_v11 = vpop.f32.mrb[243].mxu0 }
 0x2dc   :  { %3819 = vmatprep.mubr.f32.mxu1 %v2931_v8  ;;  %v3246_v13 = vld [vmem:[#allocation3 + $0x198] sm:$0xff] }
 0x2dd   :  { %v7262_v15 = vpack.c.bf16 %v3246_v13, %v3245_v10  ;;  %v2976_v10 = vld [vmem:[%s10875_s2 + $0x7d8] sm:$0xff] }
 0x2de   :  { %v1300_v17 = vpop.f32.mrb[244].mxu0  ;;  %v2495_v7 = vld [vmem:[#allocation2 + $0x3c0] sm:$0xff] }
 0x2df   :  { %3820 = vmatmul.mubr.f32.gmra.mrb[82].mxu1 %v2930_v12  ;;  %1537 = vst.msk [vmem:[#allocation2 + $0x3d0] sm:$0xff] %vm1414_vm5, %v1300_v17  ;;  %v6934_v18 = vpop.f32.mrb[245].mxu0 }
 0x2e0   :  { %7263 = vmatpush1.bf16.msra.mxu1 %v7262_v15  ;;  %3824 = vmatprep.mubr.f32.mxu1 %v2936_v14  ;;  %v2975_v18 = vld [vmem:[%s10875_s2 + $0x7d0] sm:$0xff] }
 0x2e1   :  { %7264 = vmatprep.subr.bf16.mxu1 %v7525_v0  ;;  %v3247_v20 = vld [vmem:[#allocation3 + $0x1a0] sm:$0xff]  ;;  %v3248_v21 = vld [vmem:[#allocation3 + $0x1a8] sm:$0xff] }
 0x2e2   :  { %v7265_v23 = vpack.c.bf16 %v3248_v21, %v3247_v20  ;;  %v1305_v24 = vpop.f32.mrb[246].mxu0  ;;  %v2981_v21 = vld [vmem:[%s10875_s2 + $0x800] sm:$0xff] }
 0x2e3   :  { %3825 = vmatmul.mubr.f32.gmra.mrb[84].mxu1 %v2935_v19  ;;  %1538 = vst.msk [vmem:[#allocation2 + $0x3d8] sm:$0xff] %vm1414_vm5, %v1305_v24  ;;  %v6937_v25 = vpop.f32.mrb[247].mxu0  ;;  %v2496_v19 = vld [vmem:[#allocation2 + $0x3c8] sm:$0xff] }
 0x2e4   :  { %7266 = vmatpush1.bf16.msra.mxu1 %v7265_v23  ;;  %3829 = vmatprep.mubr.f32.mxu1 %v2941_v22 }
 0x2e5   :  { %7267 = vmatprep.subr.bf16.mxu1 %v7525_v0 }
 0x2e6   :  { %v1310_v28 = vpop.f32.mrb[248].mxu0 }
 0x2e7   :  { %3830 = vmatmul.mubr.f32.gmra.mrb[86].mxu1 %v2940_v26  ;;  %1539 = vst.msk [vmem:[#allocation2 + $0x3e0] sm:$0xff] %vm1414_vm5, %v1310_v28  ;;  %v6940_v29 = vpop.f32.mrb[249].mxu0 }
 0x2e8   :  { %3834 = vmatprep.mubr.f32.mxu1 %v2946_v27 }
 0x2ea   :  { %v1315_v32 = vpop.f32.mrb[250].mxu0 }
 0x2eb   :  { %3835 = vmatmul.mubr.f32.gmra.mrb[88].mxu1 %v2945_v30  ;;  %1540 = vst.msk [vmem:[#allocation2 + $0x3e8] sm:$0xff] %vm1414_vm5, %v1315_v32  ;;  %v6943_v33 = vpop.f32.mrb[251].mxu0 }
 0x2ec   :  { %3839 = vmatprep.mubr.f32.mxu1 %v2951_v31  ;;  %v2980_v31 = vld [vmem:[%s10875_s2 + $0x7f8] sm:$0xff]  ;;  %v2497_v33 = vld [vmem:[#allocation2 + $0x3d0] sm:$0xff] }
 0x2ee   :  { %v2499_v37 = vld [vmem:[#allocation2 + $0x3da] sm:$0xff]  ;;  %v1320_v38 = vpop.f32.mrb[252].mxu0 }
 0x2ef   :  { %3840 = vmatmul.mubr.f32.gmra.mrb[90].mxu1 %v2950_v34  ;;  %v2507_v39 = vmax.f32 %v2491_v35, %v2499_v37  ;;  %1541 = vst.msk [vmem:[#allocation2 + $0x3f0] sm:$0xff] %vm1414_vm5, %v1320_v38  ;;  %v6946_v40 = vpop.f32.mrb[253].mxu0  ;;  %v2498_v34 = vld [vmem:[#allocation2 + $0x3d8] sm:$0x3] }
 0x2f0   :  { %3844 = vmatprep.mubr.f32.mxu1 %v2956_v36  ;;  %v2986_v36 = vld [vmem:[%s10875_s2 + $0x828] sm:$0xff] }
 0x2f1   :  { %v2522_v46 = vrot.slane %v2507_v39, 1 }
 0x2f2   :  { %v2500_v44 = vld [vmem:[#allocation2 + $0x3e2] sm:$0xff]  ;;  %v1325_v45 = vpop.f32.mrb[254].mxu0 }
 0x2f3   :  { %3845 = vmatmul.mubr.f32.gmra.mrb[92].mxu1 %v2955_v41  ;;  %v2508_v47 = vmax.f32 %v2492_v42, %v2500_v44  ;;  %1542 = vst.msk [vmem:[#allocation2 + $0x3f8] sm:$0xff] %vm1414_vm5, %v1325_v45  ;;  %v6949_v48 = vpop.f32.mrb[255].mxu0 }
 0x2f4   :  { %3849 = vmatprep.mubr.f32.mxu1 %v2961_v43  ;;  %v2985_v48 = vld [vmem:[%s10875_s2 + $0x820] sm:$0xff] }
 0x2f5   :  { %v2523_v52 = vrot.slane %v2508_v47, 1 }
 0x2f6   :  { %v2501_v53 = vld [vmem:[#allocation2 + $0x3ea] sm:$0xff]  ;;  %v1330_v54 = vpop.f32.mrb[0].mxu0 }
 0x2f7   :  { %3850 = vmatmul.mubr.f32.gmra.mrb[94].mxu1 %v2960_v49  ;;  %v2524_v55 = vsel %vm1591_vm6, %v2522_v46, %v2523_v52  ;;  %v2509_v56 = vmax.f32 %v2493_v50, %v2501_v53  ;;  %1543 = vst.msk [vmem:[#allocation2 + $0x400] sm:$0xff] %vm1414_vm5, %v1330_v54  ;;  %v6952_v57 = vpop.f32.mrb[1].mxu0 }
 0x2f8   :  { %3854 = vmatprep.mubr.f32.mxu1 %v2966_v51  ;;  %v2542_v60 = vmax.f32 %v2507_v39, %v2524_v55  ;;  %v2991_v51 = vld [vmem:[%s10875_s2 + $0x850] sm:$0xff] }
 0x2f9   :  { %v2525_v62 = vrot.slane %v2509_v56, 1 }
 0x2fa   :  { %v2502_v63 = vld [vmem:[#allocation2 + $0x3f2] sm:$0xff]  ;;  %v1335_v1 = vpop.f32.mrb[2].mxu0  ;;  %v2564_v8 = vrot.slane %v2542_v60, 2 }
 0x2fb   :  { %3855 = vmatmul.mubr.f32.gmra.mrb[96].mxu1 %v2965_v58  ;;  %v2526_v2 = vsel %vm1591_vm6, %v2523_v52, %v2525_v62  ;;  %v2510_v3 = vmax.f32 %v2494_v59, %v2502_v63  ;;  %1544 = vst.msk [vmem:[#allocation2 + $0x408] sm:$0xff] %vm1414_vm5, %v1335_v1  ;;  %v6955_v4 = vpop.f32.mrb[3].mxu0  ;;  %v3249_v58 = vld [vmem:[#allocation3 + $0x1b0] sm:$0xff]  ;;  %v2990_v63 = vld [vmem:[%s10875_s2 + $0x848] sm:$0xff] }
 0x2fc   :  { %3859 = vmatprep.mubr.f32.mxu1 %v2971_v61  ;;  %v2543_v9 = vmax.f32 %v2508_v47, %v2526_v2  ;;  %v2996_v4 = vld [vmem:[%s10875_s2 + $0x878] sm:$0xff] }
 0x2fd   :  { %v2527_v11 = vrot.slane %v2510_v3, 1 }
 0x2fe   :  { %v2565_v12 = vrot.slane %v2543_v9, 2  ;;  %v2503_v13 = vld [vmem:[#allocation2 + $0x3fa] sm:$0xff]  ;;  %v1340_v14 = vpop.f32.mrb[4].mxu0 }
 0x2ff   :  { %3860 = vmatmul.mubr.f32.gmra.mrb[98].mxu1 %v2970_v5  ;;  %v2528_v15 = vsel %vm1591_vm6, %v2525_v62, %v2527_v11  ;;  %v2511_v16 = vmax.f32 %v2495_v7, %v2503_v13  ;;  %1545 = vst.msk [vmem:[#allocation2 + $0x410] sm:$0xff] %vm1414_vm5, %v1340_v14  ;;  %v6958_v17 = vpop.f32.mrb[5].mxu0 }
 0x300   :  { %3864 = vmatprep.mubr.f32.mxu1 %v2976_v10  ;;  %v2544_v20 = vmax.f32 %v2509_v56, %v2528_v15  ;;  %v2566_v22 = vsel %vm1634_vm7, %v2564_v8, %v2565_v12 }
 0x301   :  { %v2529_v23 = vrot.slane %v2511_v16, 1  ;;  %v2586_v24 = vmax.f32 %v2542_v60, %v2566_v22 }
 0x302   :  { %v2567_v25 = vrot.slane %v2544_v20, 2  ;;  %v2504_v26 = vld [vmem:[#allocation2 + $0x402] sm:$0xff]  ;;  %v1345_v27 = vpop.f32.mrb[6].mxu0 }
 0x303   :  { %3865 = vmatmul.mubr.f32.gmra.mrb[100].mxu1 %v2975_v18  ;;  %v2530_v28 = vsel %vm1591_vm6, %v2527_v11, %v2529_v23  ;;  %v2512_v29 = vmax.f32 %v2496_v19, %v2504_v26  ;;  %1546 = vst.msk [vmem:[#allocation2 + $0x418] sm:$0xff] %vm1414_vm5, %v1345_v27  ;;  %v6961_v30 = vpop.f32.mrb[7].mxu0  ;;  %v2593_v32 = vmax.f32 %v2586_v24, 0.0 }
 0x304   :  { %3869 = vmatprep.mubr.f32.mxu1 %v2981_v21  ;;  %v2545_v35 = vmax.f32 %v2510_v3, %v2530_v28  ;;  %v2568_v37 = vsel %vm1634_vm7, %v2565_v12, %v2567_v25  ;;  %v3000_v28 = vld [vmem:[%s10875_s2 + $0x898] sm:$0xff] }
 0x305   :  { %v2531_v38 = vrot.slane %v2512_v29, 1  ;;  %2600 = vst.msk [vmem:[#allocation3 + $0x1b8] sm:$0xff] %vm1414_vm5, %v2593_v32  ;;  %v2587_v39 = vmax.f32 %v2543_v9, %v2568_v37  ;;  %v3006_v32 = vld [vmem:[%s10875_s2 + $0x8c8] sm:$0xff]  ;;  %v3005_v37 = vld [vmem:[%s10875_s2 + $0x8c0] sm:$0xff] }
 0x306   :  { %v2569_v40 = vrot.slane %v2545_v35, 2  ;;  %v2505_v41 = vld [vmem:[#allocation2 + $0x40a] sm:$0xff]  ;;  %v2506_v42 = vld [vmem:[#allocation2 + $0x412] sm:$0x3]  ;;  %v1350_v43 = vpop.f32.mrb[8].mxu0 }
 0x307   :  { %3870 = vmatmul.mubr.f32.gmra.mrb[102].mxu1 %v2980_v31  ;;  %v2532_v44 = vsel %vm1591_vm6, %v2529_v23, %v2531_v38  ;;  %v2513_v45 = vmax.f32 %v2497_v33, %v2505_v41  ;;  %v2514_v46 = vmax.f32 %v2498_v34, %v2506_v42  ;;  %1547 = vst.msk [vmem:[#allocation2 + $0x420] sm:$0xff] %vm1414_vm5, %v1350_v43  ;;  %v6964_v47 = vpop.f32.mrb[9].mxu0  ;;  %v2594_v49 = vmax.f32 %v2587_v39, 0.0  ;;  %v3010_v42 = vld [vmem:[%s10875_s2 + $0x8e8] sm:$0xff] }
 0x308   :  { %3874 = vmatprep.mubr.f32.mxu1 %v2986_v36  ;;  %v2546_v50 = vmax.f32 %v2511_v16, %v2532_v44  ;;  %v2570_v52 = vsel %vm1634_vm7, %v2567_v25, %v2569_v40  ;;  %v2995_v16 = vld [vmem:[%s10875_s2 + $0x870] sm:$0xff]  ;;  %v3016_v44 = vld [vmem:[%s10875_s2 + $0x918] sm:$0xff] }
 0x309   :  { %v2533_v53 = vrot.slane %v2513_v45, 1  ;;  %v2550_v54 = vrot.slane %v2514_v46, 1  ;;  %v2588_v55 = vmax.f32 %v2544_v20, %v2570_v52  ;;  %2601 = vst.msk [vmem:[#allocation3 + $0x1c0] sm:$0xff] %vm1414_vm5, %v2594_v49  ;;  %v3001_v20 = vld [vmem:[%s10875_s2 + $0x8a0] sm:$0xff]  ;;  %v3020_v52 = vld [vmem:[%s10875_s2 + $0x938] sm:$0xff] }
 0x30a   :  { %v2571_v56 = vrot.slane %v2546_v50, 2  ;;  %v1355_v57 = vpop.f32.mrb[10].mxu0  ;;  %v3021_v49 = vld [vmem:[%s10875_s2 + $0x940] sm:$0xff] }
 0x30b   :  { %3875 = vmatmul.mubr.f32.gmra.mrb[104].mxu1 %v2985_v48  ;;  %v2534_v59 = vsel %vm1591_vm6, %v2531_v38, %v2533_v53  ;;  %v2551_v60 = vsel %vm1591_vm6, %v2533_v53, %v2550_v54  ;;  %v2555_v61 = vmax.f32 %v2514_v46, %v2550_v54  ;;  %1548 = vst.msk [vmem:[#allocation2 + $0x428] sm:$0xff] %vm1414_vm5, %v1355_v57  ;;  %v6967_v62 = vpop.f32.mrb[11].mxu0  ;;  %v2595_v5 = vmax.f32 %v2588_v55, 0.0  ;;  %v3011_v38 = vld [vmem:[%s10875_s2 + $0x8f0] sm:$0xff]  ;;  %v3026_v54 = vld [vmem:[%s10875_s2 + $0x968] sm:$0xff] }
 0x30c   :  { %3879 = vmatprep.mubr.f32.mxu1 %v2991_v51  ;;  %v2547_v1 = vmax.f32 %v2512_v29, %v2534_v59  ;;  %v2554_v2 = vmax.f32 %v2513_v45, %v2551_v60  ;;  %v3250_v3 = vld [vmem:[#allocation3 + $0x1b8] sm:$0xff]  ;;  %v2572_v7 = vsel %vm1634_vm7, %v2569_v40, %v2571_v56  ;;  %v2548_v8 = vmax.f32 %v2513_v45, %v2533_v53  ;;  %v3015_v48 = vld [vmem:[%s10875_s2 + $0x910] sm:$0xff] }
 0x30d   :  { %v2577_v9 = vrot.slane %v2555_v61, 2  ;;  %v7268_v10 = vpack.c.bf16 %v3250_v3, %v3249_v58  ;;  %v2589_v11 = vmax.f32 %v2545_v35, %v2572_v7  ;;  %2602 = vst.msk [vmem:[#allocation3 + $0x1c8] sm:$0xff] %vm1414_vm5, %v2595_v5  ;;  %v2607_v53 = vld [vmem:[#allocation2 + $0x414] sm:$0xff]  ;;  %v3025_v59 = vld [vmem:[%s10875_s2 + $0x960] sm:$0xff] }
 0x30e   :  { %v2573_v12 = vrot.slane %v2547_v1, 2  ;;  %v2575_v13 = vrot.slane %v2554_v2, 2  ;;  %v1360_v14 = vpop.f32.mrb[12].mxu0  ;;  %v2608_v60 = vld [vmem:[#allocation2 + $0x41c] sm:$0xff]  ;;  %v3031_v61 = vld [vmem:[%s10875_s2 + $0x990] sm:$0xff] }
 0x30f   :  { %3880 = vmatmul.mubr.f32.gmra.mrb[106].mxu1 %v2990_v63  ;;  %1549 = vst.msk [vmem:[#allocation2 + $0x430] sm:$0xff] %vm1414_vm5, %v1360_v14  ;;  %v6970_v15 = vpop.f32.mrb[13].mxu0  ;;  %v2596_v17 = vmax.f32 %v2589_v11, 0.0  ;;  %v3036_v7 = vld [vmem:[%s10875_s2 + $0x9b8] sm:$0xff]  ;;  %v2729_v11 = vld [vmem:[%s10875_s2 + $0x20] sm:$0xff] }
 0x310   :  { %7269 = vmatpush1.bf16.msra.mxu1 %v7268_v10  ;;  %3884 = vmatprep.mubr.f32.mxu1 %v2996_v4  ;;  %v2576_v18 = vsel %vm1634_vm7, %v2573_v12, %v2575_v13  ;;  %v2578_v19 = vsel %vm1634_vm7, %v2575_v13, %v2577_v9  ;;  %v2574_v21 = vsel %vm1634_vm7, %v2571_v56, %v2573_v12  ;;  %v3251_v29 = vld [vmem:[#allocation3 + $0x1c0] sm:$0xff]  ;;  %v3035_v15 = vld [vmem:[%s10875_s2 + $0x9b0] sm:$0xff] }
 0x311   :  { %7270 = vmatprep.subr.bf16.mxu1 %v7525_v0  ;;  %v2592_v22 = vmax.f32 %v2548_v8, %v2578_v19  ;;  %v2590_v23 = vmax.f32 %v2546_v50, %v2574_v21  ;;  %2603 = vst.msk [vmem:[#allocation3 + $0x1d0] sm:$0xff] %vm1414_vm5, %v2596_v17  ;;  %v2591_v24 = vmax.f32 %v2547_v1, %v2576_v18  ;;  %v3030_v4 = vld [vmem:[%s10875_s2 + $0x988] sm:$0xff]  ;;  %v3041_v18 = vld [vmem:[%s10875_s2 + $0x9e0] sm:$0xff] }
 0x312   :  { %v1365_v25 = vpop.f32.mrb[14].mxu0  ;;  %v2609_v5 = vld [vmem:[#allocation2 + $0x424] sm:$0xff]  ;;  %7011 = vmatprep.mubr.msk.f32.mxu0 %vm3264_vm10, %v2729_v11 }
 0x313   :  { %3885 = vmatmul.mubr.f32.gmra.mrb[108].mxu1 %v2995_v16  ;;  %v2599_v26 = vmax.f32 %v2592_v22, 0.0  ;;  %1550 = vst.msk [vmem:[#allocation2 + $0x438] sm:$0xff] %vm1414_vm5, %v1365_v25  ;;  %v6973_v27 = vpop.f32.mrb[15].mxu0  ;;  %v2597_v30 = vmax.f32 %v2590_v23, 0.0  ;;  %v2598_v31 = vmax.f32 %v2591_v24, 0.0  ;;  %v3040_v25 = vld [vmem:[%s10875_s2 + $0x9d8] sm:$0xff] }
 0x314   :  { %3889 = vmatprep.mubr.f32.mxu1 %v3001_v20  ;;  %v3252_v33 = vld [vmem:[#allocation3 + $0x1c8] sm:$0xff] }
 0x315   :  { %2606 = vst.msk [vmem:[#allocation3 + $0x1e8] sm:$0x7f] %vm1677_vm8, %v2599_v26  ;;  %v7271_v35 = vpack.c.bf16 %v3252_v33, %v3251_v29  ;;  %v3046_v29 = vld [vmem:[%s10875_s2 + $0xa08] sm:$0xff] }
 0x316   :  { %2604 = vst.msk [vmem:[#allocation3 + $0x1d8] sm:$0xff] %vm1414_vm5, %v2597_v30  ;;  %2605 = vst.msk [vmem:[#allocation3 + $0x1e0] sm:$0xff] %vm1414_vm5, %v2598_v31  ;;  %v1370_v34 = vpop.f32.mrb[16].mxu0  ;;  %v2610_v16 = vld [vmem:[#allocation2 + $0x42c] sm:$0xff] }
 0x317   :  { %3890 = vmatmul.mubr.f32.gmra.mrb[110].mxu1 %v3000_v28  ;;  %1551 = vst.msk [vmem:[#allocation2 + $0x440] sm:$0xff] %vm1414_vm5, %v1370_v34  ;;  %v6976_v36 = vpop.f32.mrb[17].mxu0 }
 0x318   :  { %3894 = vmatprep.mubr.f32.mxu1 %v3006_v32  ;;  %7272 = vmatpush1.bf16.msra.mxu1 %v7271_v35  ;;  %v3253_v40 = vld [vmem:[#allocation3 + $0x1d0] sm:$0xff] }
 0x319   :  { %7273 = vmatprep.subr.bf16.mxu1 %v7525_v0 }
 0x31a   :  { %v1375_v39 = vpop.f32.mrb[18].mxu0  ;;  %v2611_v26 = vld [vmem:[#allocation2 + $0x434] sm:$0xff] }
 0x31b   :  { %3895 = vmatmul.mubr.f32.gmra.mrb[112].mxu1 %v3005_v37  ;;  %1552 = vst.msk [vmem:[#allocation2 + $0x448] sm:$0xff] %vm1414_vm5, %v1375_v39  ;;  %v6979_v41 = vpop.f32.mrb[19].mxu0  ;;  %v3045_v37 = vld [vmem:[%s10875_s2 + $0xa00] sm:$0xff] }
 0x31c   :  { %3899 = vmatprep.mubr.f32.mxu1 %v3011_v38 }
 0x31d   :  { %v3254_v43 = vld [vmem:[#allocation3 + $0x1d8] sm:$0xff] }
 0x31e   :  { %v7274_v45 = vpack.c.bf16 %v3254_v43, %v3253_v40  ;;  %v1380_v46 = vpop.f32.mrb[20].mxu0  ;;  %v2612_v38 = vld [vmem:[#allocation2 + $0x43c] sm:$0xff]  ;;  %v3051_v40 = vld [vmem:[%s10875_s2 + $0xa30] sm:$0xff] }
 0x31f   :  { %3900 = vmatmul.mubr.f32.gmra.mrb[114].mxu1 %v3010_v42  ;;  %1553 = vst.msk [vmem:[#allocation2 + $0x450] sm:$0xff] %vm1414_vm5, %v1380_v46  ;;  %v6982_v47 = vpop.f32.mrb[21].mxu0 }
 0x320   :  { %7275 = vmatpush1.bf16.msra.mxu1 %v7274_v45  ;;  %3904 = vmatprep.mubr.f32.mxu1 %v3016_v44 }
 0x321   :  { %7276 = vmatprep.subr.bf16.mxu1 %v7525_v0 }
 0x322   :  { %v1385_v50 = vpop.f32.mrb[22].mxu0 }
 0x323   :  { %3905 = vmatmul.mubr.f32.gmra.mrb[116].mxu1 %v3015_v48  ;;  %1554 = vst.msk [vmem:[#allocation2 + $0x458] sm:$0xff] %vm1414_vm5, %v1385_v50  ;;  %v6985_v51 = vpop.f32.mrb[23].mxu0  ;;  %v3050_v48 = vld [vmem:[%s10875_s2 + $0xa28] sm:$0xff] }
 0x324   :  { %3909 = vmatprep.mubr.f32.mxu1 %v3021_v49  ;;  %v2613_v50 = vld [vmem:[#allocation2 + $0x444] sm:$0xff]  ;;  %v2614_v51 = vld [vmem:[#allocation2 + $0x44c] sm:$0x3] }
 0x326   :  { %v2615_v55 = vld [vmem:[#allocation2 + $0x44e] sm:$0xff]  ;;  %v1390_v56 = vpop.f32.mrb[24].mxu0 }
 0x327   :  { %3910 = vmatmul.mubr.f32.gmra.mrb[118].mxu1 %v3020_v52  ;;  %v2623_v57 = vmax.f32 %v2607_v53, %v2615_v55  ;;  %1555 = vst.msk [vmem:[#allocation2 + $0x460] sm:$0xff] %vm1414_vm5, %v1390_v56  ;;  %v6988_v58 = vpop.f32.mrb[25].mxu0  ;;  %v3056_v53 = vld [vmem:[%s10875_s2 + $0xa58] sm:$0xff] }
 0x328   :  { %3914 = vmatprep.mubr.f32.mxu1 %v3026_v54 }
 0x329   :  { %v2638_v1 = vrot.slane %v2623_v57, 1 }
 0x32a   :  { %v2616_v62 = vld [vmem:[#allocation2 + $0x456] sm:$0xff] }
 0x32b   :  { %v1395_v63 = vpop.f32.mrb[26].mxu0  ;;  %3915 = vmatmul.mubr.f32.gmra.mrb[120].mxu1 %v3025_v59  ;;  %v2624_v2 = vmax.f32 %v2608_v60, %v2616_v62 }
 0x32c   :  { %1556 = vst.msk [vmem:[#allocation2 + $0x468] sm:$0xff] %vm1414_vm5, %v1395_v63  ;;  %v6991_v3 = vpop.f32.mrb[27].mxu0  ;;  %3919 = vmatprep.mubr.f32.mxu1 %v3031_v61  ;;  %v3055_v63 = vld [vmem:[%s10875_s2 + $0xa50] sm:$0xff] }
 0x32d   :  { %v2639_v8 = vrot.slane %v2624_v2, 1  ;;  %v3061_v3 = vld [vmem:[%s10875_s2 + $0xa80] sm:$0xff] }
 0x32e   :  { %v2617_v9 = vld [vmem:[#allocation2 + $0x45e] sm:$0xff] }
 0x32f   :  { %v1400_v10 = vpop.f32.mrb[28].mxu0  ;;  %3920 = vmatmul.mubr.f32.gmra.mrb[122].mxu1 %v3030_v4  ;;  %v2640_v12 = vsel %vm1591_vm6, %v2638_v1, %v2639_v8  ;;  %v2625_v13 = vmax.f32 %v2609_v5, %v2617_v9 }
 0x330   :  { %1557 = vst.msk [vmem:[#allocation2 + $0x470] sm:$0xff] %vm1414_vm5, %v1400_v10  ;;  %v6994_v14 = vpop.f32.mrb[29].mxu0  ;;  %3924 = vmatprep.mubr.f32.mxu1 %v3036_v7  ;;  %v2658_v17 = vmax.f32 %v2623_v57, %v2640_v12  ;;  %v3255_v10 = vld [vmem:[#allocation3 + $0x1e0] sm:$0xff] }
 0x331   :  { %v2641_v19 = vrot.slane %v2625_v13, 1  ;;  %v3060_v14 = vld [vmem:[%s10875_s2 + $0xa78] sm:$0xff] }
 0x332   :  { %v2680_v27 = vrot.slane %v2658_v17, 2 }
 0x333   :  { %v2618_v20 = vld [vmem:[#allocation2 + $0x466] sm:$0xff]  ;;  %v1405_v21 = vpop.f32.mrb[30].mxu0  ;;  %3925 = vmatmul.mubr.f32.gmra.mrb[124].mxu1 %v3035_v15  ;;  %v2642_v22 = vsel %vm1591_vm6, %v2639_v8, %v2641_v19 }
 0x334   :  { %v2626_v23 = vmax.f32 %v2610_v16, %v2618_v20  ;;  %1558 = vst.msk [vmem:[#allocation2 + $0x478] sm:$0xff] %vm1414_vm5, %v1405_v21  ;;  %v6997_v24 = vpop.f32.mrb[31].mxu0  ;;  %3929 = vmatprep.mubr.f32.mxu1 %v3041_v18  ;;  %v2659_v28 = vmax.f32 %v2624_v2, %v2642_v22  ;;  %v3066_v18 = vld [vmem:[%s10875_s2 + $0xaa8] sm:$0xff] }
 0x336   :  { %v2643_v30 = vrot.slane %v2626_v23, 1  ;;  %v2681_v31 = vrot.slane %v2659_v28, 2 }
 0x337   :  { %v2619_v32 = vld [vmem:[#allocation2 + $0x46e] sm:$0xff]  ;;  %v1410_v33 = vpop.f32.mrb[32].mxu0  ;;  %3930 = vmatmul.mubr.f32.gmra.mrb[126].mxu1 %v3040_v25 }
 0x338   :  { %v2644_v34 = vsel %vm1591_vm6, %v2641_v19, %v2643_v30  ;;  %v2627_v35 = vmax.f32 %v2611_v26, %v2619_v32  ;;  %1559 = vst.msk [vmem:[#allocation2 + $0x480] sm:$0xff] %vm1414_vm5, %v1410_v33  ;;  %v7000_v36 = vpop.f32.mrb[33].mxu0  ;;  %3934 = vmatprep.mubr.f32.mxu1 %v3046_v29  ;;  %v2682_v41 = vsel %vm1634_vm7, %v2680_v27, %v2681_v31  ;;  %v3065_v27 = vld [vmem:[%s10875_s2 + $0xaa0] sm:$0xff]  ;;  %v3071_v29 = vld [vmem:[%s10875_s2 + $0xad0] sm:$0xff] }
 0x339   :  { %v2660_v39 = vmax.f32 %v2625_v13, %v2644_v34  ;;  %v2702_v43 = vmax.f32 %v2658_v17, %v2682_v41  ;;  %v3070_v36 = vld [vmem:[%s10875_s2 + $0xac8] sm:$0xff]  ;;  %v3076_v41 = vld [vmem:[%s10875_s2 + $0xaf8] sm:$0xff] }
 0x33a   :  { %v2645_v42 = vrot.slane %v2627_v35, 1 }
 0x33b   :  { %v2683_v44 = vrot.slane %v2660_v39, 2  ;;  %v2620_v45 = vld [vmem:[#allocation2 + $0x476] sm:$0xff]  ;;  %3935 = vmatmul.mubr.f32.gmra.mrb[128].mxu1 %v3045_v37  ;;  %v2709_v49 = vmax.f32 %v2702_v43, 0.0 }
 0x33c   :  { %v2646_v46 = vsel %vm1591_vm6, %v2643_v30, %v2645_v42  ;;  %v2628_v47 = vmax.f32 %v2612_v38, %v2620_v45  ;;  %3939 = vmatprep.mubr.f32.mxu1 %v3051_v40  ;;  %v3081_v45 = vld [vmem:[%s10875_s2 + $0xb20] sm:$0xff] }
 0x33d   :  { %v2661_v52 = vmax.f32 %v2626_v23, %v2646_v46  ;;  %v2684_v54 = vsel %vm1634_vm7, %v2681_v31, %v2683_v44  ;;  %2716 = vst.msk [vmem:[#allocation3 + $0x1ef] sm:$0xff] %vm1414_vm5, %v2709_v49 }
 0x33e   :  { %v2647_v55 = vrot.slane %v2628_v47, 1  ;;  %v2703_v56 = vmax.f32 %v2659_v28, %v2684_v54  ;;  %v3085_v54 = vld [vmem:[%s10875_s2 + $0xb40] sm:$0xff] }
 0x33f   :  { %v2685_v57 = vrot.slane %v2661_v52, 2  ;;  %v2621_v58 = vld [vmem:[#allocation2 + $0x47e] sm:$0xff]  ;;  %v2622_v59 = vld [vmem:[#allocation2 + $0x486] sm:$0x3]  ;;  %3940 = vmatmul.mubr.f32.gmra.mrb[130].mxu1 %v3050_v48  ;;  %v3086_v48 = vld [vmem:[%s10875_s2 + $0xb48] sm:$0xff] }
 0x340   :  { %v2648_v60 = vsel %vm1591_vm6, %v2645_v42, %v2647_v55  ;;  %v2629_v61 = vmax.f32 %v2613_v50, %v2621_v58  ;;  %v2630_v62 = vmax.f32 %v2614_v51, %v2622_v59  ;;  %3944 = vmatprep.mubr.f32.mxu1 %v3056_v53  ;;  %v2710_v1 = vmax.f32 %v2703_v56, 0.0  ;;  %v3096_v58 = vld [vmem:[%s10875_s2 + $0xb98] sm:$0xff]  ;;  %v2734_v59 = vld [vmem:[%s10875_s2 + $0x48] sm:$0xff] }
 0x341   :  { %v2662_v2 = vmax.f32 %v2627_v35, %v2648_v60  ;;  %v2686_v4 = vsel %vm1634_vm7, %v2683_v44, %v2685_v57  ;;  %v3075_v44 = vld [vmem:[%s10875_s2 + $0xaf0] sm:$0xff] }
 0x342   :  { %v2649_v5 = vrot.slane %v2629_v61, 1  ;;  %v2666_v7 = vrot.slane %v2630_v62, 1  ;;  %v2704_v8 = vmax.f32 %v2660_v39, %v2686_v4  ;;  %2717 = vst.msk [vmem:[#allocation3 + $0x1f7] sm:$0xff] %vm1414_vm5, %v2710_v1  ;;  %v3095_v60 = vld [vmem:[%s10875_s2 + $0xb90] sm:$0xff]  ;;  %v3100_v1 = vld [vmem:[%s10875_s2 + $0xbb8] sm:$0xff]  ;;  %v2754_v4 = vld [vmem:[%s10875_s2 + $0xe8] sm:$0xff] }
 0x343   :  { %v2687_v9 = vrot.slane %v2662_v2, 2  ;;  %3945 = vmatmul.mubr.f32.gmra.mrb[132].mxu1 %v3055_v63  ;;  %v2744_v63 = vld [vmem:[%s10875_s2 + $0x98] sm:$0xff] }
 0x344   :  { %v2650_v11 = vsel %vm1591_vm6, %v2647_v55, %v2649_v5  ;;  %v2667_v12 = vsel %vm1591_vm6, %v2649_v5, %v2666_v7  ;;  %v2671_v13 = vmax.f32 %v2630_v62, %v2666_v7  ;;  %3949 = vmatprep.mubr.f32.mxu1 %v3061_v3  ;;  %v3256_v17 = vld [vmem:[#allocation3 + $0x1e8] sm:$0xff]  ;;  %v2711_v19 = vmax.f32 %v2704_v8, 0.0  ;;  %v3101_v62 = vld [vmem:[%s10875_s2 + $0xbc0] sm:$0xff]  ;;  %v3106_v3 = vld [vmem:[%s10875_s2 + $0xbe8] sm:$0xff] }
 0x345   :  { %v2663_v15 = vmax.f32 %v2628_v47, %v2650_v11  ;;  %v2670_v16 = vmax.f32 %v2629_v61, %v2667_v12  ;;  %v2688_v20 = vsel %vm1634_vm7, %v2685_v57, %v2687_v9  ;;  %v2664_v21 = vmax.f32 %v2629_v61, %v2649_v5  ;;  %v3080_v47 = vld [vmem:[%s10875_s2 + $0xb18] sm:$0xff]  ;;  %v3091_v55 = vld [vmem:[%s10875_s2 + $0xb70] sm:$0xff]  ;;  %v3090_v57 = vld [vmem:[%s10875_s2 + $0xb68] sm:$0xff] }
 0x346   :  { %v2693_v22 = vrot.slane %v2671_v13, 2  ;;  %v7277_v23 = vpack.c.bf16 %v3256_v17, %v3255_v10  ;;  %v2705_v24 = vmax.f32 %v2661_v52, %v2688_v20  ;;  %2718 = vst.msk [vmem:[#allocation3 + $0x1ff] sm:$0xff] %vm1414_vm5, %v2711_v19  ;;  %v2739_v61 = vld [vmem:[%s10875_s2 + $0x70] sm:$0xff]  ;;  %v3105_v5 = vld [vmem:[%s10875_s2 + $0xbe0] sm:$0xff]  ;;  %v3110_v10 = vld [vmem:[%s10875_s2 + $0xc08] sm:$0xff] }
 0x347   :  { %v2691_v25 = vrot.slane %v2670_v16, 2  ;;  %3950 = vmatmul.mubr.f32.gmra.mrb[134].mxu1 %v3060_v14  ;;  %v2689_v26 = vrot.slane %v2663_v15, 2  ;;  %v2759_v7 = vld [vmem:[%s10875_s2 + $0x110] sm:$0xff]  ;;  %v2769_v11 = vld [vmem:[%s10875_s2 + $0x160] sm:$0xff]  ;;  %v3116_v12 = vld [vmem:[%s10875_s2 + $0xc38] sm:$0xff] }
 0x348   :  { %7278 = vmatpush1.bf16.msra.mxu1 %v7277_v23  ;;  %3954 = vmatprep.mubr.f32.mxu1 %v3066_v18  ;;  %v2712_v28 = vmax.f32 %v2705_v24, 0.0  ;;  %v3111_v8 = vld [vmem:[%s10875_s2 + $0xc10] sm:$0xff]  ;;  %v2774_v13 = vld [vmem:[%s10875_s2 + $0x188] sm:$0xff]  ;;  %v3121_v16 = vld [vmem:[%s10875_s2 + $0xc60] sm:$0xff] }
 0x349   :  { %7279 = vmatprep.subr.bf16.mxu1 %v7525_v0  ;;  %v2690_v30 = vsel %vm1634_vm7, %v2687_v9, %v2689_v26  ;;  %v2692_v31 = vsel %vm1634_vm7, %v2689_v26, %v2691_v25  ;;  %v2694_v32 = vsel %vm1634_vm7, %v2691_v25, %v2693_v22  ;;  %v3257_v37 = vld [vmem:[#allocation3 + $0x1f0] sm:$0xff]  ;;  %v3115_v14 = vld [vmem:[%s10875_s2 + $0xc30] sm:$0xff]  ;;  %v2789_v19 = vld [vmem:[%s10875_s2 + $0x200] sm:$0xff] }
 0x34a   :  { %v2706_v33 = vmax.f32 %v2662_v2, %v2690_v30  ;;  %2719 = vst.msk [vmem:[#allocation3 + $0x207] sm:$0xff] %vm1414_vm5, %v2712_v28  ;;  %v2707_v34 = vmax.f32 %v2663_v15, %v2692_v31  ;;  %v2708_v35 = vmax.f32 %v2664_v21, %v2694_v32  ;;  %v2749_v2 = vld [vmem:[%s10875_s2 + $0xc0] sm:$0xff]  ;;  %v2764_v9 = vld [vmem:[%s10875_s2 + $0x138] sm:$0xff]  ;;  %v2779_v15 = vld [vmem:[%s10875_s2 + $0x1b0] sm:$0xff] }
 0x34b   :  { %3955 = vmatmul.mubr.f32.gmra.mrb[136].mxu1 %v3065_v27  ;;  %v2784_v17 = vld [vmem:[%s10875_s2 + $0x1d8] sm:$0xff]  ;;  %v3126_v20 = vld [vmem:[%s10875_s2 + $0xc88] sm:$0xff]  ;;  %v3125_v22 = vld [vmem:[%s10875_s2 + $0xc80] sm:$0xff] }
 0x34c   :  { %3959 = vmatprep.mubr.f32.mxu1 %v3071_v29  ;;  %v2713_v38 = vmax.f32 %v2706_v33, 0.0  ;;  %v2714_v39 = vmax.f32 %v2707_v34, 0.0  ;;  %v2715_v40 = vmax.f32 %v2708_v35, 0.0  ;;  %v3120_v18 = vld [vmem:[%s10875_s2 + $0xc58] sm:$0xff]  ;;  %v2794_v21 = vld [vmem:[%s10875_s2 + $0x228] sm:$0xff]  ;;  %v2799_v23 = vld [vmem:[%s10875_s2 + $0x250] sm:$0xff] }
 0x34d   :  { %v3258_v42 = vld [vmem:[#allocation3 + $0x1f8] sm:$0xff]  ;;  %v3131_v24 = vld [vmem:[%s10875_s2 + $0xcb0] sm:$0xff]  ;;  %v2804_v25 = vld [vmem:[%s10875_s2 + $0x278] sm:$0xff] }
 0x34e   :  { %2720 = vst.msk [vmem:[#allocation3 + $0x20f] sm:$0xff] %vm1414_vm5, %v2713_v38  ;;  %2721 = vst.msk [vmem:[#allocation3 + $0x217] sm:$0xff] %vm1414_vm5, %v2714_v39  ;;  %v7280_v43 = vpack.c.bf16 %v3258_v42, %v3257_v37  ;;  %v3130_v26 = vld [vmem:[%s10875_s2 + $0xca8] sm:$0xff]  ;;  %v2809_v27 = vld [vmem:[%s10875_s2 + $0x2a0] sm:$0xff] }
 0x34f   :  { %2722 = vst.msk [vmem:[#allocation3 + $0x21f] sm:$0x7f] %vm1677_vm8, %v2715_v40  ;;  %3960 = vmatmul.mubr.f32.gmra.mrb[138].mxu1 %v3070_v36  ;;  %v3136_v28 = vld [vmem:[%s10875_s2 + $0xcd8] sm:$0xff]  ;;  %v2814_v29 = vld [vmem:[%s10875_s2 + $0x2c8] sm:$0xff]  ;;  %v3135_v30 = vld [vmem:[%s10875_s2 + $0xcd0] sm:$0xff] }
 0x350   :  { %3964 = vmatprep.mubr.f32.mxu1 %v3076_v41  ;;  %7281 = vmatpush1.bf16.msra.mxu1 %v7280_v43  ;;  %v2819_v31 = vld [vmem:[%s10875_s2 + $0x2f0] sm:$0xff]  ;;  %v3141_v32 = vld [vmem:[%s10875_s2 + $0xd00] sm:$0xff]  ;;  %v2824_v33 = vld [vmem:[%s10875_s2 + $0x318] sm:$0xff] }
 0x351   :  { %v3259_v46 = vld [vmem:[#allocation3 + $0x200] sm:$0xff]  ;;  %v3140_v34 = vld [vmem:[%s10875_s2 + $0xcf8] sm:$0xff]  ;;  %v2829_v35 = vld [vmem:[%s10875_s2 + $0x340] sm:$0xff] }
 0x352   :  { %v3146_v36 = vld [vmem:[%s10875_s2 + $0xd28] sm:$0xff]  ;;  %v3145_v38 = vld [vmem:[%s10875_s2 + $0xd20] sm:$0xff]  ;;  %v2839_v39 = vld [vmem:[%s10875_s2 + $0x390] sm:$0xff] }
 0x353   :  { %3965 = vmatmul.mubr.f32.gmra.mrb[140].mxu1 %v3075_v44  ;;  %v2834_v37 = vld [vmem:[%s10875_s2 + $0x368] sm:$0xff]  ;;  %v3151_v40 = vld [vmem:[%s10875_s2 + $0xd50] sm:$0xff]  ;;  %v2844_v41 = vld [vmem:[%s10875_s2 + $0x3b8] sm:$0xff] }
 0x354   :  { %3969 = vmatprep.mubr.f32.mxu1 %v3081_v45  ;;  %v3150_v42 = vld [vmem:[%s10875_s2 + $0xd48] sm:$0xff]  ;;  %v3156_v43 = vld [vmem:[%s10875_s2 + $0xd78] sm:$0xff]  ;;  %v2849_v44 = vld [vmem:[%s10875_s2 + $0x3e0] sm:$0xff] }
 0x355   :  { %v3260_v49 = vld [vmem:[#allocation3 + $0x208] sm:$0xff]  ;;  %v3261_v50 = vld [vmem:[#allocation3 + $0x210] sm:$0xff] }
 0x356   :  { %v3262_v51 = vld [vmem:[#allocation3 + $0x218] sm:$0xff]  ;;  %v7282_v52 = vpack.c.bf16 %v3260_v49, %v3259_v46  ;;  %v3263_v56 = vld [vmem:[#allocation3 + $0x220] sm:$0x7f]  ;;  %v3155_v45 = vld [vmem:[%s10875_s2 + $0xd70] sm:$0xff] }
 0x357   :  { %v7286_v53 = vpack.c.bf16 %v3262_v51, %v3261_v50  ;;  %3970 = vmatmul.mubr.f32.gmra.mrb[142].mxu1 %v3080_v47  ;;  %v2854_v46 = vld [vmem:[%s10875_s2 + $0x408] sm:$0xff]  ;;  %v3161_v47 = vld [vmem:[%s10875_s2 + $0xda0] sm:$0xff]  ;;  %v2859_v50 = vld [vmem:[%s10875_s2 + $0x430] sm:$0xff] }
 0x358   :  { %7283 = vmatprep.subr.bf16.mxu0 %v7282_v52  ;;  %3974 = vmatprep.mubr.f32.mxu1 %v3086_v48  ;;  %v3160_v48 = vld [vmem:[%s10875_s2 + $0xd98] sm:$0xff]  ;;  %v3166_v49 = vld [vmem:[%s10875_s2 + $0xdc8] sm:$0xff]  ;;  %v3165_v51 = vld [vmem:[%s10875_s2 + $0xdc0] sm:$0xff] }
 0x359   :  { %7285 = vmatpush3.bf16.msra.mxu0 %v7282_v52  ;;  %v2864_v52 = vld [vmem:[%s10875_s2 + $0x458] sm:$0xff] }
 0x35a   :  { %7287 = vmatprep.subr.bf16.mxu0 %v7286_v53 }
 0x35b   :  { %3975 = vmatmul.mubr.f32.gmra.mrb[144].mxu1 %v3085_v54  ;;  %v3170_v54 = vld [vmem:[%s10875_s2 + $0xde8] sm:$0xff] }
 0x35c   :  { %3979 = vmatprep.mubr.f32.mxu1 %v3091_v55  ;;  %v3176_v55 = vld [vmem:[%s10875_s2 + $0xe18] sm:$0xff] }
 0x35d   :  { %7289 = vmatpush3.bf16.msra.mxu0 %v7286_v53  ;;  %v3171_v53 = vld [vmem:[%s10875_s2 + $0xdf0] sm:$0xff] }
 0x35e   :  { %7009 = vmatprep.subr.msk.mxu0 %vm1591_vm6, %v3263_v56 }
 0x35f   :  { %3980 = vmatmul.mubr.f32.gmra.mrb[146].mxu1 %v3090_v57  ;;  %v3175_v57 = vld [vmem:[%s10875_s2 + $0xe10] sm:$0xff] }
 0x360   :  { %3984 = vmatprep.mubr.f32.mxu1 %v3096_v58  ;;  %v2874_v58 = vld [vmem:[%s10875_s2 + $0x4a8] sm:$0xff] }
 0x361   :  { %7010 = vmatpush3.msk.msra.mxu0 %vm1591_vm6, %v3263_v56  ;;  %v2869_v56 = vld [vmem:[%s10875_s2 + $0x480] sm:$0xff] }
 0x362   :  { %7012 = vmatmul.mubr.msk.f32.vlgmr.msra.gmra.mrb[34].mxu0 %vm3264_vm10, %v2734_v59  ;;  %7290 = vmatprep.subr.bf16.mxu0 %v7525_v0  ;;  %v3181_v59 = vld [vmem:[%s10875_s2 + $0xe40] sm:$0xff] }
 0x363   :  { %3985 = vmatmul.mubr.f32.gmra.mrb[148].mxu1 %v3095_v60  ;;  %7014 = vmatprep.mubr.msk.f32.mxu0 %vm3264_vm10, %v2739_v61  ;;  %v3180_v60 = vld [vmem:[%s10875_s2 + $0xe38] sm:$0xff]  ;;  %v3186_v61 = vld [vmem:[%s10875_s2 + $0xe68] sm:$0xff] }
 0x364   :  { %3989 = vmatprep.mubr.f32.mxu1 %v3101_v62  ;;  %v2879_v62 = vld [vmem:[%s10875_s2 + $0x4d0] sm:$0xff] }
 0x366   :  { %7015 = vmatmul.mubr.msk.f32.gmra.mrb[36].mxu0 %vm3264_vm10, %v2744_v63  ;;  %v3185_v63 = vld [vmem:[%s10875_s2 + $0xe60] sm:$0xff] }
 0x367   :  { %3990 = vmatmul.mubr.f32.gmra.mrb[150].mxu1 %v3100_v1  ;;  %7017 = vmatprep.mubr.msk.f32.mxu0 %vm3264_vm10, %v2749_v2  ;;  %v2884_v1 = vld [vmem:[%s10875_s2 + $0x4f8] sm:$0xff]  ;;  %v3191_v2 = vld [vmem:[%s10875_s2 + $0xe90] sm:$0x3f] }
 0x368   :  { %3994 = vmatprep.mubr.f32.mxu1 %v3106_v3  ;;  %v3190_v3 = vld [vmem:[%s10875_s2 + $0xe88] sm:$0x3f] }
 0x36a   :  { %7018 = vmatmul.mubr.msk.f32.gmra.mrb[38].mxu0 %vm3264_vm10, %v2754_v4  ;;  %v2728_v4 = vld [vmem:[%s10875_s2 + $0x18] sm:$0xff] }
 0x36b   :  { %3995 = vmatmul.mubr.f32.gmra.mrb[152].mxu1 %v3105_v5  ;;  %7020 = vmatprep.mubr.msk.f32.mxu0 %vm3264_vm10, %v2759_v7  ;;  %v2889_v5 = vld [vmem:[%s10875_s2 + $0x520] sm:$0xff]  ;;  %v2727_v7 = vld [vmem:[%s10875_s2 + $0x10] sm:$0xff] }
 0x36c   :  { %3999 = vmatprep.mubr.f32.mxu1 %v3111_v8  ;;  %v2894_v8 = vld [vmem:[%s10875_s2 + $0x548] sm:$0xff] }
 0x36e   :  { %7021 = vmatmul.mubr.msk.f32.gmra.mrb[40].mxu0 %vm3264_vm10, %v2764_v9  ;;  %v2733_v9 = vld [vmem:[%s10875_s2 + $0x40] sm:$0xff] }
 0x36f   :  { %4000 = vmatmul.mubr.f32.gmra.mrb[154].mxu1 %v3110_v10  ;;  %7023 = vmatprep.mubr.msk.f32.mxu0 %vm3264_vm10, %v2769_v11  ;;  %v2732_v10 = vld [vmem:[%s10875_s2 + $0x38] sm:$0xff]  ;;  %v2738_v11 = vld [vmem:[%s10875_s2 + $0x68] sm:$0xff] }
 0x370   :  { %4004 = vmatprep.mubr.f32.mxu1 %v3116_v12  ;;  %v2899_v12 = vld [vmem:[%s10875_s2 + $0x570] sm:$0xff] }
 0x372   :  { %7024 = vmatmul.mubr.msk.f32.gmra.mrb[42].mxu0 %vm3264_vm10, %v2774_v13  ;;  %v2737_v13 = vld [vmem:[%s10875_s2 + $0x60] sm:$0xff] }
 0x373   :  { %4005 = vmatmul.mubr.f32.gmra.mrb[156].mxu1 %v3115_v14  ;;  %7026 = vmatprep.mubr.msk.f32.mxu0 %vm3264_vm10, %v2779_v15  ;;  %v2904_v14 = vld [vmem:[%s10875_s2 + $0x598] sm:$0xff]  ;;  %v2743_v15 = vld [vmem:[%s10875_s2 + $0x90] sm:$0xff] }
 0x374   :  { %4009 = vmatprep.mubr.f32.mxu1 %v3121_v16  ;;  %v2742_v16 = vld [vmem:[%s10875_s2 + $0x88] sm:$0xff] }
 0x376   :  { %7027 = vmatmul.mubr.msk.f32.gmra.mrb[44].mxu0 %vm3264_vm10, %v2784_v17  ;;  %v2748_v17 = vld [vmem:[%s10875_s2 + $0xb8] sm:$0xff] }
 0x377   :  { %4010 = vmatmul.mubr.f32.gmra.mrb[158].mxu1 %v3120_v18  ;;  %7029 = vmatprep.mubr.msk.f32.mxu0 %vm3264_vm10, %v2789_v19  ;;  %v2909_v18 = vld [vmem:[%s10875_s2 + $0x5c0] sm:$0xff]  ;;  %v2747_v19 = vld [vmem:[%s10875_s2 + $0xb0] sm:$0xff] }
 0x378   :  { %4014 = vmatprep.mubr.f32.mxu1 %v3126_v20  ;;  %v2914_v20 = vld [vmem:[%s10875_s2 + $0x5e8] sm:$0xff] }
 0x37a   :  { %7030 = vmatmul.mubr.msk.f32.gmra.mrb[46].mxu0 %vm3264_vm10, %v2794_v21  ;;  %v2753_v21 = vld [vmem:[%s10875_s2 + $0xe0] sm:$0xff] }
 0x37b   :  { %4015 = vmatmul.mubr.f32.gmra.mrb[160].mxu1 %v3125_v22  ;;  %7032 = vmatprep.mubr.msk.f32.mxu0 %vm3264_vm10, %v2799_v23  ;;  %v2752_v22 = vld [vmem:[%s10875_s2 + $0xd8] sm:$0xff]  ;;  %v2758_v23 = vld [vmem:[%s10875_s2 + $0x108] sm:$0xff] }
 0x37c   :  { %4019 = vmatprep.mubr.f32.mxu1 %v3131_v24  ;;  %v2919_v24 = vld [vmem:[%s10875_s2 + $0x610] sm:$0xff] }
 0x37e   :  { %7033 = vmatmul.mubr.msk.f32.gmra.mrb[48].mxu0 %vm3264_vm10, %v2804_v25  ;;  %v2757_v25 = vld [vmem:[%s10875_s2 + $0x100] sm:$0xff] }
 0x37f   :  { %4020 = vmatmul.mubr.f32.gmra.mrb[162].mxu1 %v3130_v26  ;;  %7035 = vmatprep.mubr.msk.f32.mxu0 %vm3264_vm10, %v2809_v27  ;;  %v2924_v26 = vld [vmem:[%s10875_s2 + $0x638] sm:$0xff]  ;;  %v2763_v27 = vld [vmem:[%s10875_s2 + $0x130] sm:$0xff] }
 0x380   :  { %4024 = vmatprep.mubr.f32.mxu1 %v3136_v28  ;;  %v2762_v28 = vld [vmem:[%s10875_s2 + $0x128] sm:$0xff] }
 0x382   :  { %7036 = vmatmul.mubr.msk.f32.gmra.mrb[50].mxu0 %vm3264_vm10, %v2814_v29  ;;  %v2768_v29 = vld [vmem:[%s10875_s2 + $0x158] sm:$0xff] }
 0x383   :  { %4025 = vmatmul.mubr.f32.gmra.mrb[164].mxu1 %v3135_v30  ;;  %7038 = vmatprep.mubr.msk.f32.mxu0 %vm3264_vm10, %v2819_v31  ;;  %v2929_v30 = vld [vmem:[%s10875_s2 + $0x660] sm:$0xff]  ;;  %v2767_v31 = vld [vmem:[%s10875_s2 + $0x150] sm:$0xff] }
 0x384   :  { %4029 = vmatprep.mubr.f32.mxu1 %v3141_v32  ;;  %v2934_v32 = vld [vmem:[%s10875_s2 + $0x688] sm:$0xff] }
 0x386   :  { %7039 = vmatmul.mubr.msk.f32.gmra.mrb[52].mxu0 %vm3264_vm10, %v2824_v33  ;;  %v2773_v33 = vld [vmem:[%s10875_s2 + $0x180] sm:$0xff] }
 0x387   :  { %4030 = vmatmul.mubr.f32.gmra.mrb[166].mxu1 %v3140_v34  ;;  %7041 = vmatprep.mubr.msk.f32.mxu0 %vm3264_vm10, %v2829_v35  ;;  %v2772_v34 = vld [vmem:[%s10875_s2 + $0x178] sm:$0xff]  ;;  %v2778_v35 = vld [vmem:[%s10875_s2 + $0x1a8] sm:$0xff] }
 0x388   :  { %4034 = vmatprep.mubr.f32.mxu1 %v3146_v36  ;;  %v2939_v36 = vld [vmem:[%s10875_s2 + $0x6b0] sm:$0xff] }
 0x38a   :  { %7042 = vmatmul.mubr.msk.f32.gmra.mrb[54].mxu0 %vm3264_vm10, %v2834_v37  ;;  %v2777_v37 = vld [vmem:[%s10875_s2 + $0x1a0] sm:$0xff] }
 0x38b   :  { %4035 = vmatmul.mubr.f32.gmra.mrb[168].mxu1 %v3145_v38  ;;  %7044 = vmatprep.mubr.msk.f32.mxu0 %vm3264_vm10, %v2839_v39  ;;  %v2944_v38 = vld [vmem:[%s10875_s2 + $0x6d8] sm:$0xff]  ;;  %v2783_v39 = vld [vmem:[%s10875_s2 + $0x1d0] sm:$0xff] }
 0x38c   :  { %4039 = vmatprep.mubr.f32.mxu1 %v3151_v40  ;;  %v2782_v40 = vld [vmem:[%s10875_s2 + $0x1c8] sm:$0xff] }
 0x38e   :  { %7045 = vmatmul.mubr.msk.f32.gmra.mrb[56].mxu0 %vm3264_vm10, %v2844_v41  ;;  %v2788_v41 = vld [vmem:[%s10875_s2 + $0x1f8] sm:$0xff] }
 0x38f   :  { %4040 = vmatmul.mubr.f32.gmra.mrb[170].mxu1 %v3150_v42  ;;  %7047 = vmatprep.mubr.msk.f32.mxu0 %vm3264_vm10, %v2849_v44  ;;  %v2949_v42 = vld [vmem:[%s10875_s2 + $0x700] sm:$0xff]  ;;  %v2954_v44 = vld [vmem:[%s10875_s2 + $0x728] sm:$0xff] }
 0x390   :  { %4044 = vmatprep.mubr.f32.mxu1 %v3156_v43  ;;  %v2787_v43 = vld [vmem:[%s10875_s2 + $0x1f0] sm:$0xff] }
 0x392   :  { %7048 = vmatmul.mubr.msk.f32.gmra.mrb[58].mxu0 %vm3264_vm10, %v2854_v46  ;;  %v2792_v46 = vld [vmem:[%s10875_s2 + $0x218] sm:$0xff] }
 0x393   :  { %4045 = vmatmul.mubr.f32.gmra.mrb[172].mxu1 %v3155_v45  ;;  %7050 = vmatprep.mubr.msk.f32.mxu0 %vm3264_vm10, %v2859_v50  ;;  %v2793_v45 = vld [vmem:[%s10875_s2 + $0x220] sm:$0xff]  ;;  %v2964_v50 = vld [vmem:[%s10875_s2 + $0x778] sm:$0xff] }
 0x394   :  { %4049 = vmatprep.mubr.f32.mxu1 %v3161_v47  ;;  %v2798_v47 = vld [vmem:[%s10875_s2 + $0x248] sm:$0xff] }
 0x396   :  { %7051 = vmatmul.mubr.msk.f32.gmra.mrb[60].mxu0 %vm3264_vm10, %v2864_v52  ;;  %v2802_v52 = vld [vmem:[%s10875_s2 + $0x268] sm:$0xff] }
 0x397   :  { %4050 = vmatmul.mubr.f32.gmra.mrb[174].mxu1 %v3160_v48  ;;  %7053 = vmatprep.mubr.msk.f32.mxu0 %vm3264_vm10, %v2869_v56  ;;  %v2959_v48 = vld [vmem:[%s10875_s2 + $0x750] sm:$0xff]  ;;  %v2974_v56 = vld [vmem:[%s10875_s2 + $0x7c8] sm:$0xff] }
 0x398   :  { %4054 = vmatprep.mubr.f32.mxu1 %v3166_v49  ;;  %v2797_v49 = vld [vmem:[%s10875_s2 + $0x240] sm:$0xff] }
 0x39a   :  { %7054 = vmatmul.mubr.msk.f32.gmra.mrb[62].mxu0 %vm3264_vm10, %v2874_v58  ;;  %v2812_v58 = vld [vmem:[%s10875_s2 + $0x2b8] sm:$0xff] }
 0x39b   :  { %4055 = vmatmul.mubr.f32.gmra.mrb[176].mxu1 %v3165_v51  ;;  %7056 = vmatprep.mubr.msk.f32.mxu0 %vm3264_vm10, %v2879_v62  ;;  %v2803_v51 = vld [vmem:[%s10875_s2 + $0x270] sm:$0xff]  ;;  %v2984_v62 = vld [vmem:[%s10875_s2 + $0x818] sm:$0xff] }
 0x39c   :  { %4059 = vmatprep.mubr.f32.mxu1 %v3171_v53  ;;  %v2808_v53 = vld [vmem:[%s10875_s2 + $0x298] sm:$0xff] }
 0x39e   :  { %7057 = vmatmul.mubr.msk.f32.gmra.mrb[64].mxu0 %vm3264_vm10, %v2884_v1  ;;  %v2822_v1 = vld [vmem:[%s10875_s2 + $0x308] sm:$0xff] }
 0x39f   :  { %4060 = vmatmul.mubr.f32.gmra.mrb[178].mxu1 %v3170_v54  ;;  %7059 = vmatprep.mubr.msk.f32.mxu0 %vm3264_vm10, %v2889_v5  ;;  %v2969_v54 = vld [vmem:[%s10875_s2 + $0x7a0] sm:$0xff]  ;;  %v2994_v5 = vld [vmem:[%s10875_s2 + $0x868] sm:$0xff] }
 0x3a0   :  { %4064 = vmatprep.mubr.f32.mxu1 %v3176_v55  ;;  %v2807_v55 = vld [vmem:[%s10875_s2 + $0x290] sm:$0xff] }
 0x3a2   :  { %7060 = vmatmul.mubr.msk.f32.gmra.mrb[66].mxu0 %vm3264_vm10, %v2894_v8  ;;  %v2832_v8 = vld [vmem:[%s10875_s2 + $0x358] sm:$0xff] }
 0x3a3   :  { %4065 = vmatmul.mubr.f32.gmra.mrb[180].mxu1 %v3175_v57  ;;  %7062 = vmatprep.mubr.msk.f32.mxu0 %vm3264_vm10, %v2899_v12  ;;  %v2813_v57 = vld [vmem:[%s10875_s2 + $0x2c0] sm:$0xff]  ;;  %v2999_v12 = vld [vmem:[%s10875_s2 + $0x890] sm:$0xff] }
 0x3a4   :  { %4069 = vmatprep.mubr.f32.mxu1 %v3181_v59  ;;  %v2818_v59 = vld [vmem:[%s10875_s2 + $0x2e8] sm:$0xff] }
 0x3a6   :  { %7063 = vmatmul.mubr.msk.f32.gmra.mrb[68].mxu0 %vm3264_vm10, %v2904_v14  ;;  %v2842_v14 = vld [vmem:[%s10875_s2 + $0x3a8] sm:$0xff] }
 0x3a7   :  { %4070 = vmatmul.mubr.f32.gmra.mrb[182].mxu1 %v3180_v60  ;;  %7065 = vmatprep.mubr.msk.f32.mxu0 %vm3264_vm10, %v2909_v18  ;;  %v2979_v60 = vld [vmem:[%s10875_s2 + $0x7f0] sm:$0xff]  ;;  %v3009_v18 = vld [vmem:[%s10875_s2 + $0x8e0] sm:$0xff] }
 0x3a8   :  { %4074 = vmatprep.mubr.f32.mxu1 %v3186_v61  ;;  %v2817_v61 = vld [vmem:[%s10875_s2 + $0x2e0] sm:$0xff] }
 0x3aa   :  { %7066 = vmatmul.mubr.msk.f32.gmra.mrb[70].mxu0 %vm3264_vm10, %v2914_v20  ;;  %v2852_v20 = vld [vmem:[%s10875_s2 + $0x3f8] sm:$0xff] }
 0x3ab   :  { %4075 = vmatmul.mubr.f32.gmra.mrb[184].mxu1 %v3185_v63  ;;  %7068 = vmatprep.mubr.msk.f32.mxu0 %vm3264_vm10, %v2919_v24  ;;  %v2823_v63 = vld [vmem:[%s10875_s2 + $0x310] sm:$0xff] }
 0x3ac   :  { %4079 = vmatprep.mubr.f32.mxu1 %v3191_v2  ;;  %v2828_v2 = vld [vmem:[%s10875_s2 + $0x338] sm:$0xff]  ;;  %v3019_v24 = vld [vmem:[%s10875_s2 + $0x930] sm:$0xff] }
 0x3ae   :  { %7069 = vmatmul.mubr.msk.f32.gmra.mrb[72].mxu0 %vm3264_vm10, %v2924_v26  ;;  %v2862_v26 = vld [vmem:[%s10875_s2 + $0x448] sm:$0xff] }
 0x3af   :  { %4080 = vmatmul.mubr.f32.gmra.mrb[186].mxu1 %v3190_v3  ;;  %7071 = vmatprep.mubr.msk.f32.mxu0 %vm3264_vm10, %v2929_v30  ;;  %v2989_v3 = vld [vmem:[%s10875_s2 + $0x840] sm:$0xff] }
 0x3b0   :  { %4149 = vmatprep.mubr.f32.mxu1 %v2728_v4  ;;  %v2827_v4 = vld [vmem:[%s10875_s2 + $0x330] sm:$0xff]  ;;  %v3029_v30 = vld [vmem:[%s10875_s2 + $0x980] sm:$0xff] }
 0x3b2   :  { %7072 = vmatmul.mubr.msk.f32.gmra.mrb[74].mxu0 %vm3264_vm10, %v2934_v32  ;;  %v2872_v32 = vld [vmem:[%s10875_s2 + $0x498] sm:$0xff] }
 0x3b3   :  { %4150 = vmatmul.mubr.f32.vlgmr.msra.gmra.mrb[0].mxu1 %v2727_v7  ;;  %7074 = vmatprep.mubr.msk.f32.mxu0 %vm3264_vm10, %v2939_v36  ;;  %v2833_v7 = vld [vmem:[%s10875_s2 + $0x360] sm:$0xff]  ;;  %v3039_v36 = vld [vmem:[%s10875_s2 + $0x9d0] sm:$0xff] }
 0x3b4   :  { %4154 = vmatprep.mubr.f32.mxu1 %v2733_v9  ;;  %v2838_v9 = vld [vmem:[%s10875_s2 + $0x388] sm:$0xff] }
 0x3b6   :  { %7075 = vmatmul.mubr.msk.f32.gmra.mrb[76].mxu0 %vm3264_vm10, %v2944_v38  ;;  %v2882_v38 = vld [vmem:[%s10875_s2 + $0x4e8] sm:$0xff] }
 0x3b7   :  { %4155 = vmatmul.mubr.f32.gmra.mrb[2].mxu1 %v2732_v10  ;;  %7077 = vmatprep.mubr.msk.f32.mxu0 %vm3264_vm10, %v2949_v42  ;;  %v2837_v10 = vld [vmem:[%s10875_s2 + $0x380] sm:$0xff] }
 0x3b8   :  { %4159 = vmatprep.mubr.f32.mxu1 %v2738_v11  ;;  %v2843_v11 = vld [vmem:[%s10875_s2 + $0x3b0] sm:$0xff]  ;;  %v3049_v42 = vld [vmem:[%s10875_s2 + $0xa20] sm:$0xff] }
 0x3ba   :  { %7078 = vmatmul.mubr.msk.f32.gmra.mrb[78].mxu0 %vm3264_vm10, %v2954_v44  ;;  %v2892_v44 = vld [vmem:[%s10875_s2 + $0x538] sm:$0xff] }
 0x3bb   :  { %4160 = vmatmul.mubr.f32.gmra.mrb[4].mxu1 %v2737_v13  ;;  %7080 = vmatprep.mubr.msk.f32.mxu0 %vm3264_vm10, %v2959_v48  ;;  %v3004_v13 = vld [vmem:[%s10875_s2 + $0x8b8] sm:$0xff]  ;;  %v2897_v48 = vld [vmem:[%s10875_s2 + $0x560] sm:$0xff] }
 0x3bc   :  { %4164 = vmatprep.mubr.f32.mxu1 %v2743_v15  ;;  %v2848_v15 = vld [vmem:[%s10875_s2 + $0x3d8] sm:$0xff] }
 0x3be   :  { %7081 = vmatmul.mubr.msk.f32.gmra.mrb[80].mxu0 %vm3264_vm10, %v2964_v50 }
 0x3bf   :  { %4165 = vmatmul.mubr.f32.gmra.mrb[6].mxu1 %v2742_v16  ;;  %7083 = vmatprep.mubr.msk.f32.mxu0 %vm3264_vm10, %v2969_v54  ;;  %v2847_v16 = vld [vmem:[%s10875_s2 + $0x3d0] sm:$0xff]  ;;  %v2902_v54 = vld [vmem:[%s10875_s2 + $0x588] sm:$0xff] }
 0x3c0   :  { %4169 = vmatprep.mubr.f32.mxu1 %v2748_v17  ;;  %v2853_v17 = vld [vmem:[%s10875_s2 + $0x400] sm:$0xff] }
 0x3c2   :  { %7084 = vmatmul.mubr.msk.f32.gmra.mrb[82].mxu0 %vm3264_vm10, %v2974_v56 }
 0x3c3   :  { %4170 = vmatmul.mubr.f32.gmra.mrb[8].mxu1 %v2747_v19  ;;  %7086 = vmatprep.mubr.msk.f32.mxu0 %vm3264_vm10, %v2979_v60  ;;  %v3014_v19 = vld [vmem:[%s10875_s2 + $0x908] sm:$0xff] }
 0x3c4   :  { %4174 = vmatprep.mubr.f32.mxu1 %v2753_v21  ;;  %v2858_v21 = vld [vmem:[%s10875_s2 + $0x428] sm:$0xff] }
 0x3c6   :  { %7087 = vmatmul.mubr.msk.f32.gmra.mrb[84].mxu0 %vm3264_vm10, %v2984_v62 }
 0x3c7   :  { %4175 = vmatmul.mubr.f32.gmra.mrb[10].mxu1 %v2752_v22  ;;  %7089 = vmatprep.mubr.msk.f32.mxu0 %vm3264_vm10, %v2989_v3  ;;  %v2857_v22 = vld [vmem:[%s10875_s2 + $0x420] sm:$0xff] }
 0x3c8   :  { %4179 = vmatprep.mubr.f32.mxu1 %v2758_v23  ;;  %v2863_v23 = vld [vmem:[%s10875_s2 + $0x450] sm:$0xff] }
 0x3ca   :  { %7090 = vmatmul.mubr.msk.f32.gmra.mrb[86].mxu0 %vm3264_vm10, %v2994_v5  ;;  %v2917_v5 = vld [vmem:[%s10875_s2 + $0x600] sm:$0xff] }
 0x3cb   :  { %4180 = vmatmul.mubr.f32.gmra.mrb[12].mxu1 %v2757_v25  ;;  %7092 = vmatprep.mubr.msk.f32.mxu0 %vm3264_vm10, %v2999_v12  ;;  %v3024_v25 = vld [vmem:[%s10875_s2 + $0x958] sm:$0xff]  ;;  %v2922_v12 = vld [vmem:[%s10875_s2 + $0x628] sm:$0xff] }
 0x3cc   :  { %4184 = vmatprep.mubr.f32.mxu1 %v2763_v27  ;;  %v2868_v27 = vld [vmem:[%s10875_s2 + $0x478] sm:$0xff] }
 0x3ce   :  { %7093 = vmatmul.mubr.msk.f32.gmra.mrb[88].mxu0 %vm3264_vm10, %v3004_v13  ;;  %v2928_v13 = vld [vmem:[%s10875_s2 + $0x658] sm:$0xff] }
 0x3cf   :  { %4185 = vmatmul.mubr.f32.gmra.mrb[14].mxu1 %v2762_v28  ;;  %7095 = vmatprep.mubr.msk.f32.mxu0 %vm3264_vm10, %v3009_v18  ;;  %v2867_v28 = vld [vmem:[%s10875_s2 + $0x470] sm:$0xff] }
 0x3d0   :  { %4189 = vmatprep.mubr.f32.mxu1 %v2768_v29  ;;  %v2873_v29 = vld [vmem:[%s10875_s2 + $0x4a0] sm:$0xff] }
 0x3d2   :  { %7096 = vmatmul.mubr.msk.f32.gmra.mrb[90].mxu0 %vm3264_vm10, %v3014_v19  ;;  %v3089_v19 = vld [vmem:[%s10875_s2 + $0xb60] sm:$0xff] }
 0x3d3   :  { %4190 = vmatmul.mubr.f32.gmra.mrb[16].mxu1 %v2767_v31  ;;  %7098 = vmatprep.mubr.msk.f32.mxu0 %vm3264_vm10, %v3019_v24  ;;  %v3034_v31 = vld [vmem:[%s10875_s2 + $0x9a8] sm:$0xff] }
 0x3d4   :  { %4194 = vmatprep.mubr.f32.mxu1 %v2773_v33  ;;  %v2878_v33 = vld [vmem:[%s10875_s2 + $0x4c8] sm:$0xff] }
 0x3d6   :  { %7099 = vmatmul.mubr.msk.f32.gmra.mrb[92].mxu0 %vm3264_vm10, %v3024_v25 }
 0x3d7   :  { %4195 = vmatmul.mubr.f32.gmra.mrb[18].mxu1 %v2772_v34  ;;  %7101 = vmatprep.mubr.msk.f32.mxu0 %vm3264_vm10, %v3029_v30  ;;  %v2877_v34 = vld [vmem:[%s10875_s2 + $0x4c0] sm:$0xff] }
 0x3d8   :  { %4199 = vmatprep.mubr.f32.mxu1 %v2778_v35  ;;  %v2883_v35 = vld [vmem:[%s10875_s2 + $0x4f0] sm:$0xff] }
 0x3da   :  { %7102 = vmatmul.mubr.msk.f32.gmra.mrb[94].mxu0 %vm3264_vm10, %v3034_v31  ;;  %v3104_v31 = vld [vmem:[%s10875_s2 + $0xbd8] sm:$0xff] }
 0x3db   :  { %4200 = vmatmul.mubr.f32.gmra.mrb[20].mxu1 %v2777_v37  ;;  %7104 = vmatprep.mubr.msk.f32.mxu0 %vm3264_vm10, %v3039_v36  ;;  %v3044_v37 = vld [vmem:[%s10875_s2 + $0x9f8] sm:$0xff]  ;;  %v2947_v36 = vld [vmem:[%s10875_s2 + $0x6f0] sm:$0xff] }
 0x3dc   :  { %4204 = vmatprep.mubr.f32.mxu1 %v2783_v39  ;;  %v2888_v39 = vld [vmem:[%s10875_s2 + $0x518] sm:$0xff] }
 0x3de   :  { %7105 = vmatmul.mubr.msk.f32.gmra.mrb[96].mxu0 %vm3264_vm10, %v3044_v37  ;;  %v2953_v37 = vld [vmem:[%s10875_s2 + $0x720] sm:$0xff] }
 0x3df   :  { %4205 = vmatmul.mubr.f32.gmra.mrb[22].mxu1 %v2782_v40  ;;  %v2887_v40 = vld [vmem:[%s10875_s2 + $0x510] sm:$0xff]  ;;  %7107 = vmatprep.mubr.msk.f32.mxu0 %vm3264_vm10, %v3049_v42  ;;  %v2952_v42 = vld [vmem:[%s10875_s2 + $0x718] sm:$0xff] }
 0x3e0   :  { %4209 = vmatprep.mubr.f32.mxu1 %v2788_v41  ;;  %v2893_v41 = vld [vmem:[%s10875_s2 + $0x540] sm:$0xff] }
 0x3e3   :  { %4210 = vmatmul.mubr.f32.gmra.mrb[24].mxu1 %v2787_v43  ;;  %v3054_v43 = vld [vmem:[%s10875_s2 + $0xa48] sm:$0xff] }
 0x3e4   :  { %4214 = vmatprep.mubr.f32.mxu1 %v2793_v45  ;;  %7108 = vmatmul.mubr.msk.f32.gmra.mrb[98].mxu0 %vm3264_vm10, %v3054_v43  ;;  %v2898_v45 = vld [vmem:[%s10875_s2 + $0x568] sm:$0xff] }
 0x3e5   :  { %v2958_v43 = vld [vmem:[%s10875_s2 + $0x748] sm:$0xff] }
 0x3e7   :  { %4215 = vmatmul.mubr.f32.gmra.mrb[26].mxu1 %v2792_v46 }
 0x3e8   :  { %4219 = vmatprep.mubr.f32.mxu1 %v2798_v47 }
 0x3eb   :  { %4220 = vmatmul.mubr.f32.gmra.mrb[28].mxu1 %v2797_v49  ;;  %v2903_v49 = vld [vmem:[%s10875_s2 + $0x590] sm:$0xff] }
 0x3ec   :  { %4224 = vmatprep.mubr.f32.mxu1 %v2803_v51  ;;  %v3059_v51 = vld [vmem:[%s10875_s2 + $0xa70] sm:$0xff] }
 0x3ed   :  { %7110 = vmatprep.mubr.msk.f32.mxu0 %vm3264_vm10, %v3059_v51  ;;  %v3119_v51 = vld [vmem:[%s10875_s2 + $0xc50] sm:$0xff] }
 0x3ef   :  { %4225 = vmatmul.mubr.f32.gmra.mrb[30].mxu1 %v2802_v52 }
 0x3f0   :  { %4229 = vmatprep.mubr.f32.mxu1 %v2808_v53  ;;  %v3064_v53 = vld [vmem:[%s10875_s2 + $0xa98] sm:$0xff] }
 0x3f1   :  { %7111 = vmatmul.mubr.msk.f32.gmra.mrb[100].mxu0 %vm3264_vm10, %v3064_v53  ;;  %v3124_v53 = vld [vmem:[%s10875_s2 + $0xc78] sm:$0xff] }
 0x3f3   :  { %4230 = vmatmul.mubr.f32.gmra.mrb[32].mxu1 %v2807_v55  ;;  %v2908_v55 = vld [vmem:[%s10875_s2 + $0x5b8] sm:$0xff] }
 0x3f4   :  { %4234 = vmatprep.mubr.f32.mxu1 %v2813_v57 }
 0x3f7   :  { %4235 = vmatmul.mubr.f32.gmra.mrb[34].mxu1 %v2812_v58  ;;  %v2907_v58 = vld [vmem:[%s10875_s2 + $0x5b0] sm:$0xff] }
 0x3f8   :  { %4239 = vmatprep.mubr.f32.mxu1 %v2818_v59  ;;  %v2913_v59 = vld [vmem:[%s10875_s2 + $0x5e0] sm:$0xff] }
 0x3fb   :  { %4240 = vmatmul.mubr.f32.gmra.mrb[36].mxu1 %v2817_v61  ;;  %v3069_v61 = vld [vmem:[%s10875_s2 + $0xac0] sm:$0xff] }
 0x3fc   :  { %4244 = vmatprep.mubr.f32.mxu1 %v2823_v63  ;;  %7113 = vmatprep.mubr.msk.f32.mxu0 %vm3264_vm10, %v3069_v61  ;;  %v3074_v63 = vld [vmem:[%s10875_s2 + $0xae8] sm:$0xff]  ;;  %v2967_v61 = vld [vmem:[%s10875_s2 + $0x790] sm:$0xff] }
 0x3fd   :  { %7114 = vmatmul.mubr.msk.f32.gmra.mrb[102].mxu0 %vm3264_vm10, %v3074_v63  ;;  %v2973_v63 = vld [vmem:[%s10875_s2 + $0x7c0] sm:$0xff] }
 0x3ff   :  { %4245 = vmatmul.mubr.f32.gmra.mrb[38].mxu1 %v2822_v1  ;;  %v2912_v1 = vld [vmem:[%s10875_s2 + $0x5d8] sm:$0xff] }
 0x400   :  { %4249 = vmatprep.mubr.f32.mxu1 %v2828_v2  ;;  %v2918_v2 = vld [vmem:[%s10875_s2 + $0x608] sm:$0xff] }
 0x403   :  { %4250 = vmatmul.mubr.f32.gmra.mrb[40].mxu1 %v2827_v4 }
 0x404   :  { %4254 = vmatprep.mubr.f32.mxu1 %v2833_v7  ;;  %v2923_v7 = vld [vmem:[%s10875_s2 + $0x630] sm:$0xff] }
 0x407   :  { %4255 = vmatmul.mubr.f32.gmra.mrb[42].mxu1 %v2832_v8 }
 0x408   :  { %4259 = vmatprep.mubr.f32.mxu1 %v2838_v9  ;;  %v3079_v9 = vld [vmem:[%s10875_s2 + $0xb10] sm:$0xff] }
 0x409   :  { %7116 = vmatprep.mubr.msk.f32.mxu0 %vm3264_vm10, %v3079_v9 }
 0x40b   :  { %4260 = vmatmul.mubr.f32.gmra.mrb[44].mxu1 %v2837_v10 }
 0x40c   :  { %4264 = vmatprep.mubr.f32.mxu1 %v2843_v11  ;;  %v3084_v11 = vld [vmem:[%s10875_s2 + $0xb38] sm:$0xff] }
 0x40d   :  { %7117 = vmatmul.mubr.msk.f32.gmra.mrb[104].mxu0 %vm3264_vm10, %v3084_v11 }
 0x40e   :  { %7119 = vmatprep.mubr.msk.f32.mxu0 %vm3264_vm10, %v3089_v19  ;;  %v2982_v19 = vld [vmem:[%s10875_s2 + $0x808] sm:$0xff] }
 0x40f   :  { %4265 = vmatmul.mubr.f32.gmra.mrb[46].mxu1 %v2842_v14 }
 0x410   :  { %4269 = vmatprep.mubr.f32.mxu1 %v2848_v15 }
 0x413   :  { %4270 = vmatmul.mubr.f32.gmra.mrb[48].mxu1 %v2847_v16  ;;  %v2927_v16 = vld [vmem:[%s10875_s2 + $0x650] sm:$0xff] }
 0x414   :  { %4274 = vmatprep.mubr.f32.mxu1 %v2853_v17  ;;  %v2933_v17 = vld [vmem:[%s10875_s2 + $0x680] sm:$0xff] }
 0x417   :  { %4275 = vmatmul.mubr.f32.gmra.mrb[50].mxu1 %v2852_v20 }
 0x418   :  { %4279 = vmatprep.mubr.f32.mxu1 %v2858_v21  ;;  %v3094_v21 = vld [vmem:[%s10875_s2 + $0xb88] sm:$0xff] }
 0x419   :  { %7120 = vmatmul.mubr.msk.f32.gmra.mrb[106].mxu0 %vm3264_vm10, %v3094_v21  ;;  %v2988_v21 = vld [vmem:[%s10875_s2 + $0x838] sm:$0xff] }
 0x41b   :  { %4280 = vmatmul.mubr.f32.gmra.mrb[52].mxu1 %v2857_v22  ;;  %v2932_v22 = vld [vmem:[%s10875_s2 + $0x678] sm:$0xff] }
 0x41c   :  { %4284 = vmatprep.mubr.f32.mxu1 %v2863_v23  ;;  %v2938_v23 = vld [vmem:[%s10875_s2 + $0x6a8] sm:$0xff] }
 0x41f   :  { %4285 = vmatmul.mubr.f32.gmra.mrb[54].mxu1 %v2862_v26  ;;  %v2937_v26 = vld [vmem:[%s10875_s2 + $0x6a0] sm:$0xff] }
 0x420   :  { %4289 = vmatprep.mubr.f32.mxu1 %v2868_v27  ;;  %v2943_v27 = vld [vmem:[%s10875_s2 + $0x6d0] sm:$0xff] }
 0x423   :  { %4290 = vmatmul.mubr.f32.gmra.mrb[56].mxu1 %v2867_v28 }
 0x424   :  { %4294 = vmatprep.mubr.f32.mxu1 %v2873_v29  ;;  %v3099_v29 = vld [vmem:[%s10875_s2 + $0xbb0] sm:$0xff] }
 0x425   :  { %7122 = vmatprep.mubr.msk.f32.mxu0 %vm3264_vm10, %v3099_v29  ;;  %v3149_v29 = vld [vmem:[%s10875_s2 + $0xd40] sm:$0xff] }
 0x426   :  { %7123 = vmatmul.mubr.msk.f32.gmra.mrb[108].mxu0 %vm3264_vm10, %v3104_v31  ;;  %v3154_v31 = vld [vmem:[%s10875_s2 + $0xd68] sm:$0xff] }
 0x427   :  { %4295 = vmatmul.mubr.f32.gmra.mrb[58].mxu1 %v2872_v32  ;;  %v2942_v32 = vld [vmem:[%s10875_s2 + $0x6c8] sm:$0xff] }
 0x428   :  { %4299 = vmatprep.mubr.f32.mxu1 %v2878_v33  ;;  %v2948_v33 = vld [vmem:[%s10875_s2 + $0x6f8] sm:$0xff] }
 0x42b   :  { %4300 = vmatmul.mubr.f32.gmra.mrb[60].mxu1 %v2877_v34 }
 0x42c   :  { %4304 = vmatprep.mubr.f32.mxu1 %v2883_v35 }
 0x42f   :  { %4305 = vmatmul.mubr.f32.gmra.mrb[62].mxu1 %v2882_v38 }
 0x430   :  { %4309 = vmatprep.mubr.f32.mxu1 %v2888_v39  ;;  %v3109_v39 = vld [vmem:[%s10875_s2 + $0xc00] sm:$0xff] }
 0x431   :  { %7125 = vmatprep.mubr.msk.f32.mxu0 %vm3264_vm10, %v3109_v39 }
 0x433   :  { %4310 = vmatmul.mubr.f32.gmra.mrb[64].mxu1 %v2887_v40 }
 0x434   :  { %4314 = vmatprep.mubr.f32.mxu1 %v2893_v41  ;;  %v3114_v41 = vld [vmem:[%s10875_s2 + $0xc28] sm:$0xff] }
 0x435   :  { %v9921_v46 = vpop.f32.mrb[34].mxu0  ;;  %7126 = vmatmul.mubr.msk.f32.gmra.mrb[110].mxu0 %vm3264_vm10, %v3114_v41 }
 0x436   :  { %v9923_v47 = vpop.f32.mrb[35].mxu0  ;;  %7128 = vmatprep.mubr.msk.f32.mxu0 %vm3264_vm10, %v3119_v51  ;;  %v3164_v51 = vld [vmem:[%s10875_s2 + $0xdb8] sm:$0xff] }
 0x437   :  { %4315 = vmatmul.mubr.f32.gmra.mrb[66].mxu1 %v2892_v44 }
 0x438   :  { %4319 = vmatprep.mubr.f32.mxu1 %v2898_v45 }
 0x439   :  { %v9931_v50 = vpop.f32.mrb[36].mxu0  ;;  %7129 = vmatmul.mubr.msk.f32.gmra.mrb[112].mxu0 %vm3264_vm10, %v3124_v53 }
 0x43a   :  { %v9936_v52 = vpop.f32.mrb[37].mxu0 }
 0x43b   :  { %4320 = vmatmul.mubr.f32.gmra.mrb[68].mxu1 %v2897_v48  ;;  %v2957_v48 = vld [vmem:[%s10875_s2 + $0x740] sm:$0xff] }
 0x43c   :  { %4324 = vmatprep.mubr.f32.mxu1 %v2903_v49  ;;  %v2963_v49 = vld [vmem:[%s10875_s2 + $0x770] sm:$0xff] }
 0x43d   :  { %v9949_v56 = vpop.f32.mrb[38].mxu0 }
 0x43e   :  { %v9951_v57 = vpop.f32.mrb[39].mxu0 }
 0x43f   :  { %4325 = vmatmul.mubr.f32.gmra.mrb[70].mxu1 %v2902_v54  ;;  %v2962_v54 = vld [vmem:[%s10875_s2 + $0x768] sm:$0xff] }
 0x440   :  { %4329 = vmatprep.mubr.f32.mxu1 %v2908_v55  ;;  %v2968_v55 = vld [vmem:[%s10875_s2 + $0x798] sm:$0xff] }
 0x441   :  { %v9959_v60 = vpop.f32.mrb[40].mxu0 }
 0x442   :  { %v9964_v62 = vpop.f32.mrb[41].mxu0 }
 0x443   :  { %4330 = vmatmul.mubr.f32.gmra.mrb[72].mxu1 %v2907_v58 }
 0x444   :  { %4334 = vmatprep.mubr.f32.mxu1 %v2913_v59 }
 0x445   :  { %v9977_v3 = vpop.f32.mrb[42].mxu0 }
 0x446   :  { %v9979_v4 = vpop.f32.mrb[43].mxu0 }
 0x447   :  { %4335 = vmatmul.mubr.f32.gmra.mrb[74].mxu1 %v2912_v1  ;;  %v3129_v1 = vld [vmem:[%s10875_s2 + $0xca0] sm:$0xff] }
 0x448   :  { %4339 = vmatprep.mubr.f32.mxu1 %v2918_v2  ;;  %7131 = vmatprep.mubr.msk.f32.mxu0 %vm3264_vm10, %v3129_v1  ;;  %v3134_v2 = vld [vmem:[%s10875_s2 + $0xcc8] sm:$0xff] }
 0x449   :  { %v9987_v8 = vpop.f32.mrb[44].mxu0  ;;  %7132 = vmatmul.mubr.msk.f32.gmra.mrb[114].mxu0 %vm3264_vm10, %v3134_v2 }
 0x44a   :  { %v9992_v10 = vpop.f32.mrb[45].mxu0 }
 0x44b   :  { %4340 = vmatmul.mubr.f32.gmra.mrb[76].mxu1 %v2917_v5  ;;  %v2972_v5 = vld [vmem:[%s10875_s2 + $0x7b8] sm:$0xff] }
 0x44c   :  { %4344 = vmatprep.mubr.f32.mxu1 %v2923_v7  ;;  %v2978_v7 = vld [vmem:[%s10875_s2 + $0x7e8] sm:$0xff] }
 0x44d   :  { %v10005_v14 = vpop.f32.mrb[46].mxu0 }
 0x44e   :  { %v10007_v15 = vpop.f32.mrb[47].mxu0 }
 0x44f   :  { %4345 = vmatmul.mubr.f32.gmra.mrb[78].mxu1 %v2922_v12  ;;  %v2977_v12 = vld [vmem:[%s10875_s2 + $0x7e0] sm:$0xff] }
 0x450   :  { %4349 = vmatprep.mubr.f32.mxu1 %v2928_v13  ;;  %v2983_v13 = vld [vmem:[%s10875_s2 + $0x810] sm:$0xff] }
 0x451   :  { %v10015_v18 = vpop.f32.mrb[48].mxu0 }
 0x452   :  { %v10020_v20 = vpop.f32.mrb[49].mxu0 }
 0x453   :  { %4350 = vmatmul.mubr.f32.gmra.mrb[80].mxu1 %v2927_v16  ;;  %v3139_v16 = vld [vmem:[%s10875_s2 + $0xcf0] sm:$0xff] }
 0x454   :  { %4354 = vmatprep.mubr.f32.mxu1 %v2933_v17  ;;  %7134 = vmatprep.mubr.msk.f32.mxu0 %vm3264_vm10, %v3139_v16  ;;  %v3144_v17 = vld [vmem:[%s10875_s2 + $0xd18] sm:$0xff]  ;;  %v3174_v16 = vld [vmem:[%s10875_s2 + $0xe08] sm:$0xff] }
 0x455   :  { %v10033_v24 = vpop.f32.mrb[50].mxu0  ;;  %7135 = vmatmul.mubr.msk.f32.gmra.mrb[116].mxu0 %vm3264_vm10, %v3144_v17 }
 0x456   :  { %v10035_v25 = vpop.f32.mrb[51].mxu0  ;;  %7137 = vmatprep.mubr.msk.f32.mxu0 %vm3264_vm10, %v3149_v29 }
 0x457   :  { %4355 = vmatmul.mubr.f32.gmra.mrb[82].mxu1 %v2932_v22 }
 0x458   :  { %4359 = vmatprep.mubr.f32.mxu1 %v2938_v23 }
 0x459   :  { %v10043_v28 = vpop.f32.mrb[52].mxu0  ;;  %7138 = vmatmul.mubr.msk.f32.gmra.mrb[118].mxu0 %vm3264_vm10, %v3154_v31 }
 0x45a   :  { %v10048_v30 = vpop.f32.mrb[53].mxu0 }
 0x45b   :  { %4360 = vmatmul.mubr.f32.gmra.mrb[84].mxu1 %v2937_v26  ;;  %v2987_v26 = vld [vmem:[%s10875_s2 + $0x830] sm:$0xff] }
 0x45c   :  { %4364 = vmatprep.mubr.f32.mxu1 %v2943_v27  ;;  %v2993_v27 = vld [vmem:[%s10875_s2 + $0x860] sm:$0xff] }
 0x45d   :  { %v10061_v34 = vpop.f32.mrb[54].mxu0 }
 0x45e   :  { %v10063_v35 = vpop.f32.mrb[55].mxu0 }
 0x45f   :  { %4365 = vmatmul.mubr.f32.gmra.mrb[86].mxu1 %v2942_v32  ;;  %v2992_v32 = vld [vmem:[%s10875_s2 + $0x858] sm:$0xff] }
 0x460   :  { %4369 = vmatprep.mubr.f32.mxu1 %v2948_v33  ;;  %v2998_v33 = vld [vmem:[%s10875_s2 + $0x888] sm:$0xff] }
 0x461   :  { %v10071_v38 = vpop.f32.mrb[56].mxu0 }
 0x462   :  { %v10076_v40 = vpop.f32.mrb[57].mxu0 }
 0x463   :  { %4370 = vmatmul.mubr.f32.gmra.mrb[88].mxu1 %v2947_v36 }
 0x464   :  { %4374 = vmatprep.mubr.f32.mxu1 %v2953_v37 }
 0x465   :  { %v10089_v44 = vpop.f32.mrb[58].mxu0 }
 0x466   :  { %v10091_v45 = vpop.f32.mrb[59].mxu0 }
 0x467   :  { %4375 = vmatmul.mubr.f32.gmra.mrb[90].mxu1 %v2952_v42 }
 0x468   :  { %4379 = vmatprep.mubr.f32.mxu1 %v2958_v43  ;;  %v2997_v43 = vld [vmem:[%s10875_s2 + $0x880] sm:$0xff] }
 0x469   :  { %v10113_v58 = vpop.f32.mrb[60].mxu0 }
 0x46a   :  { %v10115_v59 = vpop.f32.mrb[61].mxu0 }
 0x46b   :  { %4380 = vmatmul.mubr.f32.gmra.mrb[92].mxu1 %v2957_v48  ;;  %v3003_v48 = vld [vmem:[%s10875_s2 + $0x8b0] sm:$0xff] }
 0x46c   :  { %4384 = vmatprep.mubr.f32.mxu1 %v2963_v49  ;;  %v3159_v49 = vld [vmem:[%s10875_s2 + $0xd90] sm:$0xff] }
 0x46d   :  { %v10137_v9 = vpop.f32.mrb[62].mxu0  ;;  %7140 = vmatprep.mubr.msk.f32.mxu0 %vm3264_vm10, %v3159_v49 }
 0x46e   :  { %v10139_v11 = vpop.f32.mrb[63].mxu0  ;;  %7141 = vmatmul.mubr.msk.f32.gmra.mrb[120].mxu0 %vm3264_vm10, %v3164_v51 }
 0x46f   :  { %4385 = vmatmul.mubr.f32.gmra.mrb[94].mxu1 %v2962_v54 }
 0x470   :  { %4389 = vmatprep.mubr.f32.mxu1 %v2968_v55  ;;  %v3002_v55 = vld [vmem:[%s10875_s2 + $0x8a8] sm:$0xff] }
 0x471   :  { %v10161_v22 = vpop.f32.mrb[64].mxu0 }
 0x472   :  { %v10163_v23 = vpop.f32.mrb[65].mxu0 }
 0x473   :  { %4390 = vmatmul.mubr.f32.gmra.mrb[96].mxu1 %v2967_v61  ;;  %v3008_v61 = vld [vmem:[%s10875_s2 + $0x8d8] sm:$0xff] }
 0x474   :  { %4394 = vmatprep.mubr.f32.mxu1 %v2973_v63 }
 0x475   :  { %v10185_v37 = vpop.f32.mrb[66].mxu0 }
 0x476   :  { %v10188_v42 = vpop.f32.mrb[67].mxu0 }
 0x477   :  { %4395 = vmatmul.mubr.f32.gmra.mrb[98].mxu1 %v2972_v5 }
 0x478   :  { %4399 = vmatprep.mubr.f32.mxu1 %v2978_v7  ;;  %v3007_v7 = vld [vmem:[%s10875_s2 + $0x8d0] sm:$0xff] }
 0x479   :  { %v10213_v1 = vpop.f32.mrb[68].mxu0 }
 0x47a   :  { %v10216_v5 = vpop.f32.mrb[69].mxu0 }
 0x47b   :  { %4400 = vmatmul.mubr.f32.gmra.mrb[100].mxu1 %v2977_v12  ;;  %v3013_v12 = vld [vmem:[%s10875_s2 + $0x900] sm:$0xff] }
 0x47c   :  { %4404 = vmatprep.mubr.f32.mxu1 %v2983_v13  ;;  %v3169_v13 = vld [vmem:[%s10875_s2 + $0xde0] sm:$0xff] }
 0x47d   :  { %7143 = vmatprep.mubr.msk.f32.mxu0 %vm3264_vm10, %v3169_v13  ;;  %v10241_v29 = vpop.f32.mrb[70].mxu0 }
 0x47e   :  { %7144 = vmatmul.mubr.msk.f32.gmra.mrb[122].mxu0 %vm3264_vm10, %v3174_v16 }
 0x47f   :  { %4405 = vmatmul.mubr.f32.gmra.mrb[102].mxu1 %v2982_v19 }
 0x480   :  { %4409 = vmatprep.mubr.f32.mxu1 %v2988_v21  ;;  %v3012_v21 = vld [vmem:[%s10875_s2 + $0x8f8] sm:$0xff] }
 0x483   :  { %4410 = vmatmul.mubr.f32.gmra.mrb[104].mxu1 %v2987_v26  ;;  %v3018_v26 = vld [vmem:[%s10875_s2 + $0x928] sm:$0xff] }
 0x484   :  { %4414 = vmatprep.mubr.f32.mxu1 %v2993_v27 }
 0x486   :  { %v4151_v36 = vpop.f32.mrb[0].mxu1 }
 0x487   :  { %v4687_v39 = vadd.f32 %v9923_v47, %v4151_v36  ;;  %v4153_v41 = vpop.f32.mrb[1].mxu1  ;;  %4415 = vmatmul.mubr.f32.gmra.mrb[106].mxu1 %v2992_v32  ;;  %v10244_v32 = vpop.f32.mrb[71].mxu0 }
 0x488   :  { %4419 = vmatprep.mubr.f32.mxu1 %v2998_v33  ;;  %v3017_v33 = vld [vmem:[%s10875_s2 + $0x920] sm:$0xff] }
 0x489   :  { %5155 = vst.msk [vmem:[#allocation4] sm:$0xff] %vm1414_vm5, %v4687_v39  ;;  %v3023_v39 = vld [vmem:[%s10875_s2 + $0x950] sm:$0xff] }
 0x48a   :  { %v4156_v47 = vpop.f32.mrb[2].mxu1 }
 0x48b   :  { %v4692_v53 = vadd.f32 %v9921_v46, %v4156_v47  ;;  %v4158_v54 = vpop.f32.mrb[3].mxu1  ;;  %4420 = vmatmul.mubr.f32.gmra.mrb[108].mxu1 %v2997_v43 }
 0x48c   :  { %4424 = vmatprep.mubr.f32.mxu1 %v3003_v48  ;;  %v3184_v48 = vld [vmem:[%s10875_s2 + $0xe58] sm:$0xff] }
 0x48d   :  { %5156 = vst.msk [vmem:[#allocation4 + $0x8] sm:$0xff] %vm1414_vm5, %v4692_v53 }
 0x48e   :  { %v4161_v63 = vpop.f32.mrb[4].mxu1 }
 0x48f   :  { %v4697_v46 = vadd.f32 %v9936_v52, %v4161_v63  ;;  %v4163_v2 = vpop.f32.mrb[5].mxu1  ;;  %4425 = vmatmul.mubr.f32.gmra.mrb[110].mxu1 %v3002_v55  ;;  %v3022_v55 = vld [vmem:[%s10875_s2 + $0x948] sm:$0xff] }
 0x490   :  { %4429 = vmatprep.mubr.f32.mxu1 %v3008_v61  ;;  %v5250_v49 = vld [vmem:[#allocation4] sm:$0xff] }
 0x491   :  { %5157 = vst.msk [vmem:[#allocation4 + $0x10] sm:$0xff] %vm1414_vm5, %v4697_v46  ;;  %v3028_v46 = vld [vmem:[%s10875_s2 + $0x978] sm:$0xff] }
 0x492   :  { %v4166_v52 = vpop.f32.mrb[6].mxu1 }
 0x493   :  { %v4702_v17 = vadd.f32 %v9931_v50, %v4166_v52  ;;  %v4168_v19 = vpop.f32.mrb[7].mxu1  ;;  %4430 = vmatmul.mubr.f32.gmra.mrb[112].mxu1 %v3007_v7  ;;  %v10269_v7 = vpop.f32.mrb[72].mxu0 }
 0x494   :  { %4434 = vmatprep.mubr.f32.mxu1 %v3013_v12  ;;  %v5251_v36 = vld [vmem:[#allocation4 + $0x8] sm:$0x1f]  ;;  %v10273_v16 = vpop.f32.mrb[73].mxu0  ;;  %v3027_v19 = vld [vmem:[%s10875_s2 + $0x970] sm:$0xff] }
 0x495   :  { %5158 = vst.msk [vmem:[#allocation4 + $0x18] sm:$0xff] %vm1414_vm5, %v4702_v17  ;;  %v5261_v53 = vrot.slane %v5251_v36, 1 }
 0x496   :  { %v4171_v27 = vpop.f32.mrb[8].mxu1 }
 0x497   :  { %v4707_v50 = vadd.f32 %v9951_v57, %v4171_v27  ;;  %v4173_v31 = vpop.f32.mrb[9].mxu1  ;;  %4435 = vmatmul.mubr.f32.gmra.mrb[114].mxu1 %v3012_v21  ;;  %v3179_v57 = vld [vmem:[%s10875_s2 + $0xe30] sm:$0xff] }
 0x498   :  { %4439 = vmatprep.mubr.f32.mxu1 %v3018_v26  ;;  %v5252_v41 = vld [vmem:[#allocation4 + $0xd] sm:$0xff]  ;;  %7146 = vmatprep.mubr.msk.f32.mxu0 %vm3264_vm10, %v3179_v57 }
 0x499   :  { %5159 = vst.msk [vmem:[#allocation4 + $0x20] sm:$0xff] %vm1414_vm5, %v4707_v50  ;;  %7147 = vmatmul.mubr.msk.f32.gmra.mrb[124].mxu0 %vm3264_vm10, %v3184_v48  ;;  %v5269_v61 = vrot.slane %v5252_v41, 1  ;;  %v3033_v26 = vld [vmem:[%s10875_s2 + $0x9a0] sm:$0xff]  ;;  %v3194_v50 = vld [vmem:[%s10875_s2 + $0xea8] sm:$0x3f] }
 0x49a   :  { %v4176_v43 = vpop.f32.mrb[10].mxu1 }
 0x49b   :  { %v4712_v47 = vadd.f32 %v9949_v56, %v4176_v43  ;;  %v4178_v51 = vpop.f32.mrb[11].mxu1  ;;  %4440 = vmatmul.mubr.f32.gmra.mrb[116].mxu1 %v3017_v33  ;;  %v5260_v56 = vrot.slane %v5250_v49, 1  ;;  %v3032_v43 = vld [vmem:[%s10875_s2 + $0x998] sm:$0xff] }
 0x49c   :  { %v5253_v54 = vld [vmem:[#allocation4 + $0x15] sm:$0x1f]  ;;  %4444 = vmatprep.mubr.f32.mxu1 %v3023_v39 }
 0x49d   :  { %v5270_v63 = vrot.slane %v5253_v54, 1  ;;  %5160 = vst.msk [vmem:[#allocation4 + $0x28] sm:$0xff] %vm1414_vm5, %v4712_v47  ;;  %v5262_v17 = vsel %vm1591_vm6, %v5260_v56, %v5261_v53 }
 0x49e   :  { %v4181_v2 = vpop.f32.mrb[12].mxu1  ;;  %v5265_v31 = vmax.f32 %v5250_v49, %v5262_v17 }
 0x49f   :  { %v5271_v12 = vsel %vm1591_vm6, %v5269_v61, %v5270_v63  ;;  %v4717_v13 = vadd.f32 %v9964_v62, %v4181_v2  ;;  %v4183_v52 = vpop.f32.mrb[13].mxu1  ;;  %4445 = vmatmul.mubr.f32.gmra.mrb[118].mxu1 %v3022_v55  ;;  %v3189_v62 = vld [vmem:[%s10875_s2 + $0xe80] sm:$0xff]  ;;  %v5275_v48 = vmax.f32 %v5253_v54, %v5270_v63  ;;  %v10299_v55 = vpop.f32.mrb[74].mxu0  ;;  %v5266_v61 = vmax.f32 %v5251_v36, %v5261_v53 }
 0x4a0   :  { %4449 = vmatprep.mubr.f32.mxu1 %v3028_v46  ;;  %v5274_v21 = vmax.f32 %v5252_v41, %v5271_v12  ;;  %7149 = vmatprep.mubr.msk.f32.mxu0 %vm3264_vm10, %v3189_v62  ;;  %v5254_v57 = vld [vmem:[#allocation4 + $0x1a] sm:$0xff]  ;;  %v10302_v12 = vpop.f32.mrb[75].mxu0  ;;  %v5255_v54 = vld [vmem:[#allocation4 + $0x22] sm:$0xf] }
 0x4a1   :  { %5161 = vst.msk [vmem:[#allocation4 + $0x30] sm:$0xff] %vm1414_vm5, %v4717_v13  ;;  %7150 = vmatmul.mubr.msk.f32.gmra.mrb[126].mxu0 %vm3264_vm10, %v3194_v50  ;;  %v3037_v13 = vld [vmem:[%s10875_s2 + $0x9c0] sm:$0xff]  ;;  %v5277_v52 = vmax.f32 %v5266_v61, %v5275_v48  ;;  %v3042_v62 = vld [vmem:[%s10875_s2 + $0x9e8] sm:$0xff]  ;;  %v3048_v50 = vld [vmem:[%s10875_s2 + $0xa18] sm:$0xff] }
 0x4a2   :  { %v4186_v27 = vpop.f32.mrb[14].mxu1  ;;  %v5276_v47 = vmax.f32 %v5265_v31, %v5274_v21 }
 0x4a3   :  { %v4722_v33 = vadd.f32 %v9959_v60, %v4186_v27  ;;  %v4188_v39 = vpop.f32.mrb[15].mxu1  ;;  %4450 = vmatmul.mubr.f32.gmra.mrb[120].mxu1 %v3027_v19  ;;  %v3038_v60 = vld [vmem:[%s10875_s2 + $0x9c8] sm:$0xff] }
 0x4a4   :  { %v5256_v41 = vld [vmem:[#allocation4 + $0x26] sm:$0xff]  ;;  %4454 = vmatprep.mubr.f32.mxu1 %v3033_v26 }
 0x4a5   :  { %v5278_v51 = vmax.f32 %v5254_v57, %v5256_v41  ;;  %5162 = vst.msk [vmem:[#allocation4 + $0x38] sm:$0xff] %vm1414_vm5, %v4722_v33  ;;  %v10320_v33 = vpop.f32.mrb[76].mxu0  ;;  %v3047_v41 = vld [vmem:[%s10875_s2 + $0xa10] sm:$0xff] }
 0x4a6   :  { %v4191_v49 = vpop.f32.mrb[16].mxu1  ;;  %v10324_v57 = vpop.f32.mrb[77].mxu0 }
 0x4a7   :  { %v5280_v46 = vmax.f32 %v5276_v47, %v5278_v51  ;;  %v4727_v56 = vadd.f32 %v9979_v4, %v4191_v49  ;;  %v4193_v2 = vpop.f32.mrb[17].mxu1  ;;  %4455 = vmatmul.mubr.f32.gmra.mrb[122].mxu1 %v3032_v43  ;;  %v3043_v4 = vld [vmem:[%s10875_s2 + $0x9f0] sm:$0xff]  ;;  %v3053_v47 = vld [vmem:[%s10875_s2 + $0xa40] sm:$0xff] }
 0x4a8   :  { %v5257_v63 = vld [vmem:[#allocation4 + $0x2e] sm:$0xf]  ;;  %4459 = vmatprep.mubr.f32.mxu1 %v3038_v60 }
 0x4a9   :  { %v5282_v17 = vmax.f32 %v5280_v46, 0.0  ;;  %v5279_v19 = vmax.f32 %v5255_v54, %v5257_v63  ;;  %5163 = vst.msk [vmem:[#allocation4 + $0x40] sm:$0xff] %vm1414_vm5, %v4727_v56  ;;  %v3052_v2 = vld [vmem:[%s10875_s2 + $0xa38] sm:$0xff] }
 0x4aa   :  { %v4196_v36 = vpop.f32.mrb[18].mxu1 }
 0x4ab   :  { %5284 = vst.msk [vmem:[#allocation5] sm:$0xff] %vm1414_vm5, %v5282_v17  ;;  %v5281_v53 = vmax.f32 %v5277_v52, %v5279_v19  ;;  %v4732_v21 = vadd.f32 %v9977_v3, %v4196_v36  ;;  %v4198_v26 = vpop.f32.mrb[19].mxu1  ;;  %4460 = vmatmul.mubr.f32.gmra.mrb[124].mxu1 %v3037_v13  ;;  %v3058_v13 = vld [vmem:[%s10875_s2 + $0xa68] sm:$0xff] }
 0x4ac   :  { %4464 = vmatprep.mubr.f32.mxu1 %v3043_v4  ;;  %v5287_v43 = vld [vmem:[#allocation4 + $0x32] sm:$0xff]  ;;  %v5288_v48 = vld [vmem:[#allocation4 + $0x3a] sm:$0x1f] }
 0x4ad   :  { %v5283_v27 = vmax.f32 %v5281_v53, 0.0  ;;  %5164 = vst.msk [vmem:[#allocation4 + $0x48] sm:$0xff] %vm1414_vm5, %v4732_v21  ;;  %v5297_v61 = vrot.slane %v5287_v43, 1  ;;  %v5298_v46 = vrot.slane %v5288_v48, 1  ;;  %v3057_v21 = vld [vmem:[%s10875_s2 + $0xa60] sm:$0xff] }
 0x4ae   :  { %v4201_v31 = vpop.f32.mrb[20].mxu1 }
 0x4af   :  { %5286 = vst.msk [vmem:[#allocation5 + $0x8] sm:$0xf] %vm5285_vm11, %v5283_v27  ;;  %v4737_v3 = vadd.f32 %v9992_v10, %v4201_v31  ;;  %v4203_v39 = vpop.f32.mrb[21].mxu1  ;;  %4465 = vmatmul.mubr.f32.gmra.mrb[126].mxu1 %v3042_v62  ;;  %v5299_v53 = vsel %vm1591_vm6, %v5297_v61, %v5298_v46  ;;  %v3063_v62 = vld [vmem:[%s10875_s2 + $0xa90] sm:$0xff] }
 0x4b0   :  { %4469 = vmatprep.mubr.f32.mxu1 %v3048_v50  ;;  %v5289_v51 = vld [vmem:[#allocation4 + $0x3f] sm:$0xff] }
 0x4b1   :  { %5165 = vst.msk [vmem:[#allocation4 + $0x50] sm:$0xff] %vm1414_vm5, %v4737_v3  ;;  %v5306_v54 = vrot.slane %v5289_v51, 1 }
 0x4b2   :  { %v4206_v60 = vpop.f32.mrb[22].mxu1 }
 0x4b3   :  { %v4742_v10 = vadd.f32 %v9987_v8, %v4206_v60  ;;  %v4208_v49 = vpop.f32.mrb[23].mxu1  ;;  %4470 = vmatmul.mubr.f32.gmra.mrb[128].mxu1 %v3047_v41  ;;  %v10341_v8 = vpop.f32.mrb[78].mxu0  ;;  %v3062_v41 = vld [vmem:[%s10875_s2 + $0xa88] sm:$0xff] }
 0x4b4   :  { %v5290_v56 = vld [vmem:[#allocation4 + $0x47] sm:$0x1f]  ;;  %4474 = vmatprep.mubr.f32.mxu1 %v3053_v47  ;;  %v10345_v36 = vpop.f32.mrb[79].mxu0  ;;  %v5303_v49 = vmax.f32 %v5288_v48, %v5298_v46 }
 0x4b5   :  { %v5307_v63 = vrot.slane %v5290_v56, 1  ;;  %5166 = vst.msk [vmem:[#allocation4 + $0x58] sm:$0xff] %vm1414_vm5, %v4742_v10 }
 0x4b6   :  { %v4211_v52 = vpop.f32.mrb[24].mxu1 }
 0x4b7   :  { %v5308_v17 = vsel %vm1591_vm6, %v5306_v54, %v5307_v63  ;;  %v4747_v19 = vadd.f32 %v10007_v15, %v4211_v52  ;;  %v4213_v4 = vpop.f32.mrb[25].mxu1  ;;  %4475 = vmatmul.mubr.f32.gmra.mrb[130].mxu1 %v3052_v2  ;;  %v5302_v15 = vmax.f32 %v5287_v43, %v5299_v53  ;;  %v5312_v47 = vmax.f32 %v5290_v56, %v5307_v63  ;;  %v3068_v43 = vld [vmem:[%s10875_s2 + $0xab8] sm:$0xff]  ;;  %v3067_v52 = vld [vmem:[%s10875_s2 + $0xab0] sm:$0xff] }
 0x4b8   :  { %4479 = vmatprep.mubr.f32.mxu1 %v3058_v13  ;;  %v5311_v26 = vmax.f32 %v5289_v51, %v5308_v17  ;;  %v5291_v3 = vld [vmem:[#allocation4 + $0x4c] sm:$0xff]  ;;  %v5292_v56 = vld [vmem:[#allocation4 + $0x54] sm:$0xf] }
 0x4b9   :  { %5167 = vst.msk [vmem:[#allocation4 + $0x60] sm:$0xff] %vm1414_vm5, %v4747_v19  ;;  %v5314_v17 = vmax.f32 %v5303_v49, %v5312_v47 }
 0x4ba   :  { %v4216_v27 = vpop.f32.mrb[26].mxu1  ;;  %v5313_v51 = vmax.f32 %v5302_v15, %v5311_v26  ;;  %v3072_v26 = vld [vmem:[%s10875_s2 + $0xad8] sm:$0xff] }
 0x4bb   :  { %v4752_v50 = vadd.f32 %v10005_v14, %v4216_v27  ;;  %v4218_v31 = vpop.f32.mrb[27].mxu1  ;;  %4480 = vmatmul.mubr.f32.gmra.mrb[132].mxu1 %v3057_v21  ;;  %v10363_v14 = vpop.f32.mrb[80].mxu0  ;;  %v3078_v27 = vld [vmem:[%s10875_s2 + $0xb08] sm:$0xff] }
 0x4bc   :  { %v5293_v39 = vld [vmem:[#allocation4 + $0x58] sm:$0xff]  ;;  %4484 = vmatprep.mubr.f32.mxu1 %v3063_v62  ;;  %v10366_v13 = vpop.f32.mrb[81].mxu0 }
 0x4bd   :  { %v5315_v60 = vmax.f32 %v5291_v3, %v5293_v39  ;;  %5168 = vst.msk [vmem:[#allocation4 + $0x68] sm:$0xff] %vm1414_vm5, %v4752_v50  ;;  %v10384_v50 = vpop.f32.mrb[82].mxu0  ;;  %v3077_v39 = vld [vmem:[%s10875_s2 + $0xb00] sm:$0xff] }
 0x4be   :  { %v4221_v10 = vpop.f32.mrb[28].mxu1  ;;  %v10388_v3 = vpop.f32.mrb[83].mxu0 }
 0x4bf   :  { %v5317_v61 = vmax.f32 %v5313_v51, %v5315_v60  ;;  %v4757_v2 = vadd.f32 %v10020_v20, %v4221_v10  ;;  %v4223_v54 = vpop.f32.mrb[29].mxu1  ;;  %4485 = vmatmul.mubr.f32.gmra.mrb[134].mxu1 %v3062_v41  ;;  %v3073_v20 = vld [vmem:[%s10875_s2 + $0xae0] sm:$0xff]  ;;  %v3083_v41 = vld [vmem:[%s10875_s2 + $0xb30] sm:$0xff] }
 0x4c0   :  { %v5294_v63 = vld [vmem:[#allocation4 + $0x60] sm:$0xf]  ;;  %4489 = vmatprep.mubr.f32.mxu1 %v3068_v43  ;;  %v5798_v51 = vld [vmem:[#allocation5] sm:$0xff] }
 0x4c1   :  { %v5319_v19 = vmax.f32 %v5317_v61, 0.0  ;;  %v5316_v4 = vmax.f32 %v5292_v56, %v5294_v63  ;;  %5169 = vst.msk [vmem:[#allocation4 + $0x70] sm:$0xff] %vm1414_vm5, %v4757_v2  ;;  %v3082_v2 = vld [vmem:[%s10875_s2 + $0xb28] sm:$0xff]  ;;  %v3088_v56 = vld [vmem:[%s10875_s2 + $0xb58] sm:$0xff] }
 0x4c2   :  { %v4226_v48 = vpop.f32.mrb[30].mxu1 }
 0x4c3   :  { %5321 = vst.msk [vmem:[#allocation5 + $0xc] sm:$0xff] %vm1414_vm5, %v5319_v19  ;;  %v5318_v46 = vmax.f32 %v5314_v17, %v5316_v4  ;;  %v4762_v53 = vadd.f32 %v10015_v18, %v4226_v48  ;;  %v4228_v21 = vpop.f32.mrb[31].mxu1  ;;  %4490 = vmatmul.mubr.f32.gmra.mrb[136].mxu1 %v3067_v52  ;;  %v10406_v17 = vpop.f32.mrb[84].mxu0 }
 0x4c4   :  { %4494 = vmatprep.mubr.f32.mxu1 %v3073_v20  ;;  %v5323_v19 = vld [vmem:[#allocation4 + $0x64] sm:$0xff]  ;;  %v10409_v48 = vpop.f32.mrb[85].mxu0  ;;  %v3093_v21 = vld [vmem:[%s10875_s2 + $0xb80] sm:$0xff] }
 0x4c5   :  { %v5320_v62 = vmax.f32 %v5318_v46, 0.0  ;;  %5170 = vst.msk [vmem:[#allocation4 + $0x78] sm:$0xff] %vm1414_vm5, %v4762_v53  ;;  %v3087_v53 = vld [vmem:[%s10875_s2 + $0xb50] sm:$0xff] }
 0x4c6   :  { %v4231_v15 = vpop.f32.mrb[32].mxu1 }
 0x4c7   :  { %5322 = vst.msk [vmem:[#allocation5 + $0x14] sm:$0xf] %vm5285_vm11, %v5320_v62  ;;  %v4767_v18 = vadd.f32 %v10035_v25, %v4231_v15  ;;  %v4233_v31 = vpop.f32.mrb[33].mxu1  ;;  %4495 = vmatmul.mubr.f32.gmra.mrb[138].mxu1 %v3072_v26  ;;  %v5333_v26 = vrot.slane %v5323_v19, 1 }
 0x4c8   :  { %4499 = vmatprep.mubr.f32.mxu1 %v3078_v27  ;;  %v5324_v54 = vld [vmem:[#allocation4 + $0x6c] sm:$0x1f] }
 0x4c9   :  { %5171 = vst.msk [vmem:[#allocation4 + $0x80] sm:$0xff] %vm1414_vm5, %v4767_v18  ;;  %v5334_v46 = vrot.slane %v5324_v54, 1  ;;  %v3092_v31 = vld [vmem:[%s10875_s2 + $0xb78] sm:$0xff] }
 0x4ca   :  { %v4236_v47 = vpop.f32.mrb[34].mxu1  ;;  %v5799_v60 = vld [vmem:[#allocation5 + $0x8] sm:$0xff] }
 0x4cb   :  { %v4772_v25 = vadd.f32 %v10033_v24, %v4236_v47  ;;  %v4238_v43 = vpop.f32.mrb[35].mxu1  ;;  %4500 = vmatmul.mubr.f32.gmra.mrb[140].mxu1 %v3077_v39  ;;  %v7291_v10 = vpack.c.bf16 %v5799_v60, %v5798_v51  ;;  %v5335_v18 = vsel %vm1591_vm6, %v5333_v26, %v5334_v46  ;;  %v3098_v47 = vld [vmem:[%s10875_s2 + $0xba8] sm:$0xff]  ;;  %v10428_v60 = vpop.f32.mrb[86].mxu0 }
 0x4cc   :  { %v5325_v49 = vld [vmem:[#allocation4 + $0x71] sm:$0xff]  ;;  %v5326_v61 = vld [vmem:[#allocation4 + $0x79] sm:$0x1f]  ;;  %4504 = vmatprep.mubr.f32.mxu1 %v3083_v41 }
 0x4cd   :  { %5172 = vst.msk [vmem:[#allocation4 + $0x88] sm:$0xff] %vm1414_vm5, %v4772_v25  ;;  %7292 = vmatpush1.bf16.msra.mxu0 %v7291_v10  ;;  %v5342_v63 = vrot.slane %v5325_v49, 1  ;;  %v5343_v24 = vrot.slane %v5326_v61, 1  ;;  %v5338_v25 = vmax.f32 %v5323_v19, %v5335_v18 }
 0x4ce   :  { %v4241_v52 = vpop.f32.mrb[36].mxu1  ;;  %7293 = vmatprep.subr.bf16.mxu0 %v7525_v0 }
 0x4cf   :  { %v4777_v4 = vadd.f32 %v10048_v30, %v4241_v52  ;;  %v4243_v20 = vpop.f32.mrb[37].mxu1  ;;  %4505 = vmatmul.mubr.f32.gmra.mrb[142].mxu1 %v3082_v2  ;;  %v5344_v62 = vsel %vm1591_vm6, %v5342_v63, %v5343_v24  ;;  %v5348_v41 = vmax.f32 %v5326_v61, %v5343_v24  ;;  %v10434_v61 = vpop.f32.mrb[87].mxu0 }
 0x4d0   :  { %4509 = vmatprep.mubr.f32.mxu1 %v3088_v56  ;;  %v5347_v39 = vmax.f32 %v5325_v49, %v5344_v62  ;;  %v5327_v43 = vld [vmem:[#allocation4 + $0x7e] sm:$0xff]  ;;  %v3097_v49 = vld [vmem:[%s10875_s2 + $0xba0] sm:$0xff] }
 0x4d1   :  { %5173 = vst.msk [vmem:[#allocation4 + $0x90] sm:$0xff] %vm1414_vm5, %v4777_v4  ;;  %v3102_v62 = vld [vmem:[%s10875_s2 + $0xbc8] sm:$0xff] }
 0x4d2   :  { %v4246_v30 = vpop.f32.mrb[38].mxu1  ;;  %v5349_v52 = vmax.f32 %v5338_v25, %v5347_v39 }
 0x4d3   :  { %v4782_v27 = vadd.f32 %v10043_v28, %v4246_v30  ;;  %v4248_v15 = vpop.f32.mrb[39].mxu1  ;;  %4510 = vmatmul.mubr.f32.gmra.mrb[144].mxu1 %v3087_v53  ;;  %v5339_v28 = vmax.f32 %v5324_v54, %v5334_v46 }
 0x4d4   :  { %4514 = vmatprep.mubr.f32.mxu1 %v3093_v21  ;;  %v5328_v56 = vld [vmem:[#allocation4 + $0x86] sm:$0xf] }
 0x4d5   :  { %5174 = vst.msk [vmem:[#allocation4 + $0x98] sm:$0xff] %vm1414_vm5, %v4782_v27  ;;  %v5350_v4 = vmax.f32 %v5339_v28, %v5348_v41  ;;  %v3108_v15 = vld [vmem:[%s10875_s2 + $0xbf8] sm:$0xff] }
 0x4d6   :  { %v4251_v51 = vpop.f32.mrb[40].mxu1 }
 0x4d7   :  { %v4787_v10 = vadd.f32 %v10063_v35, %v4251_v51  ;;  %v4253_v2 = vpop.f32.mrb[41].mxu1  ;;  %4515 = vmatmul.mubr.f32.gmra.mrb[146].mxu1 %v3092_v31  ;;  %v3103_v35 = vld [vmem:[%s10875_s2 + $0xbd0] sm:$0xff]  ;;  %v10448_v31 = vpop.f32.mrb[88].mxu0  ;;  %v3113_v51 = vld [vmem:[%s10875_s2 + $0xc20] sm:$0xff] }
 0x4d8   :  { %v5329_v63 = vld [vmem:[#allocation4 + $0x8a] sm:$0xff]  ;;  %v5330_v24 = vld [vmem:[#allocation4 + $0x92] sm:$0xf]  ;;  %4519 = vmatprep.mubr.f32.mxu1 %v3098_v47  ;;  %v10453_v41 = vpop.f32.mrb[89].mxu0  ;;  %v3107_v47 = vld [vmem:[%s10875_s2 + $0xbf0] sm:$0xff] }
 0x4d9   :  { %v5351_v20 = vmax.f32 %v5327_v43, %v5329_v63  ;;  %v5352_v54 = vmax.f32 %v5328_v56, %v5330_v24  ;;  %5175 = vst.msk [vmem:[#allocation4 + $0xa0] sm:$0xff] %vm1414_vm5, %v4787_v10  ;;  %v3112_v2 = vld [vmem:[%s10875_s2 + $0xc18] sm:$0xff]  ;;  %v3118_v56 = vld [vmem:[%s10875_s2 + $0xc48] sm:$0xff] }
 0x4da   :  { %v4256_v19 = vpop.f32.mrb[42].mxu1 }
 0x4db   :  { %v5353_v46 = vmax.f32 %v5349_v52, %v5351_v20  ;;  %v5354_v53 = vmax.f32 %v5350_v4, %v5352_v54  ;;  %v4792_v21 = vadd.f32 %v10061_v34, %v4256_v19  ;;  %v4258_v26 = vpop.f32.mrb[43].mxu1  ;;  %4520 = vmatmul.mubr.f32.gmra.mrb[148].mxu1 %v3097_v49  ;;  %v10470_v20 = vpop.f32.mrb[90].mxu0 }
 0x4dc   :  { %4524 = vmatprep.mubr.f32.mxu1 %v3103_v35  ;;  %v5359_v54 = vld [vmem:[#allocation4 + $0x96] sm:$0xff] }
 0x4dd   :  { %v5355_v30 = vmax.f32 %v5353_v46, 0.0  ;;  %v5356_v27 = vmax.f32 %v5354_v53, 0.0  ;;  %5176 = vst.msk [vmem:[#allocation4 + $0xa8] sm:$0xff] %vm1414_vm5, %v4792_v21  ;;  %v10473_v53 = vpop.f32.mrb[91].mxu0  ;;  %v3117_v26 = vld [vmem:[%s10875_s2 + $0xc40] sm:$0xff] }
 0x4de   :  { %v4261_v18 = vpop.f32.mrb[44].mxu1 }
 0x4df   :  { %5357 = vst.msk [vmem:[#allocation5 + $0x18] sm:$0xff] %vm1414_vm5, %v5355_v30  ;;  %v4797_v34 = vadd.f32 %v10076_v40, %v4261_v18  ;;  %v4263_v39 = vpop.f32.mrb[45].mxu1  ;;  %4525 = vmatmul.mubr.f32.gmra.mrb[150].mxu1 %v3102_v62  ;;  %v3123_v62 = vld [vmem:[%s10875_s2 + $0xc70] sm:$0xff]  ;;  %v5369_v30 = vrot.slane %v5359_v54, 1 }
 0x4e0   :  { %5358 = vst.msk [vmem:[#allocation5 + $0x20] sm:$0xf] %vm5285_vm11, %v5356_v27  ;;  %4529 = vmatprep.mubr.f32.mxu1 %v3108_v15  ;;  %v5360_v49 = vld [vmem:[#allocation4 + $0x9e] sm:$0x1f] }
 0x4e1   :  { %5177 = vst.msk [vmem:[#allocation4 + $0xb0] sm:$0xff] %vm1414_vm5, %v4797_v34  ;;  %v5370_v21 = vrot.slane %v5360_v49, 1  ;;  %v3122_v39 = vld [vmem:[%s10875_s2 + $0xc68] sm:$0xff] }
 0x4e2   :  { %v4266_v28 = vpop.f32.mrb[46].mxu1 }
 0x4e3   :  { %v4802_v25 = vadd.f32 %v10071_v38, %v4266_v28  ;;  %v4268_v43 = vpop.f32.mrb[47].mxu1  ;;  %4530 = vmatmul.mubr.f32.gmra.mrb[152].mxu1 %v3107_v47  ;;  %v5800_v38 = vld [vmem:[#allocation5 + $0x10] sm:$0xff]  ;;  %v5371_v34 = vsel %vm1591_vm6, %v5369_v30, %v5370_v21  ;;  %v3128_v28 = vld [vmem:[%s10875_s2 + $0xc98] sm:$0xff] }
 0x4e4   :  { %v5361_v40 = vld [vmem:[#allocation4 + $0xa3] sm:$0xff]  ;;  %v5362_v10 = vld [vmem:[#allocation4 + $0xab] sm:$0x1f]  ;;  %4534 = vmatprep.mubr.f32.mxu1 %v3113_v51  ;;  %v10493_v43 = vpop.f32.mrb[92].mxu0 }
 0x4e5   :  { %5178 = vst.msk [vmem:[#allocation4 + $0xb8] sm:$0xff] %vm1414_vm5, %v4802_v25  ;;  %v5378_v63 = vrot.slane %v5361_v40, 1  ;;  %v5379_v24 = vrot.slane %v5362_v10, 1 }
 0x4e6   :  { %v4271_v52 = vpop.f32.mrb[48].mxu1  ;;  %v5801_v4 = vld [vmem:[#allocation5 + $0x18] sm:$0xff] }
 0x4e7   :  { %v4807_v35 = vadd.f32 %v10091_v45, %v4271_v52  ;;  %v4273_v19 = vpop.f32.mrb[49].mxu1  ;;  %4535 = vmatmul.mubr.f32.gmra.mrb[154].mxu1 %v3112_v2  ;;  %v7294_v46 = vpack.c.bf16 %v5801_v4, %v5800_v38  ;;  %v5380_v45 = vsel %vm1591_vm6, %v5378_v63, %v5379_v24  ;;  %v5384_v51 = vmax.f32 %v5362_v10, %v5379_v24  ;;  %v10499_v10 = vpop.f32.mrb[93].mxu0 }
 0x4e8   :  { %4539 = vmatprep.mubr.f32.mxu1 %v3118_v56  ;;  %v5383_v47 = vmax.f32 %v5361_v40, %v5380_v45  ;;  %v5374_v2 = vmax.f32 %v5359_v54, %v5371_v34  ;;  %v5363_v56 = vld [vmem:[#allocation4 + $0xb0] sm:$0xff]  ;;  %v3127_v40 = vld [vmem:[%s10875_s2 + $0xc90] sm:$0xff]  ;;  %v3132_v45 = vld [vmem:[%s10875_s2 + $0xcb8] sm:$0xff] }
 0x4e9   :  { %5179 = vst.msk [vmem:[#allocation4 + $0xc0] sm:$0xff] %vm1414_vm5, %v4807_v35  ;;  %7295 = vmatpush1.bf16.msra.mxu0 %v7294_v46 }
 0x4ea   :  { %v4276_v27 = vpop.f32.mrb[50].mxu1  ;;  %7296 = vmatprep.subr.bf16.mxu0 %v7525_v0  ;;  %v5385_v35 = vmax.f32 %v5374_v2, %v5383_v47 }
 0x4eb   :  { %v4812_v15 = vadd.f32 %v10089_v44, %v4276_v27  ;;  %v4278_v18 = vpop.f32.mrb[51].mxu1  ;;  %4540 = vmatmul.mubr.f32.gmra.mrb[156].mxu1 %v3117_v26  ;;  %v5375_v44 = vmax.f32 %v5360_v49, %v5370_v21 }
 0x4ec   :  { %4544 = vmatprep.mubr.f32.mxu1 %v3123_v62  ;;  %v5364_v24 = vld [vmem:[#allocation4 + $0xb8] sm:$0xf] }
 0x4ed   :  { %5180 = vst.msk [vmem:[#allocation4 + $0xc8] sm:$0xff] %vm1414_vm5, %v4812_v15  ;;  %v5386_v19 = vmax.f32 %v5375_v44, %v5384_v51  ;;  %v3138_v18 = vld [vmem:[%s10875_s2 + $0xce8] sm:$0xff] }
 0x4ee   :  { %v4281_v25 = vpop.f32.mrb[52].mxu1 }
 0x4ef   :  { %v4817_v63 = vadd.f32 %v10115_v59, %v4281_v25  ;;  %v4283_v52 = vpop.f32.mrb[53].mxu1  ;;  %4545 = vmatmul.mubr.f32.gmra.mrb[158].mxu1 %v3122_v39  ;;  %v3133_v59 = vld [vmem:[%s10875_s2 + $0xcc0] sm:$0xff]  ;;  %v10513_v39 = vpop.f32.mrb[94].mxu0  ;;  %v3143_v25 = vld [vmem:[%s10875_s2 + $0xd10] sm:$0xff] }
 0x4f0   :  { %v5365_v38 = vld [vmem:[#allocation4 + $0xbc] sm:$0xff]  ;;  %v5366_v4 = vld [vmem:[#allocation4 + $0xc4] sm:$0xf]  ;;  %4549 = vmatprep.mubr.f32.mxu1 %v3128_v28  ;;  %v10518_v51 = vpop.f32.mrb[95].mxu0  ;;  %v3137_v28 = vld [vmem:[%s10875_s2 + $0xce0] sm:$0xff] }
 0x4f1   :  { %v5387_v46 = vmax.f32 %v5363_v56, %v5365_v38  ;;  %v5388_v49 = vmax.f32 %v5364_v24, %v5366_v4  ;;  %5181 = vst.msk [vmem:[#allocation4 + $0xd0] sm:$0xff] %vm1414_vm5, %v4817_v63  ;;  %v3148_v52 = vld [vmem:[%s10875_s2 + $0xd38] sm:$0xff] }
 0x4f2   :  { %v4286_v54 = vpop.f32.mrb[54].mxu1 }
 0x4f3   :  { %v5389_v21 = vmax.f32 %v5385_v35, %v5387_v46  ;;  %v5390_v26 = vmax.f32 %v5386_v19, %v5388_v49  ;;  %v4822_v62 = vadd.f32 %v10113_v58, %v4286_v54  ;;  %v4288_v30 = vpop.f32.mrb[55].mxu1  ;;  %4550 = vmatmul.mubr.f32.gmra.mrb[160].mxu1 %v3127_v40  ;;  %v10535_v35 = vpop.f32.mrb[96].mxu0 }
 0x4f4   :  { %4554 = vmatprep.mubr.f32.mxu1 %v3133_v59  ;;  %v10538_v59 = vpop.f32.mrb[97].mxu0 }
 0x4f5   :  { %v5391_v27 = vmax.f32 %v5389_v21, 0.0  ;;  %v5392_v15 = vmax.f32 %v5390_v26, 0.0  ;;  %5182 = vst.msk [vmem:[#allocation4 + $0xd8] sm:$0xff] %vm1414_vm5, %v4822_v62  ;;  %v3147_v26 = vld [vmem:[%s10875_s2 + $0xd30] sm:$0xff] }
 0x4f6   :  { %v4291_v34 = vpop.f32.mrb[56].mxu1 }
 0x4f7   :  { %5393 = vst.msk [vmem:[#allocation5 + $0x24] sm:$0xff] %vm1414_vm5, %v5391_v27  ;;  %v4827_v58 = vadd.f32 %v10139_v11, %v4291_v34  ;;  %v4293_v47 = vpop.f32.mrb[57].mxu1  ;;  %4555 = vmatmul.mubr.f32.gmra.mrb[162].mxu1 %v3132_v45  ;;  %v3142_v11 = vld [vmem:[%s10875_s2 + $0xd08] sm:$0xff] }
 0x4f8   :  { %5394 = vst.msk [vmem:[#allocation5 + $0x2c] sm:$0xf] %vm5285_vm11, %v5392_v15  ;;  %4559 = vmatprep.mubr.f32.mxu1 %v3138_v18  ;;  %v5396_v63 = vld [vmem:[#allocation4 + $0xd0] sm:$0x1f]  ;;  %v3152_v47 = vld [vmem:[%s10875_s2 + $0xd58] sm:$0xff] }
 0x4f9   :  { %5183 = vst.msk [vmem:[#allocation4 + $0xe0] sm:$0xff] %vm1414_vm5, %v4827_v58  ;;  %v5406_v54 = vrot.slane %v5396_v63, 1 }
 0x4fa   :  { %v4296_v44 = vpop.f32.mrb[58].mxu1 }
 0x4fb   :  { %v4832_v2 = vadd.f32 %v10137_v9, %v4296_v44  ;;  %v4298_v56 = vpop.f32.mrb[59].mxu1  ;;  %4560 = vmatmul.mubr.f32.gmra.mrb[164].mxu1 %v3137_v28  ;;  %v5395_v9 = vld [vmem:[#allocation4 + $0xc8] sm:$0xff] }
 0x4fc   :  { %4564 = vmatprep.mubr.f32.mxu1 %v3143_v25  ;;  %v5397_v40 = vld [vmem:[#allocation4 + $0xd5] sm:$0xff]  ;;  %v5405_v45 = vrot.slane %v5395_v9, 1 }
 0x4fd   :  { %5184 = vst.msk [vmem:[#allocation4 + $0xe8] sm:$0xff] %vm1414_vm5, %v4832_v2  ;;  %v5414_v62 = vrot.slane %v5397_v40, 1  ;;  %v3158_v25 = vld [vmem:[%s10875_s2 + $0xd88] sm:$0xff]  ;;  %v10558_v2 = vpop.f32.mrb[98].mxu0 }
 0x4fe   :  { %v4301_v24 = vpop.f32.mrb[60].mxu1  ;;  %v5802_v38 = vld [vmem:[#allocation5 + $0x20] sm:$0xff]  ;;  %v5407_v58 = vsel %vm1591_vm6, %v5405_v45, %v5406_v54 }
 0x4ff   :  { %v5803_v4 = vld [vmem:[#allocation5 + $0x28] sm:$0xff]  ;;  %v4837_v19 = vadd.f32 %v10163_v23, %v4301_v24  ;;  %v4303_v46 = vpop.f32.mrb[61].mxu1  ;;  %4565 = vmatmul.mubr.f32.gmra.mrb[166].mxu1 %v3142_v11  ;;  %v3153_v23 = vld [vmem:[%s10875_s2 + $0xd60] sm:$0xff] }
 0x500   :  { %v7297_v49 = vpack.c.bf16 %v5803_v4, %v5802_v38  ;;  %v5398_v21 = vld [vmem:[#allocation4 + $0xdd] sm:$0x1f]  ;;  %4569 = vmatprep.mubr.f32.mxu1 %v3148_v52  ;;  %v10561_v52 = vpop.f32.mrb[99].mxu0 }
 0x501   :  { %v5415_v30 = vrot.slane %v5398_v21, 1  ;;  %5185 = vst.msk [vmem:[#allocation4 + $0xf0] sm:$0xff] %vm1414_vm5, %v4837_v19 }
 0x502   :  { %7298 = vmatpush1.bf16.msra.mxu0 %v7297_v49  ;;  %v4306_v27 = vpop.f32.mrb[62].mxu1  ;;  %v5411_v49 = vmax.f32 %v5396_v63, %v5406_v54  ;;  %v3168_v63 = vld [vmem:[%s10875_s2 + $0xdd8] sm:$0xff] }
 0x503   :  { %7299 = vmatprep.subr.bf16.mxu0 %v7525_v0  ;;  %v5416_v15 = vsel %vm1591_vm6, %v5414_v62, %v5415_v30  ;;  %v4842_v18 = vadd.f32 %v10161_v22, %v4306_v27  ;;  %v4308_v34 = vpop.f32.mrb[63].mxu1  ;;  %4570 = vmatmul.mubr.f32.gmra.mrb[168].mxu1 %v3147_v26  ;;  %v5410_v22 = vmax.f32 %v5395_v9, %v5407_v58 }
 0x504   :  { %4574 = vmatprep.mubr.f32.mxu1 %v3153_v23  ;;  %v5419_v28 = vmax.f32 %v5397_v40, %v5416_v15  ;;  %v5399_v24 = vld [vmem:[#allocation4 + $0xe2] sm:$0xff]  ;;  %v3157_v40 = vld [vmem:[%s10875_s2 + $0xd80] sm:$0xff]  ;;  %v5420_v4 = vmax.f32 %v5398_v21, %v5415_v30  ;;  %v5400_v45 = vld [vmem:[#allocation4 + $0xea] sm:$0xf] }
 0x505   :  { %5186 = vst.msk [vmem:[#allocation4 + $0xf8] sm:$0xff] %vm1414_vm5, %v4842_v18  ;;  %v3162_v21 = vld [vmem:[%s10875_s2 + $0xda8] sm:$0xff] }
 0x506   :  { %v4311_v44 = vpop.f32.mrb[64].mxu1  ;;  %v5421_v19 = vmax.f32 %v5410_v22, %v5419_v28  ;;  %v5422_v30 = vmax.f32 %v5411_v49, %v5420_v4  ;;  %v3173_v22 = vld [vmem:[%s10875_s2 + $0xe00] sm:$0xff]  ;;  %v3178_v4 = vld [vmem:[%s10875_s2 + $0xe28] sm:$0xff] }
 0x507   :  { %v4847_v56 = vadd.f32 %v10188_v42, %v4311_v44  ;;  %v4313_v11 = vpop.f32.mrb[65].mxu1  ;;  %4575 = vmatmul.mubr.f32.gmra.mrb[170].mxu1 %v3152_v47  ;;  %v3163_v42 = vld [vmem:[%s10875_s2 + $0xdb0] sm:$0xff] }
 0x508   :  { %v5401_v38 = vld [vmem:[#allocation4 + $0xee] sm:$0xff]  ;;  %4579 = vmatprep.mubr.f32.mxu1 %v3158_v25  ;;  %v3167_v25 = vld [vmem:[%s10875_s2 + $0xdd0] sm:$0xff] }
 0x509   :  { %v5423_v46 = vmax.f32 %v5399_v24, %v5401_v38  ;;  %5187 = vst.msk [vmem:[#allocation4 + $0x100] sm:$0xff] %vm1414_vm5, %v4847_v56  ;;  %v3172_v24 = vld [vmem:[%s10875_s2 + $0xdf8] sm:$0xff] }
 0x50a   :  { %v4316_v9 = vpop.f32.mrb[66].mxu1 }
 0x50b   :  { %v5425_v26 = vmax.f32 %v5421_v19, %v5423_v46  ;;  %v4852_v62 = vadd.f32 %v10185_v37, %v4316_v9  ;;  %v4318_v23 = vpop.f32.mrb[67].mxu1  ;;  %4580 = vmatmul.mubr.f32.gmra.mrb[172].mxu1 %v3157_v40  ;;  %v10578_v37 = vpop.f32.mrb[100].mxu0 }
 0x50c   :  { %v5402_v27 = vld [vmem:[#allocation4 + $0xf6] sm:$0xf]  ;;  %4584 = vmatprep.mubr.f32.mxu1 %v3163_v42  ;;  %v10582_v28 = vpop.f32.mrb[101].mxu0 }
 0x50d   :  { %v5427_v15 = vmax.f32 %v5425_v26, 0.0  ;;  %v5424_v18 = vmax.f32 %v5400_v45, %v5402_v27  ;;  %5188 = vst.msk [vmem:[#allocation4 + $0x108] sm:$0xff] %vm1414_vm5, %v4852_v62  ;;  %v10600_v42 = vpop.f32.mrb[102].mxu0  ;;  %v3177_v45 = vld [vmem:[%s10875_s2 + $0xe20] sm:$0xff] }
 0x50e   :  { %v4321_v54 = vpop.f32.mrb[68].mxu1  ;;  %v10603_v49 = vpop.f32.mrb[103].mxu0 }
 0x50f   :  { %5429 = vst.msk [vmem:[#allocation5 + $0x30] sm:$0xff] %vm1414_vm5, %v5427_v15  ;;  %v5426_v34 = vmax.f32 %v5422_v30, %v5424_v18  ;;  %v4857_v58 = vadd.f32 %v10216_v5, %v4321_v54  ;;  %v4323_v47 = vpop.f32.mrb[69].mxu1  ;;  %4585 = vmatmul.mubr.f32.gmra.mrb[174].mxu1 %v3162_v21 }
 0x510   :  { %4589 = vmatprep.mubr.f32.mxu1 %v3168_v63  ;;  %v5431_v38 = vld [vmem:[#allocation4 + $0xfa] sm:$0xff]  ;;  %v5432_v40 = vld [vmem:[#allocation4 + $0x102] sm:$0x1f]  ;;  %v3188_v47 = vld [vmem:[%s10875_s2 + $0xe78] sm:$0xff] }
 0x511   :  { %v5428_v44 = vmax.f32 %v5426_v34, 0.0  ;;  %5189 = vst.msk [vmem:[#allocation4 + $0x110] sm:$0xff] %vm1414_vm5, %v4857_v58  ;;  %v5441_v26 = vrot.slane %v5431_v38, 1  ;;  %v5442_v62 = vrot.slane %v5432_v40, 1  ;;  %v3182_v34 = vld [vmem:[%s10875_s2 + $0xe48] sm:$0xff] }
 0x512   :  { %v4326_v56 = vpop.f32.mrb[70].mxu1 }
 0x513   :  { %5430 = vst.msk [vmem:[#allocation5 + $0x38] sm:$0xf] %vm5285_vm11, %v5428_v44  ;;  %v4862_v5 = vadd.f32 %v10213_v1, %v4326_v56  ;;  %v4328_v11 = vpop.f32.mrb[71].mxu1  ;;  %4590 = vmatmul.mubr.f32.gmra.mrb[176].mxu1 %v3167_v25  ;;  %v5443_v54 = vsel %vm1591_vm6, %v5441_v26, %v5442_v62  ;;  %v10622_v44 = vpop.f32.mrb[104].mxu0 }
 0x514   :  { %4594 = vmatprep.mubr.f32.mxu1 %v3173_v22  ;;  %v5433_v19 = vld [vmem:[#allocation4 + $0x107] sm:$0xff] }
 0x515   :  { %5190 = vst.msk [vmem:[#allocation4 + $0x118] sm:$0xff] %vm1414_vm5, %v4862_v5  ;;  %v5450_v27 = vrot.slane %v5433_v19, 1  ;;  %v10625_v5 = vpop.f32.mrb[105].mxu0 }
 0x516   :  { %v4331_v46 = vpop.f32.mrb[72].mxu1 }
 0x517   :  { %v4867_v1 = vadd.f32 %v10244_v32, %v4331_v46  ;;  %v4333_v9 = vpop.f32.mrb[73].mxu1  ;;  %4595 = vmatmul.mubr.f32.gmra.mrb[178].mxu1 %v3172_v24  ;;  %v3183_v32 = vld [vmem:[%s10875_s2 + $0xe50] sm:$0xff] }
 0x518   :  { %v5434_v23 = vld [vmem:[#allocation4 + $0x10f] sm:$0x1f]  ;;  %4599 = vmatprep.mubr.f32.mxu1 %v3178_v4  ;;  %v3187_v4 = vld [vmem:[%s10875_s2 + $0xe70] sm:$0xff]  ;;  %v5447_v9 = vmax.f32 %v5432_v40, %v5442_v62 }
 0x519   :  { %v5451_v21 = vrot.slane %v5434_v23, 1  ;;  %5191 = vst.msk [vmem:[#allocation4 + $0x120] sm:$0xff] %vm1414_vm5, %v4867_v1 }
 0x51a   :  { %v4336_v30 = vpop.f32.mrb[74].mxu1 }
 0x51b   :  { %v5452_v15 = vsel %vm1591_vm6, %v5450_v27, %v5451_v21  ;;  %v4872_v18 = vadd.f32 %v10241_v29, %v4336_v30  ;;  %v4338_v63 = vpop.f32.mrb[75].mxu1  ;;  %4600 = vmatmul.mubr.f32.gmra.mrb[180].mxu1 %v3177_v45  ;;  %v5446_v29 = vmax.f32 %v5431_v38, %v5443_v54  ;;  %v10639_v54 = vpop.f32.mrb[106].mxu0 }
 0x51c   :  { %4604 = vmatprep.mubr.f32.mxu1 %v3183_v32  ;;  %v5455_v58 = vmax.f32 %v5433_v19, %v5452_v15  ;;  %v5435_v11 = vld [vmem:[#allocation4 + $0x114] sm:$0xff]  ;;  %v5456_v19 = vmax.f32 %v5434_v23, %v5451_v21  ;;  %v5436_v32 = vld [vmem:[#allocation4 + $0x11c] sm:$0xf]  ;;  %v3192_v23 = vld [vmem:[%s10875_s2 + $0xe98] sm:$0x3f] }
 0x51d   :  { %5192 = vst.msk [vmem:[#allocation4 + $0x128] sm:$0xff] %vm1414_vm5, %v4872_v18 }
 0x51e   :  { %v4341_v25 = vpop.f32.mrb[76].mxu1  ;;  %v5457_v46 = vmax.f32 %v5446_v29, %v5455_v58  ;;  %v5458_v21 = vmax.f32 %v5447_v9, %v5456_v19 }
 0x51f   :  { %v4877_v22 = vadd.f32 %v10273_v16, %v4341_v25  ;;  %v4343_v56 = vpop.f32.mrb[77].mxu1  ;;  %4605 = vmatmul.mubr.f32.gmra.mrb[182].mxu1 %v3182_v34  ;;  %v3193_v16 = vld [vmem:[%s10875_s2 + $0xea0] sm:$0x3f]  ;;  %v10643_v34 = vpop.f32.mrb[107].mxu0 }
 0x520   :  { %v5437_v24 = vld [vmem:[#allocation4 + $0x120] sm:$0xff]  ;;  %4609 = vmatprep.mubr.f32.mxu1 %v3188_v47 }
 0x521   :  { %v5459_v1 = vmax.f32 %v5435_v11, %v5437_v24  ;;  %5193 = vst.msk [vmem:[#allocation4 + $0x130] sm:$0xff] %vm1414_vm5, %v4877_v22  ;;  %v5804_v56 = vld [vmem:[#allocation5 + $0x30] sm:$0xff]  ;;  %v10649_v24 = vpop.f32.mrb[108].mxu0 }
 0x522   :  { %v4346_v38 = vpop.f32.mrb[78].mxu1 }
 0x523   :  { %v5461_v26 = vmax.f32 %v5457_v46, %v5459_v1  ;;  %v4882_v45 = vadd.f32 %v10269_v7, %v4346_v38  ;;  %v4348_v27 = vpop.f32.mrb[79].mxu1  ;;  %4610 = vmatmul.mubr.f32.gmra.mrb[184].mxu1 %v3187_v4  ;;  %v10652_v46 = vpop.f32.mrb[109].mxu0 }
 0x524   :  { %v5438_v30 = vld [vmem:[#allocation4 + $0x128] sm:$0xf]  ;;  %4614 = vmatprep.mubr.f32.mxu1 %v3193_v16 }
 0x525   :  { %v5463_v15 = vmax.f32 %v5461_v26, 0.0  ;;  %v5460_v18 = vmax.f32 %v5436_v32, %v5438_v30  ;;  %5194 = vst.msk [vmem:[#allocation4 + $0x138] sm:$0xff] %vm1414_vm5, %v4882_v45 }
 0x526   :  { %v4351_v63 = vpop.f32.mrb[80].mxu1 }
 0x527   :  { %5465 = vst.msk [vmem:[#allocation5 + $0x3c] sm:$0xff] %vm1414_vm5, %v5463_v15  ;;  %v5462_v7 = vmax.f32 %v5458_v21, %v5460_v18  ;;  %v4887_v40 = vadd.f32 %v10302_v12, %v4351_v63  ;;  %v4353_v62 = vpop.f32.mrb[81].mxu1  ;;  %4615 = vmatmul.mubr.f32.gmra.mrb[186].mxu1 %v3192_v23  ;;  %v10659_v15 = vpop.f32.mrb[110].mxu0 }
 0x528   :  { %v5467_v45 = vld [vmem:[#allocation4 + $0x12c] sm:$0xff] }
 0x529   :  { %v5464_v58 = vmax.f32 %v5462_v7, 0.0  ;;  %5195 = vst.msk [vmem:[#allocation4 + $0x140] sm:$0xff] %vm1414_vm5, %v4887_v40  ;;  %v5477_v30 = vrot.slane %v5467_v45, 1  ;;  %v10662_v7 = vpop.f32.mrb[111].mxu0 }
 0x52a   :  { %v4356_v47 = vpop.f32.mrb[82].mxu1 }
 0x52b   :  { %5466 = vst.msk [vmem:[#allocation5 + $0x44] sm:$0xf] %vm5285_vm11, %v5464_v58  ;;  %v4892_v25 = vadd.f32 %v10299_v55, %v4356_v47  ;;  %v4358_v29 = vpop.f32.mrb[83].mxu1 }
 0x52c   :  { %v5468_v38 = vld [vmem:[#allocation4 + $0x134] sm:$0x1f] }
 0x52d   :  { %5196 = vst.msk [vmem:[#allocation4 + $0x148] sm:$0xff] %vm1414_vm5, %v4892_v25 }
 0x52e   :  { %v4361_v22 = vpop.f32.mrb[84].mxu1  ;;  %v5805_v11 = vld [vmem:[#allocation5 + $0x38] sm:$0xff] }
 0x52f   :  { %v4897_v12 = vadd.f32 %v10324_v57, %v4361_v22  ;;  %v4363_v4 = vpop.f32.mrb[85].mxu1  ;;  %v7300_v19 = vpack.c.bf16 %v5805_v11, %v5804_v56  ;;  %v5478_v57 = vrot.slane %v5468_v38, 1 }
 0x530   :  { %v5469_v1 = vld [vmem:[#allocation4 + $0x139] sm:$0xff]  ;;  %v5470_v16 = vld [vmem:[#allocation4 + $0x141] sm:$0x1f] }
 0x531   :  { %5197 = vst.msk [vmem:[#allocation4 + $0x150] sm:$0xff] %vm1414_vm5, %v4897_v12  ;;  %7301 = vmatpush1.bf16.msra.mxu0 %v7300_v19  ;;  %v5486_v55 = vrot.slane %v5469_v1, 1  ;;  %v5487_v9 = vrot.slane %v5470_v16, 1  ;;  %v5479_v40 = vsel %vm1591_vm6, %v5477_v30, %v5478_v57  ;;  %v5483_v47 = vmax.f32 %v5468_v38, %v5478_v57 }
 0x532   :  { %v4366_v26 = vpop.f32.mrb[86].mxu1  ;;  %7302 = vmatprep.subr.bf16.mxu0 %v7525_v0  ;;  %v5482_v25 = vmax.f32 %v5467_v45, %v5479_v40 }
 0x533   :  { %v4902_v27 = vadd.f32 %v10320_v33, %v4366_v26  ;;  %v4368_v32 = vpop.f32.mrb[87].mxu1  ;;  %v5488_v23 = vsel %vm1591_vm6, %v5486_v55, %v5487_v9  ;;  %v5492_v58 = vmax.f32 %v5470_v16, %v5487_v9  ;;  %v10668_v16 = vpop.f32.mrb[112].mxu0 }
 0x534   :  { %v5491_v62 = vmax.f32 %v5469_v1, %v5488_v23  ;;  %v5471_v29 = vld [vmem:[#allocation4 + $0x146] sm:$0xff]  ;;  %v10671_v32 = vpop.f32.mrb[113].mxu0 }
 0x535   :  { %5198 = vst.msk [vmem:[#allocation4 + $0x158] sm:$0xff] %vm1414_vm5, %v4902_v27  ;;  %v5494_v19 = vmax.f32 %v5483_v47, %v5492_v58 }
 0x536   :  { %v4371_v21 = vpop.f32.mrb[88].mxu1 }
 0x537   :  { %v4907_v18 = vadd.f32 %v10345_v36, %v4371_v21  ;;  %v4373_v63 = vpop.f32.mrb[89].mxu1  ;;  %v5493_v36 = vmax.f32 %v5482_v25, %v5491_v62 }
 0x538   :  { %v5472_v11 = vld [vmem:[#allocation4 + $0x14e] sm:$0xf]  ;;  %v10678_v63 = vpop.f32.mrb[114].mxu0 }
 0x539   :  { %5199 = vst.msk [vmem:[#allocation4 + $0x160] sm:$0xff] %vm1414_vm5, %v4907_v18  ;;  %v10681_v62 = vpop.f32.mrb[115].mxu0 }
 0x53a   :  { %v4376_v33 = vpop.f32.mrb[90].mxu1 }
 0x53b   :  { %v4912_v22 = vadd.f32 %v10341_v8, %v4376_v33  ;;  %v4378_v56 = vpop.f32.mrb[91].mxu1 }
 0x53c   :  { %v5473_v12 = vld [vmem:[#allocation4 + $0x152] sm:$0xff]  ;;  %v5474_v4 = vld [vmem:[#allocation4 + $0x15a] sm:$0xf] }
 0x53d   :  { %v5495_v55 = vmax.f32 %v5471_v29, %v5473_v12  ;;  %v5496_v26 = vmax.f32 %v5472_v11, %v5474_v4  ;;  %5200 = vst.msk [vmem:[#allocation4 + $0x168] sm:$0xff] %vm1414_vm5, %v4912_v22 }
 0x53e   :  { %v4381_v1 = vpop.f32.mrb[92].mxu1 }
 0x53f   :  { %v5497_v9 = vmax.f32 %v5493_v36, %v5495_v55  ;;  %v5498_v27 = vmax.f32 %v5494_v19, %v5496_v26  ;;  %v4917_v38 = vadd.f32 %v10366_v13, %v4381_v1  ;;  %v4383_v45 = vpop.f32.mrb[93].mxu1  ;;  %v10688_v1 = vpop.f32.mrb[116].mxu0 }
 0x540   :  { %v5503_v11 = vld [vmem:[#allocation4 + $0x15e] sm:$0xff] }
 0x541   :  { %v5499_v8 = vmax.f32 %v5497_v9, 0.0  ;;  %v5500_v57 = vmax.f32 %v5498_v27, 0.0  ;;  %5201 = vst.msk [vmem:[#allocation4 + $0x170] sm:$0xff] %vm1414_vm5, %v4917_v38  ;;  %v10691_v38 = vpop.f32.mrb[117].mxu0 }
 0x542   :  { %v4386_v30 = vpop.f32.mrb[94].mxu1 }
 0x543   :  { %5501 = vst.msk [vmem:[#allocation5 + $0x48] sm:$0xff] %vm1414_vm5, %v5499_v8  ;;  %v4922_v23 = vadd.f32 %v10363_v14, %v4386_v30  ;;  %v4388_v21 = vpop.f32.mrb[95].mxu1  ;;  %v5806_v14 = vld [vmem:[#allocation5 + $0x40] sm:$0xff] }
 0x544   :  { %5502 = vst.msk [vmem:[#allocation5 + $0x50] sm:$0xf] %vm5285_vm11, %v5500_v57  ;;  %v5504_v47 = vld [vmem:[#allocation4 + $0x166] sm:$0x1f] }
 0x545   :  { %5202 = vst.msk [vmem:[#allocation4 + $0x178] sm:$0xff] %vm1414_vm5, %v4922_v23  ;;  %v5514_v19 = vrot.slane %v5504_v47, 1 }
 0x546   :  { %v4391_v18 = vpop.f32.mrb[96].mxu1 }
 0x547   :  { %v4927_v13 = vadd.f32 %v10388_v3, %v4391_v18  ;;  %v4393_v40 = vpop.f32.mrb[97].mxu1  ;;  %v5513_v3 = vrot.slane %v5503_v11, 1  ;;  %v5519_v30 = vmax.f32 %v5504_v47, %v5514_v19 }
 0x548   :  { %v5505_v58 = vld [vmem:[#allocation4 + $0x16b] sm:$0xff]  ;;  %v5506_v33 = vld [vmem:[#allocation4 + $0x173] sm:$0x1f] }
 0x549   :  { %5203 = vst.msk [vmem:[#allocation4 + $0x180] sm:$0xff] %vm1414_vm5, %v4927_v13  ;;  %v5522_v25 = vrot.slane %v5505_v58, 1  ;;  %v5523_v29 = vrot.slane %v5506_v33, 1 }
 0x54a   :  { %v4396_v22 = vpop.f32.mrb[98].mxu1  ;;  %v5807_v56 = vld [vmem:[#allocation5 + $0x48] sm:$0xff] }
 0x54b   :  { %v4932_v12 = vadd.f32 %v10384_v50, %v4396_v22  ;;  %v4398_v4 = vpop.f32.mrb[99].mxu1  ;;  %v7303_v36 = vpack.c.bf16 %v5807_v56, %v5806_v14  ;;  %v5524_v55 = vsel %vm1591_vm6, %v5522_v25, %v5523_v29  ;;  %v5515_v50 = vsel %vm1591_vm6, %v5513_v3, %v5514_v19 }
 0x54c   :  { %v5527_v45 = vmax.f32 %v5505_v58, %v5524_v55  ;;  %v5528_v8 = vmax.f32 %v5506_v33, %v5523_v29  ;;  %v5518_v23 = vmax.f32 %v5503_v11, %v5515_v50  ;;  %v5507_v21 = vld [vmem:[#allocation4 + $0x178] sm:$0xff]  ;;  %v10697_v33 = vpop.f32.mrb[118].mxu0 }
 0x54d   :  { %5204 = vst.msk [vmem:[#allocation4 + $0x188] sm:$0xff] %vm1414_vm5, %v4932_v12  ;;  %7304 = vmatpush1.bf16.msra.mxu0 %v7303_v36  ;;  %v10700_v36 = vpop.f32.mrb[119].mxu0 }
 0x54e   :  { %v4401_v26 = vpop.f32.mrb[100].mxu1  ;;  %7305 = vmatprep.subr.bf16.mxu0 %v7525_v0  ;;  %v5530_v14 = vmax.f32 %v5519_v30, %v5528_v8 }
 0x54f   :  { %v4937_v9 = vadd.f32 %v10409_v48, %v4401_v26  ;;  %v4403_v27 = vpop.f32.mrb[101].mxu1  ;;  %v5529_v48 = vmax.f32 %v5518_v23, %v5527_v45 }
 0x550   :  { %v5508_v40 = vld [vmem:[#allocation4 + $0x180] sm:$0xf]  ;;  %v10707_v27 = vpop.f32.mrb[120].mxu0 }
 0x551   :  { %5205 = vst.msk [vmem:[#allocation4 + $0x190] sm:$0xff] %vm1414_vm5, %v4937_v9  ;;  %v10710_v45 = vpop.f32.mrb[121].mxu0 }
 0x552   :  { %v4406_v57 = vpop.f32.mrb[102].mxu1 }
 0x553   :  { %v4942_v18 = vadd.f32 %v10406_v17, %v4406_v57  ;;  %v4408_v13 = vpop.f32.mrb[103].mxu1 }
 0x554   :  { %v5509_v25 = vld [vmem:[#allocation4 + $0x184] sm:$0xff]  ;;  %v5510_v22 = vld [vmem:[#allocation4 + $0x18c] sm:$0xf] }
 0x555   :  { %v5531_v56 = vmax.f32 %v5507_v21, %v5509_v25  ;;  %v5532_v12 = vmax.f32 %v5508_v40, %v5510_v22  ;;  %5206 = vst.msk [vmem:[#allocation4 + $0x198] sm:$0xff] %vm1414_vm5, %v4942_v18 }
 0x556   :  { %v4411_v58 = vpop.f32.mrb[104].mxu1 }
 0x557   :  { %v5533_v29 = vmax.f32 %v5529_v48, %v5531_v56  ;;  %v5534_v4 = vmax.f32 %v5530_v14, %v5532_v12  ;;  %v4947_v47 = vadd.f32 %v10434_v61, %v4411_v58  ;;  %v4413_v11 = vpop.f32.mrb[105].mxu1  ;;  %v10716_v12 = vpop.f32.mrb[122].mxu0 }
 0x558   :  { %v5539_v18 = vld [vmem:[#allocation4 + $0x190] sm:$0xff] }
 0x559   :  { %v5535_v17 = vmax.f32 %v5533_v29, 0.0  ;;  %v5536_v19 = vmax.f32 %v5534_v4, 0.0  ;;  %5207 = vst.msk [vmem:[#allocation4 + $0x1a0] sm:$0xff] %vm1414_vm5, %v4947_v47  ;;  %v10720_v4 = vpop.f32.mrb[123].mxu0 }
 0x55a   :  { %v4416_v3 = vpop.f32.mrb[106].mxu1 }
 0x55b   :  { %5537 = vst.msk [vmem:[#allocation5 + $0x54] sm:$0xff] %vm1414_vm5, %v5535_v17  ;;  %v4952_v55 = vadd.f32 %v10428_v60, %v4416_v3  ;;  %v4418_v26 = vpop.f32.mrb[107].mxu1 }
 0x55c   :  { %5538 = vst.msk [vmem:[#allocation5 + $0x5c] sm:$0xf] %vm5285_vm11, %v5536_v19  ;;  %v5540_v8 = vld [vmem:[#allocation4 + $0x198] sm:$0x1f] }
 0x55d   :  { %5208 = vst.msk [vmem:[#allocation4 + $0x1a8] sm:$0xff] %vm1414_vm5, %v4952_v55  ;;  %v5550_v25 = vrot.slane %v5540_v8, 1 }
 0x55e   :  { %v4421_v9 = vpop.f32.mrb[108].mxu1 }
 0x55f   :  { %v4957_v61 = vadd.f32 %v10453_v41, %v4421_v9  ;;  %v4423_v50 = vpop.f32.mrb[109].mxu1  ;;  %v5549_v41 = vrot.slane %v5539_v18, 1 }
 0x560   :  { %v5541_v57 = vld [vmem:[#allocation4 + $0x19d] sm:$0xff] }
 0x561   :  { %5209 = vst.msk [vmem:[#allocation4 + $0x1b0] sm:$0xff] %vm1414_vm5, %v4957_v61  ;;  %v5558_v48 = vrot.slane %v5541_v57, 1  ;;  %v5551_v47 = vsel %vm1591_vm6, %v5549_v41, %v5550_v25 }
 0x562   :  { %v4426_v30 = vpop.f32.mrb[110].mxu1  ;;  %v5808_v23 = vld [vmem:[#allocation5 + $0x50] sm:$0xff]  ;;  %v5554_v19 = vmax.f32 %v5539_v18, %v5551_v47 }
 0x563   :  { %v5809_v21 = vld [vmem:[#allocation5 + $0x58] sm:$0xff]  ;;  %v4962_v60 = vadd.f32 %v10448_v31, %v4426_v30  ;;  %v4428_v13 = vpop.f32.mrb[111].mxu1 }
 0x564   :  { %v7306_v40 = vpack.c.bf16 %v5809_v21, %v5808_v23  ;;  %v5542_v22 = vld [vmem:[#allocation4 + $0x1a5] sm:$0x1f]  ;;  %v5555_v21 = vmax.f32 %v5540_v8, %v5550_v25 }
 0x565   :  { %v5559_v14 = vrot.slane %v5542_v22, 1  ;;  %5210 = vst.msk [vmem:[#allocation4 + $0x1b8] sm:$0xff] %vm1414_vm5, %v4962_v60 }
 0x566   :  { %7307 = vmatpush1.bf16.msra.mxu0 %v7306_v40  ;;  %v4431_v56 = vpop.f32.mrb[112].mxu1 }
 0x567   :  { %7308 = vmatprep.subr.bf16.mxu0 %v7525_v0  ;;  %v5560_v58 = vsel %vm1591_vm6, %v5558_v48, %v5559_v14  ;;  %v4967_v29 = vadd.f32 %v10473_v53, %v4431_v56  ;;  %v4433_v31 = vpop.f32.mrb[113].mxu1  ;;  %v5564_v61 = vmax.f32 %v5542_v22, %v5559_v14 }
 0x568   :  { %v5563_v11 = vmax.f32 %v5541_v57, %v5560_v58  ;;  %v5543_v26 = vld [vmem:[#allocation4 + $0x1aa] sm:$0xff]  ;;  %v5544_v18 = vld [vmem:[#allocation4 + $0x1b2] sm:$0xf] }
 0x569   :  { %5211 = vst.msk [vmem:[#allocation4 + $0x1c0] sm:$0xff] %vm1414_vm5, %v4967_v29  ;;  %v5566_v48 = vmax.f32 %v5555_v21, %v5564_v61 }
 0x56a   :  { %v4436_v17 = vpop.f32.mrb[114].mxu1  ;;  %v5565_v50 = vmax.f32 %v5554_v19, %v5563_v11 }
 0x56b   :  { %v4972_v3 = vadd.f32 %v10470_v20, %v4436_v17  ;;  %v4438_v55 = vpop.f32.mrb[115].mxu1 }
 0x56c   :  { %v5545_v9 = vld [vmem:[#allocation4 + $0x1b6] sm:$0xff]  ;;  %v10726_v23 = vpop.f32.mrb[124].mxu0 }
 0x56d   :  { %v5567_v30 = vmax.f32 %v5543_v26, %v5545_v9  ;;  %5212 = vst.msk [vmem:[#allocation4 + $0x1c8] sm:$0xff] %vm1414_vm5, %v4972_v3  ;;  %v10729_v40 = vpop.f32.mrb[125].mxu0 }
 0x56e   :  { %v4441_v53 = vpop.f32.mrb[116].mxu1 }
 0x56f   :  { %v5569_v60 = vmax.f32 %v5565_v50, %v5567_v30  ;;  %v4977_v57 = vadd.f32 %v10499_v10, %v4441_v53  ;;  %v4443_v13 = vpop.f32.mrb[117].mxu1 }
 0x570   :  { %v5546_v20 = vld [vmem:[#allocation4 + $0x1be] sm:$0xf] }
 0x571   :  { %v5571_v41 = vmax.f32 %v5569_v60, 0.0  ;;  %v5568_v56 = vmax.f32 %v5544_v18, %v5546_v20  ;;  %5213 = vst.msk [vmem:[#allocation4 + $0x1d0] sm:$0xff] %vm1414_vm5, %v4977_v57 }
 0x572   :  { %v4446_v22 = vpop.f32.mrb[118].mxu1 }
 0x573   :  { %5573 = vst.msk [vmem:[#allocation5 + $0x60] sm:$0xff] %vm1414_vm5, %v5571_v41  ;;  %v5570_v14 = vmax.f32 %v5566_v48, %v5568_v56  ;;  %v4982_v58 = vadd.f32 %v10493_v43, %v4446_v22  ;;  %v4448_v8 = vpop.f32.mrb[119].mxu1 }
 0x574   :  { %v10735_v29 = vpop.f32.mrb[126].mxu0  ;;  %v5575_v17 = vld [vmem:[#allocation4 + $0x1c2] sm:$0xff]  ;;  %v5576_v19 = vld [vmem:[#allocation4 + $0x1ca] sm:$0x1f] }
 0x575   :  { %v5572_v25 = vmax.f32 %v5570_v14, 0.0  ;;  %5214 = vst.msk [vmem:[#allocation4 + $0x1d8] sm:$0xff] %vm1414_vm5, %v4982_v58  ;;  %v10739_v11 = vpop.f32.mrb[127].mxu0  ;;  %v5585_v9 = vrot.slane %v5575_v17, 1  ;;  %v5586_v61 = vrot.slane %v5576_v19, 1 }
 0x576   :  { %v4451_v10 = vpop.f32.mrb[120].mxu1 }
 0x577   :  { %5574 = vst.msk [vmem:[#allocation5 + $0x68] sm:$0xf] %vm5285_vm11, %v5572_v25  ;;  %v4987_v31 = vadd.f32 %v10518_v51, %v4451_v10  ;;  %v4453_v47 = vpop.f32.mrb[121].mxu1  ;;  %v5587_v13 = vsel %vm1591_vm6, %v5585_v9, %v5586_v61 }
 0x578   :  { %v5577_v3 = vld [vmem:[#allocation4 + $0x1cf] sm:$0xff]  ;;  %v5590_v20 = vmax.f32 %v5575_v17, %v5587_v13 }
 0x579   :  { %5215 = vst.msk [vmem:[#allocation4 + $0x1e0] sm:$0xff] %vm1414_vm5, %v4987_v31  ;;  %v5594_v30 = vrot.slane %v5577_v3, 1 }
 0x57a   :  { %v4456_v43 = vpop.f32.mrb[122].mxu1 }
 0x57b   :  { %v4992_v55 = vadd.f32 %v10513_v39, %v4456_v43  ;;  %v4458_v26 = vpop.f32.mrb[123].mxu1 }
 0x57c   :  { %v5578_v50 = vld [vmem:[#allocation4 + $0x1d7] sm:$0x1f] }
 0x57d   :  { %v5595_v53 = vrot.slane %v5578_v50, 1  ;;  %5216 = vst.msk [vmem:[#allocation4 + $0x1e8] sm:$0xff] %vm1414_vm5, %v4992_v55 }
 0x57e   :  { %v4461_v51 = vpop.f32.mrb[124].mxu1 }
 0x57f   :  { %v5596_v21 = vsel %vm1591_vm6, %v5594_v30, %v5595_v53  ;;  %v4997_v60 = vadd.f32 %v10538_v59, %v4461_v51  ;;  %v4463_v57 = vpop.f32.mrb[125].mxu1  ;;  %v5600_v14 = vmax.f32 %v5578_v50, %v5595_v53  ;;  %v5591_v59 = vmax.f32 %v5576_v19, %v5586_v61 }
 0x580   :  { %v5599_v18 = vmax.f32 %v5577_v3, %v5596_v21  ;;  %v5579_v56 = vld [vmem:[#allocation4 + $0x1dc] sm:$0xff]  ;;  %v5580_v3 = vld [vmem:[#allocation4 + $0x1e4] sm:$0xf]  ;;  %v5810_v21 = vld [vmem:[#allocation5 + $0x60] sm:$0xff] }
 0x581   :  { %5217 = vst.msk [vmem:[#allocation4 + $0x1f0] sm:$0xff] %vm1414_vm5, %v4997_v60  ;;  %v5602_v55 = vmax.f32 %v5591_v59, %v5600_v14 }
 0x582   :  { %v4466_v39 = vpop.f32.mrb[126].mxu1  ;;  %v5601_v58 = vmax.f32 %v5590_v20, %v5599_v18 }
 0x583   :  { %v5002_v48 = vadd.f32 %v10535_v35, %v4466_v39  ;;  %v4468_v41 = vpop.f32.mrb[127].mxu1 }
 0x584   :  { %v5581_v22 = vld [vmem:[#allocation4 + $0x1e8] sm:$0xff] }
 0x585   :  { %v5603_v8 = vmax.f32 %v5579_v56, %v5581_v22  ;;  %5218 = vst.msk [vmem:[#allocation4 + $0x1f8] sm:$0xff] %vm1414_vm5, %v5002_v48 }
 0x586   :  { %v4471_v25 = vpop.f32.mrb[128].mxu1 }
 0x587   :  { %v5605_v10 = vmax.f32 %v5601_v58, %v5603_v8  ;;  %v5007_v31 = vadd.f32 %v10561_v52, %v4471_v25  ;;  %v4473_v47 = vpop.f32.mrb[129].mxu1 }
 0x588   :  { %v5582_v43 = vld [vmem:[#allocation4 + $0x1f0] sm:$0xf] }
 0x589   :  { %v5607_v17 = vmax.f32 %v5605_v10, 0.0  ;;  %v5604_v26 = vmax.f32 %v5580_v3, %v5582_v43  ;;  %5219 = vst.msk [vmem:[#allocation4 + $0x200] sm:$0xff] %vm1414_vm5, %v5007_v31 }
 0x58a   :  { %v4476_v35 = vpop.f32.mrb[130].mxu1 }
 0x58b   :  { %5609 = vst.msk [vmem:[#allocation5 + $0x6c] sm:$0xff] %vm1414_vm5, %v5607_v17  ;;  %v5606_v9 = vmax.f32 %v5602_v55, %v5604_v26  ;;  %v5012_v50 = vadd.f32 %v10558_v2, %v4476_v35  ;;  %v4478_v30 = vpop.f32.mrb[131].mxu1 }
 0x58d   :  { %v5608_v53 = vmax.f32 %v5606_v9, 0.0  ;;  %5220 = vst.msk [vmem:[#allocation4 + $0x208] sm:$0xff] %vm1414_vm5, %v5012_v50 }
 0x58e   :  { %v4481_v19 = vpop.f32.mrb[132].mxu1 }
 0x58f   :  { %5610 = vst.msk [vmem:[#allocation5 + $0x74] sm:$0xf] %vm5285_vm11, %v5608_v53  ;;  %v5017_v52 = vadd.f32 %v10582_v28, %v4481_v19  ;;  %v4483_v61 = vpop.f32.mrb[133].mxu1  ;;  %v5611_v28 = vld [vmem:[#allocation4 + $0x1f4] sm:$0xff] }
 0x590   :  { %v5612_v20 = vld [vmem:[#allocation4 + $0x1fc] sm:$0x1f]  ;;  %v5621_v8 = vrot.slane %v5611_v28, 1 }
 0x591   :  { %5221 = vst.msk [vmem:[#allocation4 + $0x210] sm:$0xff] %vm1414_vm5, %v5017_v52  ;;  %v5622_v58 = vrot.slane %v5612_v20, 1 }
 0x592   :  { %v4486_v51 = vpop.f32.mrb[134].mxu1  ;;  %v5811_v60 = vld [vmem:[#allocation5 + $0x68] sm:$0xff] }
 0x593   :  { %v5022_v57 = vadd.f32 %v10578_v37, %v4486_v51  ;;  %v4488_v13 = vpop.f32.mrb[135].mxu1  ;;  %v7309_v18 = vpack.c.bf16 %v5811_v60, %v5810_v21  ;;  %v5793_v37 = vld [vmem:[%s10876_s3 + $0x8] sm:$0xff]  ;;  %v5627_v55 = vmax.f32 %v5612_v20, %v5622_v58 }
 0x594   :  { %v5613_v2 = vld [vmem:[#allocation4 + $0x201] sm:$0xff]  ;;  %v5614_v39 = vld [vmem:[#allocation4 + $0x209] sm:$0x1f]  ;;  %6266 = vmatprep.mubr.msk.f32.mxu0 %vm5821_vm12, %v5793_v37 }
 0x595   :  { %5222 = vst.msk [vmem:[#allocation4 + $0x218] sm:$0xff] %vm1414_vm5, %v5022_v57  ;;  %7310 = vmatpush1.bf16.msra.mxu0 %v7309_v18  ;;  %v5630_v48 = vrot.slane %v5613_v2, 1  ;;  %v5631_v41 = vrot.slane %v5614_v39, 1 }
 0x596   :  { %v4491_v56 = vpop.f32.mrb[136].mxu1  ;;  %7311 = vmatprep.subr.bf16.mxu0 %v7525_v0 }
 0x597   :  { %v5027_v22 = vadd.f32 %v10603_v49, %v4491_v56  ;;  %v4493_v14 = vpop.f32.mrb[137].mxu1  ;;  %v5632_v25 = vsel %vm1591_vm6, %v5630_v48, %v5631_v41  ;;  %v5623_v49 = vsel %vm1591_vm6, %v5621_v8, %v5622_v58  ;;  %v5636_v3 = vmax.f32 %v5614_v39, %v5631_v41  ;;  %v5812_v8 = vld [vmem:[#allocation5 + $0x70] sm:$0xff] }
 0x598   :  { %v5635_v47 = vmax.f32 %v5613_v2, %v5632_v25  ;;  %v5626_v17 = vmax.f32 %v5611_v28, %v5623_v49  ;;  %v5615_v26 = vld [vmem:[#allocation4 + $0x20e] sm:$0xff] }
 0x599   :  { %5223 = vst.msk [vmem:[#allocation4 + $0x220] sm:$0xff] %vm1414_vm5, %v5027_v22  ;;  %v5638_v52 = vmax.f32 %v5627_v55, %v5636_v3 }
 0x59a   :  { %v4496_v59 = vpop.f32.mrb[138].mxu1  ;;  %v5637_v19 = vmax.f32 %v5626_v17, %v5635_v47 }
 0x59b   :  { %v5032_v10 = vadd.f32 %v10600_v42, %v4496_v59  ;;  %v4498_v31 = vpop.f32.mrb[139].mxu1 }
 0x59c   :  { %v5616_v50 = vld [vmem:[#allocation4 + $0x216] sm:$0xf] }
 0x59d   :  { %5224 = vst.msk [vmem:[#allocation4 + $0x228] sm:$0xff] %vm1414_vm5, %v5032_v10 }
 0x59e   :  { %v4501_v43 = vpop.f32.mrb[140].mxu1 }
 0x59f   :  { %v5037_v35 = vadd.f32 %v10625_v5, %v4501_v43  ;;  %v4503_v9 = vpop.f32.mrb[141].mxu1 }
 0x5a0   :  { %v5617_v30 = vld [vmem:[#allocation4 + $0x21a] sm:$0xff]  ;;  %v5618_v53 = vld [vmem:[#allocation4 + $0x222] sm:$0xf] }
 0x5a1   :  { %v5639_v42 = vmax.f32 %v5615_v26, %v5617_v30  ;;  %v5640_v61 = vmax.f32 %v5616_v50, %v5618_v53  ;;  %5225 = vst.msk [vmem:[#allocation4 + $0x230] sm:$0xff] %vm1414_vm5, %v5037_v35 }
 0x5a2   :  { %v4506_v51 = vpop.f32.mrb[142].mxu1 }
 0x5a3   :  { %v5641_v21 = vmax.f32 %v5637_v19, %v5639_v42  ;;  %v5642_v60 = vmax.f32 %v5638_v52, %v5640_v61  ;;  %v5042_v57 = vadd.f32 %v10622_v44, %v4506_v51  ;;  %v4508_v13 = vpop.f32.mrb[143].mxu1 }
 0x5a4   :  { %v5647_v59 = vld [vmem:[#allocation4 + $0x226] sm:$0xff] }
 0x5a5   :  { %v5643_v18 = vmax.f32 %v5641_v21, 0.0  ;;  %v5644_v2 = vmax.f32 %v5642_v60, 0.0  ;;  %5226 = vst.msk [vmem:[#allocation4 + $0x238] sm:$0xff] %vm1414_vm5, %v5042_v57 }
 0x5a6   :  { %v4511_v5 = vpop.f32.mrb[144].mxu1 }
 0x5a7   :  { %5645 = vst.msk [vmem:[#allocation5 + $0x78] sm:$0xff] %vm1414_vm5, %v5643_v18  ;;  %v5047_v39 = vadd.f32 %v10643_v34, %v4511_v5  ;;  %v4513_v20 = vpop.f32.mrb[145].mxu1 }
 0x5a8   :  { %5646 = vst.msk [vmem:[#allocation5 + $0x80] sm:$0xf] %vm5285_vm11, %v5644_v2  ;;  %v5648_v22 = vld [vmem:[#allocation4 + $0x22e] sm:$0x1f] }
 0x5a9   :  { %5227 = vst.msk [vmem:[#allocation4 + $0x240] sm:$0xff] %vm1414_vm5, %v5047_v39  ;;  %v5658_v49 = vrot.slane %v5648_v22, 1 }
 0x5aa   :  { %v4516_v48 = vpop.f32.mrb[146].mxu1 }
 0x5ab   :  { %v5052_v41 = vadd.f32 %v10639_v54, %v4516_v48  ;;  %v4518_v56 = vpop.f32.mrb[147].mxu1  ;;  %v5657_v54 = vrot.slane %v5647_v59, 1  ;;  %v5663_v9 = vmax.f32 %v5648_v22, %v5658_v49 }
 0x5ac   :  { %v5649_v44 = vld [vmem:[#allocation4 + $0x233] sm:$0xff]  ;;  %v5650_v28 = vld [vmem:[#allocation4 + $0x23b] sm:$0x1f] }
 0x5ad   :  { %5228 = vst.msk [vmem:[#allocation4 + $0x248] sm:$0xff] %vm1414_vm5, %v5052_v41  ;;  %v5666_v14 = vrot.slane %v5649_v44, 1  ;;  %v5667_v58 = vrot.slane %v5650_v28, 1  ;;  %v5659_v17 = vsel %vm1591_vm6, %v5657_v54, %v5658_v49 }
 0x5ae   :  { %v4521_v37 = vpop.f32.mrb[148].mxu1  ;;  %v5813_v25 = vld [vmem:[#allocation5 + $0x78] sm:$0xff]  ;;  %v5662_v50 = vmax.f32 %v5647_v59, %v5659_v17 }
 0x5af   :  { %v5057_v34 = vadd.f32 %v10652_v46, %v4521_v37  ;;  %v4523_v10 = vpop.f32.mrb[149].mxu1  ;;  %v7312_v31 = vpack.c.bf16 %v5813_v25, %v5812_v8  ;;  %v5668_v47 = vsel %vm1591_vm6, %v5666_v14, %v5667_v58  ;;  %v5672_v35 = vmax.f32 %v5650_v28, %v5667_v58 }
 0x5b0   :  { %v5671_v26 = vmax.f32 %v5649_v44, %v5668_v47  ;;  %v5651_v30 = vld [vmem:[#allocation4 + $0x240] sm:$0xff] }
 0x5b1   :  { %5229 = vst.msk [vmem:[#allocation4 + $0x250] sm:$0xff] %vm1414_vm5, %v5057_v34  ;;  %7313 = vmatpush1.bf16.msra.mxu0 %v7312_v31  ;;  %v5674_v21 = vmax.f32 %v5663_v9, %v5672_v35 }
 0x5b2   :  { %v4526_v3 = vpop.f32.mrb[150].mxu1  ;;  %7314 = vmatprep.subr.bf16.mxu0 %v7525_v0  ;;  %v5673_v51 = vmax.f32 %v5662_v50, %v5671_v26 }
 0x5b3   :  { %v5062_v43 = vadd.f32 %v10649_v24, %v4526_v3  ;;  %v4528_v55 = vpop.f32.mrb[151].mxu1 }
 0x5b4   :  { %v5652_v52 = vld [vmem:[#allocation4 + $0x248] sm:$0xf] }
 0x5b5   :  { %5230 = vst.msk [vmem:[#allocation4 + $0x258] sm:$0xff] %vm1414_vm5, %v5062_v43 }
 0x5b6   :  { %v4531_v46 = vpop.f32.mrb[152].mxu1 }
 0x5b7   :  { %v5067_v53 = vadd.f32 %v10662_v7, %v4531_v46  ;;  %v4533_v19 = vpop.f32.mrb[153].mxu1 }
 0x5b8   :  { %v5653_v42 = vld [vmem:[#allocation4 + $0x24c] sm:$0xff]  ;;  %v5654_v61 = vld [vmem:[#allocation4 + $0x254] sm:$0xf] }
 0x5b9   :  { %v5675_v24 = vmax.f32 %v5651_v30, %v5653_v42  ;;  %v5676_v60 = vmax.f32 %v5652_v52, %v5654_v61  ;;  %5231 = vst.msk [vmem:[#allocation4 + $0x260] sm:$0xff] %vm1414_vm5, %v5067_v53 }
 0x5ba   :  { %v4536_v57 = vpop.f32.mrb[154].mxu1 }
 0x5bb   :  { %v5677_v13 = vmax.f32 %v5673_v51, %v5675_v24  ;;  %v5678_v18 = vmax.f32 %v5674_v21, %v5676_v60  ;;  %v5072_v2 = vadd.f32 %v10659_v15, %v4536_v57  ;;  %v4538_v5 = vpop.f32.mrb[155].mxu1 }
 0x5bc   :  { %v5683_v8 = vld [vmem:[#allocation4 + $0x258] sm:$0xff] }
 0x5bd   :  { %v5679_v39 = vmax.f32 %v5677_v13, 0.0  ;;  %v5680_v20 = vmax.f32 %v5678_v18, 0.0  ;;  %5232 = vst.msk [vmem:[#allocation4 + $0x268] sm:$0xff] %vm1414_vm5, %v5072_v2 }
 0x5be   :  { %v4541_v7 = vpop.f32.mrb[156].mxu1 }
 0x5bf   :  { %5681 = vst.msk [vmem:[#allocation5 + $0x84] sm:$0xff] %vm1414_vm5, %v5679_v39  ;;  %v5077_v48 = vadd.f32 %v10671_v32, %v4541_v7  ;;  %v4543_v41 = vpop.f32.mrb[157].mxu1 }
 0x5c0   :  { %5682 = vst.msk [vmem:[#allocation5 + $0x8c] sm:$0xf] %vm5285_vm11, %v5680_v20  ;;  %v5684_v15 = vld [vmem:[#allocation4 + $0x260] sm:$0x1f] }
 0x5c1   :  { %5233 = vst.msk [vmem:[#allocation4 + $0x270] sm:$0xff] %vm1414_vm5, %v5077_v48  ;;  %v5694_v32 = vrot.slane %v5684_v15, 1 }
 0x5c2   :  { %v4546_v56 = vpop.f32.mrb[158].mxu1 }
 0x5c3   :  { %v5082_v44 = vadd.f32 %v10668_v16, %v4546_v56  ;;  %v4548_v28 = vpop.f32.mrb[159].mxu1  ;;  %v5693_v16 = vrot.slane %v5683_v8, 1 }
 0x5c4   :  { %v5685_v22 = vld [vmem:[#allocation4 + $0x265] sm:$0xff] }
 0x5c5   :  { %5234 = vst.msk [vmem:[#allocation4 + $0x278] sm:$0xff] %vm1414_vm5, %v5082_v44  ;;  %v5702_v31 = vrot.slane %v5685_v22, 1 }
 0x5c6   :  { %v4551_v14 = vpop.f32.mrb[160].mxu1  ;;  %v5814_v58 = vld [vmem:[#allocation5 + $0x80] sm:$0xff] }
 0x5c7   :  { %v5815_v37 = vld [vmem:[#allocation5 + $0x88] sm:$0xff]  ;;  %v5087_v25 = vadd.f32 %v10681_v62, %v4551_v14  ;;  %v4553_v59 = vpop.f32.mrb[161].mxu1  ;;  %v5695_v62 = vsel %vm1591_vm6, %v5693_v16, %v5694_v32 }
 0x5c8   :  { %v7315_v34 = vpack.c.bf16 %v5815_v37, %v5814_v58  ;;  %v5686_v10 = vld [vmem:[#allocation4 + $0x26d] sm:$0x1f]  ;;  %v5698_v26 = vmax.f32 %v5683_v8, %v5695_v62 }
 0x5c9   :  { %v5703_v49 = vrot.slane %v5686_v10, 1  ;;  %5235 = vst.msk [vmem:[#allocation4 + $0x280] sm:$0xff] %vm1414_vm5, %v5087_v25 }
 0x5ca   :  { %7316 = vmatpush1.bf16.msra.mxu0 %v7315_v34  ;;  %v4556_v54 = vpop.f32.mrb[162].mxu1 }
 0x5cb   :  { %7317 = vmatprep.subr.bf16.mxu0 %v7525_v0  ;;  %v5704_v47 = vsel %vm1591_vm6, %v5702_v31, %v5703_v49  ;;  %v5092_v3 = vadd.f32 %v10678_v63, %v4556_v54  ;;  %v4558_v43 = vpop.f32.mrb[163].mxu1  ;;  %v5708_v30 = vmax.f32 %v5686_v10, %v5703_v49  ;;  %v5699_v63 = vmax.f32 %v5684_v15, %v5694_v32 }
 0x5cc   :  { %v5707_v55 = vmax.f32 %v5685_v22, %v5704_v47  ;;  %v5687_v9 = vld [vmem:[#allocation4 + $0x272] sm:$0xff]  ;;  %v5688_v21 = vld [vmem:[#allocation4 + $0x27a] sm:$0xf] }
 0x5cd   :  { %5236 = vst.msk [vmem:[#allocation4 + $0x288] sm:$0xff] %vm1414_vm5, %v5092_v3  ;;  %v5710_v60 = vmax.f32 %v5699_v63, %v5708_v30 }
 0x5ce   :  { %v4561_v17 = vpop.f32.mrb[164].mxu1  ;;  %v5709_v53 = vmax.f32 %v5698_v26, %v5707_v55 }
 0x5cf   :  { %v5097_v35 = vadd.f32 %v10691_v38, %v4561_v17  ;;  %v4563_v46 = vpop.f32.mrb[165].mxu1 }
 0x5d0   :  { %v5689_v50 = vld [vmem:[#allocation4 + $0x27e] sm:$0xff] }
 0x5d1   :  { %v5711_v19 = vmax.f32 %v5687_v9, %v5689_v50  ;;  %5237 = vst.msk [vmem:[#allocation4 + $0x290] sm:$0xff] %vm1414_vm5, %v5097_v35 }
 0x5d2   :  { %v4566_v52 = vpop.f32.mrb[166].mxu1 }
 0x5d3   :  { %v5713_v42 = vmax.f32 %v5709_v53, %v5711_v19  ;;  %v5102_v61 = vadd.f32 %v10688_v1, %v4566_v52  ;;  %v4568_v51 = vpop.f32.mrb[167].mxu1 }
 0x5d4   :  { %v5690_v24 = vld [vmem:[#allocation4 + $0x286] sm:$0xf] }
 0x5d5   :  { %v5715_v57 = vmax.f32 %v5713_v42, 0.0  ;;  %v5712_v13 = vmax.f32 %v5688_v21, %v5690_v24  ;;  %5238 = vst.msk [vmem:[#allocation4 + $0x298] sm:$0xff] %vm1414_vm5, %v5102_v61 }
 0x5d6   :  { %v4571_v38 = vpop.f32.mrb[168].mxu1 }
 0x5d7   :  { %5717 = vst.msk [vmem:[#allocation5 + $0x90] sm:$0xff] %vm1414_vm5, %v5715_v57  ;;  %v5714_v18 = vmax.f32 %v5710_v60, %v5712_v13  ;;  %v5107_v2 = vadd.f32 %v10700_v36, %v4571_v38  ;;  %v4573_v5 = vpop.f32.mrb[169].mxu1 }
 0x5d8   :  { %v5719_v48 = vld [vmem:[#allocation4 + $0x28a] sm:$0xff]  ;;  %v5720_v41 = vld [vmem:[#allocation4 + $0x292] sm:$0x1f] }
 0x5d9   :  { %v5716_v39 = vmax.f32 %v5714_v18, 0.0  ;;  %5239 = vst.msk [vmem:[#allocation4 + $0x2a0] sm:$0xff] %vm1414_vm5, %v5107_v2  ;;  %v5729_v36 = vrot.slane %v5719_v48, 1  ;;  %v5730_v22 = vrot.slane %v5720_v41, 1 }
 0x5da   :  { %v4576_v20 = vpop.f32.mrb[170].mxu1 }
 0x5db   :  { %5718 = vst.msk [vmem:[#allocation5 + $0x98] sm:$0xf] %vm5285_vm11, %v5716_v39  ;;  %v5112_v1 = vadd.f32 %v10697_v33, %v4576_v20  ;;  %v4578_v7 = vpop.f32.mrb[171].mxu1  ;;  %v5731_v34 = vsel %vm1591_vm6, %v5729_v36, %v5730_v22 }
 0x5dc   :  { %v5721_v56 = vld [vmem:[#allocation4 + $0x297] sm:$0xff]  ;;  %v5734_v10 = vmax.f32 %v5719_v48, %v5731_v34 }
 0x5dd   :  { %5240 = vst.msk [vmem:[#allocation4 + $0x2a8] sm:$0xff] %vm1414_vm5, %v5112_v1  ;;  %v5738_v58 = vrot.slane %v5721_v56, 1 }
 0x5de   :  { %v4581_v44 = vpop.f32.mrb[172].mxu1  ;;  %v5816_v21 = vld [vmem:[#allocation5 + $0x90] sm:$0xff] }
 0x5df   :  { %v5117_v28 = vadd.f32 %v10710_v45, %v4581_v44  ;;  %v4583_v15 = vpop.f32.mrb[173].mxu1 }
 0x5e0   :  { %v5722_v14 = vld [vmem:[#allocation4 + $0x29f] sm:$0x1f] }
 0x5e1   :  { %v5739_v37 = vrot.slane %v5722_v14, 1  ;;  %5241 = vst.msk [vmem:[#allocation4 + $0x2b0] sm:$0xff] %vm1414_vm5, %v5117_v28 }
 0x5e2   :  { %v4586_v8 = vpop.f32.mrb[174].mxu1 }
 0x5e3   :  { %v5740_v33 = vsel %vm1591_vm6, %v5738_v58, %v5739_v37  ;;  %v5122_v25 = vadd.f32 %v10707_v27, %v4586_v8  ;;  %v4588_v59 = vpop.f32.mrb[175].mxu1  ;;  %v5744_v47 = vmax.f32 %v5722_v14, %v5739_v37  ;;  %v5735_v27 = vmax.f32 %v5720_v41, %v5730_v22 }
 0x5e4   :  { %v5743_v32 = vmax.f32 %v5721_v56, %v5740_v33  ;;  %v5723_v16 = vld [vmem:[#allocation4 + $0x2a4] sm:$0xff]  ;;  %v5724_v35 = vld [vmem:[#allocation4 + $0x2ac] sm:$0xf] }
 0x5e5   :  { %5242 = vst.msk [vmem:[#allocation4 + $0x2b8] sm:$0xff] %vm1414_vm5, %v5122_v25  ;;  %v5746_v9 = vmax.f32 %v5735_v27, %v5744_v47  ;;  %v5794_v47 = vld [vmem:[%s10876_s3 + $0x10] sm:$0xff] }
 0x5e6   :  { %v4591_v45 = vpop.f32.mrb[176].mxu1  ;;  %v5745_v3 = vmax.f32 %v5734_v10, %v5743_v32 }
 0x5e7   :  { %v5127_v31 = vadd.f32 %v10720_v4, %v4591_v45  ;;  %v4593_v49 = vpop.f32.mrb[177].mxu1 }
 0x5e8   :  { %v5725_v54 = vld [vmem:[#allocation4 + $0x2b0] sm:$0xff] }
 0x5e9   :  { %v5747_v43 = vmax.f32 %v5723_v16, %v5725_v54  ;;  %5243 = vst.msk [vmem:[#allocation4 + $0x2c0] sm:$0xff] %vm1414_vm5, %v5127_v31  ;;  %v5792_v49 = vld [vmem:[%s10876_s3] sm:$0xff]  ;;  %v5795_v54 = vld [vmem:[%s10876_s3 + $0x18] sm:$0xff] }
 0x5ea   :  { %v4596_v62 = vpop.f32.mrb[178].mxu1 }
 0x5eb   :  { %v5749_v55 = vmax.f32 %v5745_v3, %v5747_v43  ;;  %v5132_v17 = vadd.f32 %v10716_v12, %v4596_v62  ;;  %v4598_v26 = vpop.f32.mrb[179].mxu1  ;;  %v5797_v3 = vld [vmem:[%s10876_s3 + $0x28] sm:$0xff]  ;;  %v5796_v43 = vld [vmem:[%s10876_s3 + $0x20] sm:$0xff] }
 0x5ec   :  { %v5726_v46 = vld [vmem:[#allocation4 + $0x2b8] sm:$0xf]  ;;  %v5919_v62 = vld [vmem:[%s10877_s5] sm:$0xff] }
 0x5ed   :  { %v5751_v50 = vmax.f32 %v5749_v55, 0.0  ;;  %v5748_v30 = vmax.f32 %v5724_v35, %v5726_v46  ;;  %5244 = vst.msk [vmem:[#allocation4 + $0x2c8] sm:$0xff] %vm1414_vm5, %v5132_v17 }
 0x5ee   :  { %v4601_v4 = vpop.f32.mrb[180].mxu1 }
 0x5ef   :  { %5753 = vst.msk [vmem:[#allocation5 + $0x9c] sm:$0xff] %vm1414_vm5, %v5751_v50  ;;  %v5750_v53 = vmax.f32 %v5746_v9, %v5748_v30  ;;  %v5137_v19 = vadd.f32 %v10729_v40, %v4601_v4  ;;  %v4603_v52 = vpop.f32.mrb[181].mxu1 }
 0x5f1   :  { %v5752_v63 = vmax.f32 %v5750_v53, 0.0  ;;  %5245 = vst.msk [vmem:[#allocation4 + $0x2d0] sm:$0xff] %vm1414_vm5, %v5137_v19  ;;  %v5918_v53 = vld [vmem:[%s10878_s4] sm:$0xff] }
 0x5f2   :  { %v4606_v42 = vpop.f32.mrb[182].mxu1 }
 0x5f3   :  { %5754 = vst.msk [vmem:[#allocation5 + $0xa4] sm:$0xf] %vm5285_vm11, %v5752_v63  ;;  %v5142_v12 = vadd.f32 %v10726_v23, %v4606_v42  ;;  %v4608_v61 = vpop.f32.mrb[183].mxu1  ;;  %v5755_v23 = vld [vmem:[#allocation4 + $0x2bc] sm:$0xff] }
 0x5f4   :  { %v5756_v18 = vld [vmem:[#allocation4 + $0x2c4] sm:$0x1f] }
 0x5f5   :  { %5246 = vst.msk [vmem:[#allocation4 + $0x2d8] sm:$0xff] %vm1414_vm5, %v5142_v12  ;;  %v5766_v7 = vrot.slane %v5756_v18, 1 }
 0x5f6   :  { %v4611_v51 = vpop.f32.mrb[184].mxu1  ;;  %v5817_v24 = vld [vmem:[#allocation5 + $0x98] sm:$0xff] }
 0x5f7   :  { %v5147_v60 = vadd.f32 %v10739_v11, %v4611_v51  ;;  %v4613_v57 = vpop.f32.mrb[185].mxu1  ;;  %v7318_v13 = vpack.c.bf16 %v5817_v24, %v5816_v21  ;;  %v5765_v11 = vrot.slane %v5755_v23, 1  ;;  %v5771_v28 = vmax.f32 %v5756_v18, %v5766_v7 }
 0x5f8   :  { %v5757_v40 = vld [vmem:[#allocation4 + $0x2c9] sm:$0xff]  ;;  %v5758_v38 = vld [vmem:[#allocation4 + $0x2d1] sm:$0x1f] }
 0x5f9   :  { %5247 = vst.msk [vmem:[#allocation4 + $0x2e0] sm:$0xff] %vm1414_vm5, %v5147_v60  ;;  %7319 = vmatpush1.bf16.msra.mxu0 %v7318_v13  ;;  %v5774_v2 = vrot.slane %v5757_v40, 1  ;;  %v5775_v5 = vrot.slane %v5758_v38, 1  ;;  %v5767_v41 = vsel %vm1591_vm6, %v5765_v11, %v5766_v7 }
 0x5fa   :  { %v4616_v39 = vpop.f32.mrb[186].mxu1  ;;  %7320 = vmatprep.subr.bf16.mxu0 %v7525_v0  ;;  %v5770_v15 = vmax.f32 %v5755_v23, %v5767_v41  ;;  %v5818_v45 = vld [vmem:[#allocation5 + $0xa0] sm:$0xff] }
 0x5fb   :  { %v5152_v20 = vadd.f32 %v10735_v29, %v4616_v39  ;;  %v4618_v1 = vpop.f32.mrb[187].mxu1  ;;  %v5776_v48 = vsel %vm1591_vm6, %v5774_v2, %v5775_v5  ;;  %v5780_v44 = vmax.f32 %v5758_v38, %v5775_v5 }
 0x5fc   :  { %v5779_v56 = vmax.f32 %v5757_v40, %v5776_v48  ;;  %v5759_v36 = vld [vmem:[#allocation4 + $0x2d6] sm:$0xff] }
 0x5fd   :  { %5249 = vst.msk [vmem:[#allocation4 + $0x2e8] sm:$0x3f] %vm5248_vm13, %v5152_v20  ;;  %v5782_v8 = vmax.f32 %v5771_v28, %v5780_v44 }
 0x5fe   :  { %v5781_v37 = vmax.f32 %v5770_v15, %v5779_v56 }
 0x600   :  { %v5760_v22 = vld [vmem:[#allocation4 + $0x2de] sm:$0xf] }
 0x604   :  { %v5761_v14 = vld [vmem:[#allocation4 + $0x2e2] sm:$0xff]  ;;  %v5762_v58 = vld [vmem:[#allocation4 + $0x2ea] sm:$0xf] }
 0x605   :  { %v5783_v33 = vmax.f32 %v5759_v36, %v5761_v14  ;;  %v5784_v29 = vmax.f32 %v5760_v22, %v5762_v58 }
 0x607   :  { %v5785_v25 = vmax.f32 %v5781_v37, %v5783_v33  ;;  %v5786_v59 = vmax.f32 %v5782_v8, %v5784_v29 }
 0x609   :  { %v5787_v34 = vmax.f32 %v5785_v25, 0.0  ;;  %v5788_v32 = vmax.f32 %v5786_v59, 0.0 }
 0x60b   :  { %5789 = vst.msk [vmem:[#allocation5 + $0xa8] sm:$0xff] %vm1414_vm5, %v5787_v34 }
 0x60c   :  { %5790 = vst.msk [vmem:[#allocation5 + $0xb0] sm:$0xf] %vm5285_vm11, %v5788_v32 }
 0x612   :  { %v5819_v10 = vld [vmem:[#allocation5 + $0xa8] sm:$0xff] }
 0x613   :  { %v7321_v31 = vpack.c.bf16 %v5819_v10, %v5818_v45  ;;  %v5820_v16 = vld [vmem:[#allocation5 + $0xb0] sm:$0x1f] }
 0x615   :  { %7322 = vmatpush1.bf16.msra.mxu0 %v7321_v31 }
 0x616   :  { %5879 = vmatprep.subr.mxu0 %v7527_v6 }
 0x619   :  { %6265 = vmatpush1.msk.msra.mxu0 %vm5831_vm14, %v5820_v16 }
 0x61a   :  { %5900 = vmatmul.mubr.f32.vlgmr.msra.gmra.mrb[128].mxu0 %v5792_v49  ;;  %7323 = vmatprep.subr.bf16.mxu0 %v7525_v0  ;;  %v7530_v0 = vmov 0  }
 0x61b   :  { %6267 = vmatprep.mubr.msk.f32.mxu0 %vm5821_vm12, %v5795_v54  ;;  %7520 = vset.pattern.permute.xlu0 %v7530_v0 }
 0x61c   :  { %5922 = vperm.xlu0 %7520, %v5919_v62  }
 0x61e   :  { %5905 = vmatmul.mubr.f32.gmra.mrb[130].mxu0 %v5794_v47 }
 0x61f   :  { %6268 = vmatprep.mubr.msk.f32.mxu0 %vm5821_vm12, %v5797_v3 }
 0x622   :  { %5910 = vmatmul.mubr.f32.gmra.mrb[132].mxu0 %v5796_v43 }
 0x623   :  { %7158 = vmatprep.mubr.msk.f32.mxu0 %vm7526_vm0, %v7527_v6 }
 0x69b   :  { %v5923_v19 = vpop.permute.xlu0 %5922 }
 0x6ed   :  { %v5901_v27 = vpop.f32.mrb[128].mxu0 }
 0x6ee   :  { %v5903_v55 = vpop.f32.mrb[129].mxu0  ;;  %v5915_v26 = vmax.f32 %v5901_v27, 0.0 }
 0x6f1   :  { %v5906_v17 = vpop.f32.mrb[130].mxu0 }
 0x6f2   :  { %v5916_v35 = vmax.f32 %v5906_v17, 0.0  ;;  %v5908_v46 = vpop.f32.mrb[131].mxu0 }
 0x6f4   :  { %v7324_v9 = vpack.c.bf16 %v5916_v35, %v5915_v26 }
 0x6f5   :  { %v5911_v50 = vpop.f32.mrb[132].mxu0 }
 0x6f6   :  { %7325 = vmatpush3.bf16.msra.mxu0 %v7324_v9  ;;  %v5917_v30 = vmax.f32 %v5911_v50, 0.0  ;;  %v5913_v4 = vpop.f32.mrb[133].mxu0 }
 0x6f7   :  { %7156 = vmatprep.subr.mxu0 %v7527_v6 }
 0x6fa   :  { %7157 = vmatpush3.msra.mxu0 %v5917_v30 }
 0x6fb   :  { %7159 = vmatmul.mubr.msk.f32.vlgmr.msra.gmra.mrb[134].mxu0 %vm5925_vm15, %v5918_v53 }
 0x7ce   :  { %v5995_v52 = vpop.f32.mrb[134].mxu0 }
 0x7cf   :  { %v5996_v63 = vadd.f32 %v5995_v52, %v5923_v19  ;;  %v7160_v42 = vpop.f32.mrb[135].mxu0 }
 0x7d1   :  { %v5999_v12 = vsel %vm1414_vm5, %v5996_v63, -inf }
 0x7d2   :  { %v6000_v61 = vrot.slane %v5999_v12, 4 }
 0x7d4   :  { %v6001_v51 = vmax.f32 %v5999_v12, %v6000_v61 }
 0x7d6   :  { %v6002_v21 = vrot.slane %v6001_v51, 2 }
 0x7d8   :  { %v6003_v24 = vmax.f32 %v6001_v51, %v6002_v21 }
 0x7da   :  { %v6004_v60 = vrot.slane %v6003_v24, 1 }
 0x7dc   :  { %v6005_v57 = vmax.f32 %v6003_v24, %v6004_v60 }
 0x7de   :  { %v6006_v6 = vsub.f32 %v5996_v63, %v6005_v57 }
 0x7e0   :  { %v6007_v13 = vmul.f32 1.442695, %v6006_v6 }
 0x7e2   :  { %7521 = vpow2.f32 %v6007_v13 }
 0x7ec   :  { %v7522_v40 = vpop.eup %7521 }
 0x7ed   :  { %v6009_v38 = vsel %vm1414_vm5, %v7522_v40, 0.0 }
 0x7ee   :  { %v6010_v18 = vrot.slane %v6009_v38, 4 }
 0x7f0   :  { %v6011_v2 = vadd.f32 %v6010_v18, %v6009_v38 }
 0x7f2   :  { %v6012_v5 = vrot.slane %v6011_v2, 2 }
 0x7f4   :  { %v6013_v39 = vadd.f32 %v6012_v5, %v6011_v2 }
 0x7f6   :  { %v6014_v23 = vrot.slane %v6013_v39, 1 }
 0x7f8   :  { %v6015_v20 = vadd.f32 %v6014_v23, %v6013_v39 }
 0x7fa   :  { %7523 = vlog2.f32 %v6015_v20 }
 0x804   :  { %v7524_v1 = vpop.eup %7523 }
 0x805   :  { %v6017_v7 = vmul.f32 0.6931472, %v7524_v1 }
 0x807   :  { %v6018_v11 = vsub.f32 %v6006_v6, %v6017_v7 }
 0x809   :  { %6019 = vst.msk [vmem:[%s10879_s6] sm:$0xff] %vm1414_vm5, %v6018_v11 }

</bundles_post_ra>
